<compile_context>
chip_gen: v7x
topology: tpu7x:2x2x1
jax: 0.10.0
libtpu: 0.0.40
codegen_flags: <defaults>
</compile_context>

<pallas_src>
import jax
import jax.numpy as jnp
from jax import lax
from jax.experimental import pallas as pl
from jax.experimental.pallas import tpu as pltpu


# --------------------------------------------------------------------------- #
# Kernel 1: bidirectional LSTM recurrence (time-major)
# --------------------------------------------------------------------------- #
def bilstm_recurrence_kernel(emb_ref,            # (T, B, E)   bf16
                             wih_ref,            # (E, 8H)     bf16  [fwd | bwd]
                             whh_ref,            # (2H, 4H)    bf16  [fwd ; bwd]
                             b_ref,              # (1, 8H)     f32   [fwd | bwd]
                             hf_out_ref,         # (T, B, H)   bf16
                             hb_out_ref,         # (T, B, H)   bf16
                             xg_scr):            # (T, B, 8H)  f32 VMEM scratch
    T, B, E = emb_ref.shape
    H = whh_ref.shape[1] // 4

    # One hoisted input projection for BOTH directions (bf16 MXU, f32 accumulate).
    emb_flat = emb_ref[...].reshape(T * B, E)
    xg_scr[...] = (jnp.dot(emb_flat, wih_ref[...],
                           preferred_element_type=jnp.float32)
                   + b_ref[...]).reshape(T, B, 8 * H)

    whh_blk = whh_ref[...]                          # (2H, 4H) bf16
    z_bh = jnp.zeros((B, H), jnp.bfloat16)          # hoisted off-diagonal zero block

    def step(s, carry):
        h, c = carry                                # (2B, H) f32 each: rows [fwd; bwd]
        t_f = s
        t_b = T - 1 - s

        hf16 = h[:B].astype(jnp.bfloat16)
        hb16 = h[B:].astype(jnp.bfloat16)
        # Block-diagonal [[hf, 0], [0, hb]]: one (2B,2H)@(2H,4H) dot covers both
        # directions' recurrent projections (K=256 = native MXU width on v6e/v7x).
        h_blk = jnp.concatenate(
            [jnp.concatenate([hf16, z_bh], axis=1),
             jnp.concatenate([z_bh, hb16], axis=1)], axis=0)      # (2B, 2H) bf16
        rec = jnp.dot(h_blk, whh_blk,
                      preferred_element_type=jnp.float32)         # (2B, 4H) f32

        xg_f = xg_scr[t_f]                                        # (B, 8H)
        xg_b = xg_scr[t_b]
        x_gates = jnp.concatenate([xg_f[:, :4 * H],
                                   xg_b[:, 4 * H:]], axis=0)      # (2B, 4H)

        g = x_gates + rec
        # PyTorch gate order i, f, g, o — all gate math kept in f32.
        i = jax.nn.sigmoid(g[:, 0 * H:1 * H])
        f = jax.nn.sigmoid(g[:, 1 * H:2 * H])
        gg = jnp.tanh(g[:, 2 * H:3 * H])
        o = jax.nn.sigmoid(g[:, 3 * H:4 * H])
        c_new = f * c + i * gg
        h_new = o * jnp.tanh(c_new)

        hf_out_ref[t_f] = h_new[:B].astype(jnp.bfloat16)
        hb_out_ref[t_b] = h_new[B:].astype(jnp.bfloat16)
        return h_new, c_new

    h0 = jnp.zeros((2 * B, H), jnp.float32)
    c0 = jnp.zeros((2 * B, H), jnp.float32)
    # T is static & small -> full unroll gives the scheduler cross-step visibility.
    lax.fori_loop(0, T, step, (h0, c0), unroll=True)


# --------------------------------------------------------------------------- #
# Kernel 2: output projection + softmax over the time axis, tiled over vocab,
#           stored directly batch-first (no XLA transpose afterwards).
# --------------------------------------------------------------------------- #
def projection_softmax_kernel(hf_ref, hb_ref,    # (T, B, H) bf16, resident across tiles
                              wf_ref, wb_ref,    # (H, Vt)   bf16
                              b_ref,             # (1, Vt)   f32
                              out_ref):          # (B, T, Vt) f32
    T, B, H = hf_ref.shape
    Vt = wf_ref.shape[1]

    hf = hf_ref[...].reshape(T * B, H)
    hb = hb_ref[...].reshape(T * B, H)
    # Two flattened 2D matmuls instead of concat + batched einsum (bf16 MXU, f32 acc).
    logits = (jnp.dot(hf, wf_ref[...], preferred_element_type=jnp.float32)
              + jnp.dot(hb, wb_ref[...], preferred_element_type=jnp.float32)
              + b_ref[...]).reshape(T, B, Vt)

    # Softmax over the time axis (axis 0, time-major) == PyTorch Softmax(dim=1).
    m = jnp.max(logits, axis=0, keepdims=True)
    e = jnp.exp(logits - m)
    denom = jnp.sum(e, axis=0, keepdims=True)
    probs = e * pl.reciprocal(denom, approx=False)        # exact normalization

    # In-VMEM T<->B swap (lanes untouched, sublane shuffle only): output leaves
    # the kernel already (B, T, Vt), removing the XLA transpose HBM round trip.
    for b in range(B):                                    # B is small & static
        out_ref[b] = probs[:, b, :]


# --------------------------------------------------------------------------- #
# Wrapper
# --------------------------------------------------------------------------- #
def _choose_v_tile(v_pad, cap=512):
    """Largest lane-aligned (128-multiple) tile <= cap that divides v_pad."""
    for cand in range(min(cap, v_pad), 127, -128):
        if v_pad % cand == 0:
            return cand
    return 128


def text_generator_forward(x_ids, params):
    """x_ids: (B, T) int32 token ids. Returns (B, T, V) softmax(dim=1) probs."""
    # Gather directly into time-major (T, B, E) and cast activations to bf16.
    emb_tm = jnp.take(params["embedding"], x_ids.T, axis=0).astype(jnp.bfloat16)
    T, B, E = emb_tm.shape
    H = params["whh_blk"].shape[1] // 4
    V = params["wlin_f"].shape[1]

    hf, hb = pl.pallas_call(
        bilstm_recurrence_kernel,
        out_shape=(jax.ShapeDtypeStruct((T, B, H), jnp.bfloat16),
                   jax.ShapeDtypeStruct((T, B, H), jnp.bfloat16)),
        scratch_shapes=[pltpu.VMEM((T, B, 8 * H), jnp.float32)],
    )(emb_tm, params["wih_cat"], params["whh_blk"], params["b_cat"])

    # Pad the vocab axis to a lane multiple: never fall back to a full-V block.
    v_pad = ((V + 127) // 128) * 128
    wf, wb, bl = params["wlin_f"], params["wlin_b"], params["blin"]
    if v_pad != V:
        pad = v_pad - V
        wf = jnp.pad(wf, ((0, 0), (0, pad)))
        wb = jnp.pad(wb, ((0, 0), (0, pad)))
        bl = jnp.pad(bl, ((0, 0), (0, pad)))
    tv = _choose_v_tile(v_pad)

    out_bt = pl.pallas_call(
        projection_softmax_kernel,
        out_shape=jax.ShapeDtypeStruct((B, T, v_pad), jnp.float32),
        grid=(v_pad // tv,),
        in_specs=[
            pl.BlockSpec((T, B, H), lambda j: (0, 0, 0)),   # hf resident across tiles
            pl.BlockSpec((T, B, H), lambda j: (0, 0, 0)),   # hb resident across tiles
            pl.BlockSpec((H, tv), lambda j: (0, j)),        # linear weight (fwd half)
            pl.BlockSpec((H, tv), lambda j: (0, j)),        # linear weight (bwd half)
            pl.BlockSpec((1, tv), lambda j: (0, j)),        # bias
        ],
        out_specs=pl.BlockSpec((B, T, tv), lambda j: (0, 0, j)),
        compiler_params=pltpu.CompilerParams(
            dimension_semantics=("parallel",)),
    )(hf, hb, wf, wb, bl)

    return out_bt[:, :, :V] if v_pad != V else out_bt


# --------------------------------------------------------------------------- #
# Parameters (mirrors PyTorch default inits; stored kernel-ready & packed)
# --------------------------------------------------------------------------- #
def init_params(key, vocab_size, embedding_dim, lstm_units):
    V, E, H = vocab_size, embedding_dim, lstm_units
    ks = jax.random.split(key, 12)

    def unif(k, shape, scale):
        return jax.random.uniform(k, shape, jnp.float32, -scale, scale)

    # nn.Embedding: N(0,1) init; padding_idx=0 row zeroed.
    emb = jax.random.normal(ks[0], (V, E), jnp.float32).at[0].set(0.0)

    s_lstm = 1.0 / (H ** 0.5)
    # Stored for x @ W: W_ih -> (E, 4H), W_hh -> (H, 4H); bias = b_ih + b_hh.
    wih_f = unif(ks[1], (E, 4 * H), s_lstm)
    whh_f = unif(ks[2], (H, 4 * H), s_lstm)
    b_f = unif(ks[3], (1, 4 * H), s_lstm) + unif(ks[4], (1, 4 * H), s_lstm)
    wih_b = unif(ks[5], (E, 4 * H), s_lstm)
    whh_b = unif(ks[6], (H, 4 * H), s_lstm)
    b_b = unif(ks[7], (1, 4 * H), s_lstm) + unif(ks[8], (1, 4 * H), s_lstm)

    s_lin = 1.0 / ((2 * H) ** 0.5)
    wlin_f = unif(ks[9], (H, V), s_lin)
    wlin_b = unif(ks[10], (H, V), s_lin)
    blin = unif(ks[11], (1, V), s_lin)

    return dict(
        embedding=emb,                                                   # f32
        wih_cat=jnp.concatenate([wih_f, wih_b], axis=1).astype(jnp.bfloat16),  # (E, 8H)
        whh_blk=jnp.concatenate([whh_f, whh_b], axis=0).astype(jnp.bfloat16),  # (2H, 4H)
        b_cat=jnp.concatenate([b_f, b_b], axis=1),                       # (1, 8H) f32
        wlin_f=wlin_f.astype(jnp.bfloat16),                              # (H, V)
        wlin_b=wlin_b.astype(jnp.bfloat16),                              # (H, V)
        blin=blin,                                                       # (1, V) f32
    )


# --------------------------------------------------------------------------- #
# Pure-JAX f32 reference (mirrors the PyTorch module) for correctness checking
# --------------------------------------------------------------------------- #
def text_generator_reference(x_ids, params):
    H = params["whh_blk"].shape[1] // 4
    wih = params["wih_cat"].astype(jnp.float32)
    whh = params["whh_blk"].astype(jnp.float32)
    b = params["b_cat"]
    wih_f, wih_b = wih[:, :4 * H], wih[:, 4 * H:]
    whh_f, whh_b = whh[:H], whh[H:]
    b_f, b_b = b[:, :4 * H], b[:, 4 * H:]

    emb = jnp.take(params["embedding"], x_ids, axis=0)                 # (B, T, E)
    B, T, E = emb.shape

    def run_direction(wih_d, whh_d, b_d, reverse):
        xs = jnp.einsum('bte,eg->tbg', emb, wih_d) + b_d               # (T, B, 4H)
        if reverse:
            xs = xs[::-1]

        def step(carry, x):
            h, c = carry
            g = x + h @ whh_d
            i = jax.nn.sigmoid(g[:, 0 * H:1 * H])
            f = jax.nn.sigmoid(g[:, 1 * H:2 * H])
            gg = jnp.tanh(g[:, 2 * H:3 * H])
            o = jax.nn.sigmoid(g[:, 3 * H:4 * H])
            c = f * c + i * gg
            h = o * jnp.tanh(c)
            return (h, c), h

        init = (jnp.zeros((B, H), jnp.float32), jnp.zeros((B, H), jnp.float32))
        _, hs = lax.scan(step, init, xs)                               # (T, B, H)
        if reverse:
            hs = hs[::-1]
        return jnp.transpose(hs, (1, 0, 2))                            # (B, T, H)

    hf = run_direction(wih_f, whh_f, b_f, False)
    hb = run_direction(wih_b, whh_b, b_b, True)
    logits = (hf @ params["wlin_f"].astype(jnp.float32)
              + hb @ params["wlin_b"].astype(jnp.float32)
              + params["blin"])
    return jax.nn.softmax(logits, axis=1)      # dim=1 == time axis (batch_first)


if __name__ == "__main__":
    # Small but MXU/lane-aligned shapes: E = H = 128, B = 8 (sublane multiple),
    # V = 384 (three lane-aligned vocab columns; single 384-wide tile).
    vocab_size, embedding_dim, lstm_units = 384, 128, 128
    batch, seq = 8, 16

    root = jax.random.PRNGKey(0)
    k_params, k_data = jax.random.split(root)

    params = init_params(k_params, vocab_size, embedding_dim, lstm_units)
    x = jax.random.randint(k_data, (batch, seq), 0, vocab_size, dtype=jnp.int32)

    fwd = jax.jit(text_generator_forward)
    probs = fwd(x, params)
    jax.block_until_ready(probs)

    assert probs.shape == (batch, seq, vocab_size)
    # Softmax(dim=1): sums over the sequence axis are ~1 (exact reciprocal).
    assert jnp.allclose(jnp.sum(probs, axis=1), 1.0, atol=1e-4)

    ref = text_generator_reference(x, params)
    max_diff = float(jnp.max(jnp.abs(probs - ref)))
    # bf16 MXU operands vs f32 reference: allow a slightly looser tolerance.
    assert max_diff < 1e-2, max_diff

    print("KERNEL_OK")
</pallas_src>

<mosaic_0001>
module attributes {stable_mosaic.version = 11 : i64} {
  func.func @projection_softmax_kernel(%arg0: i32, %arg1: memref<16x8x128xbf16, #tpu.memory_space<vmem>>, %arg2: memref<16x8x128xbf16, #tpu.memory_space<vmem>>, %arg3: memref<128x384xbf16, #tpu.memory_space<vmem>>, %arg4: memref<128x384xbf16, #tpu.memory_space<vmem>>, %arg5: memref<1x384xf32, #tpu.memory_space<vmem>>, %arg6: memref<8x16x384xf32, #tpu.memory_space<vmem>>) attributes {dimension_semantics = [#tpu.dimension_semantics<parallel>], iteration_bounds = array<i64: 1>, scalar_prefetch = 0 : i64, scratch_operands = 0 : i64, tpu.core_type = #tpu.core_type<tc>, window_params = [{pipeline_mode = #tpu.pipeline_mode<synchronous>, transform_indices = @transform_0, window_bounds = array<i64: 16, 8, 128>}, {pipeline_mode = #tpu.pipeline_mode<synchronous>, transform_indices = @transform_1, window_bounds = array<i64: 16, 8, 128>}, {transform_indices = @transform_2, window_bounds = array<i64: 128, 384>}, {transform_indices = @transform_3, window_bounds = array<i64: 128, 384>}, {transform_indices = @transform_4, window_bounds = array<i64: 1, 384>}, {transform_indices = @transform_5, window_bounds = array<i64: 8, 16, 384>}]} {
    %c0 = arith.constant 0 : index
    %c0_0 = arith.constant 0 : index
    %c0_1 = arith.constant 0 : index
    %0 = vector.load %arg1[%c0, %c0_0, %c0_1] : memref<16x8x128xbf16, #tpu.memory_space<vmem>>, vector<16x8x128xbf16>
    %1 = vector.shape_cast %0 : vector<16x8x128xbf16> to vector<128x128xbf16>
    %c0_2 = arith.constant 0 : index
    %c0_3 = arith.constant 0 : index
    %c0_4 = arith.constant 0 : index
    %2 = vector.load %arg2[%c0_2, %c0_3, %c0_4] : memref<16x8x128xbf16, #tpu.memory_space<vmem>>, vector<16x8x128xbf16>
    %3 = vector.shape_cast %2 : vector<16x8x128xbf16> to vector<128x128xbf16>
    %c0_5 = arith.constant 0 : index
    %c0_6 = arith.constant 0 : index
    %4 = vector.load %arg3[%c0_5, %c0_6] : memref<128x384xbf16, #tpu.memory_space<vmem>>, vector<128x384xbf16>
    %cst = arith.constant dense<0.000000e+00> : vector<128x384xf32>
    %5 = tpu.matmul %1, %4, %cst {dimension_numbers = #tpu.dot_dimension_numbers<[1], [0], [0], [1], [0, 0, 1, 1], [], []>} : vector<128x128xbf16>, vector<128x384xbf16>, vector<128x384xf32> -> vector<128x384xf32>
    %c0_7 = arith.constant 0 : index
    %c0_8 = arith.constant 0 : index
    %6 = vector.load %arg4[%c0_7, %c0_8] : memref<128x384xbf16, #tpu.memory_space<vmem>>, vector<128x384xbf16>
    %cst_9 = arith.constant dense<0.000000e+00> : vector<128x384xf32>
    %7 = tpu.matmul %3, %6, %cst_9 {dimension_numbers = #tpu.dot_dimension_numbers<[1], [0], [0], [1], [0, 0, 1, 1], [], []>} : vector<128x128xbf16>, vector<128x384xbf16>, vector<128x384xf32> -> vector<128x384xf32>
    %8 = arith.addf %5, %7 : vector<128x384xf32>
    %c0_10 = arith.constant 0 : index
    %c0_11 = arith.constant 0 : index
    %9 = vector.load %arg5[%c0_10, %c0_11] : memref<1x384xf32, #tpu.memory_space<vmem>>, vector<1x384xf32>
    %10 = vector.broadcast %9 : vector<1x384xf32> to vector<128x384xf32>
    %11 = arith.addf %8, %10 : vector<128x384xf32>
    %12 = vector.shape_cast %11 : vector<128x384xf32> to vector<16x8x384xf32>
    %cst_12 = arith.constant dense<0xFF800000> : vector<8x384xf32>
    %13 = vector.multi_reduction <maximumf>, %12, %cst_12 [0] : vector<16x8x384xf32> to vector<8x384xf32>
    %14 = vector.shape_cast %13 : vector<8x384xf32> to vector<1x8x384xf32>
    %15 = vector.broadcast %14 : vector<1x8x384xf32> to vector<16x8x384xf32>
    %16 = arith.subf %12, %15 : vector<16x8x384xf32>
    %17 = math.exp %16 : vector<16x8x384xf32>
    %cst_13 = arith.constant dense<0.000000e+00> : vector<8x384xf32>
    %18 = vector.multi_reduction <add>, %17, %cst_13 [0] : vector<16x8x384xf32> to vector<8x384xf32>
    %19 = vector.shape_cast %18 : vector<8x384xf32> to vector<1x8x384xf32>
    %20 = tpu.reciprocal %19 : vector<1x8x384xf32> -> vector<1x8x384xf32>
    %21 = vector.broadcast %20 : vector<1x8x384xf32> to vector<16x8x384xf32>
    %22 = arith.mulf %17, %21 : vector<16x8x384xf32>
    %23 = vector.extract_strided_slice %22 {offsets = [0, 0, 0], sizes = [16, 1, 384], strides = [1, 1, 1]} : vector<16x8x384xf32> to vector<16x1x384xf32>
    %24 = vector.shape_cast %23 : vector<16x1x384xf32> to vector<16x384xf32>
    %c0_14 = arith.constant 0 : index
    %c0_15 = arith.constant 0 : index
    %c0_16 = arith.constant 0 : index
    %25 = vector.load %arg6[%c0_14, %c0_15, %c0_16] : memref<8x16x384xf32, #tpu.memory_space<vmem>>, vector<1x16x384xf32>
    %26 = vector.shape_cast %25 : vector<1x16x384xf32> to vector<16x384xf32>
    %27 = vector.shape_cast %24 : vector<16x384xf32> to vector<1x16x384xf32>
    tpu.vector_store %arg6[%c0_14, %c0_15, %c0_16], %27 {strides = array<i32>} : memref<8x16x384xf32, #tpu.memory_space<vmem>>, vector<1x16x384xf32>,
    %28 = vector.extract_strided_slice %22 {offsets = [0, 1, 0], sizes = [16, 1, 384], strides = [1, 1, 1]} : vector<16x8x384xf32> to vector<16x1x384xf32>
    %29 = vector.shape_cast %28 : vector<16x1x384xf32> to vector<16x384xf32>
    %c1 = arith.constant 1 : index
    %c0_17 = arith.constant 0 : index
    %c0_18 = arith.constant 0 : index
    %30 = vector.load %arg6[%c1, %c0_17, %c0_18] : memref<8x16x384xf32, #tpu.memory_space<vmem>>, vector<1x16x384xf32>
    %31 = vector.shape_cast %30 : vector<1x16x384xf32> to vector<16x384xf32>
    %32 = vector.shape_cast %29 : vector<16x384xf32> to vector<1x16x384xf32>
    tpu.vector_store %arg6[%c1, %c0_17, %c0_18], %32 {strides = array<i32>} : memref<8x16x384xf32, #tpu.memory_space<vmem>>, vector<1x16x384xf32>,
    %33 = vector.extract_strided_slice %22 {offsets = [0, 2, 0], sizes = [16, 1, 384], strides = [1, 1, 1]} : vector<16x8x384xf32> to vector<16x1x384xf32>
    %34 = vector.shape_cast %33 : vector<16x1x384xf32> to vector<16x384xf32>
    %c2 = arith.constant 2 : index
    %c0_19 = arith.constant 0 : index
    %c0_20 = arith.constant 0 : index
    %35 = vector.load %arg6[%c2, %c0_19, %c0_20] : memref<8x16x384xf32, #tpu.memory_space<vmem>>, vector<1x16x384xf32>
    %36 = vector.shape_cast %35 : vector<1x16x384xf32> to vector<16x384xf32>
    %37 = vector.shape_cast %34 : vector<16x384xf32> to vector<1x16x384xf32>
    tpu.vector_store %arg6[%c2, %c0_19, %c0_20], %37 {strides = array<i32>} : memref<8x16x384xf32, #tpu.memory_space<vmem>>, vector<1x16x384xf32>,
    %38 = vector.extract_strided_slice %22 {offsets = [0, 3, 0], sizes = [16, 1, 384], strides = [1, 1, 1]} : vector<16x8x384xf32> to vector<16x1x384xf32>
    %39 = vector.shape_cast %38 : vector<16x1x384xf32> to vector<16x384xf32>
    %c3 = arith.constant 3 : index
    %c0_21 = arith.constant 0 : index
    %c0_22 = arith.constant 0 : index
    %40 = vector.load %arg6[%c3, %c0_21, %c0_22] : memref<8x16x384xf32, #tpu.memory_space<vmem>>, vector<1x16x384xf32>
    %41 = vector.shape_cast %40 : vector<1x16x384xf32> to vector<16x384xf32>
    %42 = vector.shape_cast %39 : vector<16x384xf32> to vector<1x16x384xf32>
    tpu.vector_store %arg6[%c3, %c0_21, %c0_22], %42 {strides = array<i32>} : memref<8x16x384xf32, #tpu.memory_space<vmem>>, vector<1x16x384xf32>,
    %43 = vector.extract_strided_slice %22 {offsets = [0, 4, 0], sizes = [16, 1, 384], strides = [1, 1, 1]} : vector<16x8x384xf32> to vector<16x1x384xf32>
    %44 = vector.shape_cast %43 : vector<16x1x384xf32> to vector<16x384xf32>
    %c4 = arith.constant 4 : index
    %c0_23 = arith.constant 0 : index
    %c0_24 = arith.constant 0 : index
    %45 = vector.load %arg6[%c4, %c0_23, %c0_24] : memref<8x16x384xf32, #tpu.memory_space<vmem>>, vector<1x16x384xf32>
    %46 = vector.shape_cast %45 : vector<1x16x384xf32> to vector<16x384xf32>
    %47 = vector.shape_cast %44 : vector<16x384xf32> to vector<1x16x384xf32>
    tpu.vector_store %arg6[%c4, %c0_23, %c0_24], %47 {strides = array<i32>} : memref<8x16x384xf32, #tpu.memory_space<vmem>>, vector<1x16x384xf32>,
    %48 = vector.extract_strided_slice %22 {offsets = [0, 5, 0], sizes = [16, 1, 384], strides = [1, 1, 1]} : vector<16x8x384xf32> to vector<16x1x384xf32>
    %49 = vector.shape_cast %48 : vector<16x1x384xf32> to vector<16x384xf32>
    %c5 = arith.constant 5 : index
    %c0_25 = arith.constant 0 : index
    %c0_26 = arith.constant 0 : index
    %50 = vector.load %arg6[%c5, %c0_25, %c0_26] : memref<8x16x384xf32, #tpu.memory_space<vmem>>, vector<1x16x384xf32>
    %51 = vector.shape_cast %50 : vector<1x16x384xf32> to vector<16x384xf32>
    %52 = vector.shape_cast %49 : vector<16x384xf32> to vector<1x16x384xf32>
    tpu.vector_store %arg6[%c5, %c0_25, %c0_26], %52 {strides = array<i32>} : memref<8x16x384xf32, #tpu.memory_space<vmem>>, vector<1x16x384xf32>,
    %53 = vector.extract_strided_slice %22 {offsets = [0, 6, 0], sizes = [16, 1, 384], strides = [1, 1, 1]} : vector<16x8x384xf32> to vector<16x1x384xf32>
    %54 = vector.shape_cast %53 : vector<16x1x384xf32> to vector<16x384xf32>
    %c6 = arith.constant 6 : index
    %c0_27 = arith.constant 0 : index
    %c0_28 = arith.constant 0 : index
    %55 = vector.load %arg6[%c6, %c0_27, %c0_28] : memref<8x16x384xf32, #tpu.memory_space<vmem>>, vector<1x16x384xf32>
    %56 = vector.shape_cast %55 : vector<1x16x384xf32> to vector<16x384xf32>
    %57 = vector.shape_cast %54 : vector<16x384xf32> to vector<1x16x384xf32>
    tpu.vector_store %arg6[%c6, %c0_27, %c0_28], %57 {strides = array<i32>} : memref<8x16x384xf32, #tpu.memory_space<vmem>>, vector<1x16x384xf32>,
    %58 = vector.extract_strided_slice %22 {offsets = [0, 7, 0], sizes = [16, 1, 384], strides = [1, 1, 1]} : vector<16x8x384xf32> to vector<16x1x384xf32>
    %59 = vector.shape_cast %58 : vector<16x1x384xf32> to vector<16x384xf32>
    %c7 = arith.constant 7 : index
    %c0_29 = arith.constant 0 : index
    %c0_30 = arith.constant 0 : index
    %60 = vector.load %arg6[%c7, %c0_29, %c0_30] : memref<8x16x384xf32, #tpu.memory_space<vmem>>, vector<1x16x384xf32>
    %61 = vector.shape_cast %60 : vector<1x16x384xf32> to vector<16x384xf32>
    %62 = vector.shape_cast %59 : vector<16x384xf32> to vector<1x16x384xf32>
    tpu.vector_store %arg6[%c7, %c0_29, %c0_30], %62 {strides = array<i32>} : memref<8x16x384xf32, #tpu.memory_space<vmem>>, vector<1x16x384xf32>,
    return
  }
  func.func @transform_0(%arg0: i32) -> (i32, i32, i32) {
    %c0_i32 = arith.constant 0 : i32
    %c0_i32_0 = arith.constant 0 : i32
    %c0_i32_1 = arith.constant 0 : i32
    %c0_i32_2 = arith.constant 0 : i32
    return %c0_i32, %c0_i32_0, %c0_i32_1 : i32, i32, i32
  }
  func.func @transform_1(%arg0: i32) -> (i32, i32, i32) {
    %c0_i32 = arith.constant 0 : i32
    %c0_i32_0 = arith.constant 0 : i32
    %c0_i32_1 = arith.constant 0 : i32
    %c0_i32_2 = arith.constant 0 : i32
    return %c0_i32, %c0_i32_0, %c0_i32_1 : i32, i32, i32
  }
  func.func @transform_2(%arg0: i32) -> (i32, i32) {
    %c0_i32 = arith.constant 0 : i32
    %c0_i32_0 = arith.constant 0 : i32
    return %c0_i32, %arg0 : i32, i32
  }
  func.func @transform_3(%arg0: i32) -> (i32, i32) {
    %c0_i32 = arith.constant 0 : i32
    %c0_i32_0 = arith.constant 0 : i32
    return %c0_i32, %arg0 : i32, i32
  }
  func.func @transform_4(%arg0: i32) -> (i32, i32) {
    %c0_i32 = arith.constant 0 : i32
    %c0_i32_0 = arith.constant 0 : i32
    return %c0_i32, %arg0 : i32, i32
  }
  func.func @transform_5(%arg0: i32) -> (i32, i32, i32) {
    %c0_i32 = arith.constant 0 : i32
    %c0_i32_0 = arith.constant 0 : i32
    %c0_i32_1 = arith.constant 0 : i32
    return %c0_i32, %c0_i32_0, %arg0 : i32, i32, i32
  }
}

module attributes {stable_mosaic.version = 11 : i64} {
  func.func @bilstm_recurrence_kernel(%arg0: memref<16x8x128xbf16, #tpu.memory_space<vmem>>, %arg1: memref<128x1024xbf16, #tpu.memory_space<vmem>>, %arg2: memref<256x512xbf16, #tpu.memory_space<vmem>>, %arg3: memref<1x1024xf32, #tpu.memory_space<vmem>>, %arg4: memref<16x8x128xbf16, #tpu.memory_space<vmem>>, %arg5: memref<16x8x128xbf16, #tpu.memory_space<vmem>>, %arg6: memref<16x8x1024xf32, #tpu.memory_space<vmem>>) attributes {dimension_semantics = [], scalar_prefetch = 0 : i64, scratch_operands = 1 : i64, tpu.core_type = #tpu.core_type<tc>} {
    %c0 = arith.constant 0 : index
    %c0_0 = arith.constant 0 : index
    %c0_1 = arith.constant 0 : index
    %0 = vector.load %arg0[%c0, %c0_0, %c0_1] : memref<16x8x128xbf16, #tpu.memory_space<vmem>>, vector<16x8x128xbf16>
    %1 = vector.shape_cast %0 : vector<16x8x128xbf16> to vector<128x128xbf16>
    %c0_2 = arith.constant 0 : index
    %c0_3 = arith.constant 0 : index
    %2 = vector.load %arg1[%c0_2, %c0_3] : memref<128x1024xbf16, #tpu.memory_space<vmem>>, vector<128x1024xbf16>
    %cst = arith.constant dense<0.000000e+00> : vector<128x1024xf32>
    %3 = tpu.matmul %1, %2, %cst {dimension_numbers = #tpu.dot_dimension_numbers<[1], [0], [0], [1], [0, 0, 1, 1], [], []>} : vector<128x128xbf16>, vector<128x1024xbf16>, vector<128x1024xf32> -> vector<128x1024xf32>
    %c0_4 = arith.constant 0 : index
    %c0_5 = arith.constant 0 : index
    %4 = vector.load %arg3[%c0_4, %c0_5] : memref<1x1024xf32, #tpu.memory_space<vmem>>, vector<1x1024xf32>
    %5 = vector.broadcast %4 : vector<1x1024xf32> to vector<128x1024xf32>
    %6 = arith.addf %3, %5 : vector<128x1024xf32>
    %7 = vector.shape_cast %6 : vector<128x1024xf32> to vector<16x8x1024xf32>
    %c0_6 = arith.constant 0 : index
    %c0_7 = arith.constant 0 : index
    %c0_8 = arith.constant 0 : index
    %8 = vector.load %arg6[%c0_6, %c0_7, %c0_8] : memref<16x8x1024xf32, #tpu.memory_space<vmem>>, vector<16x8x1024xf32>
    tpu.vector_store %arg6[%c0_6, %c0_7, %c0_8], %7 {strides = array<i32>} : memref<16x8x1024xf32, #tpu.memory_space<vmem>>, vector<16x8x1024xf32>,
    %c0_9 = arith.constant 0 : index
    %c0_10 = arith.constant 0 : index
    %9 = vector.load %arg2[%c0_9, %c0_10] : memref<256x512xbf16, #tpu.memory_space<vmem>>, vector<256x512xbf16>
    %cst_11 = arith.constant 0.000000e+00 : bf16
    %10 = vector.broadcast %cst_11 : bf16 to vector<8x128xbf16>
    %cst_12 = arith.constant 0.000000e+00 : f32
    %11 = vector.broadcast %cst_12 : f32 to vector<16x128xf32>
    %cst_13 = arith.constant 0.000000e+00 : f32
    %12 = vector.broadcast %cst_13 : f32 to vector<16x128xf32>
    %c0_i32 = arith.constant 0 : i32
    %c15_i32 = arith.constant 15 : i32
    %13 = arith.subi %c15_i32, %c0_i32 : i32
    %14 = vector.extract_strided_slice %11 {offsets = [0, 0], sizes = [8, 128], strides = [1, 1]} : vector<16x128xf32> to vector<8x128xf32>
    %15 = arith.truncf %14 : vector<8x128xf32> to vector<8x128xbf16>
    %16 = vector.extract_strided_slice %11 {offsets = [8, 0], sizes = [8, 128], strides = [1, 1]} : vector<16x128xf32> to vector<8x128xf32>
    %17 = arith.truncf %16 : vector<8x128xf32> to vector<8x128xbf16>
    %18 = tpu.concatenate %15, %10 in 1 : vector<8x128xbf16>, vector<8x128xbf16> -> vector<8x256xbf16>
    %19 = tpu.concatenate %10, %17 in 1 : vector<8x128xbf16>, vector<8x128xbf16> -> vector<8x256xbf16>
    %20 = tpu.concatenate %18, %19 in 0 : vector<8x256xbf16>, vector<8x256xbf16> -> vector<16x256xbf16>
    %cst_14 = arith.constant dense<0.000000e+00> : vector<16x512xf32>
    %21 = tpu.matmul %20, %9, %cst_14 {dimension_numbers = #tpu.dot_dimension_numbers<[1], [0], [0], [1], [0, 0, 1, 1], [], []>} : vector<16x256xbf16>, vector<256x512xbf16>, vector<16x512xf32> -> vector<16x512xf32>
    %22 = arith.index_cast %c0_i32 : i32 to index
    %c0_15 = arith.constant 0 : index
    %c0_16 = arith.constant 0 : index
    %23 = vector.load %arg6[%22, %c0_15, %c0_16] : memref<16x8x1024xf32, #tpu.memory_space<vmem>>, vector<1x8x1024xf32>
    %24 = vector.shape_cast %23 : vector<1x8x1024xf32> to vector<8x1024xf32>
    %25 = arith.index_cast %13 : i32 to index
    %c0_17 = arith.constant 0 : index
    %c0_18 = arith.constant 0 : index
    %26 = vector.load %arg6[%25, %c0_17, %c0_18] : memref<16x8x1024xf32, #tpu.memory_space<vmem>>, vector<1x8x1024xf32>
    %27 = vector.shape_cast %26 : vector<1x8x1024xf32> to vector<8x1024xf32>
    %28 = vector.extract_strided_slice %24 {offsets = [0, 0], sizes = [8, 512], strides = [1, 1]} : vector<8x1024xf32> to vector<8x512xf32>
    %29 = vector.extract_strided_slice %27 {offsets = [0, 512], sizes = [8, 512], strides = [1, 1]} : vector<8x1024xf32> to vector<8x512xf32>
    %30 = tpu.concatenate %28, %29 in 0 : vector<8x512xf32>, vector<8x512xf32> -> vector<16x512xf32>
    %31 = arith.addf %30, %21 : vector<16x512xf32>
    %32 = vector.extract_strided_slice %31 {offsets = [0, 0], sizes = [16, 128], strides = [1, 1]} : vector<16x512xf32> to vector<16x128xf32>
    %33 = arith.negf %32 : vector<16x128xf32>
    %34 = math.exp %33 : vector<16x128xf32>
    %cst_19 = arith.constant 1.000000e+00 : f32
    %35 = vector.broadcast %cst_19 : f32 to vector<16x128xf32>
    %36 = arith.addf %35, %34 : vector<16x128xf32>
    %37 = arith.divf %35, %36 : vector<16x128xf32>
    %38 = vector.extract_strided_slice %31 {offsets = [0, 128], sizes = [16, 128], strides = [1, 1]} : vector<16x512xf32> to vector<16x128xf32>
    %39 = arith.negf %38 : vector<16x128xf32>
    %40 = math.exp %39 : vector<16x128xf32>
    %cst_20 = arith.constant 1.000000e+00 : f32
    %41 = vector.broadcast %cst_20 : f32 to vector<16x128xf32>
    %42 = arith.addf %41, %40 : vector<16x128xf32>
    %43 = arith.divf %41, %42 : vector<16x128xf32>
    %44 = vector.extract_strided_slice %31 {offsets = [0, 256], sizes = [16, 128], strides = [1, 1]} : vector<16x512xf32> to vector<16x128xf32>
    %45 = math.tanh %44 : vector<16x128xf32>
    %46 = vector.extract_strided_slice %31 {offsets = [0, 384], sizes = [16, 128], strides = [1, 1]} : vector<16x512xf32> to vector<16x128xf32>
    %47 = arith.negf %46 : vector<16x128xf32>
    %48 = math.exp %47 : vector<16x128xf32>
    %cst_21 = arith.constant 1.000000e+00 : f32
    %49 = vector.broadcast %cst_21 : f32 to vector<16x128xf32>
    %50 = arith.addf %49, %48 : vector<16x128xf32>
    %51 = arith.divf %49, %50 : vector<16x128xf32>
    %52 = arith.mulf %43, %12 : vector<16x128xf32>
    %53 = arith.mulf %37, %45 : vector<16x128xf32>
    %54 = arith.addf %52, %53 : vector<16x128xf32>
    %55 = math.tanh %54 : vector<16x128xf32>
    %56 = arith.mulf %51, %55 : vector<16x128xf32>
    %57 = vector.extract_strided_slice %56 {offsets = [0, 0], sizes = [8, 128], strides = [1, 1]} : vector<16x128xf32> to vector<8x128xf32>
    %58 = arith.truncf %57 : vector<8x128xf32> to vector<8x128xbf16>
    %59 = arith.index_cast %c0_i32 : i32 to index
    %c0_22 = arith.constant 0 : index
    %c0_23 = arith.constant 0 : index
    %60 = vector.load %arg4[%59, %c0_22, %c0_23] : memref<16x8x128xbf16, #tpu.memory_space<vmem>>, vector<1x8x128xbf16>
    %61 = vector.shape_cast %60 : vector<1x8x128xbf16> to vector<8x128xbf16>
    %62 = vector.shape_cast %58 : vector<8x128xbf16> to vector<1x8x128xbf16>
    tpu.vector_store %arg4[%59, %c0_22, %c0_23], %62 {strides = array<i32>} : memref<16x8x128xbf16, #tpu.memory_space<vmem>>, vector<1x8x128xbf16>,
    %63 = vector.extract_strided_slice %56 {offsets = [8, 0], sizes = [8, 128], strides = [1, 1]} : vector<16x128xf32> to vector<8x128xf32>
    %64 = arith.truncf %63 : vector<8x128xf32> to vector<8x128xbf16>
    %65 = arith.index_cast %13 : i32 to index
    %c0_24 = arith.constant 0 : index
    %c0_25 = arith.constant 0 : index
    %66 = vector.load %arg5[%65, %c0_24, %c0_25] : memref<16x8x128xbf16, #tpu.memory_space<vmem>>, vector<1x8x128xbf16>
    %67 = vector.shape_cast %66 : vector<1x8x128xbf16> to vector<8x128xbf16>
    %68 = vector.shape_cast %64 : vector<8x128xbf16> to vector<1x8x128xbf16>
    tpu.vector_store %arg5[%65, %c0_24, %c0_25], %68 {strides = array<i32>} : memref<16x8x128xbf16, #tpu.memory_space<vmem>>, vector<1x8x128xbf16>,
    %c1_i32 = arith.constant 1 : i32
    %c15_i32_26 = arith.constant 15 : i32
    %69 = arith.subi %c15_i32_26, %c1_i32 : i32
    %70 = vector.extract_strided_slice %56 {offsets = [0, 0], sizes = [8, 128], strides = [1, 1]} : vector<16x128xf32> to vector<8x128xf32>
    %71 = arith.truncf %70 : vector<8x128xf32> to vector<8x128xbf16>
    %72 = vector.extract_strided_slice %56 {offsets = [8, 0], sizes = [8, 128], strides = [1, 1]} : vector<16x128xf32> to vector<8x128xf32>
    %73 = arith.truncf %72 : vector<8x128xf32> to vector<8x128xbf16>
    %74 = tpu.concatenate %71, %10 in 1 : vector<8x128xbf16>, vector<8x128xbf16> -> vector<8x256xbf16>
    %75 = tpu.concatenate %10, %73 in 1 : vector<8x128xbf16>, vector<8x128xbf16> -> vector<8x256xbf16>
    %76 = tpu.concatenate %74, %75 in 0 : vector<8x256xbf16>, vector<8x256xbf16> -> vector<16x256xbf16>
    %cst_27 = arith.constant dense<0.000000e+00> : vector<16x512xf32>
    %77 = tpu.matmul %76, %9, %cst_27 {dimension_numbers = #tpu.dot_dimension_numbers<[1], [0], [0], [1], [0, 0, 1, 1], [], []>} : vector<16x256xbf16>, vector<256x512xbf16>, vector<16x512xf32> -> vector<16x512xf32>
    %78 = arith.index_cast %c1_i32 : i32 to index
    %c0_28 = arith.constant 0 : index
    %c0_29 = arith.constant 0 : index
    %79 = vector.load %arg6[%78, %c0_28, %c0_29] : memref<16x8x1024xf32, #tpu.memory_space<vmem>>, vector<1x8x1024xf32>
    %80 = vector.shape_cast %79 : vector<1x8x1024xf32> to vector<8x1024xf32>
    %81 = arith.index_cast %69 : i32 to index
    %c0_30 = arith.constant 0 : index
    %c0_31 = arith.constant 0 : index
    %82 = vector.load %arg6[%81, %c0_30, %c0_31] : memref<16x8x1024xf32, #tpu.memory_space<vmem>>, vector<1x8x1024xf32>
    %83 = vector.shape_cast %82 : vector<1x8x1024xf32> to vector<8x1024xf32>
    %84 = vector.extract_strided_slice %80 {offsets = [0, 0], sizes = [8, 512], strides = [1, 1]} : vector<8x1024xf32> to vector<8x512xf32>
    %85 = vector.extract_strided_slice %83 {offsets = [0, 512], sizes = [8, 512], strides = [1, 1]} : vector<8x1024xf32> to vector<8x512xf32>
    %86 = tpu.concatenate %84, %85 in 0 : vector<8x512xf32>, vector<8x512xf32> -> vector<16x512xf32>
    %87 = arith.addf %86, %77 : vector<16x512xf32>
    %88 = vector.extract_strided_slice %87 {offsets = [0, 0], sizes = [16, 128], strides = [1, 1]} : vector<16x512xf32> to vector<16x128xf32>
    %89 = arith.negf %88 : vector<16x128xf32>
    %90 = math.exp %89 : vector<16x128xf32>
    %cst_32 = arith.constant 1.000000e+00 : f32
    %91 = vector.broadcast %cst_32 : f32 to vector<16x128xf32>
    %92 = arith.addf %91, %90 : vector<16x128xf32>
    %93 = arith.divf %91, %92 : vector<16x128xf32>
    %94 = vector.extract_strided_slice %87 {offsets = [0, 128], sizes = [16, 128], strides = [1, 1]} : vector<16x512xf32> to vector<16x128xf32>
    %95 = arith.negf %94 : vector<16x128xf32>
    %96 = math.exp %95 : vector<16x128xf32>
    %cst_33 = arith.constant 1.000000e+00 : f32
    %97 = vector.broadcast %cst_33 : f32 to vector<16x128xf32>
    %98 = arith.addf %97, %96 : vector<16x128xf32>
    %99 = arith.divf %97, %98 : vector<16x128xf32>
    %100 = vector.extract_strided_slice %87 {offsets = [0, 256], sizes = [16, 128], strides = [1, 1]} : vector<16x512xf32> to vector<16x128xf32>
    %101 = math.tanh %100 : vector<16x128xf32>
    %102 = vector.extract_strided_slice %87 {offsets = [0, 384], sizes = [16, 128], strides = [1, 1]} : vector<16x512xf32> to vector<16x128xf32>
    %103 = arith.negf %102 : vector<16x128xf32>
    %104 = math.exp %103 : vector<16x128xf32>
    %cst_34 = arith.constant 1.000000e+00 : f32
    %105 = vector.broadcast %cst_34 : f32 to vector<16x128xf32>
    %106 = arith.addf %105, %104 : vector<16x128xf32>
    %107 = arith.divf %105, %106 : vector<16x128xf32>
    %108 = arith.mulf %99, %54 : vector<16x128xf32>
    %109 = arith.mulf %93, %101 : vector<16x128xf32>
    %110 = arith.addf %108, %109 : vector<16x128xf32>
    %111 = math.tanh %110 : vector<16x128xf32>
    %112 = arith.mulf %107, %111 : vector<16x128xf32>
    %113 = vector.extract_strided_slice %112 {offsets = [0, 0], sizes = [8, 128], strides = [1, 1]} : vector<16x128xf32> to vector<8x128xf32>
    %114 = arith.truncf %113 : vector<8x128xf32> to vector<8x128xbf16>
    %115 = arith.index_cast %c1_i32 : i32 to index
    %c0_35 = arith.constant 0 : index
    %c0_36 = arith.constant 0 : index
    %116 = vector.load %arg4[%115, %c0_35, %c0_36] : memref<16x8x128xbf16, #tpu.memory_space<vmem>>, vector<1x8x128xbf16>
    %117 = vector.shape_cast %116 : vector<1x8x128xbf16> to vector<8x128xbf16>
    %118 = vector.shape_cast %114 : vector<8x128xbf16> to vector<1x8x128xbf16>
    tpu.vector_store %arg4[%115, %c0_35, %c0_36], %118 {strides = array<i32>} : memref<16x8x128xbf16, #tpu.memory_space<vmem>>, vector<1x8x128xbf16>,
    %119 = vector.extract_strided_slice %112 {offsets = [8, 0], sizes = [8, 128], strides = [1, 1]} : vector<16x128xf32> to vector<8x128xf32>
    %120 = arith.truncf %119 : vector<8x128xf32> to vector<8x128xbf16>
    %121 = arith.index_cast %69 : i32 to index
    %c0_37 = arith.constant 0 : index
    %c0_38 = arith.constant 0 : index
    %122 = vector.load %arg5[%121, %c0_37, %c0_38] : memref<16x8x128xbf16, #tpu.memory_space<vmem>>, vector<1x8x128xbf16>
    %123 = vector.shape_cast %122 : vector<1x8x128xbf16> to vector<8x128xbf16>
    %124 = vector.shape_cast %120 : vector<8x128xbf16> to vector<1x8x128xbf16>
    tpu.vector_store %arg5[%121, %c0_37, %c0_38], %124 {strides = array<i32>} : memref<16x8x128xbf16, #tpu.memory_space<vmem>>, vector<1x8x128xbf16>,
    %c2_i32 = arith.constant 2 : i32
    %c15_i32_39 = arith.constant 15 : i32
    %125 = arith.subi %c15_i32_39, %c2_i32 : i32
    %126 = vector.extract_strided_slice %112 {offsets = [0, 0], sizes = [8, 128], strides = [1, 1]} : vector<16x128xf32> to vector<8x128xf32>
    %127 = arith.truncf %126 : vector<8x128xf32> to vector<8x128xbf16>
    %128 = vector.extract_strided_slice %112 {offsets = [8, 0], sizes = [8, 128], strides = [1, 1]} : vector<16x128xf32> to vector<8x128xf32>
    %129 = arith.truncf %128 : vector<8x128xf32> to vector<8x128xbf16>
    %130 = tpu.concatenate %127, %10 in 1 : vector<8x128xbf16>, vector<8x128xbf16> -> vector<8x256xbf16>
    %131 = tpu.concatenate %10, %129 in 1 : vector<8x128xbf16>, vector<8x128xbf16> -> vector<8x256xbf16>
    %132 = tpu.concatenate %130, %131 in 0 : vector<8x256xbf16>, vector<8x256xbf16> -> vector<16x256xbf16>
    %cst_40 = arith.constant dense<0.000000e+00> : vector<16x512xf32>
    %133 = tpu.matmul %132, %9, %cst_40 {dimension_numbers = #tpu.dot_dimension_numbers<[1], [0], [0], [1], [0, 0, 1, 1], [], []>} : vector<16x256xbf16>, vector<256x512xbf16>, vector<16x512xf32> -> vector<16x512xf32>
    %134 = arith.index_cast %c2_i32 : i32 to index
    %c0_41 = arith.constant 0 : index
    %c0_42 = arith.constant 0 : index
    %135 = vector.load %arg6[%134, %c0_41, %c0_42] : memref<16x8x1024xf32, #tpu.memory_space<vmem>>, vector<1x8x1024xf32>
    %136 = vector.shape_cast %135 : vector<1x8x1024xf32> to vector<8x1024xf32>
    %137 = arith.index_cast %125 : i32 to index
    %c0_43 = arith.constant 0 : index
    %c0_44 = arith.constant 0 : index
    %138 = vector.load %arg6[%137, %c0_43, %c0_44] : memref<16x8x1024xf32, #tpu.memory_space<vmem>>, vector<1x8x1024xf32>
    %139 = vector.shape_cast %138 : vector<1x8x1024xf32> to vector<8x1024xf32>
    %140 = vector.extract_strided_slice %136 {offsets = [0, 0], sizes = [8, 512], strides = [1, 1]} : vector<8x1024xf32> to vector<8x512xf32>
    %141 = vector.extract_strided_slice %139 {offsets = [0, 512], sizes = [8, 512], strides = [1, 1]} : vector<8x1024xf32> to vector<8x512xf32>
    %142 = tpu.concatenate %140, %141 in 0 : vector<8x512xf32>, vector<8x512xf32> -> vector<16x512xf32>
    %143 = arith.addf %142, %133 : vector<16x512xf32>
    %144 = vector.extract_strided_slice %143 {offsets = [0, 0], sizes = [16, 128], strides = [1, 1]} : vector<16x512xf32> to vector<16x128xf32>
    %145 = arith.negf %144 : vector<16x128xf32>
    %146 = math.exp %145 : vector<16x128xf32>
    %cst_45 = arith.constant 1.000000e+00 : f32
    %147 = vector.broadcast %cst_45 : f32 to vector<16x128xf32>
    %148 = arith.addf %147, %146 : vector<16x128xf32>
    %149 = arith.divf %147, %148 : vector<16x128xf32>
    %150 = vector.extract_strided_slice %143 {offsets = [0, 128], sizes = [16, 128], strides = [1, 1]} : vector<16x512xf32> to vector<16x128xf32>
    %151 = arith.negf %150 : vector<16x128xf32>
    %152 = math.exp %151 : vector<16x128xf32>
    %cst_46 = arith.constant 1.000000e+00 : f32
    %153 = vector.broadcast %cst_46 : f32 to vector<16x128xf32>
    %154 = arith.addf %153, %152 : vector<16x128xf32>
    %155 = arith.divf %153, %154 : vector<16x128xf32>
    %156 = vector.extract_strided_slice %143 {offsets = [0, 256], sizes = [16, 128], strides = [1, 1]} : vector<16x512xf32> to vector<16x128xf32>
    %157 = math.tanh %156 : vector<16x128xf32>
    %158 = vector.extract_strided_slice %143 {offsets = [0, 384], sizes = [16, 128], strides = [1, 1]} : vector<16x512xf32> to vector<16x128xf32>
    %159 = arith.negf %158 : vector<16x128xf32>
    %160 = math.exp %159 : vector<16x128xf32>
    %cst_47 = arith.constant 1.000000e+00 : f32
    %161 = vector.broadcast %cst_47 : f32 to vector<16x128xf32>
    %162 = arith.addf %161, %160 : vector<16x128xf32>
    %163 = arith.divf %161, %162 : vector<16x128xf32>
    %164 = arith.mulf %155, %110 : vector<16x128xf32>
    %165 = arith.mulf %149, %157 : vector<16x128xf32>
    %166 = arith.addf %164, %165 : vector<16x128xf32>
    %167 = math.tanh %166 : vector<16x128xf32>
    %168 = arith.mulf %163, %167 : vector<16x128xf32>
    %169 = vector.extract_strided_slice %168 {offsets = [0, 0], sizes = [8, 128], strides = [1, 1]} : vector<16x128xf32> to vector<8x128xf32>
    %170 = arith.truncf %169 : vector<8x128xf32> to vector<8x128xbf16>
    %171 = arith.index_cast %c2_i32 : i32 to index
    %c0_48 = arith.constant 0 : index
    %c0_49 = arith.constant 0 : index
    %172 = vector.load %arg4[%171, %c0_48, %c0_49] : memref<16x8x128xbf16, #tpu.memory_space<vmem>>, vector<1x8x128xbf16>
    %173 = vector.shape_cast %172 : vector<1x8x128xbf16> to vector<8x128xbf16>
    %174 = vector.shape_cast %170 : vector<8x128xbf16> to vector<1x8x128xbf16>
    tpu.vector_store %arg4[%171, %c0_48, %c0_49], %174 {strides = array<i32>} : memref<16x8x128xbf16, #tpu.memory_space<vmem>>, vector<1x8x128xbf16>,
    %175 = vector.extract_strided_slice %168 {offsets = [8, 0], sizes = [8, 128], strides = [1, 1]} : vector<16x128xf32> to vector<8x128xf32>
    %176 = arith.truncf %175 : vector<8x128xf32> to vector<8x128xbf16>
    %177 = arith.index_cast %125 : i32 to index
    %c0_50 = arith.constant 0 : index
    %c0_51 = arith.constant 0 : index
    %178 = vector.load %arg5[%177, %c0_50, %c0_51] : memref<16x8x128xbf16, #tpu.memory_space<vmem>>, vector<1x8x128xbf16>
    %179 = vector.shape_cast %178 : vector<1x8x128xbf16> to vector<8x128xbf16>
    %180 = vector.shape_cast %176 : vector<8x128xbf16> to vector<1x8x128xbf16>
    tpu.vector_store %arg5[%177, %c0_50, %c0_51], %180 {strides = array<i32>} : memref<16x8x128xbf16, #tpu.memory_space<vmem>>, vector<1x8x128xbf16>,
    %c3_i32 = arith.constant 3 : i32
    %c15_i32_52 = arith.constant 15 : i32
    %181 = arith.subi %c15_i32_52, %c3_i32 : i32
    %182 = vector.extract_strided_slice %168 {offsets = [0, 0], sizes = [8, 128], strides = [1, 1]} : vector<16x128xf32> to vector<8x128xf32>
    %183 = arith.truncf %182 : vector<8x128xf32> to vector<8x128xbf16>
    %184 = vector.extract_strided_slice %168 {offsets = [8, 0], sizes = [8, 128], strides = [1, 1]} : vector<16x128xf32> to vector<8x128xf32>
    %185 = arith.truncf %184 : vector<8x128xf32> to vector<8x128xbf16>
    %186 = tpu.concatenate %183, %10 in 1 : vector<8x128xbf16>, vector<8x128xbf16> -> vector<8x256xbf16>
    %187 = tpu.concatenate %10, %185 in 1 : vector<8x128xbf16>, vector<8x128xbf16> -> vector<8x256xbf16>
    %188 = tpu.concatenate %186, %187 in 0 : vector<8x256xbf16>, vector<8x256xbf16> -> vector<16x256xbf16>
    %cst_53 = arith.constant dense<0.000000e+00> : vector<16x512xf32>
    %189 = tpu.matmul %188, %9, %cst_53 {dimension_numbers = #tpu.dot_dimension_numbers<[1], [0], [0], [1], [0, 0, 1, 1], [], []>} : vector<16x256xbf16>, vector<256x512xbf16>, vector<16x512xf32> -> vector<16x512xf32>
    %190 = arith.index_cast %c3_i32 : i32 to index
    %c0_54 = arith.constant 0 : index
    %c0_55 = arith.constant 0 : index
    %191 = vector.load %arg6[%190, %c0_54, %c0_55] : memref<16x8x1024xf32, #tpu.memory_space<vmem>>, vector<1x8x1024xf32>
    %192 = vector.shape_cast %191 : vector<1x8x1024xf32> to vector<8x1024xf32>
    %193 = arith.index_cast %181 : i32 to index
    %c0_56 = arith.constant 0 : index
    %c0_57 = arith.constant 0 : index
    %194 = vector.load %arg6[%193, %c0_56, %c0_57] : memref<16x8x1024xf32, #tpu.memory_space<vmem>>, vector<1x8x1024xf32>
    %195 = vector.shape_cast %194 : vector<1x8x1024xf32> to vector<8x1024xf32>
    %196 = vector.extract_strided_slice %192 {offsets = [0, 0], sizes = [8, 512], strides = [1, 1]} : vector<8x1024xf32> to vector<8x512xf32>
    %197 = vector.extract_strided_slice %195 {offsets = [0, 512], sizes = [8, 512], strides = [1, 1]} : vector<8x1024xf32> to vector<8x512xf32>
    %198 = tpu.concatenate %196, %197 in 0 : vector<8x512xf32>, vector<8x512xf32> -> vector<16x512xf32>
    %199 = arith.addf %198, %189 : vector<16x512xf32>
    %200 = vector.extract_strided_slice %199 {offsets = [0, 0], sizes = [16, 128], strides = [1, 1]} : vector<16x512xf32> to vector<16x128xf32>
    %201 = arith.negf %200 : vector<16x128xf32>
    %202 = math.exp %201 : vector<16x128xf32>
    %cst_58 = arith.constant 1.000000e+00 : f32
    %203 = vector.broadcast %cst_58 : f32 to vector<16x128xf32>
    %204 = arith.addf %203, %202 : vector<16x128xf32>
    %205 = arith.divf %203, %204 : vector<16x128xf32>
    %206 = vector.extract_strided_slice %199 {offsets = [0, 128], sizes = [16, 128], strides = [1, 1]} : vector<16x512xf32> to vector<16x128xf32>
    %207 = arith.negf %206 : vector<16x128xf32>
    %208 = math.exp %207 : vector<16x128xf32>
    %cst_59 = arith.constant 1.000000e+00 : f32
    %209 = vector.broadcast %cst_59 : f32 to vector<16x128xf32>
    %210 = arith.addf %209, %208 : vector<16x128xf32>
    %211 = arith.divf %209, %210 : vector<16x128xf32>
    %212 = vector.extract_strided_slice %199 {offsets = [0, 256], sizes = [16, 128], strides = [1, 1]} : vector<16x512xf32> to vector<16x128xf32>
    %213 = math.tanh %212 : vector<16x128xf32>
    %214 = vector.extract_strided_slice %199 {offsets = [0, 384], sizes = [16, 128], strides = [1, 1]} : vector<16x512xf32> to vector<16x128xf32>
    %215 = arith.negf %214 : vector<16x128xf32>
    %216 = math.exp %215 : vector<16x128xf32>
    %cst_60 = arith.constant 1.000000e+00 : f32
    %217 = vector.broadcast %cst_60 : f32 to vector<16x128xf32>
    %218 = arith.addf %217, %216 : vector<16x128xf32>
    %219 = arith.divf %217, %218 : vector<16x128xf32>
    %220 = arith.mulf %211, %166 : vector<16x128xf32>
    %221 = arith.mulf %205, %213 : vector<16x128xf32>
    %222 = arith.addf %220, %221 : vector<16x128xf32>
    %223 = math.tanh %222 : vector<16x128xf32>
    %224 = arith.mulf %219, %223 : vector<16x128xf32>
    %225 = vector.extract_strided_slice %224 {offsets = [0, 0], sizes = [8, 128], strides = [1, 1]} : vector<16x128xf32> to vector<8x128xf32>
    %226 = arith.truncf %225 : vector<8x128xf32> to vector<8x128xbf16>
    %227 = arith.index_cast %c3_i32 : i32 to index
    %c0_61 = arith.constant 0 : index
    %c0_62 = arith.constant 0 : index
    %228 = vector.load %arg4[%227, %c0_61, %c0_62] : memref<16x8x128xbf16, #tpu.memory_space<vmem>>, vector<1x8x128xbf16>
    %229 = vector.shape_cast %228 : vector<1x8x128xbf16> to vector<8x128xbf16>
    %230 = vector.shape_cast %226 : vector<8x128xbf16> to vector<1x8x128xbf16>
    tpu.vector_store %arg4[%227, %c0_61, %c0_62], %230 {strides = array<i32>} : memref<16x8x128xbf16, #tpu.memory_space<vmem>>, vector<1x8x128xbf16>,
    %231 = vector.extract_strided_slice %224 {offsets = [8, 0], sizes = [8, 128], strides = [1, 1]} : vector<16x128xf32> to vector<8x128xf32>
    %232 = arith.truncf %231 : vector<8x128xf32> to vector<8x128xbf16>
    %233 = arith.index_cast %181 : i32 to index
    %c0_63 = arith.constant 0 : index
    %c0_64 = arith.constant 0 : index
    %234 = vector.load %arg5[%233, %c0_63, %c0_64] : memref<16x8x128xbf16, #tpu.memory_space<vmem>>, vector<1x8x128xbf16>
    %235 = vector.shape_cast %234 : vector<1x8x128xbf16> to vector<8x128xbf16>
    %236 = vector.shape_cast %232 : vector<8x128xbf16> to vector<1x8x128xbf16>
    tpu.vector_store %arg5[%233, %c0_63, %c0_64], %236 {strides = array<i32>} : memref<16x8x128xbf16, #tpu.memory_space<vmem>>, vector<1x8x128xbf16>,
    %c4_i32 = arith.constant 4 : i32
    %c15_i32_65 = arith.constant 15 : i32
    %237 = arith.subi %c15_i32_65, %c4_i32 : i32
    %238 = vector.extract_strided_slice %224 {offsets = [0, 0], sizes = [8, 128], strides = [1, 1]} : vector<16x128xf32> to vector<8x128xf32>
    %239 = arith.truncf %238 : vector<8x128xf32> to vector<8x128xbf16>
    %240 = vector.extract_strided_slice %224 {offsets = [8, 0], sizes = [8, 128], strides = [1, 1]} : vector<16x128xf32> to vector<8x128xf32>
    %241 = arith.truncf %240 : vector<8x128xf32> to vector<8x128xbf16>
    %242 = tpu.concatenate %239, %10 in 1 : vector<8x128xbf16>, vector<8x128xbf16> -> vector<8x256xbf16>
    %243 = tpu.concatenate %10, %241 in 1 : vector<8x128xbf16>, vector<8x128xbf16> -> vector<8x256xbf16>
    %244 = tpu.concatenate %242, %243 in 0 : vector<8x256xbf16>, vector<8x256xbf16> -> vector<16x256xbf16>
    %cst_66 = arith.constant dense<0.000000e+00> : vector<16x512xf32>
    %245 = tpu.matmul %244, %9, %cst_66 {dimension_numbers = #tpu.dot_dimension_numbers<[1], [0], [0], [1], [0, 0, 1, 1], [], []>} : vector<16x256xbf16>, vector<256x512xbf16>, vector<16x512xf32> -> vector<16x512xf32>
    %246 = arith.index_cast %c4_i32 : i32 to index
    %c0_67 = arith.constant 0 : index
    %c0_68 = arith.constant 0 : index
    %247 = vector.load %arg6[%246, %c0_67, %c0_68] : memref<16x8x1024xf32, #tpu.memory_space<vmem>>, vector<1x8x1024xf32>
    %248 = vector.shape_cast %247 : vector<1x8x1024xf32> to vector<8x1024xf32>
    %249 = arith.index_cast %237 : i32 to index
    %c0_69 = arith.constant 0 : index
    %c0_70 = arith.constant 0 : index
    %250 = vector.load %arg6[%249, %c0_69, %c0_70] : memref<16x8x1024xf32, #tpu.memory_space<vmem>>, vector<1x8x1024xf32>
    %251 = vector.shape_cast %250 : vector<1x8x1024xf32> to vector<8x1024xf32>
    %252 = vector.extract_strided_slice %248 {offsets = [0, 0], sizes = [8, 512], strides = [1, 1]} : vector<8x1024xf32> to vector<8x512xf32>
    %253 = vector.extract_strided_slice %251 {offsets = [0, 512], sizes = [8, 512], strides = [1, 1]} : vector<8x1024xf32> to vector<8x512xf32>
    %254 = tpu.concatenate %252, %253 in 0 : vector<8x512xf32>, vector<8x512xf32> -> vector<16x512xf32>
    %255 = arith.addf %254, %245 : vector<16x512xf32>
    %256 = vector.extract_strided_slice %255 {offsets = [0, 0], sizes = [16, 128], strides = [1, 1]} : vector<16x512xf32> to vector<16x128xf32>
    %257 = arith.negf %256 : vector<16x128xf32>
    %258 = math.exp %257 : vector<16x128xf32>
    %cst_71 = arith.constant 1.000000e+00 : f32
    %259 = vector.broadcast %cst_71 : f32 to vector<16x128xf32>
    %260 = arith.addf %259, %258 : vector<16x128xf32>
    %261 = arith.divf %259, %260 : vector<16x128xf32>
    %262 = vector.extract_strided_slice %255 {offsets = [0, 128], sizes = [16, 128], strides = [1, 1]} : vector<16x512xf32> to vector<16x128xf32>
    %263 = arith.negf %262 : vector<16x128xf32>
    %264 = math.exp %263 : vector<16x128xf32>
    %cst_72 = arith.constant 1.000000e+00 : f32
    %265 = vector.broadcast %cst_72 : f32 to vector<16x128xf32>
    %266 = arith.addf %265, %264 : vector<16x128xf32>
    %267 = arith.divf %265, %266 : vector<16x128xf32>
    %268 = vector.extract_strided_slice %255 {offsets = [0, 256], sizes = [16, 128], strides = [1, 1]} : vector<16x512xf32> to vector<16x128xf32>
    %269 = math.tanh %268 : vector<16x128xf32>
    %270 = vector.extract_strided_slice %255 {offsets = [0, 384], sizes = [16, 128], strides = [1, 1]} : vector<16x512xf32> to vector<16x128xf32>
    %271 = arith.negf %270 : vector<16x128xf32>
    %272 = math.exp %271 : vector<16x128xf32>
    %cst_73 = arith.constant 1.000000e+00 : f32
    %273 = vector.broadcast %cst_73 : f32 to vector<16x128xf32>
    %274 = arith.addf %273, %272 : vector<16x128xf32>
    %275 = arith.divf %273, %274 : vector<16x128xf32>
    %276 = arith.mulf %267, %222 : vector<16x128xf32>
    %277 = arith.mulf %261, %269 : vector<16x128xf32>
    %278 = arith.addf %276, %277 : vector<16x128xf32>
    %279 = math.tanh %278 : vector<16x128xf32>
    %280 = arith.mulf %275, %279 : vector<16x128xf32>
    %281 = vector.extract_strided_slice %280 {offsets = [0, 0], sizes = [8, 128], strides = [1, 1]} : vector<16x128xf32> to vector<8x128xf32>
    %282 = arith.truncf %281 : vector<8x128xf32> to vector<8x128xbf16>
    %283 = arith.index_cast %c4_i32 : i32 to index
    %c0_74 = arith.constant 0 : index
    %c0_75 = arith.constant 0 : index
    %284 = vector.load %arg4[%283, %c0_74, %c0_75] : memref<16x8x128xbf16, #tpu.memory_space<vmem>>, vector<1x8x128xbf16>
    %285 = vector.shape_cast %284 : vector<1x8x128xbf16> to vector<8x128xbf16>
    %286 = vector.shape_cast %282 : vector<8x128xbf16> to vector<1x8x128xbf16>
    tpu.vector_store %arg4[%283, %c0_74, %c0_75], %286 {strides = array<i32>} : memref<16x8x128xbf16, #tpu.memory_space<vmem>>, vector<1x8x128xbf16>,
    %287 = vector.extract_strided_slice %280 {offsets = [8, 0], sizes = [8, 128], strides = [1, 1]} : vector<16x128xf32> to vector<8x128xf32>
    %288 = arith.truncf %287 : vector<8x128xf32> to vector<8x128xbf16>
    %289 = arith.index_cast %237 : i32 to index
    %c0_76 = arith.constant 0 : index
    %c0_77 = arith.constant 0 : index
    %290 = vector.load %arg5[%289, %c0_76, %c0_77] : memref<16x8x128xbf16, #tpu.memory_space<vmem>>, vector<1x8x128xbf16>
    %291 = vector.shape_cast %290 : vector<1x8x128xbf16> to vector<8x128xbf16>
    %292 = vector.shape_cast %288 : vector<8x128xbf16> to vector<1x8x128xbf16>
    tpu.vector_store %arg5[%289, %c0_76, %c0_77], %292 {strides = array<i32>} : memref<16x8x128xbf16, #tpu.memory_space<vmem>>, vector<1x8x128xbf16>,
    %c5_i32 = arith.constant 5 : i32
    %c15_i32_78 = arith.constant 15 : i32
    %293 = arith.subi %c15_i32_78, %c5_i32 : i32
    %294 = vector.extract_strided_slice %280 {offsets = [0, 0], sizes = [8, 128], strides = [1, 1]} : vector<16x128xf32> to vector<8x128xf32>
    %295 = arith.truncf %294 : vector<8x128xf32> to vector<8x128xbf16>
    %296 = vector.extract_strided_slice %280 {offsets = [8, 0], sizes = [8, 128], strides = [1, 1]} : vector<16x128xf32> to vector<8x128xf32>
    %297 = arith.truncf %296 : vector<8x128xf32> to vector<8x128xbf16>
    %298 = tpu.concatenate %295, %10 in 1 : vector<8x128xbf16>, vector<8x128xbf16> -> vector<8x256xbf16>
    %299 = tpu.concatenate %10, %297 in 1 : vector<8x128xbf16>, vector<8x128xbf16> -> vector<8x256xbf16>
    %300 = tpu.concatenate %298, %299 in 0 : vector<8x256xbf16>, vector<8x256xbf16> -> vector<16x256xbf16>
    %cst_79 = arith.constant dense<0.000000e+00> : vector<16x512xf32>
    %301 = tpu.matmul %300, %9, %cst_79 {dimension_numbers = #tpu.dot_dimension_numbers<[1], [0], [0], [1], [0, 0, 1, 1], [], []>} : vector<16x256xbf16>, vector<256x512xbf16>, vector<16x512xf32> -> vector<16x512xf32>
    %302 = arith.index_cast %c5_i32 : i32 to index
    %c0_80 = arith.constant 0 : index
    %c0_81 = arith.constant 0 : index
    %303 = vector.load %arg6[%302, %c0_80, %c0_81] : memref<16x8x1024xf32, #tpu.memory_space<vmem>>, vector<1x8x1024xf32>
    %304 = vector.shape_cast %303 : vector<1x8x1024xf32> to vector<8x1024xf32>
    %305 = arith.index_cast %293 : i32 to index
    %c0_82 = arith.constant 0 : index
    %c0_83 = arith.constant 0 : index
    %306 = vector.load %arg6[%305, %c0_82, %c0_83] : memref<16x8x1024xf32, #tpu.memory_space<vmem>>, vector<1x8x1024xf32>
    %307 = vector.shape_cast %306 : vector<1x8x1024xf32> to vector<8x1024xf32>
    %308 = vector.extract_strided_slice %304 {offsets = [0, 0], sizes = [8, 512], strides = [1, 1]} : vector<8x1024xf32> to vector<8x512xf32>
    %309 = vector.extract_strided_slice %307 {offsets = [0, 512], sizes = [8, 512], strides = [1, 1]} : vector<8x1024xf32> to vector<8x512xf32>
    %310 = tpu.concatenate %308, %309 in 0 : vector<8x512xf32>, vector<8x512xf32> -> vector<16x512xf32>
    %311 = arith.addf %310, %301 : vector<16x512xf32>
    %312 = vector.extract_strided_slice %311 {offsets = [0, 0], sizes = [16, 128], strides = [1, 1]} : vector<16x512xf32> to vector<16x128xf32>
    %313 = arith.negf %312 : vector<16x128xf32>
    %314 = math.exp %313 : vector<16x128xf32>
    %cst_84 = arith.constant 1.000000e+00 : f32
    %315 = vector.broadcast %cst_84 : f32 to vector<16x128xf32>
    %316 = arith.addf %315, %314 : vector<16x128xf32>
    %317 = arith.divf %315, %316 : vector<16x128xf32>
    %318 = vector.extract_strided_slice %311 {offsets = [0, 128], sizes = [16, 128], strides = [1, 1]} : vector<16x512xf32> to vector<16x128xf32>
    %319 = arith.negf %318 : vector<16x128xf32>
    %320 = math.exp %319 : vector<16x128xf32>
    %cst_85 = arith.constant 1.000000e+00 : f32
    %321 = vector.broadcast %cst_85 : f32 to vector<16x128xf32>
    %322 = arith.addf %321, %320 : vector<16x128xf32>
    %323 = arith.divf %321, %322 : vector<16x128xf32>
    %324 = vector.extract_strided_slice %311 {offsets = [0, 256], sizes = [16, 128], strides = [1, 1]} : vector<16x512xf32> to vector<16x128xf32>
    %325 = math.tanh %324 : vector<16x128xf32>
    %326 = vector.extract_strided_slice %311 {offsets = [0, 384], sizes = [16, 128], strides = [1, 1]} : vector<16x512xf32> to vector<16x128xf32>
    %327 = arith.negf %326 : vector<16x128xf32>
    %328 = math.exp %327 : vector<16x128xf32>
    %cst_86 = arith.constant 1.000000e+00 : f32
    %329 = vector.broadcast %cst_86 : f32 to vector<16x128xf32>
    %330 = arith.addf %329, %328 : vector<16x128xf32>
    %331 = arith.divf %329, %330 : vector<16x128xf32>
    %332 = arith.mulf %323, %278 : vector<16x128xf32>
    %333 = arith.mulf %317, %325 : vector<16x128xf32>
    %334 = arith.addf %332, %333 : vector<16x128xf32>
    %335 = math.tanh %334 : vector<16x128xf32>
    %336 = arith.mulf %331, %335 : vector<16x128xf32>
    %337 = vector.extract_strided_slice %336 {offsets = [0, 0], sizes = [8, 128], strides = [1, 1]} : vector<16x128xf32> to vector<8x128xf32>
    %338 = arith.truncf %337 : vector<8x128xf32> to vector<8x128xbf16>
    %339 = arith.index_cast %c5_i32 : i32 to index
    %c0_87 = arith.constant 0 : index
    %c0_88 = arith.constant 0 : index
    %340 = vector.load %arg4[%339, %c0_87, %c0_88] : memref<16x8x128xbf16, #tpu.memory_space<vmem>>, vector<1x8x128xbf16>
    %341 = vector.shape_cast %340 : vector<1x8x128xbf16> to vector<8x128xbf16>
    %342 = vector.shape_cast %338 : vector<8x128xbf16> to vector<1x8x128xbf16>
    tpu.vector_store %arg4[%339, %c0_87, %c0_88], %342 {strides = array<i32>} : memref<16x8x128xbf16, #tpu.memory_space<vmem>>, vector<1x8x128xbf16>,
    %343 = vector.extract_strided_slice %336 {offsets = [8, 0], sizes = [8, 128], strides = [1, 1]} : vector<16x128xf32> to vector<8x128xf32>
    %344 = arith.truncf %343 : vector<8x128xf32> to vector<8x128xbf16>
    %345 = arith.index_cast %293 : i32 to index
    %c0_89 = arith.constant 0 : index
    %c0_90 = arith.constant 0 : index
    %346 = vector.load %arg5[%345, %c0_89, %c0_90] : memref<16x8x128xbf16, #tpu.memory_space<vmem>>, vector<1x8x128xbf16>
    %347 = vector.shape_cast %346 : vector<1x8x128xbf16> to vector<8x128xbf16>
    %348 = vector.shape_cast %344 : vector<8x128xbf16> to vector<1x8x128xbf16>
    tpu.vector_store %arg5[%345, %c0_89, %c0_90], %348 {strides = array<i32>} : memref<16x8x128xbf16, #tpu.memory_space<vmem>>, vector<1x8x128xbf16>,
    %c6_i32 = arith.constant 6 : i32
    %c15_i32_91 = arith.constant 15 : i32
    %349 = arith.subi %c15_i32_91, %c6_i32 : i32
    %350 = vector.extract_strided_slice %336 {offsets = [0, 0], sizes = [8, 128], strides = [1, 1]} : vector<16x128xf32> to vector<8x128xf32>
    %351 = arith.truncf %350 : vector<8x128xf32> to vector<8x128xbf16>
    %352 = vector.extract_strided_slice %336 {offsets = [8, 0], sizes = [8, 128], strides = [1, 1]} : vector<16x128xf32> to vector<8x128xf32>
    %353 = arith.truncf %352 : vector<8x128xf32> to vector<8x128xbf16>
    %354 = tpu.concatenate %351, %10 in 1 : vector<8x128xbf16>, vector<8x128xbf16> -> vector<8x256xbf16>
    %355 = tpu.concatenate %10, %353 in 1 : vector<8x128xbf16>, vector<8x128xbf16> -> vector<8x256xbf16>
    %356 = tpu.concatenate %354, %355 in 0 : vector<8x256xbf16>, vector<8x256xbf16> -> vector<16x256xbf16>
    %cst_92 = arith.constant dense<0.000000e+00> : vector<16x512xf32>
    %357 = tpu.matmul %356, %9, %cst_92 {dimension_numbers = #tpu.dot_dimension_numbers<[1], [0], [0], [1], [0, 0, 1, 1], [], []>} : vector<16x256xbf16>, vector<256x512xbf16>, vector<16x512xf32> -> vector<16x512xf32>
    %358 = arith.index_cast %c6_i32 : i32 to index
    %c0_93 = arith.constant 0 : index
    %c0_94 = arith.constant 0 : index
    %359 = vector.load %arg6[%358, %c0_93, %c0_94] : memref<16x8x1024xf32, #tpu.memory_space<vmem>>, vector<1x8x1024xf32>
    %360 = vector.shape_cast %359 : vector<1x8x1024xf32> to vector<8x1024xf32>
    %361 = arith.index_cast %349 : i32 to index
    %c0_95 = arith.constant 0 : index
    %c0_96 = arith.constant 0 : index
    %362 = vector.load %arg6[%361, %c0_95, %c0_96] : memref<16x8x1024xf32, #tpu.memory_space<vmem>>, vector<1x8x1024xf32>
    %363 = vector.shape_cast %362 : vector<1x8x1024xf32> to vector<8x1024xf32>
    %364 = vector.extract_strided_slice %360 {offsets = [0, 0], sizes = [8, 512], strides = [1, 1]} : vector<8x1024xf32> to vector<8x512xf32>
    %365 = vector.extract_strided_slice %363 {offsets = [0, 512], sizes = [8, 512], strides = [1, 1]} : vector<8x1024xf32> to vector<8x512xf32>
    %366 = tpu.concatenate %364, %365 in 0 : vector<8x512xf32>, vector<8x512xf32> -> vector<16x512xf32>
    %367 = arith.addf %366, %357 : vector<16x512xf32>
    %368 = vector.extract_strided_slice %367 {offsets = [0, 0], sizes = [16, 128], strides = [1, 1]} : vector<16x512xf32> to vector<16x128xf32>
    %369 = arith.negf %368 : vector<16x128xf32>
    %370 = math.exp %369 : vector<16x128xf32>
    %cst_97 = arith.constant 1.000000e+00 : f32
    %371 = vector.broadcast %cst_97 : f32 to vector<16x128xf32>
    %372 = arith.addf %371, %370 : vector<16x128xf32>
    %373 = arith.divf %371, %372 : vector<16x128xf32>
    %374 = vector.extract_strided_slice %367 {offsets = [0, 128], sizes = [16, 128], strides = [1, 1]} : vector<16x512xf32> to vector<16x128xf32>
    %375 = arith.negf %374 : vector<16x128xf32>
    %376 = math.exp %375 : vector<16x128xf32>
    %cst_98 = arith.constant 1.000000e+00 : f32
    %377 = vector.broadcast %cst_98 : f32 to vector<16x128xf32>
    %378 = arith.addf %377, %376 : vector<16x128xf32>
    %379 = arith.divf %377, %378 : vector<16x128xf32>
    %380 = vector.extract_strided_slice %367 {offsets = [0, 256], sizes = [16, 128], strides = [1, 1]} : vector<16x512xf32> to vector<16x128xf32>
    %381 = math.tanh %380 : vector<16x128xf32>
    %382 = vector.extract_strided_slice %367 {offsets = [0, 384], sizes = [16, 128], strides = [1, 1]} : vector<16x512xf32> to vector<16x128xf32>
    %383 = arith.negf %382 : vector<16x128xf32>
    %384 = math.exp %383 : vector<16x128xf32>
    %cst_99 = arith.constant 1.000000e+00 : f32
    %385 = vector.broadcast %cst_99 : f32 to vector<16x128xf32>
    %386 = arith.addf %385, %384 : vector<16x128xf32>
    %387 = arith.divf %385, %386 : vector<16x128xf32>
    %388 = arith.mulf %379, %334 : vector<16x128xf32>
    %389 = arith.mulf %373, %381 : vector<16x128xf32>
    %390 = arith.addf %388, %389 : vector<16x128xf32>
    %391 = math.tanh %390 : vector<16x128xf32>
    %392 = arith.mulf %387, %391 : vector<16x128xf32>
    %393 = vector.extract_strided_slice %392 {offsets = [0, 0], sizes = [8, 128], strides = [1, 1]} : vector<16x128xf32> to vector<8x128xf32>
    %394 = arith.truncf %393 : vector<8x128xf32> to vector<8x128xbf16>
    %395 = arith.index_cast %c6_i32 : i32 to index
    %c0_100 = arith.constant 0 : index
    %c0_101 = arith.constant 0 : index
    %396 = vector.load %arg4[%395, %c0_100, %c0_101] : memref<16x8x128xbf16, #tpu.memory_space<vmem>>, vector<1x8x128xbf16>
    %397 = vector.shape_cast %396 : vector<1x8x128xbf16> to vector<8x128xbf16>
    %398 = vector.shape_cast %394 : vector<8x128xbf16> to vector<1x8x128xbf16>
    tpu.vector_store %arg4[%395, %c0_100, %c0_101], %398 {strides = array<i32>} : memref<16x8x128xbf16, #tpu.memory_space<vmem>>, vector<1x8x128xbf16>,
    %399 = vector.extract_strided_slice %392 {offsets = [8, 0], sizes = [8, 128], strides = [1, 1]} : vector<16x128xf32> to vector<8x128xf32>
    %400 = arith.truncf %399 : vector<8x128xf32> to vector<8x128xbf16>
    %401 = arith.index_cast %349 : i32 to index
    %c0_102 = arith.constant 0 : index
    %c0_103 = arith.constant 0 : index
    %402 = vector.load %arg5[%401, %c0_102, %c0_103] : memref<16x8x128xbf16, #tpu.memory_space<vmem>>, vector<1x8x128xbf16>
    %403 = vector.shape_cast %402 : vector<1x8x128xbf16> to vector<8x128xbf16>
    %404 = vector.shape_cast %400 : vector<8x128xbf16> to vector<1x8x128xbf16>
    tpu.vector_store %arg5[%401, %c0_102, %c0_103], %404 {strides = array<i32>} : memref<16x8x128xbf16, #tpu.memory_space<vmem>>, vector<1x8x128xbf16>,
    %c7_i32 = arith.constant 7 : i32
    %c15_i32_104 = arith.constant 15 : i32
    %405 = arith.subi %c15_i32_104, %c7_i32 : i32
    %406 = vector.extract_strided_slice %392 {offsets = [0, 0], sizes = [8, 128], strides = [1, 1]} : vector<16x128xf32> to vector<8x128xf32>
    %407 = arith.truncf %406 : vector<8x128xf32> to vector<8x128xbf16>
    %408 = vector.extract_strided_slice %392 {offsets = [8, 0], sizes = [8, 128], strides = [1, 1]} : vector<16x128xf32> to vector<8x128xf32>
    %409 = arith.truncf %408 : vector<8x128xf32> to vector<8x128xbf16>
    %410 = tpu.concatenate %407, %10 in 1 : vector<8x128xbf16>, vector<8x128xbf16> -> vector<8x256xbf16>
    %411 = tpu.concatenate %10, %409 in 1 : vector<8x128xbf16>, vector<8x128xbf16> -> vector<8x256xbf16>
    %412 = tpu.concatenate %410, %411 in 0 : vector<8x256xbf16>, vector<8x256xbf16> -> vector<16x256xbf16>
    %cst_105 = arith.constant dense<0.000000e+00> : vector<16x512xf32>
    %413 = tpu.matmul %412, %9, %cst_105 {dimension_numbers = #tpu.dot_dimension_numbers<[1], [0], [0], [1], [0, 0, 1, 1], [], []>} : vector<16x256xbf16>, vector<256x512xbf16>, vector<16x512xf32> -> vector<16x512xf32>
    %414 = arith.index_cast %c7_i32 : i32 to index
    %c0_106 = arith.constant 0 : index
    %c0_107 = arith.constant 0 : index
    %415 = vector.load %arg6[%414, %c0_106, %c0_107] : memref<16x8x1024xf32, #tpu.memory_space<vmem>>, vector<1x8x1024xf32>
    %416 = vector.shape_cast %415 : vector<1x8x1024xf32> to vector<8x1024xf32>
    %417 = arith.index_cast %405 : i32 to index
    %c0_108 = arith.constant 0 : index
    %c0_109 = arith.constant 0 : index
    %418 = vector.load %arg6[%417, %c0_108, %c0_109] : memref<16x8x1024xf32, #tpu.memory_space<vmem>>, vector<1x8x1024xf32>
    %419 = vector.shape_cast %418 : vector<1x8x1024xf32> to vector<8x1024xf32>
    %420 = vector.extract_strided_slice %416 {offsets = [0, 0], sizes = [8, 512], strides = [1, 1]} : vector<8x1024xf32> to vector<8x512xf32>
    %421 = vector.extract_strided_slice %419 {offsets = [0, 512], sizes = [8, 512], strides = [1, 1]} : vector<8x1024xf32> to vector<8x512xf32>
    %422 = tpu.concatenate %420, %421 in 0 : vector<8x512xf32>, vector<8x512xf32> -> vector<16x512xf32>
    %423 = arith.addf %422, %413 : vector<16x512xf32>
    %424 = vector.extract_strided_slice %423 {offsets = [0, 0], sizes = [16, 128], strides = [1, 1]} : vector<16x512xf32> to vector<16x128xf32>
    %425 = arith.negf %424 : vector<16x128xf32>
    %426 = math.exp %425 : vector<16x128xf32>
    %cst_110 = arith.constant 1.000000e+00 : f32
    %427 = vector.broadcast %cst_110 : f32 to vector<16x128xf32>
    %428 = arith.addf %427, %426 : vector<16x128xf32>
    %429 = arith.divf %427, %428 : vector<16x128xf32>
    %430 = vector.extract_strided_slice %423 {offsets = [0, 128], sizes = [16, 128], strides = [1, 1]} : vector<16x512xf32> to vector<16x128xf32>
    %431 = arith.negf %430 : vector<16x128xf32>
    %432 = math.exp %431 : vector<16x128xf32>
    %cst_111 = arith.constant 1.000000e+00 : f32
    %433 = vector.broadcast %cst_111 : f32 to vector<16x128xf32>
    %434 = arith.addf %433, %432 : vector<16x128xf32>
    %435 = arith.divf %433, %434 : vector<16x128xf32>
    %436 = vector.extract_strided_slice %423 {offsets = [0, 256], sizes = [16, 128], strides = [1, 1]} : vector<16x512xf32> to vector<16x128xf32>
    %437 = math.tanh %436 : vector<16x128xf32>
    %438 = vector.extract_strided_slice %423 {offsets = [0, 384], sizes = [16, 128], strides = [1, 1]} : vector<16x512xf32> to vector<16x128xf32>
    %439 = arith.negf %438 : vector<16x128xf32>
    %440 = math.exp %439 : vector<16x128xf32>
    %cst_112 = arith.constant 1.000000e+00 : f32
    %441 = vector.broadcast %cst_112 : f32 to vector<16x128xf32>
    %442 = arith.addf %441, %440 : vector<16x128xf32>
    %443 = arith.divf %441, %442 : vector<16x128xf32>
    %444 = arith.mulf %435, %390 : vector<16x128xf32>
    %445 = arith.mulf %429, %437 : vector<16x128xf32>
    %446 = arith.addf %444, %445 : vector<16x128xf32>
    %447 = math.tanh %446 : vector<16x128xf32>
    %448 = arith.mulf %443, %447 : vector<16x128xf32>
    %449 = vector.extract_strided_slice %448 {offsets = [0, 0], sizes = [8, 128], strides = [1, 1]} : vector<16x128xf32> to vector<8x128xf32>
    %450 = arith.truncf %449 : vector<8x128xf32> to vector<8x128xbf16>
    %451 = arith.index_cast %c7_i32 : i32 to index
    %c0_113 = arith.constant 0 : index
    %c0_114 = arith.constant 0 : index
    %452 = vector.load %arg4[%451, %c0_113, %c0_114] : memref<16x8x128xbf16, #tpu.memory_space<vmem>>, vector<1x8x128xbf16>
    %453 = vector.shape_cast %452 : vector<1x8x128xbf16> to vector<8x128xbf16>
    %454 = vector.shape_cast %450 : vector<8x128xbf16> to vector<1x8x128xbf16>
    tpu.vector_store %arg4[%451, %c0_113, %c0_114], %454 {strides = array<i32>} : memref<16x8x128xbf16, #tpu.memory_space<vmem>>, vector<1x8x128xbf16>,
    %455 = vector.extract_strided_slice %448 {offsets = [8, 0], sizes = [8, 128], strides = [1, 1]} : vector<16x128xf32> to vector<8x128xf32>
    %456 = arith.truncf %455 : vector<8x128xf32> to vector<8x128xbf16>
    %457 = arith.index_cast %405 : i32 to index
    %c0_115 = arith.constant 0 : index
    %c0_116 = arith.constant 0 : index
    %458 = vector.load %arg5[%457, %c0_115, %c0_116] : memref<16x8x128xbf16, #tpu.memory_space<vmem>>, vector<1x8x128xbf16>
    %459 = vector.shape_cast %458 : vector<1x8x128xbf16> to vector<8x128xbf16>
    %460 = vector.shape_cast %456 : vector<8x128xbf16> to vector<1x8x128xbf16>
    tpu.vector_store %arg5[%457, %c0_115, %c0_116], %460 {strides = array<i32>} : memref<16x8x128xbf16, #tpu.memory_space<vmem>>, vector<1x8x128xbf16>,
    %c8_i32 = arith.constant 8 : i32
    %c15_i32_117 = arith.constant 15 : i32
    %461 = arith.subi %c15_i32_117, %c8_i32 : i32
    %462 = vector.extract_strided_slice %448 {offsets = [0, 0], sizes = [8, 128], strides = [1, 1]} : vector<16x128xf32> to vector<8x128xf32>
    %463 = arith.truncf %462 : vector<8x128xf32> to vector<8x128xbf16>
    %464 = vector.extract_strided_slice %448 {offsets = [8, 0], sizes = [8, 128], strides = [1, 1]} : vector<16x128xf32> to vector<8x128xf32>
    %465 = arith.truncf %464 : vector<8x128xf32> to vector<8x128xbf16>
    %466 = tpu.concatenate %463, %10 in 1 : vector<8x128xbf16>, vector<8x128xbf16> -> vector<8x256xbf16>
    %467 = tpu.concatenate %10, %465 in 1 : vector<8x128xbf16>, vector<8x128xbf16> -> vector<8x256xbf16>
    %468 = tpu.concatenate %466, %467 in 0 : vector<8x256xbf16>, vector<8x256xbf16> -> vector<16x256xbf16>
    %cst_118 = arith.constant dense<0.000000e+00> : vector<16x512xf32>
    %469 = tpu.matmul %468, %9, %cst_118 {dimension_numbers = #tpu.dot_dimension_numbers<[1], [0], [0], [1], [0, 0, 1, 1], [], []>} : vector<16x256xbf16>, vector<256x512xbf16>, vector<16x512xf32> -> vector<16x512xf32>
    %470 = arith.index_cast %c8_i32 : i32 to index
    %c0_119 = arith.constant 0 : index
    %c0_120 = arith.constant 0 : index
    %471 = vector.load %arg6[%470, %c0_119, %c0_120] : memref<16x8x1024xf32, #tpu.memory_space<vmem>>, vector<1x8x1024xf32>
    %472 = vector.shape_cast %471 : vector<1x8x1024xf32> to vector<8x1024xf32>
    %473 = arith.index_cast %461 : i32 to index
    %c0_121 = arith.constant 0 : index
    %c0_122 = arith.constant 0 : index
    %474 = vector.load %arg6[%473, %c0_121, %c0_122] : memref<16x8x1024xf32, #tpu.memory_space<vmem>>, vector<1x8x1024xf32>
    %475 = vector.shape_cast %474 : vector<1x8x1024xf32> to vector<8x1024xf32>
    %476 = vector.extract_strided_slice %472 {offsets = [0, 0], sizes = [8, 512], strides = [1, 1]} : vector<8x1024xf32> to vector<8x512xf32>
    %477 = vector.extract_strided_slice %475 {offsets = [0, 512], sizes = [8, 512], strides = [1, 1]} : vector<8x1024xf32> to vector<8x512xf32>
    %478 = tpu.concatenate %476, %477 in 0 : vector<8x512xf32>, vector<8x512xf32> -> vector<16x512xf32>
    %479 = arith.addf %478, %469 : vector<16x512xf32>
    %480 = vector.extract_strided_slice %479 {offsets = [0, 0], sizes = [16, 128], strides = [1, 1]} : vector<16x512xf32> to vector<16x128xf32>
    %481 = arith.negf %480 : vector<16x128xf32>
    %482 = math.exp %481 : vector<16x128xf32>
    %cst_123 = arith.constant 1.000000e+00 : f32
    %483 = vector.broadcast %cst_123 : f32 to vector<16x128xf32>
    %484 = arith.addf %483, %482 : vector<16x128xf32>
    %485 = arith.divf %483, %484 : vector<16x128xf32>
    %486 = vector.extract_strided_slice %479 {offsets = [0, 128], sizes = [16, 128], strides = [1, 1]} : vector<16x512xf32> to vector<16x128xf32>
    %487 = arith.negf %486 : vector<16x128xf32>
    %488 = math.exp %487 : vector<16x128xf32>
    %cst_124 = arith.constant 1.000000e+00 : f32
    %489 = vector.broadcast %cst_124 : f32 to vector<16x128xf32>
    %490 = arith.addf %489, %488 : vector<16x128xf32>
    %491 = arith.divf %489, %490 : vector<16x128xf32>
    %492 = vector.extract_strided_slice %479 {offsets = [0, 256], sizes = [16, 128], strides = [1, 1]} : vector<16x512xf32> to vector<16x128xf32>
    %493 = math.tanh %492 : vector<16x128xf32>
    %494 = vector.extract_strided_slice %479 {offsets = [0, 384], sizes = [16, 128], strides = [1, 1]} : vector<16x512xf32> to vector<16x128xf32>
    %495 = arith.negf %494 : vector<16x128xf32>
    %496 = math.exp %495 : vector<16x128xf32>
    %cst_125 = arith.constant 1.000000e+00 : f32
    %497 = vector.broadcast %cst_125 : f32 to vector<16x128xf32>
    %498 = arith.addf %497, %496 : vector<16x128xf32>
    %499 = arith.divf %497, %498 : vector<16x128xf32>
    %500 = arith.mulf %491, %446 : vector<16x128xf32>
    %501 = arith.mulf %485, %493 : vector<16x128xf32>
    %502 = arith.addf %500, %501 : vector<16x128xf32>
    %503 = math.tanh %502 : vector<16x128xf32>
    %504 = arith.mulf %499, %503 : vector<16x128xf32>
    %505 = vector.extract_strided_slice %504 {offsets = [0, 0], sizes = [8, 128], strides = [1, 1]} : vector<16x128xf32> to vector<8x128xf32>
    %506 = arith.truncf %505 : vector<8x128xf32> to vector<8x128xbf16>
    %507 = arith.index_cast %c8_i32 : i32 to index
    %c0_126 = arith.constant 0 : index
    %c0_127 = arith.constant 0 : index
    %508 = vector.load %arg4[%507, %c0_126, %c0_127] : memref<16x8x128xbf16, #tpu.memory_space<vmem>>, vector<1x8x128xbf16>
    %509 = vector.shape_cast %508 : vector<1x8x128xbf16> to vector<8x128xbf16>
    %510 = vector.shape_cast %506 : vector<8x128xbf16> to vector<1x8x128xbf16>
    tpu.vector_store %arg4[%507, %c0_126, %c0_127], %510 {strides = array<i32>} : memref<16x8x128xbf16, #tpu.memory_space<vmem>>, vector<1x8x128xbf16>,
    %511 = vector.extract_strided_slice %504 {offsets = [8, 0], sizes = [8, 128], strides = [1, 1]} : vector<16x128xf32> to vector<8x128xf32>
    %512 = arith.truncf %511 : vector<8x128xf32> to vector<8x128xbf16>
    %513 = arith.index_cast %461 : i32 to index
    %c0_128 = arith.constant 0 : index
    %c0_129 = arith.constant 0 : index
    %514 = vector.load %arg5[%513, %c0_128, %c0_129] : memref<16x8x128xbf16, #tpu.memory_space<vmem>>, vector<1x8x128xbf16>
    %515 = vector.shape_cast %514 : vector<1x8x128xbf16> to vector<8x128xbf16>
    %516 = vector.shape_cast %512 : vector<8x128xbf16> to vector<1x8x128xbf16>
    tpu.vector_store %arg5[%513, %c0_128, %c0_129], %516 {strides = array<i32>} : memref<16x8x128xbf16, #tpu.memory_space<vmem>>, vector<1x8x128xbf16>,
    %c9_i32 = arith.constant 9 : i32
    %c15_i32_130 = arith.constant 15 : i32
    %517 = arith.subi %c15_i32_130, %c9_i32 : i32
    %518 = vector.extract_strided_slice %504 {offsets = [0, 0], sizes = [8, 128], strides = [1, 1]} : vector<16x128xf32> to vector<8x128xf32>
    %519 = arith.truncf %518 : vector<8x128xf32> to vector<8x128xbf16>
    %520 = vector.extract_strided_slice %504 {offsets = [8, 0], sizes = [8, 128], strides = [1, 1]} : vector<16x128xf32> to vector<8x128xf32>
    %521 = arith.truncf %520 : vector<8x128xf32> to vector<8x128xbf16>
    %522 = tpu.concatenate %519, %10 in 1 : vector<8x128xbf16>, vector<8x128xbf16> -> vector<8x256xbf16>
    %523 = tpu.concatenate %10, %521 in 1 : vector<8x128xbf16>, vector<8x128xbf16> -> vector<8x256xbf16>
    %524 = tpu.concatenate %522, %523 in 0 : vector<8x256xbf16>, vector<8x256xbf16> -> vector<16x256xbf16>
    %cst_131 = arith.constant dense<0.000000e+00> : vector<16x512xf32>
    %525 = tpu.matmul %524, %9, %cst_131 {dimension_numbers = #tpu.dot_dimension_numbers<[1], [0], [0], [1], [0, 0, 1, 1], [], []>} : vector<16x256xbf16>, vector<256x512xbf16>, vector<16x512xf32> -> vector<16x512xf32>
    %526 = arith.index_cast %c9_i32 : i32 to index
    %c0_132 = arith.constant 0 : index
    %c0_133 = arith.constant 0 : index
    %527 = vector.load %arg6[%526, %c0_132, %c0_133] : memref<16x8x1024xf32, #tpu.memory_space<vmem>>, vector<1x8x1024xf32>
    %528 = vector.shape_cast %527 : vector<1x8x1024xf32> to vector<8x1024xf32>
    %529 = arith.index_cast %517 : i32 to index
    %c0_134 = arith.constant 0 : index
    %c0_135 = arith.constant 0 : index
    %530 = vector.load %arg6[%529, %c0_134, %c0_135] : memref<16x8x1024xf32, #tpu.memory_space<vmem>>, vector<1x8x1024xf32>
    %531 = vector.shape_cast %530 : vector<1x8x1024xf32> to vector<8x1024xf32>
    %532 = vector.extract_strided_slice %528 {offsets = [0, 0], sizes = [8, 512], strides = [1, 1]} : vector<8x1024xf32> to vector<8x512xf32>
    %533 = vector.extract_strided_slice %531 {offsets = [0, 512], sizes = [8, 512], strides = [1, 1]} : vector<8x1024xf32> to vector<8x512xf32>
    %534 = tpu.concatenate %532, %533 in 0 : vector<8x512xf32>, vector<8x512xf32> -> vector<16x512xf32>
    %535 = arith.addf %534, %525 : vector<16x512xf32>
    %536 = vector.extract_strided_slice %535 {offsets = [0, 0], sizes = [16, 128], strides = [1, 1]} : vector<16x512xf32> to vector<16x128xf32>
    %537 = arith.negf %536 : vector<16x128xf32>
    %538 = math.exp %537 : vector<16x128xf32>
    %cst_136 = arith.constant 1.000000e+00 : f32
    %539 = vector.broadcast %cst_136 : f32 to vector<16x128xf32>
    %540 = arith.addf %539, %538 : vector<16x128xf32>
    %541 = arith.divf %539, %540 : vector<16x128xf32>
    %542 = vector.extract_strided_slice %535 {offsets = [0, 128], sizes = [16, 128], strides = [1, 1]} : vector<16x512xf32> to vector<16x128xf32>
    %543 = arith.negf %542 : vector<16x128xf32>
    %544 = math.exp %543 : vector<16x128xf32>
    %cst_137 = arith.constant 1.000000e+00 : f32
    %545 = vector.broadcast %cst_137 : f32 to vector<16x128xf32>
    %546 = arith.addf %545, %544 : vector<16x128xf32>
    %547 = arith.divf %545, %546 : vector<16x128xf32>
    %548 = vector.extract_strided_slice %535 {offsets = [0, 256], sizes = [16, 128], strides = [1, 1]} : vector<16x512xf32> to vector<16x128xf32>
    %549 = math.tanh %548 : vector<16x128xf32>
    %550 = vector.extract_strided_slice %535 {offsets = [0, 384], sizes = [16, 128], strides = [1, 1]} : vector<16x512xf32> to vector<16x128xf32>
    %551 = arith.negf %550 : vector<16x128xf32>
    %552 = math.exp %551 : vector<16x128xf32>
    %cst_138 = arith.constant 1.000000e+00 : f32
    %553 = vector.broadcast %cst_138 : f32 to vector<16x128xf32>
    %554 = arith.addf %553, %552 : vector<16x128xf32>
    %555 = arith.divf %553, %554 : vector<16x128xf32>
    %556 = arith.mulf %547, %502 : vector<16x128xf32>
    %557 = arith.mulf %541, %549 : vector<16x128xf32>
    %558 = arith.addf %556, %557 : vector<16x128xf32>
    %559 = math.tanh %558 : vector<16x128xf32>
    %560 = arith.mulf %555, %559 : vector<16x128xf32>
    %561 = vector.extract_strided_slice %560 {offsets = [0, 0], sizes = [8, 128], strides = [1, 1]} : vector<16x128xf32> to vector<8x128xf32>
    %562 = arith.truncf %561 : vector<8x128xf32> to vector<8x128xbf16>
    %563 = arith.index_cast %c9_i32 : i32 to index
    %c0_139 = arith.constant 0 : index
    %c0_140 = arith.constant 0 : index
    %564 = vector.load %arg4[%563, %c0_139, %c0_140] : memref<16x8x128xbf16, #tpu.memory_space<vmem>>, vector<1x8x128xbf16>
    %565 = vector.shape_cast %564 : vector<1x8x128xbf16> to vector<8x128xbf16>
    %566 = vector.shape_cast %562 : vector<8x128xbf16> to vector<1x8x128xbf16>
    tpu.vector_store %arg4[%563, %c0_139, %c0_140], %566 {strides = array<i32>} : memref<16x8x128xbf16, #tpu.memory_space<vmem>>, vector<1x8x128xbf16>,
    %567 = vector.extract_strided_slice %560 {offsets = [8, 0], sizes = [8, 128], strides = [1, 1]} : vector<16x128xf32> to vector<8x128xf32>
    %568 = arith.truncf %567 : vector<8x128xf32> to vector<8x128xbf16>
    %569 = arith.index_cast %517 : i32 to index
    %c0_141 = arith.constant 0 : index
    %c0_142 = arith.constant 0 : index
    %570 = vector.load %arg5[%569, %c0_141, %c0_142] : memref<16x8x128xbf16, #tpu.memory_space<vmem>>, vector<1x8x128xbf16>
    %571 = vector.shape_cast %570 : vector<1x8x128xbf16> to vector<8x128xbf16>
    %572 = vector.shape_cast %568 : vector<8x128xbf16> to vector<1x8x128xbf16>
    tpu.vector_store %arg5[%569, %c0_141, %c0_142], %572 {strides = array<i32>} : memref<16x8x128xbf16, #tpu.memory_space<vmem>>, vector<1x8x128xbf16>,
    %c10_i32 = arith.constant 10 : i32
    %c15_i32_143 = arith.constant 15 : i32
    %573 = arith.subi %c15_i32_143, %c10_i32 : i32
    %574 = vector.extract_strided_slice %560 {offsets = [0, 0], sizes = [8, 128], strides = [1, 1]} : vector<16x128xf32> to vector<8x128xf32>
    %575 = arith.truncf %574 : vector<8x128xf32> to vector<8x128xbf16>
    %576 = vector.extract_strided_slice %560 {offsets = [8, 0], sizes = [8, 128], strides = [1, 1]} : vector<16x128xf32> to vector<8x128xf32>
    %577 = arith.truncf %576 : vector<8x128xf32> to vector<8x128xbf16>
    %578 = tpu.concatenate %575, %10 in 1 : vector<8x128xbf16>, vector<8x128xbf16> -> vector<8x256xbf16>
    %579 = tpu.concatenate %10, %577 in 1 : vector<8x128xbf16>, vector<8x128xbf16> -> vector<8x256xbf16>
    %580 = tpu.concatenate %578, %579 in 0 : vector<8x256xbf16>, vector<8x256xbf16> -> vector<16x256xbf16>
    %cst_144 = arith.constant dense<0.000000e+00> : vector<16x512xf32>
    %581 = tpu.matmul %580, %9, %cst_144 {dimension_numbers = #tpu.dot_dimension_numbers<[1], [0], [0], [1], [0, 0, 1, 1], [], []>} : vector<16x256xbf16>, vector<256x512xbf16>, vector<16x512xf32> -> vector<16x512xf32>
    %582 = arith.index_cast %c10_i32 : i32 to index
    %c0_145 = arith.constant 0 : index
    %c0_146 = arith.constant 0 : index
    %583 = vector.load %arg6[%582, %c0_145, %c0_146] : memref<16x8x1024xf32, #tpu.memory_space<vmem>>, vector<1x8x1024xf32>
    %584 = vector.shape_cast %583 : vector<1x8x1024xf32> to vector<8x1024xf32>
    %585 = arith.index_cast %573 : i32 to index
    %c0_147 = arith.constant 0 : index
    %c0_148 = arith.constant 0 : index
    %586 = vector.load %arg6[%585, %c0_147, %c0_148] : memref<16x8x1024xf32, #tpu.memory_space<vmem>>, vector<1x8x1024xf32>
    %587 = vector.shape_cast %586 : vector<1x8x1024xf32> to vector<8x1024xf32>
    %588 = vector.extract_strided_slice %584 {offsets = [0, 0], sizes = [8, 512], strides = [1, 1]} : vector<8x1024xf32> to vector<8x512xf32>
    %589 = vector.extract_strided_slice %587 {offsets = [0, 512], sizes = [8, 512], strides = [1, 1]} : vector<8x1024xf32> to vector<8x512xf32>
    %590 = tpu.concatenate %588, %589 in 0 : vector<8x512xf32>, vector<8x512xf32> -> vector<16x512xf32>
    %591 = arith.addf %590, %581 : vector<16x512xf32>
    %592 = vector.extract_strided_slice %591 {offsets = [0, 0], sizes = [16, 128], strides = [1, 1]} : vector<16x512xf32> to vector<16x128xf32>
    %593 = arith.negf %592 : vector<16x128xf32>
    %594 = math.exp %593 : vector<16x128xf32>
    %cst_149 = arith.constant 1.000000e+00 : f32
    %595 = vector.broadcast %cst_149 : f32 to vector<16x128xf32>
    %596 = arith.addf %595, %594 : vector<16x128xf32>
    %597 = arith.divf %595, %596 : vector<16x128xf32>
    %598 = vector.extract_strided_slice %591 {offsets = [0, 128], sizes = [16, 128], strides = [1, 1]} : vector<16x512xf32> to vector<16x128xf32>
    %599 = arith.negf %598 : vector<16x128xf32>
    %600 = math.exp %599 : vector<16x128xf32>
    %cst_150 = arith.constant 1.000000e+00 : f32
    %601 = vector.broadcast %cst_150 : f32 to vector<16x128xf32>
    %602 = arith.addf %601, %600 : vector<16x128xf32>
    %603 = arith.divf %601, %602 : vector<16x128xf32>
    %604 = vector.extract_strided_slice %591 {offsets = [0, 256], sizes = [16, 128], strides = [1, 1]} : vector<16x512xf32> to vector<16x128xf32>
    %605 = math.tanh %604 : vector<16x128xf32>
    %606 = vector.extract_strided_slice %591 {offsets = [0, 384], sizes = [16, 128], strides = [1, 1]} : vector<16x512xf32> to vector<16x128xf32>
    %607 = arith.negf %606 : vector<16x128xf32>
    %608 = math.exp %607 : vector<16x128xf32>
    %cst_151 = arith.constant 1.000000e+00 : f32
    %609 = vector.broadcast %cst_151 : f32 to vector<16x128xf32>
    %610 = arith.addf %609, %608 : vector<16x128xf32>
    %611 = arith.divf %609, %610 : vector<16x128xf32>
    %612 = arith.mulf %603, %558 : vector<16x128xf32>
    %613 = arith.mulf %597, %605 : vector<16x128xf32>
    %614 = arith.addf %612, %613 : vector<16x128xf32>
    %615 = math.tanh %614 : vector<16x128xf32>
    %616 = arith.mulf %611, %615 : vector<16x128xf32>
    %617 = vector.extract_strided_slice %616 {offsets = [0, 0], sizes = [8, 128], strides = [1, 1]} : vector<16x128xf32> to vector<8x128xf32>
    %618 = arith.truncf %617 : vector<8x128xf32> to vector<8x128xbf16>
    %619 = arith.index_cast %c10_i32 : i32 to index
    %c0_152 = arith.constant 0 : index
    %c0_153 = arith.constant 0 : index
    %620 = vector.load %arg4[%619, %c0_152, %c0_153] : memref<16x8x128xbf16, #tpu.memory_space<vmem>>, vector<1x8x128xbf16>
    %621 = vector.shape_cast %620 : vector<1x8x128xbf16> to vector<8x128xbf16>
    %622 = vector.shape_cast %618 : vector<8x128xbf16> to vector<1x8x128xbf16>
    tpu.vector_store %arg4[%619, %c0_152, %c0_153], %622 {strides = array<i32>} : memref<16x8x128xbf16, #tpu.memory_space<vmem>>, vector<1x8x128xbf16>,
    %623 = vector.extract_strided_slice %616 {offsets = [8, 0], sizes = [8, 128], strides = [1, 1]} : vector<16x128xf32> to vector<8x128xf32>
    %624 = arith.truncf %623 : vector<8x128xf32> to vector<8x128xbf16>
    %625 = arith.index_cast %573 : i32 to index
    %c0_154 = arith.constant 0 : index
    %c0_155 = arith.constant 0 : index
    %626 = vector.load %arg5[%625, %c0_154, %c0_155] : memref<16x8x128xbf16, #tpu.memory_space<vmem>>, vector<1x8x128xbf16>
    %627 = vector.shape_cast %626 : vector<1x8x128xbf16> to vector<8x128xbf16>
    %628 = vector.shape_cast %624 : vector<8x128xbf16> to vector<1x8x128xbf16>
    tpu.vector_store %arg5[%625, %c0_154, %c0_155], %628 {strides = array<i32>} : memref<16x8x128xbf16, #tpu.memory_space<vmem>>, vector<1x8x128xbf16>,
    %c11_i32 = arith.constant 11 : i32
    %c15_i32_156 = arith.constant 15 : i32
    %629 = arith.subi %c15_i32_156, %c11_i32 : i32
    %630 = vector.extract_strided_slice %616 {offsets = [0, 0], sizes = [8, 128], strides = [1, 1]} : vector<16x128xf32> to vector<8x128xf32>
    %631 = arith.truncf %630 : vector<8x128xf32> to vector<8x128xbf16>
    %632 = vector.extract_strided_slice %616 {offsets = [8, 0], sizes = [8, 128], strides = [1, 1]} : vector<16x128xf32> to vector<8x128xf32>
    %633 = arith.truncf %632 : vector<8x128xf32> to vector<8x128xbf16>
    %634 = tpu.concatenate %631, %10 in 1 : vector<8x128xbf16>, vector<8x128xbf16> -> vector<8x256xbf16>
    %635 = tpu.concatenate %10, %633 in 1 : vector<8x128xbf16>, vector<8x128xbf16> -> vector<8x256xbf16>
    %636 = tpu.concatenate %634, %635 in 0 : vector<8x256xbf16>, vector<8x256xbf16> -> vector<16x256xbf16>
    %cst_157 = arith.constant dense<0.000000e+00> : vector<16x512xf32>
    %637 = tpu.matmul %636, %9, %cst_157 {dimension_numbers = #tpu.dot_dimension_numbers<[1], [0], [0], [1], [0, 0, 1, 1], [], []>} : vector<16x256xbf16>, vector<256x512xbf16>, vector<16x512xf32> -> vector<16x512xf32>
    %638 = arith.index_cast %c11_i32 : i32 to index
    %c0_158 = arith.constant 0 : index
    %c0_159 = arith.constant 0 : index
    %639 = vector.load %arg6[%638, %c0_158, %c0_159] : memref<16x8x1024xf32, #tpu.memory_space<vmem>>, vector<1x8x1024xf32>
    %640 = vector.shape_cast %639 : vector<1x8x1024xf32> to vector<8x1024xf32>
    %641 = arith.index_cast %629 : i32 to index
    %c0_160 = arith.constant 0 : index
    %c0_161 = arith.constant 0 : index
    %642 = vector.load %arg6[%641, %c0_160, %c0_161] : memref<16x8x1024xf32, #tpu.memory_space<vmem>>, vector<1x8x1024xf32>
    %643 = vector.shape_cast %642 : vector<1x8x1024xf32> to vector<8x1024xf32>
    %644 = vector.extract_strided_slice %640 {offsets = [0, 0], sizes = [8, 512], strides = [1, 1]} : vector<8x1024xf32> to vector<8x512xf32>
    %645 = vector.extract_strided_slice %643 {offsets = [0, 512], sizes = [8, 512], strides = [1, 1]} : vector<8x1024xf32> to vector<8x512xf32>
    %646 = tpu.concatenate %644, %645 in 0 : vector<8x512xf32>, vector<8x512xf32> -> vector<16x512xf32>
    %647 = arith.addf %646, %637 : vector<16x512xf32>
    %648 = vector.extract_strided_slice %647 {offsets = [0, 0], sizes = [16, 128], strides = [1, 1]} : vector<16x512xf32> to vector<16x128xf32>
    %649 = arith.negf %648 : vector<16x128xf32>
    %650 = math.exp %649 : vector<16x128xf32>
    %cst_162 = arith.constant 1.000000e+00 : f32
    %651 = vector.broadcast %cst_162 : f32 to vector<16x128xf32>
    %652 = arith.addf %651, %650 : vector<16x128xf32>
    %653 = arith.divf %651, %652 : vector<16x128xf32>
    %654 = vector.extract_strided_slice %647 {offsets = [0, 128], sizes = [16, 128], strides = [1, 1]} : vector<16x512xf32> to vector<16x128xf32>
    %655 = arith.negf %654 : vector<16x128xf32>
    %656 = math.exp %655 : vector<16x128xf32>
    %cst_163 = arith.constant 1.000000e+00 : f32
    %657 = vector.broadcast %cst_163 : f32 to vector<16x128xf32>
    %658 = arith.addf %657, %656 : vector<16x128xf32>
    %659 = arith.divf %657, %658 : vector<16x128xf32>
    %660 = vector.extract_strided_slice %647 {offsets = [0, 256], sizes = [16, 128], strides = [1, 1]} : vector<16x512xf32> to vector<16x128xf32>
    %661 = math.tanh %660 : vector<16x128xf32>
    %662 = vector.extract_strided_slice %647 {offsets = [0, 384], sizes = [16, 128], strides = [1, 1]} : vector<16x512xf32> to vector<16x128xf32>
    %663 = arith.negf %662 : vector<16x128xf32>
    %664 = math.exp %663 : vector<16x128xf32>
    %cst_164 = arith.constant 1.000000e+00 : f32
    %665 = vector.broadcast %cst_164 : f32 to vector<16x128xf32>
    %666 = arith.addf %665, %664 : vector<16x128xf32>
    %667 = arith.divf %665, %666 : vector<16x128xf32>
    %668 = arith.mulf %659, %614 : vector<16x128xf32>
    %669 = arith.mulf %653, %661 : vector<16x128xf32>
    %670 = arith.addf %668, %669 : vector<16x128xf32>
    %671 = math.tanh %670 : vector<16x128xf32>
    %672 = arith.mulf %667, %671 : vector<16x128xf32>
    %673 = vector.extract_strided_slice %672 {offsets = [0, 0], sizes = [8, 128], strides = [1, 1]} : vector<16x128xf32> to vector<8x128xf32>
    %674 = arith.truncf %673 : vector<8x128xf32> to vector<8x128xbf16>
    %675 = arith.index_cast %c11_i32 : i32 to index
    %c0_165 = arith.constant 0 : index
    %c0_166 = arith.constant 0 : index
    %676 = vector.load %arg4[%675, %c0_165, %c0_166] : memref<16x8x128xbf16, #tpu.memory_space<vmem>>, vector<1x8x128xbf16>
    %677 = vector.shape_cast %676 : vector<1x8x128xbf16> to vector<8x128xbf16>
    %678 = vector.shape_cast %674 : vector<8x128xbf16> to vector<1x8x128xbf16>
    tpu.vector_store %arg4[%675, %c0_165, %c0_166], %678 {strides = array<i32>} : memref<16x8x128xbf16, #tpu.memory_space<vmem>>, vector<1x8x128xbf16>,
    %679 = vector.extract_strided_slice %672 {offsets = [8, 0], sizes = [8, 128], strides = [1, 1]} : vector<16x128xf32> to vector<8x128xf32>
    %680 = arith.truncf %679 : vector<8x128xf32> to vector<8x128xbf16>
    %681 = arith.index_cast %629 : i32 to index
    %c0_167 = arith.constant 0 : index
    %c0_168 = arith.constant 0 : index
    %682 = vector.load %arg5[%681, %c0_167, %c0_168] : memref<16x8x128xbf16, #tpu.memory_space<vmem>>, vector<1x8x128xbf16>
    %683 = vector.shape_cast %682 : vector<1x8x128xbf16> to vector<8x128xbf16>
    %684 = vector.shape_cast %680 : vector<8x128xbf16> to vector<1x8x128xbf16>
    tpu.vector_store %arg5[%681, %c0_167, %c0_168], %684 {strides = array<i32>} : memref<16x8x128xbf16, #tpu.memory_space<vmem>>, vector<1x8x128xbf16>,
    %c12_i32 = arith.constant 12 : i32
    %c15_i32_169 = arith.constant 15 : i32
    %685 = arith.subi %c15_i32_169, %c12_i32 : i32
    %686 = vector.extract_strided_slice %672 {offsets = [0, 0], sizes = [8, 128], strides = [1, 1]} : vector<16x128xf32> to vector<8x128xf32>
    %687 = arith.truncf %686 : vector<8x128xf32> to vector<8x128xbf16>
    %688 = vector.extract_strided_slice %672 {offsets = [8, 0], sizes = [8, 128], strides = [1, 1]} : vector<16x128xf32> to vector<8x128xf32>
    %689 = arith.truncf %688 : vector<8x128xf32> to vector<8x128xbf16>
    %690 = tpu.concatenate %687, %10 in 1 : vector<8x128xbf16>, vector<8x128xbf16> -> vector<8x256xbf16>
    %691 = tpu.concatenate %10, %689 in 1 : vector<8x128xbf16>, vector<8x128xbf16> -> vector<8x256xbf16>
    %692 = tpu.concatenate %690, %691 in 0 : vector<8x256xbf16>, vector<8x256xbf16> -> vector<16x256xbf16>
    %cst_170 = arith.constant dense<0.000000e+00> : vector<16x512xf32>
    %693 = tpu.matmul %692, %9, %cst_170 {dimension_numbers = #tpu.dot_dimension_numbers<[1], [0], [0], [1], [0, 0, 1, 1], [], []>} : vector<16x256xbf16>, vector<256x512xbf16>, vector<16x512xf32> -> vector<16x512xf32>
    %694 = arith.index_cast %c12_i32 : i32 to index
    %c0_171 = arith.constant 0 : index
    %c0_172 = arith.constant 0 : index
    %695 = vector.load %arg6[%694, %c0_171, %c0_172] : memref<16x8x1024xf32, #tpu.memory_space<vmem>>, vector<1x8x1024xf32>
    %696 = vector.shape_cast %695 : vector<1x8x1024xf32> to vector<8x1024xf32>
    %697 = arith.index_cast %685 : i32 to index
    %c0_173 = arith.constant 0 : index
    %c0_174 = arith.constant 0 : index
    %698 = vector.load %arg6[%697, %c0_173, %c0_174] : memref<16x8x1024xf32, #tpu.memory_space<vmem>>, vector<1x8x1024xf32>
    %699 = vector.shape_cast %698 : vector<1x8x1024xf32> to vector<8x1024xf32>
    %700 = vector.extract_strided_slice %696 {offsets = [0, 0], sizes = [8, 512], strides = [1, 1]} : vector<8x1024xf32> to vector<8x512xf32>
    %701 = vector.extract_strided_slice %699 {offsets = [0, 512], sizes = [8, 512], strides = [1, 1]} : vector<8x1024xf32> to vector<8x512xf32>
    %702 = tpu.concatenate %700, %701 in 0 : vector<8x512xf32>, vector<8x512xf32> -> vector<16x512xf32>
    %703 = arith.addf %702, %693 : vector<16x512xf32>
    %704 = vector.extract_strided_slice %703 {offsets = [0, 0], sizes = [16, 128], strides = [1, 1]} : vector<16x512xf32> to vector<16x128xf32>
    %705 = arith.negf %704 : vector<16x128xf32>
    %706 = math.exp %705 : vector<16x128xf32>
    %cst_175 = arith.constant 1.000000e+00 : f32
    %707 = vector.broadcast %cst_175 : f32 to vector<16x128xf32>
    %708 = arith.addf %707, %706 : vector<16x128xf32>
    %709 = arith.divf %707, %708 : vector<16x128xf32>
    %710 = vector.extract_strided_slice %703 {offsets = [0, 128], sizes = [16, 128], strides = [1, 1]} : vector<16x512xf32> to vector<16x128xf32>
    %711 = arith.negf %710 : vector<16x128xf32>
    %712 = math.exp %711 : vector<16x128xf32>
    %cst_176 = arith.constant 1.000000e+00 : f32
    %713 = vector.broadcast %cst_176 : f32 to vector<16x128xf32>
    %714 = arith.addf %713, %712 : vector<16x128xf32>
    %715 = arith.divf %713, %714 : vector<16x128xf32>
    %716 = vector.extract_strided_slice %703 {offsets = [0, 256], sizes = [16, 128], strides = [1, 1]} : vector<16x512xf32> to vector<16x128xf32>
    %717 = math.tanh %716 : vector<16x128xf32>
    %718 = vector.extract_strided_slice %703 {offsets = [0, 384], sizes = [16, 128], strides = [1, 1]} : vector<16x512xf32> to vector<16x128xf32>
    %719 = arith.negf %718 : vector<16x128xf32>
    %720 = math.exp %719 : vector<16x128xf32>
    %cst_177 = arith.constant 1.000000e+00 : f32
    %721 = vector.broadcast %cst_177 : f32 to vector<16x128xf32>
    %722 = arith.addf %721, %720 : vector<16x128xf32>
    %723 = arith.divf %721, %722 : vector<16x128xf32>
    %724 = arith.mulf %715, %670 : vector<16x128xf32>
    %725 = arith.mulf %709, %717 : vector<16x128xf32>
    %726 = arith.addf %724, %725 : vector<16x128xf32>
    %727 = math.tanh %726 : vector<16x128xf32>
    %728 = arith.mulf %723, %727 : vector<16x128xf32>
    %729 = vector.extract_strided_slice %728 {offsets = [0, 0], sizes = [8, 128], strides = [1, 1]} : vector<16x128xf32> to vector<8x128xf32>
    %730 = arith.truncf %729 : vector<8x128xf32> to vector<8x128xbf16>
    %731 = arith.index_cast %c12_i32 : i32 to index
    %c0_178 = arith.constant 0 : index
    %c0_179 = arith.constant 0 : index
    %732 = vector.load %arg4[%731, %c0_178, %c0_179] : memref<16x8x128xbf16, #tpu.memory_space<vmem>>, vector<1x8x128xbf16>
    %733 = vector.shape_cast %732 : vector<1x8x128xbf16> to vector<8x128xbf16>
    %734 = vector.shape_cast %730 : vector<8x128xbf16> to vector<1x8x128xbf16>
    tpu.vector_store %arg4[%731, %c0_178, %c0_179], %734 {strides = array<i32>} : memref<16x8x128xbf16, #tpu.memory_space<vmem>>, vector<1x8x128xbf16>,
    %735 = vector.extract_strided_slice %728 {offsets = [8, 0], sizes = [8, 128], strides = [1, 1]} : vector<16x128xf32> to vector<8x128xf32>
    %736 = arith.truncf %735 : vector<8x128xf32> to vector<8x128xbf16>
    %737 = arith.index_cast %685 : i32 to index
    %c0_180 = arith.constant 0 : index
    %c0_181 = arith.constant 0 : index
    %738 = vector.load %arg5[%737, %c0_180, %c0_181] : memref<16x8x128xbf16, #tpu.memory_space<vmem>>, vector<1x8x128xbf16>
    %739 = vector.shape_cast %738 : vector<1x8x128xbf16> to vector<8x128xbf16>
    %740 = vector.shape_cast %736 : vector<8x128xbf16> to vector<1x8x128xbf16>
    tpu.vector_store %arg5[%737, %c0_180, %c0_181], %740 {strides = array<i32>} : memref<16x8x128xbf16, #tpu.memory_space<vmem>>, vector<1x8x128xbf16>,
    %c13_i32 = arith.constant 13 : i32
    %c15_i32_182 = arith.constant 15 : i32
    %741 = arith.subi %c15_i32_182, %c13_i32 : i32
    %742 = vector.extract_strided_slice %728 {offsets = [0, 0], sizes = [8, 128], strides = [1, 1]} : vector<16x128xf32> to vector<8x128xf32>
    %743 = arith.truncf %742 : vector<8x128xf32> to vector<8x128xbf16>
    %744 = vector.extract_strided_slice %728 {offsets = [8, 0], sizes = [8, 128], strides = [1, 1]} : vector<16x128xf32> to vector<8x128xf32>
    %745 = arith.truncf %744 : vector<8x128xf32> to vector<8x128xbf16>
    %746 = tpu.concatenate %743, %10 in 1 : vector<8x128xbf16>, vector<8x128xbf16> -> vector<8x256xbf16>
    %747 = tpu.concatenate %10, %745 in 1 : vector<8x128xbf16>, vector<8x128xbf16> -> vector<8x256xbf16>
    %748 = tpu.concatenate %746, %747 in 0 : vector<8x256xbf16>, vector<8x256xbf16> -> vector<16x256xbf16>
    %cst_183 = arith.constant dense<0.000000e+00> : vector<16x512xf32>
    %749 = tpu.matmul %748, %9, %cst_183 {dimension_numbers = #tpu.dot_dimension_numbers<[1], [0], [0], [1], [0, 0, 1, 1], [], []>} : vector<16x256xbf16>, vector<256x512xbf16>, vector<16x512xf32> -> vector<16x512xf32>
    %750 = arith.index_cast %c13_i32 : i32 to index
    %c0_184 = arith.constant 0 : index
    %c0_185 = arith.constant 0 : index
    %751 = vector.load %arg6[%750, %c0_184, %c0_185] : memref<16x8x1024xf32, #tpu.memory_space<vmem>>, vector<1x8x1024xf32>
    %752 = vector.shape_cast %751 : vector<1x8x1024xf32> to vector<8x1024xf32>
    %753 = arith.index_cast %741 : i32 to index
    %c0_186 = arith.constant 0 : index
    %c0_187 = arith.constant 0 : index
    %754 = vector.load %arg6[%753, %c0_186, %c0_187] : memref<16x8x1024xf32, #tpu.memory_space<vmem>>, vector<1x8x1024xf32>
    %755 = vector.shape_cast %754 : vector<1x8x1024xf32> to vector<8x1024xf32>
    %756 = vector.extract_strided_slice %752 {offsets = [0, 0], sizes = [8, 512], strides = [1, 1]} : vector<8x1024xf32> to vector<8x512xf32>
    %757 = vector.extract_strided_slice %755 {offsets = [0, 512], sizes = [8, 512], strides = [1, 1]} : vector<8x1024xf32> to vector<8x512xf32>
    %758 = tpu.concatenate %756, %757 in 0 : vector<8x512xf32>, vector<8x512xf32> -> vector<16x512xf32>
    %759 = arith.addf %758, %749 : vector<16x512xf32>
    %760 = vector.extract_strided_slice %759 {offsets = [0, 0], sizes = [16, 128], strides = [1, 1]} : vector<16x512xf32> to vector<16x128xf32>
    %761 = arith.negf %760 : vector<16x128xf32>
    %762 = math.exp %761 : vector<16x128xf32>
    %cst_188 = arith.constant 1.000000e+00 : f32
    %763 = vector.broadcast %cst_188 : f32 to vector<16x128xf32>
    %764 = arith.addf %763, %762 : vector<16x128xf32>
    %765 = arith.divf %763, %764 : vector<16x128xf32>
    %766 = vector.extract_strided_slice %759 {offsets = [0, 128], sizes = [16, 128], strides = [1, 1]} : vector<16x512xf32> to vector<16x128xf32>
    %767 = arith.negf %766 : vector<16x128xf32>
    %768 = math.exp %767 : vector<16x128xf32>
    %cst_189 = arith.constant 1.000000e+00 : f32
    %769 = vector.broadcast %cst_189 : f32 to vector<16x128xf32>
    %770 = arith.addf %769, %768 : vector<16x128xf32>
    %771 = arith.divf %769, %770 : vector<16x128xf32>
    %772 = vector.extract_strided_slice %759 {offsets = [0, 256], sizes = [16, 128], strides = [1, 1]} : vector<16x512xf32> to vector<16x128xf32>
    %773 = math.tanh %772 : vector<16x128xf32>
    %774 = vector.extract_strided_slice %759 {offsets = [0, 384], sizes = [16, 128], strides = [1, 1]} : vector<16x512xf32> to vector<16x128xf32>
    %775 = arith.negf %774 : vector<16x128xf32>
    %776 = math.exp %775 : vector<16x128xf32>
    %cst_190 = arith.constant 1.000000e+00 : f32
    %777 = vector.broadcast %cst_190 : f32 to vector<16x128xf32>
    %778 = arith.addf %777, %776 : vector<16x128xf32>
    %779 = arith.divf %777, %778 : vector<16x128xf32>
    %780 = arith.mulf %771, %726 : vector<16x128xf32>
    %781 = arith.mulf %765, %773 : vector<16x128xf32>
    %782 = arith.addf %780, %781 : vector<16x128xf32>
    %783 = math.tanh %782 : vector<16x128xf32>
    %784 = arith.mulf %779, %783 : vector<16x128xf32>
    %785 = vector.extract_strided_slice %784 {offsets = [0, 0], sizes = [8, 128], strides = [1, 1]} : vector<16x128xf32> to vector<8x128xf32>
    %786 = arith.truncf %785 : vector<8x128xf32> to vector<8x128xbf16>
    %787 = arith.index_cast %c13_i32 : i32 to index
    %c0_191 = arith.constant 0 : index
    %c0_192 = arith.constant 0 : index
    %788 = vector.load %arg4[%787, %c0_191, %c0_192] : memref<16x8x128xbf16, #tpu.memory_space<vmem>>, vector<1x8x128xbf16>
    %789 = vector.shape_cast %788 : vector<1x8x128xbf16> to vector<8x128xbf16>
    %790 = vector.shape_cast %786 : vector<8x128xbf16> to vector<1x8x128xbf16>
    tpu.vector_store %arg4[%787, %c0_191, %c0_192], %790 {strides = array<i32>} : memref<16x8x128xbf16, #tpu.memory_space<vmem>>, vector<1x8x128xbf16>,
    %791 = vector.extract_strided_slice %784 {offsets = [8, 0], sizes = [8, 128], strides = [1, 1]} : vector<16x128xf32> to vector<8x128xf32>
    %792 = arith.truncf %791 : vector<8x128xf32> to vector<8x128xbf16>
    %793 = arith.index_cast %741 : i32 to index
    %c0_193 = arith.constant 0 : index
    %c0_194 = arith.constant 0 : index
    %794 = vector.load %arg5[%793, %c0_193, %c0_194] : memref<16x8x128xbf16, #tpu.memory_space<vmem>>, vector<1x8x128xbf16>
    %795 = vector.shape_cast %794 : vector<1x8x128xbf16> to vector<8x128xbf16>
    %796 = vector.shape_cast %792 : vector<8x128xbf16> to vector<1x8x128xbf16>
    tpu.vector_store %arg5[%793, %c0_193, %c0_194], %796 {strides = array<i32>} : memref<16x8x128xbf16, #tpu.memory_space<vmem>>, vector<1x8x128xbf16>,
    %c14_i32 = arith.constant 14 : i32
    %c15_i32_195 = arith.constant 15 : i32
    %797 = arith.subi %c15_i32_195, %c14_i32 : i32
    %798 = vector.extract_strided_slice %784 {offsets = [0, 0], sizes = [8, 128], strides = [1, 1]} : vector<16x128xf32> to vector<8x128xf32>
    %799 = arith.truncf %798 : vector<8x128xf32> to vector<8x128xbf16>
    %800 = vector.extract_strided_slice %784 {offsets = [8, 0], sizes = [8, 128], strides = [1, 1]} : vector<16x128xf32> to vector<8x128xf32>
    %801 = arith.truncf %800 : vector<8x128xf32> to vector<8x128xbf16>
    %802 = tpu.concatenate %799, %10 in 1 : vector<8x128xbf16>, vector<8x128xbf16> -> vector<8x256xbf16>
    %803 = tpu.concatenate %10, %801 in 1 : vector<8x128xbf16>, vector<8x128xbf16> -> vector<8x256xbf16>
    %804 = tpu.concatenate %802, %803 in 0 : vector<8x256xbf16>, vector<8x256xbf16> -> vector<16x256xbf16>
    %cst_196 = arith.constant dense<0.000000e+00> : vector<16x512xf32>
    %805 = tpu.matmul %804, %9, %cst_196 {dimension_numbers = #tpu.dot_dimension_numbers<[1], [0], [0], [1], [0, 0, 1, 1], [], []>} : vector<16x256xbf16>, vector<256x512xbf16>, vector<16x512xf32> -> vector<16x512xf32>
    %806 = arith.index_cast %c14_i32 : i32 to index
    %c0_197 = arith.constant 0 : index
    %c0_198 = arith.constant 0 : index
    %807 = vector.load %arg6[%806, %c0_197, %c0_198] : memref<16x8x1024xf32, #tpu.memory_space<vmem>>, vector<1x8x1024xf32>
    %808 = vector.shape_cast %807 : vector<1x8x1024xf32> to vector<8x1024xf32>
    %809 = arith.index_cast %797 : i32 to index
    %c0_199 = arith.constant 0 : index
    %c0_200 = arith.constant 0 : index
    %810 = vector.load %arg6[%809, %c0_199, %c0_200] : memref<16x8x1024xf32, #tpu.memory_space<vmem>>, vector<1x8x1024xf32>
    %811 = vector.shape_cast %810 : vector<1x8x1024xf32> to vector<8x1024xf32>
    %812 = vector.extract_strided_slice %808 {offsets = [0, 0], sizes = [8, 512], strides = [1, 1]} : vector<8x1024xf32> to vector<8x512xf32>
    %813 = vector.extract_strided_slice %811 {offsets = [0, 512], sizes = [8, 512], strides = [1, 1]} : vector<8x1024xf32> to vector<8x512xf32>
    %814 = tpu.concatenate %812, %813 in 0 : vector<8x512xf32>, vector<8x512xf32> -> vector<16x512xf32>
    %815 = arith.addf %814, %805 : vector<16x512xf32>
    %816 = vector.extract_strided_slice %815 {offsets = [0, 0], sizes = [16, 128], strides = [1, 1]} : vector<16x512xf32> to vector<16x128xf32>
    %817 = arith.negf %816 : vector<16x128xf32>
    %818 = math.exp %817 : vector<16x128xf32>
    %cst_201 = arith.constant 1.000000e+00 : f32
    %819 = vector.broadcast %cst_201 : f32 to vector<16x128xf32>
    %820 = arith.addf %819, %818 : vector<16x128xf32>
    %821 = arith.divf %819, %820 : vector<16x128xf32>
    %822 = vector.extract_strided_slice %815 {offsets = [0, 128], sizes = [16, 128], strides = [1, 1]} : vector<16x512xf32> to vector<16x128xf32>
    %823 = arith.negf %822 : vector<16x128xf32>
    %824 = math.exp %823 : vector<16x128xf32>
    %cst_202 = arith.constant 1.000000e+00 : f32
    %825 = vector.broadcast %cst_202 : f32 to vector<16x128xf32>
    %826 = arith.addf %825, %824 : vector<16x128xf32>
    %827 = arith.divf %825, %826 : vector<16x128xf32>
    %828 = vector.extract_strided_slice %815 {offsets = [0, 256], sizes = [16, 128], strides = [1, 1]} : vector<16x512xf32> to vector<16x128xf32>
    %829 = math.tanh %828 : vector<16x128xf32>
    %830 = vector.extract_strided_slice %815 {offsets = [0, 384], sizes = [16, 128], strides = [1, 1]} : vector<16x512xf32> to vector<16x128xf32>
    %831 = arith.negf %830 : vector<16x128xf32>
    %832 = math.exp %831 : vector<16x128xf32>
    %cst_203 = arith.constant 1.000000e+00 : f32
    %833 = vector.broadcast %cst_203 : f32 to vector<16x128xf32>
    %834 = arith.addf %833, %832 : vector<16x128xf32>
    %835 = arith.divf %833, %834 : vector<16x128xf32>
    %836 = arith.mulf %827, %782 : vector<16x128xf32>
    %837 = arith.mulf %821, %829 : vector<16x128xf32>
    %838 = arith.addf %836, %837 : vector<16x128xf32>
    %839 = math.tanh %838 : vector<16x128xf32>
    %840 = arith.mulf %835, %839 : vector<16x128xf32>
    %841 = vector.extract_strided_slice %840 {offsets = [0, 0], sizes = [8, 128], strides = [1, 1]} : vector<16x128xf32> to vector<8x128xf32>
    %842 = arith.truncf %841 : vector<8x128xf32> to vector<8x128xbf16>
    %843 = arith.index_cast %c14_i32 : i32 to index
    %c0_204 = arith.constant 0 : index
    %c0_205 = arith.constant 0 : index
    %844 = vector.load %arg4[%843, %c0_204, %c0_205] : memref<16x8x128xbf16, #tpu.memory_space<vmem>>, vector<1x8x128xbf16>
    %845 = vector.shape_cast %844 : vector<1x8x128xbf16> to vector<8x128xbf16>
    %846 = vector.shape_cast %842 : vector<8x128xbf16> to vector<1x8x128xbf16>
    tpu.vector_store %arg4[%843, %c0_204, %c0_205], %846 {strides = array<i32>} : memref<16x8x128xbf16, #tpu.memory_space<vmem>>, vector<1x8x128xbf16>,
    %847 = vector.extract_strided_slice %840 {offsets = [8, 0], sizes = [8, 128], strides = [1, 1]} : vector<16x128xf32> to vector<8x128xf32>
    %848 = arith.truncf %847 : vector<8x128xf32> to vector<8x128xbf16>
    %849 = arith.index_cast %797 : i32 to index
    %c0_206 = arith.constant 0 : index
    %c0_207 = arith.constant 0 : index
    %850 = vector.load %arg5[%849, %c0_206, %c0_207] : memref<16x8x128xbf16, #tpu.memory_space<vmem>>, vector<1x8x128xbf16>
    %851 = vector.shape_cast %850 : vector<1x8x128xbf16> to vector<8x128xbf16>
    %852 = vector.shape_cast %848 : vector<8x128xbf16> to vector<1x8x128xbf16>
    tpu.vector_store %arg5[%849, %c0_206, %c0_207], %852 {strides = array<i32>} : memref<16x8x128xbf16, #tpu.memory_space<vmem>>, vector<1x8x128xbf16>,
    %c15_i32_208 = arith.constant 15 : i32
    %c15_i32_209 = arith.constant 15 : i32
    %853 = arith.subi %c15_i32_209, %c15_i32_208 : i32
    %854 = vector.extract_strided_slice %840 {offsets = [0, 0], sizes = [8, 128], strides = [1, 1]} : vector<16x128xf32> to vector<8x128xf32>
    %855 = arith.truncf %854 : vector<8x128xf32> to vector<8x128xbf16>
    %856 = vector.extract_strided_slice %840 {offsets = [8, 0], sizes = [8, 128], strides = [1, 1]} : vector<16x128xf32> to vector<8x128xf32>
    %857 = arith.truncf %856 : vector<8x128xf32> to vector<8x128xbf16>
    %858 = tpu.concatenate %855, %10 in 1 : vector<8x128xbf16>, vector<8x128xbf16> -> vector<8x256xbf16>
    %859 = tpu.concatenate %10, %857 in 1 : vector<8x128xbf16>, vector<8x128xbf16> -> vector<8x256xbf16>
    %860 = tpu.concatenate %858, %859 in 0 : vector<8x256xbf16>, vector<8x256xbf16> -> vector<16x256xbf16>
    %cst_210 = arith.constant dense<0.000000e+00> : vector<16x512xf32>
    %861 = tpu.matmul %860, %9, %cst_210 {dimension_numbers = #tpu.dot_dimension_numbers<[1], [0], [0], [1], [0, 0, 1, 1], [], []>} : vector<16x256xbf16>, vector<256x512xbf16>, vector<16x512xf32> -> vector<16x512xf32>
    %862 = arith.index_cast %c15_i32_208 : i32 to index
    %c0_211 = arith.constant 0 : index
    %c0_212 = arith.constant 0 : index
    %863 = vector.load %arg6[%862, %c0_211, %c0_212] : memref<16x8x1024xf32, #tpu.memory_space<vmem>>, vector<1x8x1024xf32>
    %864 = vector.shape_cast %863 : vector<1x8x1024xf32> to vector<8x1024xf32>
    %865 = arith.index_cast %853 : i32 to index
    %c0_213 = arith.constant 0 : index
    %c0_214 = arith.constant 0 : index
    %866 = vector.load %arg6[%865, %c0_213, %c0_214] : memref<16x8x1024xf32, #tpu.memory_space<vmem>>, vector<1x8x1024xf32>
    %867 = vector.shape_cast %866 : vector<1x8x1024xf32> to vector<8x1024xf32>
    %868 = vector.extract_strided_slice %864 {offsets = [0, 0], sizes = [8, 512], strides = [1, 1]} : vector<8x1024xf32> to vector<8x512xf32>
    %869 = vector.extract_strided_slice %867 {offsets = [0, 512], sizes = [8, 512], strides = [1, 1]} : vector<8x1024xf32> to vector<8x512xf32>
    %870 = tpu.concatenate %868, %869 in 0 : vector<8x512xf32>, vector<8x512xf32> -> vector<16x512xf32>
    %871 = arith.addf %870, %861 : vector<16x512xf32>
    %872 = vector.extract_strided_slice %871 {offsets = [0, 0], sizes = [16, 128], strides = [1, 1]} : vector<16x512xf32> to vector<16x128xf32>
    %873 = arith.negf %872 : vector<16x128xf32>
    %874 = math.exp %873 : vector<16x128xf32>
    %cst_215 = arith.constant 1.000000e+00 : f32
    %875 = vector.broadcast %cst_215 : f32 to vector<16x128xf32>
    %876 = arith.addf %875, %874 : vector<16x128xf32>
    %877 = arith.divf %875, %876 : vector<16x128xf32>
    %878 = vector.extract_strided_slice %871 {offsets = [0, 128], sizes = [16, 128], strides = [1, 1]} : vector<16x512xf32> to vector<16x128xf32>
    %879 = arith.negf %878 : vector<16x128xf32>
    %880 = math.exp %879 : vector<16x128xf32>
    %cst_216 = arith.constant 1.000000e+00 : f32
    %881 = vector.broadcast %cst_216 : f32 to vector<16x128xf32>
    %882 = arith.addf %881, %880 : vector<16x128xf32>
    %883 = arith.divf %881, %882 : vector<16x128xf32>
    %884 = vector.extract_strided_slice %871 {offsets = [0, 256], sizes = [16, 128], strides = [1, 1]} : vector<16x512xf32> to vector<16x128xf32>
    %885 = math.tanh %884 : vector<16x128xf32>
    %886 = vector.extract_strided_slice %871 {offsets = [0, 384], sizes = [16, 128], strides = [1, 1]} : vector<16x512xf32> to vector<16x128xf32>
    %887 = arith.negf %886 : vector<16x128xf32>
    %888 = math.exp %887 : vector<16x128xf32>
    %cst_217 = arith.constant 1.000000e+00 : f32
    %889 = vector.broadcast %cst_217 : f32 to vector<16x128xf32>
    %890 = arith.addf %889, %888 : vector<16x128xf32>
    %891 = arith.divf %889, %890 : vector<16x128xf32>
    %892 = arith.mulf %883, %838 : vector<16x128xf32>
    %893 = arith.mulf %877, %885 : vector<16x128xf32>
    %894 = arith.addf %892, %893 : vector<16x128xf32>
    %895 = math.tanh %894 : vector<16x128xf32>
    %896 = arith.mulf %891, %895 : vector<16x128xf32>
    %897 = vector.extract_strided_slice %896 {offsets = [0, 0], sizes = [8, 128], strides = [1, 1]} : vector<16x128xf32> to vector<8x128xf32>
    %898 = arith.truncf %897 : vector<8x128xf32> to vector<8x128xbf16>
    %899 = arith.index_cast %c15_i32_208 : i32 to index
    %c0_218 = arith.constant 0 : index
    %c0_219 = arith.constant 0 : index
    %900 = vector.load %arg4[%899, %c0_218, %c0_219] : memref<16x8x128xbf16, #tpu.memory_space<vmem>>, vector<1x8x128xbf16>
    %901 = vector.shape_cast %900 : vector<1x8x128xbf16> to vector<8x128xbf16>
    %902 = vector.shape_cast %898 : vector<8x128xbf16> to vector<1x8x128xbf16>
    tpu.vector_store %arg4[%899, %c0_218, %c0_219], %902 {strides = array<i32>} : memref<16x8x128xbf16, #tpu.memory_space<vmem>>, vector<1x8x128xbf16>,
    %903 = vector.extract_strided_slice %896 {offsets = [8, 0], sizes = [8, 128], strides = [1, 1]} : vector<16x128xf32> to vector<8x128xf32>
    %904 = arith.truncf %903 : vector<8x128xf32> to vector<8x128xbf16>
    %905 = arith.index_cast %853 : i32 to index
    %c0_220 = arith.constant 0 : index
    %c0_221 = arith.constant 0 : index
    %906 = vector.load %arg5[%905, %c0_220, %c0_221] : memref<16x8x128xbf16, #tpu.memory_space<vmem>>, vector<1x8x128xbf16>
    %907 = vector.shape_cast %906 : vector<1x8x128xbf16> to vector<8x128xbf16>
    %908 = vector.shape_cast %904 : vector<8x128xbf16> to vector<1x8x128xbf16>
    tpu.vector_store %arg5[%905, %c0_220, %c0_221], %908 {strides = array<i32>} : memref<16x8x128xbf16, #tpu.memory_space<vmem>>, vector<1x8x128xbf16>,
    %c16_i32 = arith.constant 16 : i32
    return
  }
}

</mosaic_0001>

<bundles_post_ra>
// kernel: text_generator_forward.3
= control target key start
LH: loop header
LB: loop body
LE: loop exit
PB: predicated region body
PF: predicated region fallthrough
CT: control target
= control target key end

     0   :  { %v2520_v2 = vmov 0   ;;  %s4258_s0 = inlined_call_operand.vmem [shape: bf16[16,8,128], index: 0, kind: input, shape index: {}]   ;;  %s4259_s1 = inlined_call_operand.vmem [shape: bf16[16,8,128], index: 1, kind: input, shape index: {}]   ;;  %s4260_s2 = inlined_call_operand.vmem [shape: bf16[128,384], index: 2, kind: input, shape index: {}]   ;;  %s4261_s3 = inlined_call_operand.vmem [shape: bf16[128,384], index: 3, kind: input, shape index: {}]   ;;  %s4262_s4 = inlined_call_operand.vmem [shape: f32[1,384], index: 4, kind: input, shape index: {}]   ;;  %s4263_s5 = inlined_call_operand.hbm [shape: f32[8,16,384], index: 5, kind: output, shape index: {}]  }
   0x1   :  { %v2314_v0 = vld [vmem:[%s4261_s3 + $0x4] ss:$12 sps:$4 sm:$0xff]   ;;  %v2316_v1 = vld [vmem:[%s4261_s3] ss:$12 sps:$4 sm:$0xff]   ;;  %326 = vmatprep.mubr.bf16.mxu0 %v2520_v2  ;;  %366 = vmatprep.mubr.bf16.mxu1 %v2520_v2  ;;  %v2317_v3 = vld [vmem:[%s4261_s3 + $0x1c] ss:$12 sps:$4 sm:$0xff]  }
   0x2   :  { %294 = vmatprep.subr.bf16.mxu0 %v2314_v0  ;;  %2246 = vmatprep.subr.bf16.mxu1 %v2314_v0  ;;  %v2319_v4 = vld [vmem:[%s4261_s3 + $0x18] ss:$12 sps:$4 sm:$0xff]   ;;  %v2320_v5 = vld [vmem:[%s4261_s3 + $0x34] ss:$12 sps:$4 sm:$0xff]   ;;  %v2322_v6 = vld [vmem:[%s4261_s3 + $0x30] ss:$12 sps:$4 sm:$0xff]  }
   0x3   :  { %295 = vmatpush1.bf16.msra.mxu0 %v2316_v1  ;;  %2254 = vmatpush1.bf16.msra.mxu1 %v2316_v1  ;;  %v2323_v7 = vld [vmem:[%s4261_s3 + $0x4c] ss:$12 sps:$4 sm:$0xff]   ;;  %v2325_v8 = vld [vmem:[%s4261_s3 + $0x48] ss:$12 sps:$4 sm:$0xff]   ;;  %v2326_v9 = vld [vmem:[%s4261_s3 + $0x64] ss:$12 sps:$4 sm:$0xff]  }
   0x4   :  { %296 = vmatprep.subr.bf16.mxu0 %v2317_v3  ;;  %2247 = vmatprep.subr.bf16.mxu1 %v2317_v3  ;;  %v2328_v10 = vld [vmem:[%s4261_s3 + $0x60] ss:$12 sps:$4 sm:$0xff]   ;;  %v2329_v11 = vld [vmem:[%s4261_s3 + $0x7c] ss:$12 sps:$4 sm:$0xff]   ;;  %v2331_v12 = vld [vmem:[%s4261_s3 + $0x78] ss:$12 sps:$4 sm:$0xff]  }
   0x5   :  { %v2332_v13 = vld [vmem:[%s4261_s3 + $0x94] ss:$12 sps:$4 sm:$0xff]   ;;  %v2334_v14 = vld [vmem:[%s4261_s3 + $0x90] ss:$12 sps:$4 sm:$0xff]   ;;  %v2335_v15 = vld [vmem:[%s4261_s3 + $0xac] ss:$12 sps:$4 sm:$0xff]  }
   0x6   :  { %v2337_v16 = vld [vmem:[%s4261_s3 + $0xa8] ss:$12 sps:$4 sm:$0xff]   ;;  %v2343_v18 = vld [vmem:[%s4260_s2 + $0x4] ss:$12 sps:$4 sm:$0xff]   ;;  %v2341_v21 = vld [vmem:[%s4260_s2] ss:$12 sps:$4 sm:$0xff]  }
   0x7   :  { %297 = vmatpush1.bf16.msra.mxu0 %v2319_v4  ;;  %2255 = vmatpush1.bf16.msra.mxu1 %v2319_v4  ;;  %v2340_v17 = vld [vmem:[%s4261_s3 + $0x8] ss:$12 sps:$4 sm:$0xff]   ;;  %v2613_v19 = vld [vmem:[%s4259_s1] sm:$0xff]   ;;  %v2351_v29 = vld [vmem:[%s4260_s2 + $0x30] ss:$12 sps:$4 sm:$0xff]  }
   0x8   :  { %298 = vmatprep.subr.bf16.mxu0 %v2320_v5  ;;  %2248 = vmatprep.subr.bf16.mxu1 %v2320_v5  ;;  %v2618_v20 = vld [vmem:[%s4259_s1 + $0x20] sm:$0xff]   ;;  %v2347_v23 = vld [vmem:[%s4260_s2 + $0x1c] ss:$12 sps:$4 sm:$0xff]   ;;  %v2357_v31 = vld [vmem:[%s4260_s2 + $0x4c] ss:$12 sps:$4 sm:$0xff]  }
   0x9   :  { %v2344_v22 = vld [vmem:[%s4261_s3 + $0x20] ss:$12 sps:$4 sm:$0xff]   ;;  %v2345_v24 = vld [vmem:[%s4260_s2 + $0x18] ss:$12 sps:$4 sm:$0xff]   ;;  %v2354_v30 = vld [vmem:[%s4261_s3 + $0x50] ss:$12 sps:$4 sm:$0xff]  }
   0xa   :  { %v2350_v25 = vld [vmem:[%s4261_s3 + $0x38] ss:$12 sps:$4 sm:$0xff]   ;;  %v2640_v26 = vld [vmem:[%s4259_s1 + $0x8] sm:$0xff]   ;;  %v2353_v27 = vld [vmem:[%s4260_s2 + $0x34] ss:$12 sps:$4 sm:$0xff]  }
   0xb   :  { %299 = vmatpush1.bf16.msra.mxu0 %v2322_v6  ;;  %2256 = vmatpush1.bf16.msra.mxu1 %v2322_v6  ;;  %v2650_v28 = vld [vmem:[%s4259_s1 + $0x28] sm:$0xff]   ;;  %v2358_v34 = vld [vmem:[%s4259_s1 + $0x10] sm:$0xff]   ;;  %v2365_v40 = vld [vmem:[%s4260_s2 + $0x78] ss:$12 sps:$4 sm:$0xff]  }
   0xc   :  { %300 = vmatprep.subr.bf16.mxu0 %v2323_v7  ;;  %2249 = vmatprep.subr.bf16.mxu1 %v2323_v7  ;;  %v2355_v32 = vld [vmem:[%s4260_s2 + $0x48] ss:$12 sps:$4 sm:$0xff]   ;;  %v2363_v35 = vld [vmem:[%s4260_s2 + $0x64] ss:$12 sps:$4 sm:$0xff]   ;;  %v2361_v37 = vld [vmem:[%s4260_s2 + $0x60] ss:$12 sps:$4 sm:$0xff]  }
   0xd   :  { %v2360_v33 = vld [vmem:[%s4261_s3 + $0x68] ss:$12 sps:$4 sm:$0xff]   ;;  %v2364_v38 = vld [vmem:[%s4261_s3 + $0x80] ss:$12 sps:$4 sm:$0xff]   ;;  %v2370_v41 = vld [vmem:[%s4261_s3 + $0x98] ss:$12 sps:$4 sm:$0xff]  }
   0xe   :  { %v2680_v36 = vld [vmem:[%s4259_s1 + $0x30] sm:$0xff]   ;;  %v2367_v39 = vld [vmem:[%s4260_s2 + $0x7c] ss:$12 sps:$4 sm:$0xff]  }
   0xf   :  { %301 = vmatpush1.bf16.msra.mxu0 %v2325_v8  ;;  %2257 = vmatpush1.bf16.msra.mxu1 %v2325_v8  ;;  %v2373_v42 = vld [vmem:[%s4260_s2 + $0x94] ss:$12 sps:$4 sm:$0xff]  }
  0x10   :  { %302 = vmatprep.subr.bf16.mxu0 %v2326_v9  ;;  %2250 = vmatprep.subr.bf16.mxu1 %v2326_v9 }
  0x13   :  { %303 = vmatpush1.bf16.msra.mxu0 %v2328_v10  ;;  %2258 = vmatpush1.bf16.msra.mxu1 %v2328_v10 }
  0x14   :  { %304 = vmatprep.subr.bf16.mxu0 %v2329_v11  ;;  %2251 = vmatprep.subr.bf16.mxu1 %v2329_v11 }
  0x17   :  { %305 = vmatpush1.bf16.msra.mxu0 %v2331_v12  ;;  %2259 = vmatpush1.bf16.msra.mxu1 %v2331_v12 }
  0x18   :  { %306 = vmatprep.subr.bf16.mxu0 %v2332_v13  ;;  %2252 = vmatprep.subr.bf16.mxu1 %v2332_v13 }
  0x1b   :  { %307 = vmatpush1.bf16.msra.mxu0 %v2334_v14  ;;  %2260 = vmatpush1.bf16.msra.mxu1 %v2334_v14 }
  0x1c   :  { %308 = vmatprep.subr.bf16.mxu0 %v2335_v15  ;;  %2253 = vmatprep.subr.bf16.mxu1 %v2335_v15 }
  0x1f   :  { %309 = vmatpush1.bf16.msra.mxu0 %v2337_v16  ;;  %2261 = vmatpush1.bf16.msra.mxu1 %v2337_v16 }
  0x20   :  { %2182 = vmatprep.subr.bf16.mxu1 %v2340_v17  ;;  %680 = vmatprep.subr.bf16.mxu0 %v2343_v18 }
  0x22   :  { %327 = vmatmul.mubr.bf16.vlgmr.msra.gmra.mrb[0].mxu0 %v2613_v19  ;;  %367 = vmatmul.mubr.bf16.vlgmr.msra.gmra.mrb[0].mxu1 %v2618_v20 }
  0x23   :  { %2183 = vmatpush3.bf16.msra.mxu1 %v2340_v17  ;;  %681 = vmatpush1.bf16.msra.mxu0 %v2341_v21 }
  0x24   :  { %2184 = vmatprep.subr.bf16.mxu1 %v2344_v22  ;;  %682 = vmatprep.subr.bf16.mxu0 %v2347_v23 }
  0x25   :  { %336 = vmatprep.mubr.bf16.mxu0 %v2520_v2  ;;  %376 = vmatprep.mubr.bf16.mxu1 %v2520_v2 }
  0x27   :  { %2185 = vmatpush3.bf16.msra.mxu1 %v2344_v22  ;;  %683 = vmatpush1.bf16.msra.mxu0 %v2345_v24 }
  0x28   :  { %2186 = vmatprep.subr.bf16.mxu1 %v2350_v25  ;;  %684 = vmatprep.subr.bf16.mxu0 %v2353_v27 }
  0x2a   :  { %337 = vmatmul.mubr.bf16.gmra.mrb[4].mxu0 %v2640_v26  ;;  %377 = vmatmul.mubr.bf16.gmra.mrb[4].mxu1 %v2650_v28 }
  0x2b   :  { %2187 = vmatpush3.bf16.msra.mxu1 %v2350_v25  ;;  %685 = vmatpush1.bf16.msra.mxu0 %v2351_v29 }
  0x2c   :  { %2188 = vmatprep.subr.bf16.mxu1 %v2354_v30  ;;  %686 = vmatprep.subr.bf16.mxu0 %v2357_v31 }
  0x2d   :  { %346 = vmatprep.mubr.bf16.mxu0 %v2520_v2  ;;  %386 = vmatprep.mubr.bf16.mxu1 %v2520_v2 }
  0x2f   :  { %2189 = vmatpush3.bf16.msra.mxu1 %v2354_v30  ;;  %687 = vmatpush1.bf16.msra.mxu0 %v2355_v32 }
  0x30   :  { %2190 = vmatprep.subr.bf16.mxu1 %v2360_v33  ;;  %688 = vmatprep.subr.bf16.mxu0 %v2363_v35 }
  0x32   :  { %347 = vmatmul.mubr.bf16.gmra.mrb[8].mxu0 %v2358_v34  ;;  %387 = vmatmul.mubr.bf16.gmra.mrb[8].mxu1 %v2680_v36 }
  0x33   :  { %2191 = vmatpush3.bf16.msra.mxu1 %v2360_v33  ;;  %689 = vmatpush1.bf16.msra.mxu0 %v2361_v37 }
  0x34   :  { %2192 = vmatprep.subr.bf16.mxu1 %v2364_v38  ;;  %690 = vmatprep.subr.bf16.mxu0 %v2367_v39 }
  0x35   :  { %356 = vmatprep.mubr.bf16.mxu0 %v2520_v2  ;;  %396 = vmatprep.mubr.bf16.mxu1 %v2520_v2 }
  0x36   :  { %10 = vsyncpa [#allocation3], 0  ;;  %v2368_v43 = vld [vmem:[%s4259_s1 + $0x18] sm:$0xff]   ;;  %v2375_v48 = vld [vmem:[%s4260_s2 + $0xa8] ss:$12 sps:$4 sm:$0xff]   ;;  %v892_v1 = vlaneseq  ;;  %vm1289_vm0 = vcmask 1041409  }
  0x37   :  { %v2369_v44 = vld [vmem:[%s4259_s1 + $0x38] sm:$0xff]   ;;  %2193 = vmatpush3.bf16.msra.mxu1 %v2364_v38  ;;  %691 = vmatpush1.bf16.msra.mxu0 %v2365_v40  ;;  %v2379_v49 = vld [vmem:[%s4260_s2 + $0x8] ss:$12 sps:$4 sm:$0xff]   ;;  %v2378_v50 = vld [vmem:[%s4258_s0] sm:$0xff]   ;;  %vm1292_vm1 = vcmask 1042434   ;;  %vm1295_vm2 = vcmask 1043459  }
  0x38   :  { %v2371_v45 = vld [vmem:[%s4260_s2 + $0x90] ss:$12 sps:$4 sm:$0xff]   ;;  %2194 = vmatprep.subr.bf16.mxu1 %v2370_v41  ;;  %692 = vmatprep.subr.bf16.mxu0 %v2373_v42  ;;  %v2377_v47 = vld [vmem:[%s4260_s2 + $0xac] ss:$12 sps:$4 sm:$0xff]   ;;  %v2385_v55 = vld [vmem:[%s4260_s2 + $0x68] ss:$12 sps:$4 sm:$0xff]  }
  0x39   :  { %v2374_v46 = vld [vmem:[%s4261_s3 + $0xb0] ss:$12 sps:$4 sm:$0xff]   ;;  %v2380_v51 = vld [vmem:[%s4260_s2 + $0x20] ss:$12 sps:$4 sm:$0xff]   ;;  %v2382_v52 = vld [vmem:[%s4260_s2 + $0x38] ss:$12 sps:$4 sm:$0xff]  }
  0x3a   :  { %357 = vmatmul.mubr.bf16.gmra.mrb[12].mxu0 %v2368_v43  ;;  %397 = vmatmul.mubr.bf16.gmra.mrb[12].mxu1 %v2369_v44  ;;  %v2381_v53 = vld [vmem:[%s4258_s0 + $0x8] sm:$0xff]   ;;  %v2383_v54 = vld [vmem:[%s4260_s2 + $0x50] ss:$12 sps:$4 sm:$0xff]   ;;  %v2388_v58 = vld [vmem:[%s4260_s2 + $0x98] ss:$12 sps:$4 sm:$0xff]   ;;  %v893_v3 = vshrl.u32 %v892_v1, 7 }
  0x3b   :  { %2195 = vmatpush3.bf16.msra.mxu1 %v2370_v41  ;;  %693 = vmatpush1.bf16.msra.mxu0 %v2371_v45  ;;  %v2384_v56 = vld [vmem:[%s4258_s0 + $0x10] sm:$0xff]   ;;  %v2386_v57 = vld [vmem:[%s4260_s2 + $0x80] ss:$12 sps:$4 sm:$0xff]   ;;  %v2387_v59 = vld [vmem:[%s4258_s0 + $0x18] sm:$0xff]   ;;  %vm1298_vm3 = vcmask 1044484   ;;  %vm1301_vm4 = vcmask 1045509  }
  0x3c   :  { %2196 = vmatprep.subr.bf16.mxu1 %v2374_v46  ;;  %694 = vmatprep.subr.bf16.mxu0 %v2377_v47  ;;  %v2389_v60 = vld [vmem:[%s4260_s2 + $0xb0] ss:$12 sps:$4 sm:$0xff]   ;;  %v2390_v61 = vld [vmem:[%s4258_s0 + $0x20] sm:$0xff]   ;;  %v2391_v62 = vld [vmem:[%s4258_s0 + $0x28] sm:$0xff]   ;;  %v898_v5 = vsub.s32 1, %v893_v3  ;;  %v902_v7 = vsub.s32 2, %v893_v3 }
  0x3d   :  { %2198 = vmatprep.mubr.bf16.mxu1 %v2613_v19  ;;  %712 = vmatprep.mubr.bf16.mxu0 %v2520_v2  ;;  %v2392_v63 = vld [vmem:[%s4258_s0 + $0x30] sm:$0xff]   ;;  %v2393_v0 = vld [vmem:[%s4258_s0 + $0x38] sm:$0xff]   ;;  %v890_v4 = vld [vmem:[%s4262_s4] sm:$0x7]  ;;  %v894_v25 = vsub.s32 0, %v893_v3  ;;  %vm1304_vm5 = vcmask 1046534  }
  0x3e   :  { %v2785_v6 = vrot.slane %v890_v4, %v898_v5  ;;  %v2787_v8 = vrot.slane %v890_v4, %v902_v7  ;;  %vm1307_vm6 = vcmask 1047559   ;;  %s2521_s0 = smov [#allocation2]  }
  0x3f   :  { %2197 = vmatpush3.bf16.msra.mxu1 %v2374_v46  ;;  %695 = vmatpush1.bf16.msra.mxu0 %v2375_v48  ;;  %v2827_v31 = vrot.slane %v890_v4, %v894_v25  ;;  %s2075_s4 = sshll.u32 %s2521_s0, 4  ;;  %s2076_s4 = int_to_ptr.vmem [resolvable:$true] %s2075_s4 }
  0x40   :  { %2214 = vmatprep.subr.bf16.mxu1 %v2379_v49  ;;  %s2496_s18 = scalar_lea.vmem %s2076_s4, 6144  ;;  %p2501_p1 = scmp.lt.s32.totalorder %s2076_s4, %s2076_s4 }
  0x41   :  { %p2497_p0 = scmp.ne.s32.totalorder %s2076_s4, %s2496_s18  ;;  %p2502_p2 = scmp.lt.s32.totalorder %s2496_s18, %s2496_s18 }
  0x42   :  { %2199 = vmatmul.mubr.bf16.vlgmr.msra.gmra.mrb[16].mxu1 %v2640_v26  ;;  %713 = vmatmul.mubr.bf16.vlgmr.msra.gmra.mrb[0].mxu0 %v2378_v50 }
  0x43   :  { %2215 = vmatpush3.bf16.msra.mxu1 %v2379_v49  ;;  %2202 = vmatprep.mubr.bf16.mxu1 %v2358_v34  ;;  %p2503_p3 = por %p2502_p2, %p2501_p1 }
  0x44   :  { %2216 = vmatprep.subr.bf16.mxu1 %v2380_v51  ;;  %722 = vmatprep.mubr.bf16.mxu0 %v2520_v2 }
  0x45   :  { %p2504_p4 = pnand %p2503_p3, %p2497_p0 }
  0x47   :  { %2217 = vmatpush3.bf16.msra.mxu1 %v2380_v51 }
  0x48   :  { %2218 = vmatprep.subr.bf16.mxu1 %v2382_v52 }
  0x4a   :  { %2203 = vmatmul.mubr.bf16.gmra.mrb[20].mxu1 %v2368_v43  ;;  %723 = vmatmul.mubr.bf16.gmra.mrb[4].mxu0 %v2381_v53 }
  0x4b   :  { %2219 = vmatpush3.bf16.msra.mxu1 %v2382_v52  ;;  %2206 = vmatprep.mubr.bf16.mxu1 %v2618_v20 }
  0x4c   :  { %2220 = vmatprep.subr.bf16.mxu1 %v2383_v54  ;;  %732 = vmatprep.mubr.bf16.mxu0 %v2520_v2 }
  0x4f   :  { %2221 = vmatpush3.bf16.msra.mxu1 %v2383_v54 }
  0x50   :  { %2222 = vmatprep.subr.bf16.mxu1 %v2385_v55 }
  0x52   :  { %2207 = vmatmul.mubr.bf16.gmra.mrb[24].mxu1 %v2650_v28  ;;  %733 = vmatmul.mubr.bf16.gmra.mrb[8].mxu0 %v2384_v56 }
  0x53   :  { %2223 = vmatpush3.bf16.msra.mxu1 %v2385_v55  ;;  %2210 = vmatprep.mubr.bf16.mxu1 %v2680_v36 }
  0x54   :  { %2224 = vmatprep.subr.bf16.mxu1 %v2386_v57  ;;  %742 = vmatprep.mubr.bf16.mxu0 %v2520_v2 }
  0x57   :  { %2225 = vmatpush3.bf16.msra.mxu1 %v2386_v57 }
  0x58   :  { %2226 = vmatprep.subr.bf16.mxu1 %v2388_v58 }
  0x5a   :  { %2211 = vmatmul.mubr.bf16.gmra.mrb[28].mxu1 %v2369_v44  ;;  %743 = vmatmul.mubr.bf16.gmra.mrb[12].mxu0 %v2387_v59 }
  0x5b   :  { %2227 = vmatpush3.bf16.msra.mxu1 %v2388_v58  ;;  %752 = vmatprep.mubr.bf16.mxu0 %v2520_v2 }
  0x5c   :  { %2228 = vmatprep.subr.bf16.mxu1 %v2389_v60  ;;  %2230 = vmatprep.mubr.bf16.mxu1 %v2378_v50 }
  0x5f   :  { %2229 = vmatpush3.bf16.msra.mxu1 %v2389_v60 }
  0x62   :  { %753 = vmatmul.mubr.bf16.gmra.mrb[16].mxu0 %v2390_v61  ;;  %2231 = vmatmul.mubr.bf16.vlgmr.msra.gmra.mrb[16].mxu1 %v2381_v53 }
  0x63   :  { %762 = vmatprep.mubr.bf16.mxu0 %v2520_v2  ;;  %2234 = vmatprep.mubr.bf16.mxu1 %v2384_v56 }
  0x6a   :  { %763 = vmatmul.mubr.bf16.gmra.mrb[20].mxu0 %v2391_v62  ;;  %2235 = vmatmul.mubr.bf16.gmra.mrb[20].mxu1 %v2387_v59 }
  0x6b   :  { %772 = vmatprep.mubr.bf16.mxu0 %v2520_v2  ;;  %2238 = vmatprep.mubr.bf16.mxu1 %v2390_v61 }
  0x72   :  { %773 = vmatmul.mubr.bf16.gmra.mrb[24].mxu0 %v2392_v63  ;;  %2239 = vmatmul.mubr.bf16.gmra.mrb[24].mxu1 %v2391_v62 }
  0x73   :  { %782 = vmatprep.mubr.bf16.mxu0 %v2520_v2  ;;  %2242 = vmatprep.mubr.bf16.mxu1 %v2392_v63 }
  0x7a   :  { %783 = vmatmul.mubr.bf16.gmra.mrb[28].mxu0 %v2393_v0  ;;  %2243 = vmatmul.mubr.bf16.gmra.mrb[28].mxu1 %v2393_v0 }
  0xf5   :  { %v2789_v2 = vpop.f32.mrb[0].mxu1 }
  0xf6   :  { %v2791_v9 = vpop.f32.mrb[1].mxu1 }
  0xf7   :  { %v2793_v10 = vpop.f32.mrb[2].mxu1 }
  0xf8   :  { %v2795_v11 = vpop.f32.mrb[3].mxu1 }
  0xfd   :  { %v2797_v12 = vpop.f32.mrb[4].mxu1 }
  0xfe   :  { %v2799_v13 = vpop.f32.mrb[5].mxu1 }
  0xff   :  { %v2801_v14 = vpop.f32.mrb[6].mxu1 }
 0x100   :  { %v2803_v15 = vpop.f32.mrb[7].mxu1 }
 0x105   :  { %v2805_v16 = vpop.f32.mrb[8].mxu1 }
 0x106   :  { %v2807_v17 = vpop.f32.mrb[9].mxu1 }
 0x107   :  { %v2809_v18 = vpop.f32.mrb[10].mxu1 }
 0x108   :  { %v2811_v19 = vpop.f32.mrb[11].mxu1 }
 0x10d   :  { %v2813_v20 = vpop.f32.mrb[12].mxu1 }
 0x10e   :  { %v2815_v21 = vpop.f32.mrb[13].mxu1 }
 0x10f   :  { %v2817_v22 = vpop.f32.mrb[14].mxu1 }
 0x110   :  { %v2819_v23 = vpop.f32.mrb[15].mxu1 }
 0x115   :  { %v714_v24 = vpop.f32.mrb[0].mxu0 }
 0x116   :  { %v716_v26 = vpop.f32.mrb[1].mxu0  ;;  %v2830_v33 = vadd.f32 %v2827_v31, %v714_v24 }
 0x117   :  { %v2822_v27 = vadd.f32 %v2785_v6, %v716_v26  ;;  %v718_v28 = vpop.f32.mrb[2].mxu0 }
 0x118   :  { %v720_v29 = vpop.f32.mrb[3].mxu0  ;;  %v2839_v38 = vadd.f32 %v2827_v31, %v718_v28 }
 0x119   :  { %v2825_v30 = vadd.f32 %v2785_v6, %v720_v29 }
 0x11d   :  { %v724_v32 = vpop.f32.mrb[4].mxu0 }
 0x11e   :  { %v2833_v34 = vadd.f32 %v2827_v31, %v724_v32  ;;  %v726_v35 = vpop.f32.mrb[5].mxu0 }
 0x11f   :  { %v2836_v36 = vadd.f32 %v2785_v6, %v726_v35  ;;  %v728_v37 = vpop.f32.mrb[6].mxu0 }
 0x120   :  { %v955_v39 = vmax.f32 %v2830_v33, %v2833_v34  ;;  %v2844_v40 = vadd.f32 %v2827_v31, %v728_v37  ;;  %v730_v41 = vpop.f32.mrb[7].mxu0 }
 0x121   :  { %v970_v42 = vmax.f32 %v2822_v27, %v2836_v36  ;;  %v2849_v43 = vadd.f32 %v2785_v6, %v730_v41 }
 0x122   :  { %v956_v44 = vmax.f32 %v2839_v38, %v2844_v40 }
 0x123   :  { %v971_v45 = vmax.f32 %v2825_v30, %v2849_v43 }
 0x125   :  { %v734_v46 = vpop.f32.mrb[8].mxu0 }
 0x126   :  { %v2856_v47 = vadd.f32 %v2827_v31, %v734_v46  ;;  %v736_v48 = vpop.f32.mrb[9].mxu0 }
 0x127   :  { %v2859_v49 = vadd.f32 %v2785_v6, %v736_v48  ;;  %v738_v50 = vpop.f32.mrb[10].mxu0 }
 0x128   :  { %v957_v51 = vmax.f32 %v955_v39, %v2856_v47  ;;  %v2863_v52 = vadd.f32 %v2827_v31, %v738_v50  ;;  %v740_v53 = vpop.f32.mrb[11].mxu0 }
 0x129   :  { %v972_v54 = vmax.f32 %v970_v42, %v2859_v49  ;;  %v2867_v55 = vadd.f32 %v2785_v6, %v740_v53 }
 0x12a   :  { %v958_v56 = vmax.f32 %v956_v44, %v2863_v52 }
 0x12b   :  { %v973_v57 = vmax.f32 %v971_v45, %v2867_v55 }
 0x12d   :  { %v744_v58 = vpop.f32.mrb[12].mxu0 }
 0x12e   :  { %v2872_v59 = vadd.f32 %v2827_v31, %v744_v58  ;;  %v746_v60 = vpop.f32.mrb[13].mxu0 }
 0x12f   :  { %v2875_v61 = vadd.f32 %v2785_v6, %v746_v60  ;;  %v748_v62 = vpop.f32.mrb[14].mxu0 }
 0x130   :  { %v959_v63 = vmax.f32 %v957_v51, %v2872_v59  ;;  %v2879_v0 = vadd.f32 %v2827_v31, %v748_v62  ;;  %v750_v1 = vpop.f32.mrb[15].mxu0 }
 0x131   :  { %v974_v3 = vmax.f32 %v972_v54, %v2875_v61  ;;  %v2883_v4 = vadd.f32 %v2785_v6, %v750_v1 }
 0x132   :  { %v960_v5 = vmax.f32 %v958_v56, %v2879_v0 }
 0x133   :  { %v975_v7 = vmax.f32 %v973_v57, %v2883_v4 }
 0x135   :  { %v754_v24 = vpop.f32.mrb[16].mxu0  ;;  %v2232_v25 = vpop.f32.mrb[16].mxu1 }
 0x136   :  { %v755_v26 = vadd.f32 %v754_v24, %v2789_v2  ;;  %v2889_v28 = vadd.f32 %v2232_v25, %v2787_v8  ;;  %v756_v29 = vpop.f32.mrb[17].mxu0  ;;  %v827_v32 = vpop.f32.mrb[17].mxu1 }
 0x137   :  { %v757_v35 = vadd.f32 %v756_v29, %v2791_v9  ;;  %v2893_v37 = vadd.f32 %v2787_v8, %v827_v32  ;;  %v758_v39 = vpop.f32.mrb[18].mxu0  ;;  %v2233_v41 = vpop.f32.mrb[18].mxu1 }
 0x138   :  { %v2896_v42 = vadd.f32 %v2827_v31, %v755_v26  ;;  %v759_v44 = vadd.f32 %v758_v39, %v2793_v10  ;;  %v2900_v45 = vadd.f32 %v2233_v41, %v2787_v8  ;;  %v760_v2 = vpop.f32.mrb[19].mxu0  ;;  %v830_v46 = vpop.f32.mrb[19].mxu1 }
 0x139   :  { %v2903_v48 = vadd.f32 %v2785_v6, %v757_v35  ;;  %v985_v9 = vmax.f32 %v2893_v37, %v2889_v28  ;;  %v761_v50 = vadd.f32 %v760_v2, %v2795_v11  ;;  %v2909_v51 = vadd.f32 %v2787_v8, %v830_v46 }
 0x13a   :  { %v961_v53 = vmax.f32 %v959_v63, %v2896_v42  ;;  %v2913_v10 = vadd.f32 %v2827_v31, %v759_v44 }
 0x13b   :  { %v976_v54 = vmax.f32 %v974_v3, %v2903_v48  ;;  %v2917_v56 = vadd.f32 %v2785_v6, %v761_v50  ;;  %v986_v57 = vmax.f32 %v2909_v51, %v2900_v45 }
 0x13c   :  { %v962_v58 = vmax.f32 %v960_v5, %v2913_v10 }
 0x13d   :  { %v977_v11 = vmax.f32 %v975_v7, %v2917_v56  ;;  %v764_v60 = vpop.f32.mrb[20].mxu0  ;;  %v2236_v62 = vpop.f32.mrb[20].mxu1 }
 0x13e   :  { %v765_v1 = vadd.f32 %v764_v60, %v2797_v12  ;;  %v2925_v63 = vadd.f32 %v2236_v62, %v2787_v8  ;;  %v766_v24 = vpop.f32.mrb[21].mxu0  ;;  %v843_v25 = vpop.f32.mrb[21].mxu1 }
 0x13f   :  { %v767_v3 = vadd.f32 %v766_v24, %v2799_v13  ;;  %v2929_v26 = vadd.f32 %v2787_v8, %v843_v25  ;;  %v768_v29 = vpop.f32.mrb[22].mxu0  ;;  %v2237_v32 = vpop.f32.mrb[22].mxu1 }
 0x140   :  { %v2932_v5 = vadd.f32 %v2827_v31, %v765_v1  ;;  %v769_v7 = vadd.f32 %v768_v29, %v2801_v14  ;;  %v2936_v35 = vadd.f32 %v2237_v32, %v2787_v8  ;;  %v770_v12 = vpop.f32.mrb[23].mxu0  ;;  %v846_v39 = vpop.f32.mrb[23].mxu1 }
 0x141   :  { %v2939_v41 = vadd.f32 %v2785_v6, %v767_v3  ;;  %v987_v13 = vmax.f32 %v985_v9, %v2929_v26  ;;  %v771_v44 = vadd.f32 %v770_v12, %v2803_v15  ;;  %v2944_v2 = vadd.f32 %v2787_v8, %v846_v39 }
 0x142   :  { %v963_v46 = vmax.f32 %v961_v53, %v2932_v5  ;;  %v2948_v50 = vadd.f32 %v2827_v31, %v769_v7 }
 0x143   :  { %v978_v14 = vmax.f32 %v976_v54, %v2939_v41  ;;  %v2952_v60 = vadd.f32 %v2785_v6, %v771_v44  ;;  %v988_v62 = vmax.f32 %v986_v57, %v2944_v2  ;;  %v989_v1 = vmax.f32 %v987_v13, %v2925_v63 }
 0x144   :  { %v964_v9 = vmax.f32 %v962_v58, %v2948_v50 }
 0x145   :  { %v979_v15 = vmax.f32 %v977_v11, %v2952_v60  ;;  %v774_v24 = vpop.f32.mrb[24].mxu0  ;;  %v2240_v25 = vpop.f32.mrb[24].mxu1  ;;  %v990_v53 = vmax.f32 %v988_v62, %v2936_v35 }
 0x146   :  { %v775_v3 = vadd.f32 %v774_v24, %v2805_v16  ;;  %v2961_v29 = vadd.f32 %v2240_v25, %v2787_v8  ;;  %v776_v54 = vpop.f32.mrb[25].mxu0  ;;  %v859_v32 = vpop.f32.mrb[25].mxu1 }
 0x147   :  { %v777_v7 = vadd.f32 %v776_v54, %v2807_v17  ;;  %v2965_v57 = vadd.f32 %v2787_v8, %v859_v32  ;;  %v778_v12 = vpop.f32.mrb[26].mxu0  ;;  %v2241_v58 = vpop.f32.mrb[26].mxu1 }
 0x148   :  { %4275 = vst [vmem:[#allocation5_spill] sm:$0xff] %v2961_v29  ;;  %v2968_v11 = vadd.f32 %v2827_v31, %v775_v3  ;;  %v779_v39 = vadd.f32 %v778_v12, %v2809_v18  ;;  %v2972_v13 = vadd.f32 %v2241_v58, %v2787_v8  ;;  %v780_v16 = vpop.f32.mrb[27].mxu0  ;;  %v862_v44 = vpop.f32.mrb[27].mxu1 }
 0x149   :  { %4276 = vst [vmem:[#allocation6_spill] sm:$0xff] %v2965_v57  ;;  %v2975_v62 = vadd.f32 %v2785_v6, %v777_v7  ;;  %v991_v17 = vmax.f32 %v989_v1, %v2965_v57  ;;  %v781_v24 = vadd.f32 %v780_v16, %v2811_v19  ;;  %v2980_v25 = vadd.f32 %v2787_v8, %v862_v44 }
 0x14a   :  { %v965_v3 = vmax.f32 %v963_v46, %v2968_v11  ;;  %v2984_v54 = vadd.f32 %v2827_v31, %v779_v39 }
 0x14b   :  { %v980_v18 = vmax.f32 %v978_v14, %v2975_v62  ;;  %v2988_v32 = vadd.f32 %v2785_v6, %v781_v24  ;;  %v992_v7 = vmax.f32 %v990_v53, %v2980_v25  ;;  %v993_v12 = vmax.f32 %v991_v17, %v2961_v29 }
 0x14c   :  { %v966_v1 = vmax.f32 %v964_v9, %v2984_v54 }
 0x14d   :  { %v981_v19 = vmax.f32 %v979_v15, %v2988_v32  ;;  %v784_v58 = vpop.f32.mrb[28].mxu0  ;;  %v2244_v16 = vpop.f32.mrb[28].mxu1  ;;  %v994_v9 = vmax.f32 %v992_v7, %v2972_v13 }
 0x14e   :  { %v785_v46 = vadd.f32 %v784_v58, %v2813_v20  ;;  %v2996_v39 = vadd.f32 %v2244_v16, %v2787_v8  ;;  %v786_v44 = vpop.f32.mrb[29].mxu0  ;;  %v875_v14 = vpop.f32.mrb[29].mxu1 }
 0x14f   :  { %v787_v24 = vadd.f32 %v786_v44, %v2815_v21  ;;  %v3000_v57 = vadd.f32 %v2787_v8, %v875_v14  ;;  %v788_v53 = vpop.f32.mrb[30].mxu0  ;;  %v2245_v17 = vpop.f32.mrb[30].mxu1 }
 0x150   :  { %v3004_v15 = vadd.f32 %v2827_v31, %v785_v46  ;;  %v789_v29 = vadd.f32 %v788_v53, %v2817_v22  ;;  %v3008_v20 = vadd.f32 %v2245_v17, %v2787_v8  ;;  %v790_v58 = vpop.f32.mrb[31].mxu0  ;;  %v878_v46 = vpop.f32.mrb[31].mxu1 }
 0x151   :  { %v3011_v16 = vadd.f32 %v2785_v6, %v787_v24  ;;  %v3014_v21 = vmax.f32 %v993_v12, %v3000_v57  ;;  %v791_v44 = vadd.f32 %v790_v58, %v2819_v23  ;;  %v3028_v24 = vadd.f32 %v2787_v8, %v878_v46 }
 0x152   :  { %v967_v14 = vmax.f32 %v965_v3, %v3004_v15  ;;  %v3019_v7 = vadd.f32 %v2827_v31, %v789_v29 }
 0x153   :  { %v982_v22 = vmax.f32 %v980_v18, %v3011_v16  ;;  %v997_v53 = vmax.f32 %v3014_v21, %v2996_v39  ;;  %v3025_v17 = vadd.f32 %v2785_v6, %v791_v44  ;;  %v3033_v3 = vmax.f32 %v994_v9, %v3028_v24 }
 0x154   :  { %v968_v12 = vmax.f32 %v966_v1, %v3019_v7 }
 0x155   :  { %v983_v23 = vmax.f32 %v981_v19, %v3025_v17  ;;  %v998_v18 = vmax.f32 %v3033_v3, %v3008_v20 }
 0x156   :  { %v3035_v31 = vmax.f32 %v967_v14, %v968_v12 }
 0x157   :  { %v3037_v29 = vmax.f32 %v982_v22, %v983_v23 }
 0x158   :  { %v1000_v6 = vsub.f32 %v2830_v33, %v3035_v31  ;;  %v1003_v8 = vsub.f32 %v2839_v38, %v3035_v31  ;;  %v1006_v1 = vsub.f32 %v2833_v34, %v3035_v31  ;;  %v1009_v19 = vsub.f32 %v2844_v40, %v3035_v31 }
 0x159   :  { %v1012_v9 = vsub.f32 %v2856_v47, %v3035_v31  ;;  %v1015_v58 = vsub.f32 %v2863_v52, %v3035_v31  ;;  %v1018_v44 = vsub.f32 %v2872_v59, %v3035_v31  ;;  %v1021_v33 = vsub.f32 %v2879_v0, %v3035_v31 }
 0x15a   :  { %v1024_v38 = vsub.f32 %v2896_v42, %v3035_v31  ;;  %v1027_v34 = vsub.f32 %v2913_v10, %v3035_v31  ;;  %v1030_v40 = vsub.f32 %v2932_v5, %v3035_v31  ;;  %v1033_v47 = vsub.f32 %v2948_v50, %v3035_v31 }
 0x15b   :  { %v1036_v52 = vsub.f32 %v2968_v11, %v3035_v31  ;;  %v1039_v59 = vsub.f32 %v2984_v54, %v3035_v31  ;;  %v1042_v0 = vsub.f32 %v3004_v15, %v3035_v31  ;;  %v1045_v42 = vsub.f32 %v3019_v7, %v3035_v31 }
 0x15c   :  { %v1048_v14 = vmul.f32 1.442695, %v1000_v6  ;;  %v1054_v10 = vmul.f32 1.442695, %v1003_v8  ;;  %v1001_v5 = vsub.f32 %v2822_v27, %v3037_v29  ;;  %v1060_v46 = vmul.f32 1.442695, %v1006_v1 }
 0x15d   :  { %v1004_v50 = vsub.f32 %v2825_v30, %v3037_v29  ;;  %v1066_v11 = vmul.f32 1.442695, %v1009_v19  ;;  %v1072_v54 = vmul.f32 1.442695, %v1012_v9  ;;  %v1007_v22 = vsub.f32 %v2836_v36, %v3037_v29 }
 0x15e   :  { %2394 = vpow2.f32 %v1048_v14  ;;  %v1010_v12 = vsub.f32 %v2849_v43, %v3037_v29  ;;  %v1078_v23 = vmul.f32 1.442695, %v1015_v58  ;;  %v1013_v3 = vsub.f32 %v2859_v49, %v3037_v29 }
 0x15f   :  { %2396 = vpow2.f32 %v1054_v10  ;;  %v1016_v27 = vsub.f32 %v2867_v55, %v3037_v29  ;;  %v1019_v30 = vsub.f32 %v2875_v61, %v3037_v29  ;;  %v1022_v6 = vsub.f32 %v2883_v4, %v3037_v29 }
 0x160   :  { %2398 = vpow2.f32 %v1060_v46  ;;  %v1025_v36 = vsub.f32 %v2903_v48, %v3037_v29  ;;  %v1084_v8 = vmul.f32 1.442695, %v1018_v44  ;;  %v1046_v14 = vsub.f32 %v3025_v17, %v3037_v29 }
 0x161   :  { %2400 = vpow2.f32 %v1066_v11  ;;  %v1090_v44 = vmul.f32 1.442695, %v1021_v33  ;;  %v1096_v10 = vmul.f32 1.442695, %v1024_v38  ;;  %v1102_v11 = vmul.f32 1.442695, %v1027_v34 }
 0x162   :  { %2402 = vpow2.f32 %v1072_v54  ;;  %v1108_v19 = vmul.f32 1.442695, %v1030_v40  ;;  %v1114_v54 = vmul.f32 1.442695, %v1033_v47  ;;  %v1120_v49 = vmul.f32 1.442695, %v1036_v52 }
 0x163   :  { %2404 = vpow2.f32 %v1078_v23  ;;  %v1050_v58 = vmul.f32 1.442695, %v1001_v5  ;;  %v1126_v33 = vmul.f32 1.442695, %v1039_v59  ;;  %v1056_v23 = vmul.f32 1.442695, %v1004_v50 }
 0x164   :  { %2406 = vpow2.f32 %v1084_v8  ;;  %v3116_v38 = vmax.f32 %v997_v53, %v998_v18  ;;  %v1062_v40 = vmul.f32 1.442695, %v1007_v22  ;;  %v1068_v47 = vmul.f32 1.442695, %v1010_v12 }
 0x165   :  { %2408 = vpow2.f32 %v1090_v44  ;;  %v1074_v8 = vmul.f32 1.442695, %v1013_v3  ;;  %v4277_v3 = vld [vmem:[#allocation6_spill] sm:$0xff]  ;;  %v1086_v55 = vmul.f32 1.442695, %v1019_v30  ;;  %v4279_v7 = vsub.f32 %v2917_v56, %v3037_v29 }
 0x166   :  { %2410 = vpow2.f32 %v1096_v10  ;;  %v1002_v5 = vsub.f32 %v2893_v37, %v3116_v38  ;;  %v1005_v59 = vsub.f32 %v2909_v51, %v3116_v38  ;;  %v1008_v50 = vsub.f32 %v2889_v28, %v3116_v38  ;;  %v4278_v10 = vld [vmem:[#allocation5_spill] sm:$0xff] }
 0x167   :  { %2412 = vpow2.f32 %v1102_v11  ;;  %v1011_v53 = vsub.f32 %v2900_v45, %v3116_v38  ;;  %v1014_v18 = vsub.f32 %v2929_v26, %v3116_v38  ;;  %v1017_v37 = vsub.f32 %v2944_v2, %v3116_v38 }
 0x168   :  { %v3105_v46 = vpop.eup %2394  ;;  %2414 = vpow2.f32 %v1050_v58  ;;  %v1020_v51 = vsub.f32 %v2925_v63, %v3116_v38  ;;  %v1023_v28 = vsub.f32 %v2936_v35, %v3116_v38  ;;  %v1032_v11 = vsub.f32 %v4278_v10, %v3116_v38 }
 0x169   :  { %v3107_v1 = vpop.eup %2396  ;;  %2416 = vpow2.f32 %v1056_v23  ;;  %v1092_v15 = vmul.f32 1.442695, %v1022_v6  ;;  %v1098_v30 = vmul.f32 1.442695, %v1025_v36  ;;  %v1104_v31 = vmul.f32 1.442695, %v4279_v7 }
 0x16a   :  { %v1144_v9 = vadd.f32 %v3107_v1, %v3105_v46  ;;  %v3111_v43 = vpop.eup %2398  ;;  %2418 = vpow2.f32 %v1108_v19  ;;  %v1058_v48 = vmul.f32 1.442695, %v1005_v59  ;;  %v4280_v56 = vsub.f32 %v2939_v41, %v3037_v29 }
 0x16b   :  { %v3119_v52 = vpop.eup %2400  ;;  %2420 = vpow2.f32 %v1062_v40  ;;  %v1080_v40 = vmul.f32 1.442695, %v1016_v27  ;;  %v4281_v59 = vsub.f32 %v2952_v60, %v3037_v29  ;;  %v1070_v41 = vmul.f32 1.442695, %v1011_v53 }
 0x16c   :  { %v1145_v34 = vadd.f32 %v3111_v43, %v1144_v9  ;;  %v3132_v22 = vpop.eup %2402  ;;  %2422 = vpow2.f32 %v1114_v54  ;;  %v1132_v54 = vmul.f32 1.442695, %v1042_v0  ;;  %v1094_v17 = vmul.f32 1.442695, %v1023_v28 }
 0x16d   :  { %v3145_v44 = vpop.eup %2404  ;;  %2424 = vpow2.f32 %v1068_v47 }
 0x16e   :  { %v1146_v21 = vadd.f32 %v3119_v52, %v1145_v34  ;;  %v3158_v9 = vpop.eup %2406  ;;  %2426 = vpow2.f32 %v1120_v49  ;;  %v1138_v49 = vmul.f32 1.442695, %v1045_v42 }
 0x16f   :  { %v3165_v19 = vpop.eup %2408  ;;  %2428 = vpow2.f32 %v1074_v8  ;;  %v1052_v8 = vmul.f32 1.442695, %v1002_v5 }
 0x170   :  { %v1147_v12 = vadd.f32 %v3132_v22, %v1146_v21  ;;  %v1041_v21 = vsub.f32 %v3028_v24, %v3116_v38  ;;  %v3171_v58 = vpop.eup %2410  ;;  %2430 = vpow2.f32 %v1126_v33 }
 0x171   :  { %v3176_v27 = vpop.eup %2412  ;;  %2432 = vpow2.f32 %v1080_v40 }
 0x172   :  { %v1148_v34 = vadd.f32 %v3145_v44, %v1147_v12  ;;  %v3185_v0 = vpop.eup %2414  ;;  %2434 = vpow2.f32 %v1132_v54  ;;  %v1110_v54 = vmul.f32 1.442695, %v4280_v56  ;;  %v3327_v10 = vmul.f32 1.442695, %v1041_v21 }
 0x173   :  { %v3191_v33 = vpop.eup %2416  ;;  %2436 = vpow2.f32 %v1086_v55 }
 0x174   :  { %v1149_v12 = vadd.f32 %v3158_v9, %v1148_v34  ;;  %v3196_v42 = vpop.eup %2418  ;;  %2438 = vpow2.f32 %v1138_v49  ;;  %v1159_v6 = vadd.f32 %v3191_v33, %v3185_v0  ;;  %v1064_v49 = vmul.f32 1.442695, %v1008_v50 }
 0x175   :  { %v3201_v34 = vpop.eup %2420  ;;  %2440 = vpow2.f32 %v1092_v15  ;;  %v1116_v15 = vmul.f32 1.442695, %v4281_v59 }
 0x176   :  { %v1150_v47 = vadd.f32 %v3165_v19, %v1149_v12  ;;  %v3203_v36 = vpop.eup %2422  ;;  %2442 = vpow2.f32 %v1098_v30  ;;  %v1160_v12 = vadd.f32 %v3201_v34, %v1159_v6 }
 0x177   :  { %v3210_v55 = vpop.eup %2424  ;;  %2444 = vpow2.f32 %v1104_v31  ;;  %v4282_v31 = vsub.f32 %v2975_v62, %v3037_v29 }
 0x178   :  { %v1151_v61 = vadd.f32 %v3171_v58, %v1150_v47  ;;  %v3212_v5 = vpop.eup %2426  ;;  %2446 = vpow2.f32 %v1052_v8  ;;  %v1076_v8 = vmul.f32 1.442695, %v1014_v18 }
 0x179   :  { %v3219_v30 = vpop.eup %2428  ;;  %2448 = vpow2.f32 %v1058_v48  ;;  %v1122_v60 = vmul.f32 1.442695, %v4282_v31  ;;  %v4283_v48 = vsub.f32 %v2988_v32, %v3037_v29 }
 0x17a   :  { %v1152_v4 = vadd.f32 %v3176_v27, %v1151_v61  ;;  %v1161_v61 = vadd.f32 %v3210_v55, %v1160_v12  ;;  %v3224_v7 = vpop.eup %2430  ;;  %2450 = vpow2.f32 %v1110_v54  ;;  %v1082_v54 = vmul.f32 1.442695, %v1017_v37 }
 0x17b   :  { %v3231_v6 = vpop.eup %2432  ;;  %2452 = vpow2.f32 %v1064_v49 }
 0x17c   :  { %v1153_v40 = vadd.f32 %v3196_v42, %v1152_v4  ;;  %v1162_v4 = vadd.f32 %v3219_v30, %v1161_v61  ;;  %v3236_v45 = vpop.eup %2434  ;;  %2454 = vpow2.f32 %v1116_v15 }
 0x17d   :  { %v3243_v56 = vpop.eup %2436  ;;  %2456 = vpow2.f32 %v1070_v41  ;;  %v4286_v41 = vsub.f32 %v3011_v16, %v3037_v29 }
 0x17e   :  { %v1154_v47 = vadd.f32 %v3203_v36, %v1153_v40  ;;  %v1128_v40 = vmul.f32 1.442695, %v4283_v48  ;;  %v1163_v62 = vadd.f32 %v3231_v6, %v1162_v4  ;;  %v3248_v26 = vpop.eup %2438  ;;  %2458 = vpow2.f32 %v1122_v60 }
 0x17f   :  { %v3252_v49 = vpop.eup %2440  ;;  %2460 = vpow2.f32 %v1076_v8  ;;  %v1140_v60 = vmul.f32 1.442695, %v1046_v14  ;;  %v1088_v48 = vmul.f32 1.442695, %v1020_v51  ;;  %v4290_v51 = vsub.f32 %v2980_v25, %v3116_v38 }
 0x180   :  { %v1155_v50 = vadd.f32 %v3212_v5, %v1154_v47  ;;  %v1164_v12 = vadd.f32 %v3243_v56, %v1163_v62  ;;  %v3254_v32 = vpop.eup %2442  ;;  %2462 = vpow2.f32 %v1128_v40  ;;  %v4289_v62 = vsub.f32 %v4277_v3, %v3116_v38 }
 0x181   :  { %v3258_v15 = vpop.eup %2444  ;;  %2464 = vpow2.f32 %v1082_v54  ;;  %v1112_v25 = vmul.f32 1.442695, %v1032_v11 }
 0x182   :  { %v1156_v53 = vadd.f32 %v3224_v7, %v1155_v50  ;;  %v1165_v59 = vadd.f32 %v3252_v49, %v1164_v12  ;;  %v3260_v2 = vpop.eup %2446  ;;  %v1134_v50 = vmul.f32 1.442695, %v4286_v41  ;;  %v1100_v54 = vmul.f32 1.442695, %v4289_v62 }
 0x183   :  { %4284 = vst [vmem:[#allocation6_spill] sm:$0xff] %v3260_v2  ;;  %v3263_v61 = vpop.eup %2448  ;;  %v1106_v12 = vmul.f32 1.442695, %v4290_v51  ;;  %v4294_v41 = vsub.f32 %v2972_v13, %v3116_v38 }
 0x184   :  { %v1157_v18 = vadd.f32 %v3236_v45, %v1156_v53  ;;  %v1166_v37 = vadd.f32 %v3254_v32, %v1165_v59  ;;  %4285 = vst [vmem:[#allocation5_spill] sm:$0xff] %v3263_v61  ;;  %v3268_v31 = vpop.eup %2450  ;;  %v1174_v8 = vadd.f32 %v3263_v61, %v3260_v2 }
 0x185   :  { %v3276_v53 = vpop.eup %2452 }
 0x186   :  { %v1158_v47 = vadd.f32 %v3248_v26, %v1157_v18  ;;  %v1167_v4 = vadd.f32 %v3258_v15, %v1166_v37  ;;  %4287 = vst [vmem:[#allocation7_spill] sm:$0xff] %v3276_v53  ;;  %v3281_v40 = vpop.eup %2454  ;;  %v1175_v29 = vadd.f32 %v3276_v53, %v1174_v8 }
 0x187   :  { %v3288_v14 = vpop.eup %2456 }
 0x188   :  { %2466 = vrcp.f32 %v1158_v47  ;;  %v1168_v16 = vadd.f32 %v3268_v31, %v1167_v4  ;;  %4288 = vst [vmem:[#allocation8_spill] sm:$0xff] %v3288_v14  ;;  %v3293_v18 = vpop.eup %2458  ;;  %v1176_v35 = vadd.f32 %v3288_v14, %v1175_v29 }
 0x189   :  { %2468 = vpow2.f32 %v1134_v50  ;;  %v3300_v28 = vpop.eup %2460  ;;  %v3314_v50 = vmul.f32 1.442695, %v4294_v41 }
 0x18a   :  { %2470 = vpow2.f32 %v1140_v60  ;;  %v1169_v63 = vadd.f32 %v3281_v40, %v1168_v16  ;;  %4291 = vst [vmem:[#allocation9_spill] sm:$0xff] %v3300_v28  ;;  %v3302_v47 = vpop.eup %2462  ;;  %v1177_v59 = vadd.f32 %v3300_v28, %v1176_v35  ;;  %v4295_v60 = vsub.f32 %v3000_v57, %v3116_v38 }
 0x18b   :  { %2472 = vpow2.f32 %v1088_v48  ;;  %4292 = vst [vmem:[#allocation10_spill] sm:$0xff] %v3302_v47  ;;  %v3306_v37 = vpop.eup %2464 }
 0x18c   :  { %v1170_v3 = vadd.f32 %v3293_v18, %v1169_v63  ;;  %2474 = vpow2.f32 %v1094_v17  ;;  %4293 = vst [vmem:[#allocation11_spill] sm:$0xff] %v3306_v37  ;;  %v3319_v4 = vmul.f32 1.442695, %v4295_v60  ;;  %v3330_v13 = vadd.f32 %v3306_v37, %v1177_v59 }
 0x18d   :  { %2476 = vpow2.f32 %v1100_v54 }
 0x18e   :  { %v3322_v48 = vadd.f32 %v3302_v47, %v1170_v3  ;;  %2478 = vpow2.f32 %v1106_v12 }
 0x18f   :  { %2480 = vpow2.f32 %v1112_v25 }
 0x190   :  { %2482 = vpow2.f32 %v3314_v50 }
 0x191   :  { %2484 = vpow2.f32 %v3319_v4 }
 0x192   :  { %v2467_v8 = vpop.eup %2466  ;;  %2486 = vpow2.f32 %v3327_v10 }
 0x193   :  { %v3333_v11 = vmul.f32 %v2467_v8, %v3105_v46  ;;  %v3336_v57 = vmul.f32 %v2467_v8, %v3107_v1  ;;  %v3339_v16 = vmul.f32 %v2467_v8, %v3111_v43  ;;  %v3342_v17 = vmul.f32 %v2467_v8, %v3119_v52 }
 0x194   :  { %v3345_v24 = vmul.f32 %v2467_v8, %v3132_v22  ;;  %v3348_v21 = vmul.f32 %v2467_v8, %v3145_v44  ;;  %v3351_v29 = vmul.f32 %v2467_v8, %v3158_v9  ;;  %v3354_v46 = vmul.f32 %v2467_v8, %v3165_v19 }
 0x195   :  { %v3357_v43 = vmul.f32 %v2467_v8, %v3171_v58  ;;  %v3360_v1 = vmul.f32 %v2467_v8, %v3176_v27  ;;  %v3363_v52 = vmul.f32 %v2467_v8, %v3196_v42  ;;  %v3366_v22 = vmul.f32 %v2467_v8, %v3203_v36  ;;  %v3380_v27 = vpop.eup %2468 }
 0x196   :  { %v3369_v44 = vmul.f32 %v2467_v8, %v3212_v5  ;;  %v3372_v9 = vmul.f32 %v2467_v8, %v3224_v7  ;;  %v3375_v19 = vmul.f32 %v2467_v8, %v3236_v45  ;;  %v3378_v58 = vmul.f32 %v2467_v8, %v3248_v26  ;;  %v3385_v5 = vpop.eup %2470 }
 0x197   :  { %v1288_v42 = vrot.slane %v3336_v57, 7  ;;  %v1291_v62 = vrot.slane %v3339_v16, 6  ;;  %v1294_v36 = vrot.slane %v3342_v17, 5  ;;  %v1297_v7 = vrot.slane %v3345_v24, 4  ;;  %v3391_v63 = vpop.eup %2472 }
 0x198   :  { %v1300_v54 = vrot.slane %v3348_v21, 3  ;;  %v1303_v45 = vrot.slane %v3351_v29, 2  ;;  %v1337_v26 = vrot.slane %v3360_v1, 7  ;;  %v1306_v12 = vrot.slane %v3354_v46, 1  ;;  %v3398_v59 = vpop.eup %2474 }
 0x199   :  { %v1290_v51 = vsel %vm1289_vm0, %v1288_v42, %v3333_v11  ;;  %v1339_v35 = vrot.slane %v3363_v52, 6  ;;  %v1341_v3 = vrot.slane %v3366_v22, 5  ;;  %v1343_v60 = vrot.slane %v3369_v44, 4  ;;  %v3405_v23 = vpop.eup %2476 }
 0x19a   :  { %v1293_v25 = vsel %vm1292_vm1, %v1291_v62, %v1290_v51  ;;  %v1338_v41 = vsel %vm1289_vm0, %v1337_v26, %v3357_v43  ;;  %v1345_v8 = vrot.slane %v3372_v9, 3  ;;  %v1347_v28 = vrot.slane %v3375_v19, 2  ;;  %v3411_v53 = vpop.eup %2478 }
 0x19b   :  { %v1296_v42 = vsel %vm1295_vm2, %v1294_v36, %v1293_v25  ;;  %v1340_v37 = vsel %vm1292_vm1, %v1339_v35, %v1338_v41  ;;  %v1391_v14 = vrot.slane %v3333_v11, 1  ;;  %v1349_v51 = vrot.slane %v3378_v58, 1 }
 0x19c   :  { %v1299_v62 = vsel %vm1298_vm3, %v1297_v7, %v1296_v42  ;;  %v1342_v26 = vsel %vm1295_vm2, %v1341_v3, %v1340_v37  ;;  %v1393_v61 = vrot.slane %v3339_v16, 7  ;;  %v1395_v25 = vrot.slane %v3342_v17, 6 }
 0x19d   :  { %v1302_v2 = vsel %vm1301_vm4, %v1300_v54, %v1299_v62  ;;  %v1344_v36 = vsel %vm1298_vm3, %v1343_v60, %v1342_v26  ;;  %v1392_v35 = vsel %vm1289_vm0, %v3336_v57, %v1391_v14  ;;  %v1397_v37 = vrot.slane %v3345_v24, 5 }
 0x19e   :  { %v1305_v41 = vsel %vm1304_vm5, %v1303_v45, %v1302_v2  ;;  %v1346_v47 = vsel %vm1301_vm4, %v1345_v8, %v1344_v36  ;;  %v1394_v7 = vsel %vm1292_vm1, %v1393_v61, %v1392_v35  ;;  %v1399_v60 = vrot.slane %v3348_v21, 4  ;;  %v3434_v61 = vpop.eup %2480 }
 0x19f   :  { %v1308_v3 = vsel %vm1307_vm6, %v1306_v12, %v1305_v41  ;;  %v1348_v42 = vsel %vm1304_vm5, %v1347_v28, %v1346_v47  ;;  %v1396_v54 = vsel %vm1295_vm2, %v1395_v25, %v1394_v7  ;;  %v1401_v2 = vrot.slane %v3351_v29, 3 }
 0x1a0   :  { %v1350_v14 = vsel %vm1307_vm6, %v1349_v51, %v1348_v42  ;;  %1385 = vst [vmem:[#allocation2] sm:$0xff] %v1308_v3  ;;  %v1398_v62 = vsel %vm1298_vm3, %v1397_v37, %v1396_v54  ;;  %v1433_v45 = vrot.slane %v3357_v43, 1  ;;  %v1403_v28 = vrot.slane %v3354_v46, 2 }
 0x1a1   :  { %1388 = vst [vmem:[#allocation2 + $0x18] sm:$0xff] %v1350_v14  ;;  %v1400_v12 = vsel %vm1301_vm4, %v1399_v60, %v1398_v62  ;;  %v1435_v47 = vrot.slane %v3363_v52, 7  ;;  %v1437_v8 = vrot.slane %v3366_v22, 6  ;;  %v1439_v36 = vrot.slane %v3369_v44, 5 }
 0x1a2   :  { %v1402_v26 = vsel %vm1304_vm5, %v1401_v2, %v1400_v12  ;;  %v1434_v51 = vsel %vm1289_vm0, %v3360_v1, %v1433_v45  ;;  %v1441_v35 = vrot.slane %v3372_v9, 4  ;;  %v1443_v7 = vrot.slane %v3375_v19, 3 }
 0x1a3   :  { %v1404_v25 = vsel %vm1307_vm6, %v1403_v28, %v1402_v26  ;;  %v1436_v41 = vsel %vm1292_vm1, %v1435_v47, %v1434_v51  ;;  %v1488_v37 = vrot.slane %v3333_v11, 2  ;;  %v1445_v42 = vrot.slane %v3378_v58, 2 }
 0x1a4   :  { %v1438_v3 = vsel %vm1295_vm2, %v1437_v8, %v1436_v41  ;;  %1482 = vst [vmem:[#allocation2 + $0x30] sm:$0xff] %v1404_v25  ;;  %v1489_v54 = vrot.slane %v3336_v57, 1  ;;  %v1492_v60 = vrot.slane %v3342_v17, 7  ;;  %v1494_v62 = vrot.slane %v3345_v24, 6 }
 0x1a5   :  { %v1440_v14 = vsel %vm1298_vm3, %v1439_v36, %v1438_v3  ;;  %v1496_v2 = vrot.slane %v3348_v21, 5  ;;  %v1498_v45 = vrot.slane %v3351_v29, 4  ;;  %v1530_v47 = vrot.slane %v3357_v43, 2 }
 0x1a6   :  { %v1442_v12 = vsel %vm1301_vm4, %v1441_v35, %v1440_v14  ;;  %v1490_v28 = vsel %vm1289_vm0, %v1489_v54, %v1488_v37  ;;  %v1531_v8 = vrot.slane %v3360_v1, 1  ;;  %v1500_v36 = vrot.slane %v3354_v46, 3 }
 0x1a7   :  { %v1444_v26 = vsel %vm1304_vm5, %v1443_v7, %v1442_v12  ;;  %v1491_v51 = vsel %vm1292_vm1, %v3339_v16, %v1490_v28  ;;  %v1534_v25 = vrot.slane %v3366_v22, 7  ;;  %v1536_v37 = vrot.slane %v3369_v44, 6 }
 0x1a8   :  { %v1446_v41 = vsel %vm1307_vm6, %v1445_v42, %v1444_v26  ;;  %v1493_v3 = vsel %vm1295_vm2, %v1492_v60, %v1491_v51  ;;  %v1532_v35 = vsel %vm1289_vm0, %v1531_v8, %v1530_v47  ;;  %v1538_v14 = vrot.slane %v3372_v9, 5 }
 0x1a9   :  { %1485 = vst [vmem:[#allocation2 + $0x48] sm:$0xff] %v1446_v41  ;;  %v1495_v54 = vsel %vm1298_vm3, %v1494_v62, %v1493_v3  ;;  %v1533_v7 = vsel %vm1292_vm1, %v3363_v52, %v1532_v35  ;;  %v1540_v12 = vrot.slane %v3375_v19, 4  ;;  %v1585_v60 = vrot.slane %v3333_v11, 3 }
 0x1aa   :  { %v1497_v28 = vsel %vm1301_vm4, %v1496_v2, %v1495_v54  ;;  %v1535_v42 = vsel %vm1295_vm2, %v1534_v25, %v1533_v7  ;;  %v1586_v47 = vrot.slane %v3336_v57, 2  ;;  %v1542_v62 = vrot.slane %v3378_v58, 3 }
 0x1ab   :  { %v1499_v8 = vsel %vm1304_vm5, %v1498_v45, %v1497_v28  ;;  %v1537_v26 = vsel %vm1298_vm3, %v1536_v37, %v1535_v42  ;;  %v1588_v51 = vrot.slane %v3339_v16, 1  ;;  %v1591_v25 = vrot.slane %v3345_v24, 7 }
 0x1ac   :  { %v1501_v41 = vsel %vm1307_vm6, %v1500_v36, %v1499_v8  ;;  %v1539_v3 = vsel %vm1301_vm4, %v1538_v14, %v1537_v26  ;;  %v1587_v2 = vsel %vm1289_vm0, %v1586_v47, %v1585_v60  ;;  %v1593_v45 = vrot.slane %v3348_v21, 6 }
 0x1ad   :  { %v1541_v35 = vsel %vm1304_vm5, %v1540_v12, %v1539_v3  ;;  %1579 = vst [vmem:[#allocation2 + $0x60] sm:$0xff] %v1501_v41  ;;  %v1589_v54 = vsel %vm1292_vm1, %v1588_v51, %v1587_v2  ;;  %v1595_v37 = vrot.slane %v3351_v29, 5  ;;  %v1627_v14 = vrot.slane %v3357_v43, 3 }
 0x1ae   :  { %v1543_v7 = vsel %vm1307_vm6, %v1542_v62, %v1541_v35  ;;  %v1590_v36 = vsel %vm1295_vm2, %v3342_v17, %v1589_v54  ;;  %v1628_v28 = vrot.slane %v3360_v1, 2  ;;  %v1597_v12 = vrot.slane %v3354_v46, 4 }
 0x1af   :  { %1582 = vst [vmem:[#allocation2 + $0x78] sm:$0xff] %v1543_v7  ;;  %v1592_v42 = vsel %vm1298_vm3, %v1591_v25, %v1590_v36  ;;  %v1630_v60 = vrot.slane %v3363_v52, 1  ;;  %v1633_v47 = vrot.slane %v3369_v44, 7  ;;  %v1635_v62 = vrot.slane %v3372_v9, 6 }
 0x1b0   :  { %v1594_v8 = vsel %vm1301_vm4, %v1593_v45, %v1592_v42  ;;  %v1629_v26 = vsel %vm1289_vm0, %v1628_v28, %v1627_v14  ;;  %v1637_v51 = vrot.slane %v3375_v19, 5  ;;  %v1682_v2 = vrot.slane %v3333_v11, 4 }
 0x1b1   :  { %v1596_v41 = vsel %vm1304_vm5, %v1595_v37, %v1594_v8  ;;  %v1631_v3 = vsel %vm1292_vm1, %v1630_v60, %v1629_v26  ;;  %v1683_v25 = vrot.slane %v3336_v57, 3  ;;  %v1639_v45 = vrot.slane %v3378_v58, 4 }
 0x1b2   :  { %v1598_v35 = vsel %vm1307_vm6, %v1597_v12, %v1596_v41  ;;  %v1632_v54 = vsel %vm1295_vm2, %v3366_v22, %v1631_v3  ;;  %v1685_v7 = vrot.slane %v3339_v16, 2  ;;  %v1687_v14 = vrot.slane %v3342_v17, 1 }
 0x1b3   :  { %v1634_v36 = vsel %vm1298_vm3, %v1633_v47, %v1632_v54  ;;  %1676 = vst [vmem:[#allocation2 + $0x90] sm:$0xff] %v1598_v35  ;;  %v1684_v37 = vsel %vm1289_vm0, %v1683_v25, %v1682_v2  ;;  %v1690_v28 = vrot.slane %v3348_v21, 7  ;;  %v1692_v60 = vrot.slane %v3351_v29, 6 }
 0x1b4   :  { %v1636_v42 = vsel %vm1301_vm4, %v1635_v62, %v1634_v36  ;;  %v1686_v12 = vsel %vm1292_vm1, %v1685_v7, %v1684_v37  ;;  %v1724_v8 = vrot.slane %v3357_v43, 4  ;;  %v1725_v47 = vrot.slane %v3360_v1, 3 }
 0x1b5   :  { %v1638_v26 = vsel %vm1304_vm5, %v1637_v51, %v1636_v42  ;;  %v1688_v41 = vsel %vm1295_vm2, %v1687_v14, %v1686_v12  ;;  %v1727_v3 = vrot.slane %v3363_v52, 2  ;;  %v1694_v62 = vrot.slane %v3354_v46, 5 }
 0x1b6   :  { %v1640_v2 = vsel %vm1307_vm6, %v1639_v45, %v1638_v26  ;;  %v1689_v25 = vsel %vm1298_vm3, %v3345_v24, %v1688_v41  ;;  %v1729_v35 = vrot.slane %v3366_v22, 1  ;;  %v1726_v51 = vsel %vm1289_vm0, %v1725_v47, %v1724_v8 }
 0x1b7   :  { %1679 = vst [vmem:[#allocation2 + $0xa8] sm:$0xff] %v1640_v2  ;;  %v1691_v54 = vsel %vm1301_vm4, %v1690_v28, %v1689_v25  ;;  %v1732_v7 = vrot.slane %v3372_v9, 7  ;;  %v1734_v36 = vrot.slane %v3375_v19, 6  ;;  %v1728_v45 = vsel %vm1292_vm1, %v1727_v3, %v1726_v51 }
 0x1b8   :  { %v1693_v37 = vsel %vm1304_vm5, %v1692_v60, %v1691_v54  ;;  %v1779_v14 = vrot.slane %v3333_v11, 5  ;;  %v1780_v42 = vrot.slane %v3336_v57, 4  ;;  %v1730_v26 = vsel %vm1295_vm2, %v1729_v35, %v1728_v45 }
 0x1b9   :  { %v1695_v12 = vsel %vm1307_vm6, %v1694_v62, %v1693_v37  ;;  %v1736_v28 = vrot.slane %v3378_v58, 5  ;;  %v1782_v8 = vrot.slane %v3339_v16, 3  ;;  %v1731_v41 = vsel %vm1298_vm3, %v3369_v44, %v1730_v26 }
 0x1ba   :  { %1773 = vst [vmem:[#allocation2 + $0xc0] sm:$0xff] %v1695_v12  ;;  %v1781_v60 = vsel %vm1289_vm0, %v1780_v42, %v1779_v14  ;;  %v1784_v47 = vrot.slane %v3342_v17, 2  ;;  %v1786_v3 = vrot.slane %v3345_v24, 1  ;;  %v1733_v2 = vsel %vm1301_vm4, %v1732_v7, %v1731_v41 }
 0x1bb   :  { %v1783_v25 = vsel %vm1292_vm1, %v1782_v8, %v1781_v60  ;;  %v1789_v62 = vrot.slane %v3351_v29, 7  ;;  %v1821_v35 = vrot.slane %v3357_v43, 5  ;;  %v1735_v54 = vsel %vm1304_vm5, %v1734_v36, %v1733_v2 }
 0x1bc   :  { %v1785_v51 = vsel %vm1295_vm2, %v1784_v47, %v1783_v25  ;;  %v1822_v37 = vrot.slane %v3360_v1, 4  ;;  %v1824_v45 = vrot.slane %v3363_v52, 3  ;;  %v1737_v14 = vsel %vm1307_vm6, %v1736_v28, %v1735_v54 }
 0x1bd   :  { %v1787_v42 = vsel %vm1298_vm3, %v1786_v3, %v1785_v51  ;;  %v1791_v7 = vrot.slane %v3354_v46, 6  ;;  %v1826_v12 = vrot.slane %v3366_v22, 2  ;;  %1776 = vst [vmem:[#allocation2 + $0xd8] sm:$0xff] %v1737_v14  ;;  %v1828_v8 = vrot.slane %v3369_v44, 1 }
 0x1be   :  { %v1788_v26 = vsel %vm1301_vm4, %v3348_v21, %v1787_v42  ;;  %v1823_v36 = vsel %vm1289_vm0, %v1822_v37, %v1821_v35  ;;  %v1831_v41 = vrot.slane %v3375_v19, 7  ;;  %v1876_v47 = vrot.slane %v3333_v11, 6 }
 0x1bf   :  { %v1790_v60 = vsel %vm1304_vm5, %v1789_v62, %v1788_v26  ;;  %v1825_v28 = vsel %vm1292_vm1, %v1824_v45, %v1823_v36  ;;  %v1877_v3 = vrot.slane %v3336_v57, 5  ;;  %v1833_v54 = vrot.slane %v3378_v58, 6 }
 0x1c0   :  { %v1792_v2 = vsel %vm1307_vm6, %v1791_v7, %v1790_v60  ;;  %v1827_v25 = vsel %vm1295_vm2, %v1826_v12, %v1825_v28  ;;  %v1879_v35 = vrot.slane %v3339_v16, 4  ;;  %v1881_v62 = vrot.slane %v3342_v17, 3 }
 0x1c1   :  { %v1829_v51 = vsel %vm1298_vm3, %v1828_v8, %v1827_v25  ;;  %1870 = vst [vmem:[#allocation2 + $0xf0] sm:$0xff] %v1792_v2  ;;  %v1878_v37 = vsel %vm1289_vm0, %v1877_v3, %v1876_v47  ;;  %v1883_v45 = vrot.slane %v3345_v24, 2  ;;  %v1885_v7 = vrot.slane %v3348_v21, 1 }
 0x1c2   :  { %v1830_v14 = vsel %vm1301_vm4, %v3372_v9, %v1829_v51  ;;  %v1880_v42 = vsel %vm1292_vm1, %v1879_v35, %v1878_v37  ;;  %v1918_v12 = vrot.slane %v3357_v43, 6  ;;  %v1919_v8 = vrot.slane %v3360_v1, 5 }
 0x1c3   :  { %v1832_v26 = vsel %vm1304_vm5, %v1831_v41, %v1830_v14  ;;  %v1882_v36 = vsel %vm1295_vm2, %v1881_v62, %v1880_v42  ;;  %v1921_v60 = vrot.slane %v3363_v52, 4  ;;  %v1888_v3 = vrot.slane %v3354_v46, 7 }
 0x1c4   :  { %v1834_v28 = vsel %vm1307_vm6, %v1833_v54, %v1832_v26  ;;  %v1884_v47 = vsel %vm1298_vm3, %v1883_v45, %v1882_v36  ;;  %v1923_v2 = vrot.slane %v3366_v22, 3  ;;  %v1920_v35 = vsel %vm1289_vm0, %v1919_v8, %v1918_v12 }
 0x1c5   :  { %1873 = vst [vmem:[#allocation2 + $0x108] sm:$0xff] %v1834_v28  ;;  %v1886_v25 = vsel %vm1301_vm4, %v1885_v7, %v1884_v47  ;;  %v1925_v41 = vrot.slane %v3369_v44, 2  ;;  %v1927_v51 = vrot.slane %v3372_v9, 1  ;;  %v1922_v54 = vsel %vm1292_vm1, %v1921_v60, %v1920_v35 }
 0x1c6   :  { %v1887_v37 = vsel %vm1304_vm5, %v3351_v29, %v1886_v25  ;;  %v1973_v62 = vrot.slane %v3333_v11, 7  ;;  %v1974_v45 = vrot.slane %v3336_v57, 6  ;;  %v1924_v42 = vsel %vm1295_vm2, %v1923_v2, %v1922_v54 }
 0x1c7   :  { %v1889_v14 = vsel %vm1307_vm6, %v1888_v3, %v1887_v37  ;;  %v1930_v7 = vrot.slane %v3378_v58, 7  ;;  %v1976_v12 = vrot.slane %v3339_v16, 5  ;;  %v1926_v26 = vsel %vm1298_vm3, %v1925_v41, %v1924_v42 }
 0x1c8   :  { %1967 = vst [vmem:[#allocation2 + $0x120] sm:$0xff] %v1889_v14  ;;  %v1975_v36 = vsel %vm1289_vm0, %v1974_v45, %v1973_v62  ;;  %v1978_v8 = vrot.slane %v3342_v17, 4  ;;  %v1980_v60 = vrot.slane %v3345_v24, 3  ;;  %v1928_v11 = vsel %vm1301_vm4, %v1927_v51, %v1926_v26  ;;  %v3645_v14 = vpop.eup %2482 }
 0x1c9   :  { %v1977_v57 = vsel %vm1292_vm1, %v1976_v12, %v1975_v36  ;;  %v1982_v28 = vrot.slane %v3348_v21, 2  ;;  %v2015_v47 = vrot.slane %v3357_v43, 7  ;;  %v1929_v16 = vsel %vm1304_vm5, %v3375_v19, %v1928_v11  ;;  %v3652_v26 = vpop.eup %2484 }
 0x1ca   :  { %v1979_v3 = vsel %vm1295_vm2, %v1978_v8, %v1977_v57  ;;  %v2016_v2 = vrot.slane %v3360_v1, 6  ;;  %v2018_v25 = vrot.slane %v3363_v52, 5  ;;  %v1931_v17 = vsel %vm1307_vm6, %v1930_v7, %v1929_v16  ;;  %v3655_v8 = vpop.eup %2486 }
 0x1cb   :  { %v1981_v24 = vsel %vm1298_vm3, %v1980_v60, %v1979_v3  ;;  %v1984_v35 = vrot.slane %v3351_v29, 1  ;;  %1970 = vst [vmem:[#allocation2 + $0x138] sm:$0xff] %v1931_v17  ;;  %v2020_v41 = vrot.slane %v3366_v22, 4  ;;  %v2022_v51 = vrot.slane %v3369_v44, 3 }
 0x1cc   :  { %v1983_v21 = vsel %vm1301_vm4, %v1982_v28, %v1981_v24  ;;  %v2017_v43 = vsel %vm1289_vm0, %v2016_v2, %v2015_v47  ;;  %v1172_v37 = vadd.f32 %v3380_v27, %v3322_v48  ;;  %v1179_v29 = vadd.f32 %v3391_v63, %v3330_v13 }
 0x1cd   :  { %v1985_v1 = vsel %vm1304_vm5, %v1984_v35, %v1983_v21  ;;  %v2019_v52 = vsel %vm1292_vm1, %v2018_v25, %v2017_v43  ;;  %v2024_v62 = vrot.slane %v3372_v9, 2  ;;  %v2026_v44 = vrot.slane %v3375_v19, 1 }
 0x1ce   :  { %v1986_v50 = vsel %vm1307_vm6, %v3354_v46, %v1985_v1  ;;  %v2021_v54 = vsel %vm1295_vm2, %v2020_v41, %v2019_v52  ;;  %v1173_v45 = vadd.f32 %v3385_v5, %v1172_v37  ;;  %v1180_v48 = vadd.f32 %v3398_v59, %v1179_v29 }
 0x1cf   :  { %v2023_v22 = vsel %vm1298_vm3, %v2022_v51, %v2021_v54  ;;  %2064 = vst [vmem:[#allocation2 + $0x150] sm:$0xff] %v1986_v50  ;;  %v4296_v7 = vsub.f32 %v2996_v39, %v3116_v38  ;;  %v4297_v60 = vsub.f32 %v3008_v20, %v3116_v38 }
 0x1d0   :  { %v2025_v13 = vsel %vm1301_vm4, %v2024_v62, %v2023_v22  ;;  %2488 = vrcp.f32 %v1173_v45  ;;  %v1181_v9 = vadd.f32 %v3405_v23, %v1180_v48 }
 0x1d1   :  { %v2027_v46 = vsel %vm1304_vm5, %v2026_v44, %v2025_v13  ;;  %v1136_v12 = vmul.f32 1.442695, %v4296_v7  ;;  %v1142_v11 = vmul.f32 1.442695, %v4297_v60 }
 0x1d2   :  { %v2028_v4 = vsel %vm1307_vm6, %v3378_v58, %v2027_v46  ;;  %v1182_v19 = vadd.f32 %v3411_v53, %v1181_v9 }
 0x1d3   :  { %2067 = vst [vmem:[#allocation2 + $0x168] sm:$0xff] %v2028_v4  ;;  %2490 = vpow2.f32 %v1136_v12 }
 0x1d4   :  { %v1183_v42 = vadd.f32 %v3434_v61, %v1182_v19  ;;  %2492 = vpow2.f32 %v1142_v11 }
 0x1d6   :  { %v1184_v10 = vadd.f32 %v3645_v14, %v1183_v42 }
 0x1d8   :  { %v1185_v36 = vadd.f32 %v3652_v26, %v1184_v10 }
 0x1da   :  { %v2489_v58 = vpop.eup %2488  ;;  %v3661_v57 = vadd.f32 %v3655_v8, %v1185_v36 }
 0x1db   :  { %v3664_v39 = vmul.f32 %v2489_v58, %v3185_v0  ;;  %v3667_v28 = vmul.f32 %v2489_v58, %v3191_v33  ;;  %v3670_v47 = vmul.f32 %v2489_v58, %v3201_v34  ;;  %v3673_v16 = vmul.f32 %v2489_v58, %v3210_v55 }
 0x1dc   :  { %v3676_v3 = vmul.f32 %v2489_v58, %v3219_v30  ;;  %v3679_v20 = vmul.f32 %v2489_v58, %v3231_v6  ;;  %v3682_v38 = vmul.f32 %v2489_v58, %v3243_v56  ;;  %v3685_v0 = vmul.f32 %v2489_v58, %v3252_v49  ;;  %v4298_v56 = vld [vmem:[#allocation10_spill] sm:$0xff] }
 0x1dd   :  { %v3688_v33 = vmul.f32 %v2489_v58, %v3254_v32  ;;  %v3691_v34 = vmul.f32 %v2489_v58, %v3258_v15  ;;  %v3694_v55 = vmul.f32 %v2489_v58, %v3268_v31  ;;  %v3697_v30 = vmul.f32 %v2489_v58, %v3281_v40  ;;  %v3732_v54 = vpop.eup %2490 }
 0x1de   :  { %v3700_v6 = vmul.f32 %v2489_v58, %v3293_v18  ;;  %v3703_v2 = vmul.f32 %v2489_v58, %v4298_v56  ;;  %v3706_v49 = vmul.f32 %v2489_v58, %v3380_v27  ;;  %v3709_v32 = vmul.f32 %v2489_v58, %v3385_v5 }
 0x1df   :  { %v1309_v15 = vrot.slane %v3667_v28, 7  ;;  %v1311_v31 = vrot.slane %v3670_v47, 6  ;;  %v1313_v25 = vrot.slane %v3673_v16, 5  ;;  %v1315_v40 = vrot.slane %v3676_v3, 4 }
 0x1e0   :  { %v1317_v18 = vrot.slane %v3679_v20, 3  ;;  %v1319_v17 = vrot.slane %v3682_v38, 2  ;;  %v1351_v24 = vrot.slane %v3691_v34, 7  ;;  %v1321_v5 = vrot.slane %v3685_v0, 1 }
 0x1e1   :  { %v1310_v27 = vsel %vm1289_vm0, %v1309_v15, %v3664_v39  ;;  %v1353_v35 = vrot.slane %v3694_v55, 6  ;;  %v1355_v21 = vrot.slane %v3697_v30, 5  ;;  %v1357_v51 = vrot.slane %v3700_v6, 4 }
 0x1e2   :  { %v1312_v43 = vsel %vm1292_vm1, %v1311_v31, %v1310_v27  ;;  %v1352_v41 = vsel %vm1289_vm0, %v1351_v24, %v3688_v33  ;;  %v1359_v1 = vrot.slane %v3703_v2, 3  ;;  %v1361_v29 = vrot.slane %v3706_v49, 2  ;;  %v3755_v31 = vpop.eup %2492 }
 0x1e3   :  { %v1314_v52 = vsel %vm1295_vm2, %v1313_v25, %v1312_v43  ;;  %v1354_v37 = vsel %vm1292_vm1, %v1353_v35, %v1352_v41  ;;  %v1405_v50 = vrot.slane %v3664_v39, 1  ;;  %v1363_v44 = vrot.slane %v3709_v32, 1 }
 0x1e4   :  { %v1316_v62 = vsel %vm1298_vm3, %v1315_v40, %v1314_v52  ;;  %v1356_v22 = vsel %vm1295_vm2, %v1355_v21, %v1354_v37  ;;  %v1407_v45 = vrot.slane %v3670_v47, 7  ;;  %v1409_v9 = vrot.slane %v3673_v16, 6 }
 0x1e5   :  { %v1318_v48 = vsel %vm1301_vm4, %v1317_v18, %v1316_v62  ;;  %v1358_v13 = vsel %vm1298_vm3, %v1357_v51, %v1356_v22  ;;  %v1406_v46 = vsel %vm1289_vm0, %v3667_v28, %v1405_v50  ;;  %v1411_v7 = vrot.slane %v3676_v3, 5 }
 0x1e6   :  { %v1320_v4 = vsel %vm1304_vm5, %v1319_v17, %v1318_v48  ;;  %v1360_v19 = vsel %vm1301_vm4, %v1359_v1, %v1358_v13  ;;  %v1408_v42 = vsel %vm1292_vm1, %v1407_v45, %v1406_v46  ;;  %v1413_v58 = vrot.slane %v3679_v20, 4 }
 0x1e7   :  { %v1322_v12 = vsel %vm1307_vm6, %v1321_v5, %v1320_v4  ;;  %v1362_v10 = vsel %vm1304_vm5, %v1361_v29, %v1360_v19  ;;  %v1410_v36 = vsel %vm1295_vm2, %v1409_v9, %v1408_v42  ;;  %v1415_v56 = vrot.slane %v3682_v38, 3 }
 0x1e8   :  { %v1364_v60 = vsel %vm1307_vm6, %v1363_v44, %v1362_v10  ;;  %1386 = vst [vmem:[#allocation2 + $0x8] sm:$0xff] %v1322_v12  ;;  %v1412_v11 = vsel %vm1298_vm3, %v1411_v7, %v1410_v36  ;;  %v1447_v15 = vrot.slane %v3688_v33, 1  ;;  %v1417_v40 = vrot.slane %v3685_v0, 2 }
 0x1e9   :  { %1389 = vst [vmem:[#allocation2 + $0x20] sm:$0xff] %v1364_v60  ;;  %v1414_v25 = vsel %vm1301_vm4, %v1413_v58, %v1412_v11  ;;  %v1449_v18 = vrot.slane %v3694_v55, 7  ;;  %v1451_v17 = vrot.slane %v3697_v30, 6  ;;  %v1453_v5 = vrot.slane %v3700_v6, 5 }
 0x1ea   :  { %v1416_v24 = vsel %vm1304_vm5, %v1415_v56, %v1414_v25  ;;  %v1448_v27 = vsel %vm1289_vm0, %v3691_v34, %v1447_v15  ;;  %v1455_v35 = vrot.slane %v3703_v2, 4  ;;  %v1457_v41 = vrot.slane %v3706_v49, 3 }
 0x1eb   :  { %v1418_v21 = vsel %vm1307_vm6, %v1417_v40, %v1416_v24  ;;  %v1450_v43 = vsel %vm1292_vm1, %v1449_v18, %v1448_v27  ;;  %v1502_v51 = vrot.slane %v3664_v39, 2  ;;  %v1459_v52 = vrot.slane %v3709_v32, 2 }
 0x1ec   :  { %v1452_v1 = vsel %vm1295_vm2, %v1451_v17, %v1450_v43  ;;  %1483 = vst [vmem:[#allocation2 + $0x38] sm:$0xff] %v1418_v21  ;;  %v1503_v37 = vrot.slane %v3667_v28, 1  ;;  %v1506_v29 = vrot.slane %v3673_v16, 7  ;;  %v1508_v62 = vrot.slane %v3676_v3, 6 }
 0x1ed   :  { %v1454_v50 = vsel %vm1298_vm3, %v1453_v5, %v1452_v1  ;;  %v1510_v22 = vrot.slane %v3679_v20, 5  ;;  %v1512_v44 = vrot.slane %v3682_v38, 4  ;;  %v1544_v13 = vrot.slane %v3688_v33, 2 }
 0x1ee   :  { %v1456_v45 = vsel %vm1301_vm4, %v1455_v35, %v1454_v50  ;;  %v1504_v48 = vsel %vm1289_vm0, %v1503_v37, %v1502_v51  ;;  %v1545_v46 = vrot.slane %v3691_v34, 1  ;;  %v1514_v19 = vrot.slane %v3685_v0, 3 }
 0x1ef   :  { %v1458_v9 = vsel %vm1304_vm5, %v1457_v41, %v1456_v45  ;;  %v1505_v4 = vsel %vm1292_vm1, %v3670_v47, %v1504_v48  ;;  %v1548_v42 = vrot.slane %v3697_v30, 7  ;;  %v1550_v36 = vrot.slane %v3700_v6, 6 }
 0x1f0   :  { %v1460_v7 = vsel %vm1307_vm6, %v1459_v52, %v1458_v9  ;;  %v1507_v12 = vsel %vm1295_vm2, %v1506_v29, %v1505_v4  ;;  %v1546_v10 = vsel %vm1289_vm0, %v1545_v46, %v1544_v13  ;;  %v1552_v11 = vrot.slane %v3703_v2, 5 }
 0x1f1   :  { %1486 = vst [vmem:[#allocation2 + $0x50] sm:$0xff] %v1460_v7  ;;  %v1509_v58 = vsel %vm1298_vm3, %v1508_v62, %v1507_v12  ;;  %v1547_v60 = vsel %vm1292_vm1, %v3694_v55, %v1546_v10  ;;  %v1554_v56 = vrot.slane %v3706_v49, 4  ;;  %v1599_v40 = vrot.slane %v3664_v39, 3 }
 0x1f2   :  { %v1511_v15 = vsel %vm1301_vm4, %v1510_v22, %v1509_v58  ;;  %v1549_v25 = vsel %vm1295_vm2, %v1548_v42, %v1547_v60  ;;  %v1600_v18 = vrot.slane %v3667_v28, 2  ;;  %v1556_v27 = vrot.slane %v3709_v32, 3 }
 0x1f3   :  { %v1513_v17 = vsel %vm1304_vm5, %v1512_v44, %v1511_v15  ;;  %v1551_v24 = vsel %vm1298_vm3, %v1550_v36, %v1549_v25  ;;  %v1602_v5 = vrot.slane %v3670_v47, 1  ;;  %v1605_v41 = vrot.slane %v3676_v3, 7 }
 0x1f4   :  { %v1515_v35 = vsel %vm1307_vm6, %v1514_v19, %v1513_v17  ;;  %v1553_v21 = vsel %vm1301_vm4, %v1552_v11, %v1551_v24  ;;  %v1601_v43 = vsel %vm1289_vm0, %v1600_v18, %v1599_v40  ;;  %v1607_v52 = vrot.slane %v3679_v20, 6 }
 0x1f5   :  { %v1555_v51 = vsel %vm1304_vm5, %v1554_v56, %v1553_v21  ;;  %1580 = vst [vmem:[#allocation2 + $0x68] sm:$0xff] %v1515_v35  ;;  %v1603_v1 = vsel %vm1292_vm1, %v1602_v5, %v1601_v43  ;;  %v1609_v37 = vrot.slane %v3682_v38, 5  ;;  %v1641_v62 = vrot.slane %v3688_v33, 3 }
 0x1f6   :  { %v1557_v29 = vsel %vm1307_vm6, %v1556_v27, %v1555_v51  ;;  %v1604_v50 = vsel %vm1295_vm2, %v3673_v16, %v1603_v1  ;;  %v1642_v22 = vrot.slane %v3691_v34, 2  ;;  %v1611_v45 = vrot.slane %v3685_v0, 4 }
 0x1f7   :  { %1583 = vst [vmem:[#allocation2 + $0x80] sm:$0xff] %v1557_v29  ;;  %v1606_v44 = vsel %vm1298_vm3, %v1605_v41, %v1604_v50  ;;  %v1644_v48 = vrot.slane %v3694_v55, 1  ;;  %v1647_v13 = vrot.slane %v3700_v6, 7  ;;  %v1649_v4 = vrot.slane %v3703_v2, 6 }
 0x1f8   :  { %v1608_v46 = vsel %vm1301_vm4, %v1607_v52, %v1606_v44  ;;  %v1643_v9 = vsel %vm1289_vm0, %v1642_v22, %v1641_v62  ;;  %v1651_v19 = vrot.slane %v3706_v49, 5  ;;  %v1696_v12 = vrot.slane %v3664_v39, 4 }
 0x1f9   :  { %v1610_v42 = vsel %vm1304_vm5, %v1609_v37, %v1608_v46  ;;  %v1645_v7 = vsel %vm1292_vm1, %v1644_v48, %v1643_v9  ;;  %v1697_v10 = vrot.slane %v3667_v28, 3  ;;  %v1653_v60 = vrot.slane %v3709_v32, 4 }
 0x1fa   :  { %v1612_v36 = vsel %vm1307_vm6, %v1611_v45, %v1610_v42  ;;  %v1646_v58 = vsel %vm1295_vm2, %v3697_v30, %v1645_v7  ;;  %v1699_v11 = vrot.slane %v3670_v47, 2  ;;  %v1701_v25 = vrot.slane %v3673_v16, 1 }
 0x1fb   :  { %v1648_v56 = vsel %vm1298_vm3, %v1647_v13, %v1646_v58  ;;  %1677 = vst [vmem:[#allocation2 + $0x98] sm:$0xff] %v1612_v36  ;;  %v1698_v15 = vsel %vm1289_vm0, %v1697_v10, %v1696_v12  ;;  %v1704_v40 = vrot.slane %v3679_v20, 7  ;;  %v1706_v24 = vrot.slane %v3682_v38, 6 }
 0x1fc   :  { %v1650_v18 = vsel %vm1301_vm4, %v1649_v4, %v1648_v56  ;;  %v1700_v17 = vsel %vm1292_vm1, %v1699_v11, %v1698_v15  ;;  %v1738_v27 = vrot.slane %v3688_v33, 4  ;;  %v1739_v21 = vrot.slane %v3691_v34, 3 }
 0x1fd   :  { %v1652_v5 = vsel %vm1304_vm5, %v1651_v19, %v1650_v18  ;;  %v1702_v35 = vsel %vm1295_vm2, %v1701_v25, %v1700_v17  ;;  %v1741_v43 = vrot.slane %v3694_v55, 2  ;;  %v1708_v1 = vrot.slane %v3685_v0, 5 }
 0x1fe   :  { %v1654_v41 = vsel %vm1307_vm6, %v1653_v60, %v1652_v5  ;;  %v1703_v51 = vsel %vm1298_vm3, %v3676_v3, %v1702_v35  ;;  %v1743_v52 = vrot.slane %v3697_v30, 1  ;;  %v1740_v29 = vsel %vm1289_vm0, %v1739_v21, %v1738_v27 }
 0x1ff   :  { %1680 = vst [vmem:[#allocation2 + $0xb0] sm:$0xff] %v1654_v41  ;;  %v1705_v37 = vsel %vm1301_vm4, %v1704_v40, %v1703_v51  ;;  %v1746_v50 = vrot.slane %v3703_v2, 7  ;;  %v1748_v62 = vrot.slane %v3706_v49, 6  ;;  %v1742_v44 = vsel %vm1292_vm1, %v1741_v43, %v1740_v29 }
 0x200   :  { %v1707_v22 = vsel %vm1304_vm5, %v1706_v24, %v1705_v37  ;;  %v1793_v45 = vrot.slane %v3664_v39, 5  ;;  %v1794_v48 = vrot.slane %v3667_v28, 4  ;;  %v1744_v46 = vsel %vm1295_vm2, %v1743_v52, %v1742_v44 }
 0x201   :  { %v1709_v13 = vsel %vm1307_vm6, %v1708_v1, %v1707_v22  ;;  %v1750_v9 = vrot.slane %v3709_v32, 5  ;;  %v1796_v4 = vrot.slane %v3670_v47, 3  ;;  %v1745_v19 = vsel %vm1298_vm3, %v3700_v6, %v1744_v46 }
 0x202   :  { %1774 = vst [vmem:[#allocation2 + $0xc8] sm:$0xff] %v1709_v13  ;;  %v1795_v42 = vsel %vm1289_vm0, %v1794_v48, %v1793_v45  ;;  %v1798_v7 = vrot.slane %v3673_v16, 2  ;;  %v1800_v12 = vrot.slane %v3676_v3, 1  ;;  %v1747_v10 = vsel %vm1301_vm4, %v1746_v50, %v1745_v19 }
 0x203   :  { %v1797_v36 = vsel %vm1292_vm1, %v1796_v4, %v1795_v42  ;;  %v1803_v58 = vrot.slane %v3682_v38, 7  ;;  %v1835_v60 = vrot.slane %v3688_v33, 5  ;;  %v1749_v11 = vsel %vm1304_vm5, %v1748_v62, %v1747_v10 }
 0x204   :  { %v1799_v56 = vsel %vm1295_vm2, %v1798_v7, %v1797_v36  ;;  %v1836_v15 = vrot.slane %v3691_v34, 4  ;;  %v1838_v25 = vrot.slane %v3694_v55, 3  ;;  %v1751_v40 = vsel %vm1307_vm6, %v1750_v9, %v1749_v11 }
 0x205   :  { %v1801_v18 = vsel %vm1298_vm3, %v1800_v12, %v1799_v56  ;;  %v1805_v17 = vrot.slane %v3685_v0, 6  ;;  %v1840_v24 = vrot.slane %v3697_v30, 2  ;;  %1777 = vst [vmem:[#allocation2 + $0xe0] sm:$0xff] %v1751_v40  ;;  %v1842_v35 = vrot.slane %v3700_v6, 1 }
 0x206   :  { %v1802_v27 = vsel %vm1301_vm4, %v3679_v20, %v1801_v18  ;;  %v1837_v5 = vsel %vm1289_vm0, %v1836_v15, %v1835_v60  ;;  %v1845_v21 = vrot.slane %v3706_v49, 7  ;;  %v1890_v51 = vrot.slane %v3664_v39, 6 }
 0x207   :  { %v1804_v43 = vsel %vm1304_vm5, %v1803_v58, %v1802_v27  ;;  %v1839_v41 = vsel %vm1292_vm1, %v1838_v25, %v1837_v5  ;;  %v1891_v1 = vrot.slane %v3667_v28, 5  ;;  %v1847_v29 = vrot.slane %v3709_v32, 6 }
 0x208   :  { %v1806_v52 = vsel %vm1307_vm6, %v1805_v17, %v1804_v43  ;;  %v1841_v37 = vsel %vm1295_vm2, %v1840_v24, %v1839_v41  ;;  %v1893_v50 = vrot.slane %v3670_v47, 4  ;;  %v1895_v44 = vrot.slane %v3673_v16, 3 }
 0x209   :  { %v1843_v62 = vsel %vm1298_vm3, %v1842_v35, %v1841_v37  ;;  %1871 = vst [vmem:[#allocation2 + $0xf8] sm:$0xff] %v1806_v52  ;;  %v1892_v22 = vsel %vm1289_vm0, %v1891_v1, %v1890_v51  ;;  %v1897_v45 = vrot.slane %v3676_v3, 2  ;;  %v1899_v46 = vrot.slane %v3679_v20, 1 }
 0x20a   :  { %v1844_v48 = vsel %vm1301_vm4, %v3703_v2, %v1843_v62  ;;  %v1894_v13 = vsel %vm1292_vm1, %v1893_v50, %v1892_v22  ;;  %v1932_v9 = vrot.slane %v3688_v33, 6  ;;  %v1933_v42 = vrot.slane %v3691_v34, 5 }
 0x20b   :  { %v1846_v4 = vsel %vm1304_vm5, %v1845_v21, %v1844_v48  ;;  %v1896_v19 = vsel %vm1295_vm2, %v1895_v44, %v1894_v13  ;;  %v1935_v7 = vrot.slane %v3694_v55, 4  ;;  %v1902_v36 = vrot.slane %v3685_v0, 7 }
 0x20c   :  { %v1848_v12 = vsel %vm1307_vm6, %v1847_v29, %v1846_v4  ;;  %v1898_v10 = vsel %vm1298_vm3, %v1897_v45, %v1896_v19  ;;  %v1937_v58 = vrot.slane %v3697_v30, 3  ;;  %v1934_v11 = vsel %vm1289_vm0, %v1933_v42, %v1932_v9  ;;  %v4299_v19 = vld [vmem:[#allocation6_spill] sm:$0xff] }
 0x20d   :  { %1874 = vst [vmem:[#allocation2 + $0x110] sm:$0xff] %v1848_v12  ;;  %v1900_v60 = vsel %vm1301_vm4, %v1899_v46, %v1898_v10  ;;  %v1939_v56 = vrot.slane %v3700_v6, 2  ;;  %v1941_v15 = vrot.slane %v3703_v2, 1  ;;  %v1936_v40 = vsel %vm1292_vm1, %v1935_v7, %v1934_v11  ;;  %v4302_v10 = vld [vmem:[#allocation8_spill] sm:$0xff]  ;;  %v4304_v11 = vld [vmem:[#allocation11_spill] sm:$0xff] }
 0x20e   :  { %v1901_v25 = vsel %vm1304_vm5, %v3682_v38, %v1900_v60  ;;  %v1987_v18 = vrot.slane %v3664_v39, 7  ;;  %v1988_v17 = vrot.slane %v3667_v28, 6  ;;  %v1938_v27 = vsel %vm1295_vm2, %v1937_v58, %v1936_v40  ;;  %v4303_v58 = vld [vmem:[#allocation9_spill] sm:$0xff] }
 0x20f   :  { %v1903_v24 = vsel %vm1307_vm6, %v1902_v36, %v1901_v25  ;;  %v1944_v5 = vrot.slane %v3709_v32, 7  ;;  %v1990_v35 = vrot.slane %v3670_v47, 5  ;;  %v1940_v21 = vsel %vm1298_vm3, %v1939_v56, %v1938_v27 }
 0x210   :  { %1968 = vst [vmem:[#allocation2 + $0x128] sm:$0xff] %v1903_v24  ;;  %v1989_v43 = vsel %vm1289_vm0, %v1988_v17, %v1987_v18  ;;  %v1992_v41 = vrot.slane %v3673_v16, 4  ;;  %v1994_v51 = vrot.slane %v3676_v3, 3  ;;  %v1942_v39 = vsel %vm1301_vm4, %v1941_v15, %v1940_v21 }
 0x211   :  { %v1991_v28 = vsel %vm1292_vm1, %v1990_v35, %v1989_v43  ;;  %v1996_v1 = vrot.slane %v3679_v20, 2  ;;  %v2029_v52 = vrot.slane %v3688_v33, 7  ;;  %v1943_v47 = vsel %vm1304_vm5, %v3706_v49, %v1942_v39 }
 0x212   :  { %v1993_v37 = vsel %vm1295_vm2, %v1992_v41, %v1991_v28  ;;  %v2030_v29 = vrot.slane %v3691_v34, 6  ;;  %v2032_v50 = vrot.slane %v3694_v55, 5  ;;  %v1945_v16 = vsel %vm1307_vm6, %v1944_v5, %v1943_v47 }
 0x213   :  { %v1995_v3 = vsel %vm1298_vm3, %v1994_v51, %v1993_v37  ;;  %v1998_v62 = vrot.slane %v3682_v38, 1  ;;  %1971 = vst [vmem:[#allocation2 + $0x140] sm:$0xff] %v1945_v16  ;;  %v2034_v22 = vrot.slane %v3697_v30, 4  ;;  %v2036_v34 = vrot.slane %v3700_v6, 3 }
 0x214   :  { %v1997_v20 = vsel %vm1301_vm4, %v1996_v1, %v1995_v3  ;;  %v2031_v33 = vsel %vm1289_vm0, %v2030_v29, %v2029_v52  ;;  %v1187_v55 = vadd.f32 %v3732_v54, %v3661_v57  ;;  %v2038_v13 = vrot.slane %v3703_v2, 2  ;;  %v4300_v2 = vld [vmem:[#allocation5_spill] sm:$0xff] }
 0x215   :  { %v1999_v44 = vsel %vm1304_vm5, %v1998_v62, %v1997_v20  ;;  %v2033_v45 = vsel %vm1292_vm1, %v2032_v50, %v2031_v33  ;;  %v2040_v30 = vrot.slane %v3706_v49, 1  ;;  %v4301_v49 = vld [vmem:[#allocation7_spill] sm:$0xff] }
 0x216   :  { %v2000_v48 = vsel %vm1307_vm6, %v3685_v0, %v1999_v44  ;;  %v2035_v38 = vsel %vm1295_vm2, %v2034_v22, %v2033_v45  ;;  %v1188_v9 = vadd.f32 %v3755_v31, %v1187_v55 }
 0x217   :  { %v2037_v46 = vsel %vm1298_vm3, %v2036_v34, %v2035_v38  ;;  %2065 = vst [vmem:[#allocation2 + $0x158] sm:$0xff] %v2000_v48 }
 0x218   :  { %v2039_v4 = vsel %vm1301_vm4, %v2038_v13, %v2037_v46  ;;  %2494 = vrcp.f32 %v1188_v9 }
 0x219   :  { %v2041_v6 = vsel %vm1304_vm5, %v2040_v30, %v2039_v4 }
 0x21a   :  { %v2042_v57 = vsel %vm1307_vm6, %v3709_v32, %v2041_v6 }
 0x21b   :  { %2068 = vst [vmem:[#allocation2 + $0x170] sm:$0xff] %v2042_v57 }
 0x222   :  { %v2495_v0 = vpop.eup %2494 }
 0x223   :  { %v3959_v42 = vmul.f32 %v2495_v0, %v4299_v19  ;;  %v3962_v7 = vmul.f32 %v2495_v0, %v4300_v2  ;;  %v3965_v12 = vmul.f32 %v2495_v0, %v4301_v49  ;;  %v3968_v36 = vmul.f32 %v2495_v0, %v4302_v10 }
 0x224   :  { %v3971_v60 = vmul.f32 %v2495_v0, %v4303_v58  ;;  %v3974_v56 = vmul.f32 %v2495_v0, %v4304_v11  ;;  %v3977_v32 = vmul.f32 %v2495_v0, %v3391_v63  ;;  %v3980_v15 = vmul.f32 %v2495_v0, %v3398_v59 }
 0x225   :  { %v3983_v25 = vmul.f32 %v2495_v0, %v3405_v23  ;;  %v3986_v40 = vmul.f32 %v2495_v0, %v3411_v53  ;;  %v3989_v18 = vmul.f32 %v2495_v0, %v3434_v61  ;;  %v3992_v17 = vmul.f32 %v2495_v0, %v3645_v14 }
 0x226   :  { %v3995_v24 = vmul.f32 %v2495_v0, %v3652_v26  ;;  %v3998_v63 = vmul.f32 %v2495_v0, %v3655_v8  ;;  %v4001_v59 = vmul.f32 %v2495_v0, %v3732_v54  ;;  %v4004_v23 = vmul.f32 %v2495_v0, %v3755_v31 }
 0x227   :  { %v1323_v53 = vrot.slane %v3962_v7, 7  ;;  %v1325_v61 = vrot.slane %v3965_v12, 6  ;;  %v1327_v27 = vrot.slane %v3968_v36, 5  ;;  %v1329_v14 = vrot.slane %v3971_v60, 4 }
 0x228   :  { %v1331_v26 = vrot.slane %v3974_v56, 3  ;;  %v1333_v5 = vrot.slane %v3977_v32, 2  ;;  %v1365_v8 = vrot.slane %v3986_v40, 7  ;;  %v1335_v31 = vrot.slane %v3980_v15, 1 }
 0x229   :  { %v1324_v54 = vsel %vm1289_vm0, %v1323_v53, %v3959_v42  ;;  %v1367_v35 = vrot.slane %v3989_v18, 6  ;;  %v1369_v21 = vrot.slane %v3992_v17, 5  ;;  %v1371_v51 = vrot.slane %v3995_v24, 4 }
 0x22a   :  { %v1326_v43 = vsel %vm1292_vm1, %v1325_v61, %v1324_v54  ;;  %v1366_v41 = vsel %vm1289_vm0, %v1365_v8, %v3983_v25  ;;  %v1373_v39 = vrot.slane %v3998_v63, 3  ;;  %v1375_v52 = vrot.slane %v4001_v59, 2 }
 0x22b   :  { %v1328_v28 = vsel %vm1295_vm2, %v1327_v27, %v1326_v43  ;;  %v1368_v1 = vsel %vm1292_vm1, %v1367_v35, %v1366_v41  ;;  %v1419_v47 = vrot.slane %v3959_v42, 1  ;;  %v1377_v50 = vrot.slane %v4004_v23, 1 }
 0x22c   :  { %v1330_v37 = vsel %vm1298_vm3, %v1329_v14, %v1328_v28  ;;  %v1370_v29 = vsel %vm1295_vm2, %v1369_v21, %v1368_v1  ;;  %v1421_v16 = vrot.slane %v3965_v12, 7  ;;  %v1423_v33 = vrot.slane %v3968_v36, 6 }
 0x22d   :  { %v1332_v3 = vsel %vm1301_vm4, %v1331_v26, %v1330_v37  ;;  %v1372_v62 = vsel %vm1298_vm3, %v1371_v51, %v1370_v29  ;;  %v1420_v20 = vsel %vm1289_vm0, %v3962_v7, %v1419_v47  ;;  %v1425_v34 = vrot.slane %v3971_v60, 5 }
 0x22e   :  { %v1334_v22 = vsel %vm1304_vm5, %v1333_v5, %v1332_v3  ;;  %v1374_v44 = vsel %vm1301_vm4, %v1373_v39, %v1372_v62  ;;  %v1422_v45 = vsel %vm1292_vm1, %v1421_v16, %v1420_v20  ;;  %v1427_v13 = vrot.slane %v3974_v56, 4 }
 0x22f   :  { %v1336_v55 = vsel %vm1307_vm6, %v1335_v31, %v1334_v22  ;;  %v1376_v48 = vsel %vm1304_vm5, %v1375_v52, %v1374_v44  ;;  %v1424_v38 = vsel %vm1295_vm2, %v1423_v33, %v1422_v45  ;;  %v1429_v9 = vrot.slane %v3977_v32, 3 }
 0x230   :  { %v1378_v46 = vsel %vm1307_vm6, %v1377_v50, %v1376_v48  ;;  %1387 = vst [vmem:[#allocation2 + $0x10] sm:$0xff] %v1336_v55  ;;  %v1426_v30 = vsel %vm1298_vm3, %v1425_v34, %v1424_v38  ;;  %v1461_v4 = vrot.slane %v3983_v25, 1  ;;  %v1431_v57 = vrot.slane %v3980_v15, 2 }
 0x231   :  { %1390 = vst [vmem:[#allocation2 + $0x28] sm:$0xff] %v1378_v46  ;;  %v1428_v6 = vsel %vm1301_vm4, %v1427_v13, %v1426_v30  ;;  %v1463_v0 = vrot.slane %v3989_v18, 7  ;;  %v1465_v19 = vrot.slane %v3992_v17, 6  ;;  %v1467_v10 = vrot.slane %v3995_v24, 5 }
 0x232   :  { %v1430_v2 = vsel %vm1304_vm5, %v1429_v9, %v1428_v6  ;;  %v1462_v49 = vsel %vm1289_vm0, %v3986_v40, %v1461_v4  ;;  %v1469_v58 = vrot.slane %v3998_v63, 4  ;;  %v1471_v61 = vrot.slane %v4001_v59, 3 }
 0x233   :  { %v1432_v11 = vsel %vm1307_vm6, %v1431_v57, %v1430_v2  ;;  %v1464_v53 = vsel %vm1292_vm1, %v1463_v0, %v1462_v49  ;;  %v1516_v27 = vrot.slane %v3959_v42, 2  ;;  %v1473_v26 = vrot.slane %v4004_v23, 2 }
 0x234   :  { %v1466_v14 = vsel %vm1295_vm2, %v1465_v19, %v1464_v53  ;;  %1484 = vst [vmem:[#allocation2 + $0x40] sm:$0xff] %v1432_v11  ;;  %v1517_v5 = vrot.slane %v3962_v7, 1  ;;  %v1520_v8 = vrot.slane %v3968_v36, 7  ;;  %v1522_v31 = vrot.slane %v3971_v60, 6 }
 0x235   :  { %v1468_v54 = vsel %vm1298_vm3, %v1467_v10, %v1466_v14  ;;  %v1524_v35 = vrot.slane %v3974_v56, 5  ;;  %v1526_v21 = vrot.slane %v3977_v32, 4  ;;  %v1558_v51 = vrot.slane %v3983_v25, 2 }
 0x236   :  { %v1470_v43 = vsel %vm1301_vm4, %v1469_v58, %v1468_v54  ;;  %v1518_v41 = vsel %vm1289_vm0, %v1517_v5, %v1516_v27  ;;  %v1559_v39 = vrot.slane %v3986_v40, 1  ;;  %v1528_v52 = vrot.slane %v3980_v15, 3 }
 0x237   :  { %v1472_v28 = vsel %vm1304_vm5, %v1471_v61, %v1470_v43  ;;  %v1519_v1 = vsel %vm1292_vm1, %v3965_v12, %v1518_v41  ;;  %v1562_v47 = vrot.slane %v3992_v17, 7  ;;  %v1564_v16 = vrot.slane %v3995_v24, 6 }
 0x238   :  { %v1474_v37 = vsel %vm1307_vm6, %v1473_v26, %v1472_v28  ;;  %v1521_v29 = vsel %vm1295_vm2, %v1520_v8, %v1519_v1  ;;  %v1560_v50 = vsel %vm1289_vm0, %v1559_v39, %v1558_v51  ;;  %v1566_v20 = vrot.slane %v3998_v63, 5 }
 0x239   :  { %1487 = vst [vmem:[#allocation2 + $0x58] sm:$0xff] %v1474_v37  ;;  %v1523_v3 = vsel %vm1298_vm3, %v1522_v31, %v1521_v29  ;;  %v1561_v62 = vsel %vm1292_vm1, %v3989_v18, %v1560_v50  ;;  %v1568_v33 = vrot.slane %v4001_v59, 4  ;;  %v1613_v45 = vrot.slane %v3959_v42, 3 }
 0x23a   :  { %v1525_v22 = vsel %vm1301_vm4, %v1524_v35, %v1523_v3  ;;  %v1563_v44 = vsel %vm1295_vm2, %v1562_v47, %v1561_v62  ;;  %v1614_v34 = vrot.slane %v3962_v7, 2  ;;  %v1570_v38 = vrot.slane %v4004_v23, 3 }
 0x23b   :  { %v1527_v55 = vsel %vm1304_vm5, %v1526_v21, %v1525_v22  ;;  %v1565_v48 = vsel %vm1298_vm3, %v1564_v16, %v1563_v44  ;;  %v1616_v13 = vrot.slane %v3965_v12, 1  ;;  %v1619_v4 = vrot.slane %v3971_v60, 7 }
 0x23c   :  { %v1529_v46 = vsel %vm1307_vm6, %v1528_v52, %v1527_v55  ;;  %v1567_v30 = vsel %vm1301_vm4, %v1566_v20, %v1565_v48  ;;  %v1615_v9 = vsel %vm1289_vm0, %v1614_v34, %v1613_v45  ;;  %v1621_v0 = vrot.slane %v3974_v56, 6 }
 0x23d   :  { %v1569_v6 = vsel %vm1304_vm5, %v1568_v33, %v1567_v30  ;;  %1581 = vst [vmem:[#allocation2 + $0x70] sm:$0xff] %v1529_v46  ;;  %v1617_v57 = vsel %vm1292_vm1, %v1616_v13, %v1615_v9  ;;  %v1623_v19 = vrot.slane %v3977_v32, 5  ;;  %v1655_v10 = vrot.slane %v3983_v25, 3 }
 0x23e   :  { %v1571_v2 = vsel %vm1307_vm6, %v1570_v38, %v1569_v6  ;;  %v1618_v49 = vsel %vm1295_vm2, %v3968_v36, %v1617_v57  ;;  %v1656_v58 = vrot.slane %v3986_v40, 2  ;;  %v1625_v53 = vrot.slane %v3980_v15, 4 }
 0x23f   :  { %1584 = vst [vmem:[#allocation2 + $0x88] sm:$0xff] %v1571_v2  ;;  %v1620_v11 = vsel %vm1298_vm3, %v1619_v4, %v1618_v49  ;;  %v1658_v61 = vrot.slane %v3989_v18, 1  ;;  %v1661_v27 = vrot.slane %v3995_v24, 7  ;;  %v1663_v5 = vrot.slane %v3998_v63, 6 }
 0x240   :  { %v1622_v14 = vsel %vm1301_vm4, %v1621_v0, %v1620_v11  ;;  %v1657_v26 = vsel %vm1289_vm0, %v1656_v58, %v1655_v10  ;;  %v1665_v8 = vrot.slane %v4001_v59, 5  ;;  %v1710_v35 = vrot.slane %v3959_v42, 4 }
 0x241   :  { %v1624_v54 = vsel %vm1304_vm5, %v1623_v19, %v1622_v14  ;;  %v1659_v31 = vsel %vm1292_vm1, %v1658_v61, %v1657_v26  ;;  %v1711_v21 = vrot.slane %v3962_v7, 3  ;;  %v1667_v51 = vrot.slane %v4004_v23, 4 }
 0x242   :  { %v1626_v43 = vsel %vm1307_vm6, %v1625_v53, %v1624_v54  ;;  %v1660_v41 = vsel %vm1295_vm2, %v3992_v17, %v1659_v31  ;;  %v1713_v39 = vrot.slane %v3965_v12, 2  ;;  %v1715_v52 = vrot.slane %v3968_v36, 1 }
 0x243   :  { %v1662_v28 = vsel %vm1298_vm3, %v1661_v27, %v1660_v41  ;;  %1678 = vst [vmem:[#allocation2 + $0xa0] sm:$0xff] %v1626_v43  ;;  %v1712_v1 = vsel %vm1289_vm0, %v1711_v21, %v1710_v35  ;;  %v1718_v47 = vrot.slane %v3974_v56, 7  ;;  %v1720_v50 = vrot.slane %v3977_v32, 6 }
 0x244   :  { %v1664_v37 = vsel %vm1301_vm4, %v1663_v5, %v1662_v28  ;;  %v1714_v29 = vsel %vm1292_vm1, %v1713_v39, %v1712_v1  ;;  %v1752_v16 = vrot.slane %v3983_v25, 4  ;;  %v1753_v20 = vrot.slane %v3986_v40, 3 }
 0x245   :  { %v1666_v3 = vsel %vm1304_vm5, %v1665_v8, %v1664_v37  ;;  %v1716_v62 = vsel %vm1295_vm2, %v1715_v52, %v1714_v29  ;;  %v1755_v33 = vrot.slane %v3989_v18, 2  ;;  %v1722_v45 = vrot.slane %v3980_v15, 5 }
 0x246   :  { %v1668_v22 = vsel %vm1307_vm6, %v1667_v51, %v1666_v3  ;;  %v1717_v44 = vsel %vm1298_vm3, %v3971_v60, %v1716_v62  ;;  %v1757_v34 = vrot.slane %v3992_v17, 1  ;;  %v1754_v48 = vsel %vm1289_vm0, %v1753_v20, %v1752_v16 }
 0x247   :  { %1681 = vst [vmem:[#allocation2 + $0xb8] sm:$0xff] %v1668_v22  ;;  %v1719_v55 = vsel %vm1301_vm4, %v1718_v47, %v1717_v44  ;;  %v1760_v38 = vrot.slane %v3998_v63, 7  ;;  %v1762_v13 = vrot.slane %v4001_v59, 6  ;;  %v1756_v30 = vsel %vm1292_vm1, %v1755_v33, %v1754_v48 }
 0x248   :  { %v1721_v46 = vsel %vm1304_vm5, %v1720_v50, %v1719_v55  ;;  %v1807_v9 = vrot.slane %v3959_v42, 5  ;;  %v1808_v4 = vrot.slane %v3962_v7, 4  ;;  %v1758_v57 = vsel %vm1295_vm2, %v1757_v34, %v1756_v30 }
 0x249   :  { %v1723_v6 = vsel %vm1307_vm6, %v1722_v45, %v1721_v46  ;;  %v1764_v0 = vrot.slane %v4004_v23, 5  ;;  %v1810_v19 = vrot.slane %v3965_v12, 3  ;;  %v1759_v2 = vsel %vm1298_vm3, %v3995_v24, %v1758_v57 }
 0x24a   :  { %1775 = vst [vmem:[#allocation2 + $0xd0] sm:$0xff] %v1723_v6  ;;  %v1809_v49 = vsel %vm1289_vm0, %v1808_v4, %v1807_v9  ;;  %v1812_v10 = vrot.slane %v3968_v36, 2  ;;  %v1814_v58 = vrot.slane %v3971_v60, 1  ;;  %v1761_v11 = vsel %vm1301_vm4, %v1760_v38, %v1759_v2 }
 0x24b   :  { %v1811_v53 = vsel %vm1292_vm1, %v1810_v19, %v1809_v49  ;;  %v1817_v61 = vrot.slane %v3977_v32, 7  ;;  %v1849_v27 = vrot.slane %v3983_v25, 5  ;;  %v1763_v14 = vsel %vm1304_vm5, %v1762_v13, %v1761_v11 }
 0x24c   :  { %v1813_v26 = vsel %vm1295_vm2, %v1812_v10, %v1811_v53  ;;  %v1850_v5 = vrot.slane %v3986_v40, 4  ;;  %v1852_v8 = vrot.slane %v3989_v18, 3  ;;  %v1765_v54 = vsel %vm1307_vm6, %v1764_v0, %v1763_v14 }
 0x24d   :  { %v1815_v31 = vsel %vm1298_vm3, %v1814_v58, %v1813_v26  ;;  %v1819_v35 = vrot.slane %v3980_v15, 6  ;;  %v1854_v21 = vrot.slane %v3992_v17, 2  ;;  %1778 = vst [vmem:[#allocation2 + $0xe8] sm:$0xff] %v1765_v54  ;;  %v1856_v51 = vrot.slane %v3995_v24, 1 }
 0x24e   :  { %v1816_v43 = vsel %vm1301_vm4, %v3974_v56, %v1815_v31  ;;  %v1851_v41 = vsel %vm1289_vm0, %v1850_v5, %v1849_v27  ;;  %v1859_v39 = vrot.slane %v4001_v59, 7  ;;  %v1904_v52 = vrot.slane %v3959_v42, 6 }
 0x24f   :  { %v1818_v28 = vsel %vm1304_vm5, %v1817_v61, %v1816_v43  ;;  %v1853_v1 = vsel %vm1292_vm1, %v1852_v8, %v1851_v41  ;;  %v1905_v47 = vrot.slane %v3962_v7, 5  ;;  %v1861_v50 = vrot.slane %v4004_v23, 6 }
 0x250   :  { %v1820_v37 = vsel %vm1307_vm6, %v1819_v35, %v1818_v28  ;;  %v1855_v29 = vsel %vm1295_vm2, %v1854_v21, %v1853_v1  ;;  %v1907_v16 = vrot.slane %v3965_v12, 4  ;;  %v1909_v20 = vrot.slane %v3968_v36, 3 }
 0x251   :  { %v1857_v3 = vsel %vm1298_vm3, %v1856_v51, %v1855_v29  ;;  %1872 = vst [vmem:[#allocation2 + $0x100] sm:$0xff] %v1820_v37  ;;  %v1906_v62 = vsel %vm1289_vm0, %v1905_v47, %v1904_v52  ;;  %v1911_v33 = vrot.slane %v3971_v60, 2  ;;  %v1913_v45 = vrot.slane %v3974_v56, 1 }
 0x252   :  { %v1858_v22 = vsel %vm1301_vm4, %v3998_v63, %v1857_v3  ;;  %v1908_v44 = vsel %vm1292_vm1, %v1907_v16, %v1906_v62  ;;  %v1946_v34 = vrot.slane %v3983_v25, 6  ;;  %v1947_v38 = vrot.slane %v3986_v40, 5 }
 0x253   :  { %v1860_v55 = vsel %vm1304_vm5, %v1859_v39, %v1858_v22  ;;  %v1910_v48 = vsel %vm1295_vm2, %v1909_v20, %v1908_v44  ;;  %v1949_v13 = vrot.slane %v3989_v18, 4  ;;  %v1916_v9 = vrot.slane %v3980_v15, 7 }
 0x254   :  { %v1862_v46 = vsel %vm1307_vm6, %v1861_v50, %v1860_v55  ;;  %v1912_v30 = vsel %vm1298_vm3, %v1911_v33, %v1910_v48  ;;  %v1951_v4 = vrot.slane %v3992_v17, 3  ;;  %v1948_v57 = vsel %vm1289_vm0, %v1947_v38, %v1946_v34 }
 0x255   :  { %1875 = vst [vmem:[#allocation2 + $0x118] sm:$0xff] %v1862_v46  ;;  %v1914_v6 = vsel %vm1301_vm4, %v1913_v45, %v1912_v30  ;;  %v1953_v0 = vrot.slane %v3995_v24, 2  ;;  %v1955_v19 = vrot.slane %v3998_v63, 1  ;;  %v1950_v49 = vsel %vm1292_vm1, %v1949_v13, %v1948_v57 }
 0x256   :  { %v1915_v2 = vsel %vm1304_vm5, %v3977_v32, %v1914_v6  ;;  %v2001_v10 = vrot.slane %v3959_v42, 7  ;;  %v2002_v58 = vrot.slane %v3962_v7, 6  ;;  %v1952_v53 = vsel %vm1295_vm2, %v1951_v4, %v1950_v49 }
 0x257   :  { %v1917_v11 = vsel %vm1307_vm6, %v1916_v9, %v1915_v2  ;;  %v1958_v61 = vrot.slane %v4004_v23, 7  ;;  %v2004_v27 = vrot.slane %v3965_v12, 5  ;;  %v1954_v14 = vsel %vm1298_vm3, %v1953_v0, %v1952_v53 }
 0x258   :  { %1969 = vst [vmem:[#allocation2 + $0x130] sm:$0xff] %v1917_v11  ;;  %v2003_v26 = vsel %vm1289_vm0, %v2002_v58, %v2001_v10  ;;  %v2006_v5 = vrot.slane %v3968_v36, 4  ;;  %v2008_v8 = vrot.slane %v3971_v60, 3  ;;  %v1956_v42 = vsel %vm1301_vm4, %v1955_v19, %v1954_v14 }
 0x259   :  { %v2005_v7 = vsel %vm1292_vm1, %v2004_v27, %v2003_v26  ;;  %v2010_v54 = vrot.slane %v3974_v56, 2  ;;  %v2043_v31 = vrot.slane %v3983_v25, 7  ;;  %v1957_v12 = vsel %vm1304_vm5, %v4001_v59, %v1956_v42 }
 0x25a   :  { %v2007_v35 = vsel %vm1295_vm2, %v2006_v5, %v2005_v7  ;;  %v2044_v21 = vrot.slane %v3986_v40, 6  ;;  %v2046_v43 = vrot.slane %v3989_v18, 5  ;;  %v1959_v36 = vsel %vm1307_vm6, %v1958_v61, %v1957_v12 }
 0x25b   :  { %v2009_v60 = vsel %vm1298_vm3, %v2008_v8, %v2007_v35  ;;  %v2012_v41 = vrot.slane %v3977_v32, 1  ;;  %1972 = vst [vmem:[#allocation2 + $0x148] sm:$0xff] %v1959_v36  ;;  %v2048_v51 = vrot.slane %v3992_v17, 4  ;;  %v2050_v40 = vrot.slane %v3995_v24, 3 }
 0x25c   :  { %v2011_v56 = vsel %vm1301_vm4, %v2010_v54, %v2009_v60  ;;  %v2045_v25 = vsel %vm1289_vm0, %v2044_v21, %v2043_v31  ;;  %v2052_v32 = vrot.slane %v3998_v63, 2  ;;  %v2054_v47 = vrot.slane %v4001_v59, 1 }
 0x25d   :  { %v2013_v39 = vsel %vm1304_vm5, %v2012_v41, %v2011_v56  ;;  %v2047_v28 = vsel %vm1292_vm1, %v2046_v43, %v2045_v25 }
 0x25e   :  { %v2014_v18 = vsel %vm1307_vm6, %v3980_v15, %v2013_v39  ;;  %v2049_v1 = vsel %vm1295_vm2, %v2048_v51, %v2047_v28 }
 0x25f   :  { %v2051_v52 = vsel %vm1298_vm3, %v2050_v40, %v2049_v1  ;;  %2066 = vst [vmem:[#allocation2 + $0x160] sm:$0xff] %v2014_v18 }
 0x260   :  { %v2053_v17 = vsel %vm1301_vm4, %v2052_v32, %v2051_v52 }
 0x261   :  { %v2055_v37 = vsel %vm1304_vm5, %v2054_v47, %v2053_v17 }
 0x262   :  { %v2056_v24 = vsel %vm1307_vm6, %v4004_v23, %v2055_v37 }
 0x263   :  { %2069 = vst [vmem:[#allocation2 + $0x178] sm:$0xff] %v2056_v24 }
 0x264   :  { %2507 = shalt.err (!%p2504_p4)
}
 0x265   :  { %s2508_s21 = scalar_lea.hbm %s4263_s5, 6144 }
 0x266   :  { %p2509_p5 = scmp.ne.s32.totalorder %s4263_s5, %s2508_s21  ;;  %p2512_p6 = scmp.lt.u32.totalorder %s2508_s21, %s4263_s5 }
 0x268   :  { %p2514_p7 = pnand %p2512_p6, %p2509_p5 }
 0x26a   :  { %2517 = shalt.err (!%p2514_p7)
}
 0x26b   :  { %s2522_s26 = smov 384   ;;  %s2523_s27 = smov 24  }
 0x26c   :  { %2081 = dma.vmem_to_hbm [thread:$0]  %s2076_s4, 6144, %s4263_s5, [#allocation3], %s2522_s26, %s2522_s26, %s2523_s27  }
 0x26d   :  { %2518 = dma.done.wait [#allocation3], 6144  }
 0x26e   :  { %2519 = vsyncadd [#allocation3], 4294961152 }
 0x26f   :  { %2085 = vsyncpa [#allocation3], 1 }

// kernel: text_generator_forward.2
= control target key start
LH: loop header
LB: loop body
LE: loop exit
PB: predicated region body
PF: predicated region fallthrough
CT: control target
= control target key end

     0   :  { %11 = vsyncpa [#allocation4], 0  ;;  %s5363_s18 = smov [#allocation3]   ;;  %s8186_s0 = inlined_call_operand.vmem [shape: bf16[16,8,128], index: 0, kind: input, shape index: {}]   ;;  %s8187_s1 = inlined_call_operand.vmem [shape: bf16[128,1024], index: 1, kind: input, shape index: {}]   ;;  %s8188_s2 = inlined_call_operand.hbm [shape: bf16[256,512], index: 2, kind: input, shape index: {}]   ;;  %s8189_s3 = inlined_call_operand.vmem [shape: f32[1,1024], index: 3, kind: input, shape index: {}]   ;;  %s8190_s4 = inlined_call_operand.vmem [shape: bf16[16,8,128], index: 4, kind: output, shape index: {0}]   ;;  %s8191_s5 = inlined_call_operand.vmem [shape: bf16[16,8,128], index: 5, kind: output, shape index: {1}]  }
   0x1   :  { %s21_s19 = sshll.u32 %s5363_s18, 4  ;;  %s5339_s22 = scalar_lea.hbm %s8188_s2, 8192  ;;  %s22_s19 = int_to_ptr.vmem [resolvable:$true] %s21_s19 }
   0x2   :  { %p5340_p0 = scmp.ne.s32.totalorder %s8188_s2, %s5339_s22  ;;  %p5343_p1 = scmp.lt.u32.totalorder %s5339_s22, %s8188_s2 }
   0x4   :  { %p5345_p2 = pnand %p5343_p1, %p5340_p0 }
   0x6   :  { %5348 = shalt.err (!%p5345_p2)
}
   0x7   :  { %s5349_s27 = scalar_lea.vmem %s22_s19, 8192  ;;  %p5354_p4 = scmp.lt.s32.totalorder %s22_s19, %s22_s19 }
   0x8   :  { %p5350_p3 = scmp.ne.s32.totalorder %s22_s19, %s5349_s27  ;;  %p5355_p5 = scmp.lt.s32.totalorder %s5349_s27, %s5349_s27 }
   0xa   :  { %p5356_p6 = por %p5355_p5, %p5354_p4 }
   0xc   :  { %p5357_p7 = pnand %p5356_p6, %p5350_p3 }
   0xe   :  { %5360 = shalt.err (!%p5357_p7)
}
   0xf   :  { %s5364_s28 = smov 256   ;;  %s5365_s29 = smov 16  }
  0x10   :  { %27 = dma.hbm_to_vmem [thread:$0]  %s8188_s2, 8192, %s22_s19, [#allocation4], %s5364_s28, %s5364_s28, %s5365_s29  }
  0x11   :  { %5361 = dma.done.wait [#allocation4], 8192  }
  0x12   :  { %5362 = vsyncadd [#allocation4], 4294959104  ;;  %v5366_v0 = vmov 0   ;;  %v50_v1 = vld [vmem:[%s8187_s1] sm:$0xff]  ;;  %v51_v3 = vld [vmem:[%s8187_s1 + $0x8] sm:$0xff]  ;;  %vm1170_vm0 = vcmask 1043456  }
  0x13   :  { %556 = vmatprep.mubr.bf16.mxu0 %v5366_v0  ;;  %669 = vmatprep.mubr.bf16.mxu1 %v5366_v0  ;;  %v54_v2 = vld [vmem:[%s8187_s1 + $0x20] sm:$0xff]  ;;  %v55_v5 = vld [vmem:[%s8187_s1 + $0x28] sm:$0xff]  ;;  %v52_v62 = vld [vmem:[%s8187_s1 + $0x10] sm:$0xff] }
  0x14   :  { %v4142_v4 = vcombine.high %v50_v1, %v54_v2  ;;  %v4141_v6 = vcombine.low %v50_v1, %v54_v2  ;;  %v58_v7 = vld [vmem:[%s8187_s1 + $0x40] sm:$0xff]  ;;  %v4144_v9 = vcombine.high %v51_v3, %v55_v5  ;;  %v4143_v10 = vcombine.low %v51_v3, %v55_v5  ;;  %v59_v12 = vld [vmem:[%s8187_s1 + $0x48] sm:$0xff]  ;;  %v56_v1 = vld [vmem:[%s8187_s1 + $0x30] sm:$0xff] }
  0x15   :  { %v62_v8 = vld [vmem:[%s8187_s1 + $0x60] sm:$0xff]  ;;  %v63_v13 = vld [vmem:[%s8187_s1 + $0x68] sm:$0xff]  ;;  %v53_v2 = vld [vmem:[%s8187_s1 + $0x18] sm:$0xff] }
  0x16   :  { %v4150_v11 = vcombine.high %v58_v7, %v62_v8  ;;  %v66_v14 = vld [vmem:[%s8187_s1 + $0x80] sm:$0xff]  ;;  %524 = vmatprep.subr.bf16.mxu0 %v4142_v4  ;;  %v4152_v15 = vcombine.high %v59_v12, %v63_v13  ;;  %v67_v17 = vld [vmem:[%s8187_s1 + $0x88] sm:$0xff]  ;;  %637 = vmatprep.subr.bf16.mxu1 %v4144_v9  ;;  %v4149_v19 = vcombine.low %v58_v7, %v62_v8  ;;  %v57_v3 = vld [vmem:[%s8187_s1 + $0x38] sm:$0xff] }
  0x17   :  { %v70_v16 = vld [vmem:[%s8187_s1 + $0xa0] sm:$0xff]  ;;  %v71_v18 = vld [vmem:[%s8187_s1 + $0xa8] sm:$0xff]  ;;  %525 = vmatpush1.bf16.msra.mxu0 %v4141_v6  ;;  %638 = vmatpush1.bf16.msra.mxu1 %v4143_v10  ;;  %v4151_v20 = vcombine.low %v59_v12, %v63_v13  ;;  %v4146_v6 = vcombine.high %v52_v62, %v56_v1  ;;  %v4148_v8 = vcombine.high %v53_v2, %v57_v3  ;;  %v60_v9 = vld [vmem:[%s8187_s1 + $0x50] sm:$0xff] }
  0x18   :  { %526 = vmatprep.subr.bf16.mxu0 %v4150_v11  ;;  %v4158_v21 = vcombine.high %v66_v14, %v70_v16  ;;  %639 = vmatprep.subr.bf16.mxu1 %v4152_v15  ;;  %v4160_v22 = vcombine.high %v67_v17, %v71_v18  ;;  %v74_v23 = vld [vmem:[%s8187_s1 + $0xc0] sm:$0xff]  ;;  %v75_v25 = vld [vmem:[%s8187_s1 + $0xc8] sm:$0xff]  ;;  %v4157_v27 = vcombine.low %v66_v14, %v70_v16  ;;  %v64_v10 = vld [vmem:[%s8187_s1 + $0x70] sm:$0xff] }
  0x19   :  { %v78_v24 = vld [vmem:[%s8187_s1 + $0xe0] sm:$0xff]  ;;  %v79_v26 = vld [vmem:[%s8187_s1 + $0xe8] sm:$0xff]  ;;  %v4159_v28 = vcombine.low %v67_v17, %v71_v18  ;;  %v61_v11 = vld [vmem:[%s8187_s1 + $0x58] sm:$0xff]  ;;  %v4145_v12 = vcombine.low %v52_v62, %v56_v1  ;;  %v4154_v14 = vcombine.high %v60_v9, %v64_v10  ;;  %v4147_v15 = vcombine.low %v53_v2, %v57_v3 }
  0x1a   :  { %v4166_v29 = vcombine.high %v74_v23, %v78_v24  ;;  %v4168_v30 = vcombine.high %v75_v25, %v79_v26  ;;  %v82_v31 = vld [vmem:[%s8187_s1 + $0x100] sm:$0xff]  ;;  %v83_v33 = vld [vmem:[%s8187_s1 + $0x108] sm:$0xff]  ;;  %v4165_v35 = vcombine.low %v74_v23, %v78_v24  ;;  %v4167_v36 = vcombine.low %v75_v25, %v79_v26  ;;  %v65_v13 = vld [vmem:[%s8187_s1 + $0x78] sm:$0xff] }
  0x1b   :  { %527 = vmatpush1.bf16.msra.mxu0 %v4149_v19  ;;  %640 = vmatpush1.bf16.msra.mxu1 %v4151_v20  ;;  %v86_v32 = vld [vmem:[%s8187_s1 + $0x120] sm:$0xff]  ;;  %v87_v34 = vld [vmem:[%s8187_s1 + $0x128] sm:$0xff]  ;;  %v68_v16 = vld [vmem:[%s8187_s1 + $0x90] sm:$0xff]  ;;  %v4156_v18 = vcombine.high %v61_v11, %v65_v13  ;;  %v4153_v19 = vcombine.low %v60_v9, %v64_v10  ;;  %v4155_v24 = vcombine.low %v61_v11, %v65_v13 }
  0x1c   :  { %528 = vmatprep.subr.bf16.mxu0 %v4158_v21  ;;  %641 = vmatprep.subr.bf16.mxu1 %v4160_v22  ;;  %v4174_v37 = vcombine.high %v82_v31, %v86_v32  ;;  %v4176_v38 = vcombine.high %v83_v33, %v87_v34  ;;  %v90_v39 = vld [vmem:[%s8187_s1 + $0x140] sm:$0xff]  ;;  %v91_v41 = vld [vmem:[%s8187_s1 + $0x148] sm:$0xff]  ;;  %v4173_v43 = vcombine.low %v82_v31, %v86_v32  ;;  %v72_v17 = vld [vmem:[%s8187_s1 + $0xb0] sm:$0xff] }
  0x1d   :  { %v94_v40 = vld [vmem:[%s8187_s1 + $0x160] sm:$0xff]  ;;  %v95_v42 = vld [vmem:[%s8187_s1 + $0x168] sm:$0xff]  ;;  %v4175_v44 = vcombine.low %v83_v33, %v87_v34  ;;  %v69_v20 = vld [vmem:[%s8187_s1 + $0x98] sm:$0xff]  ;;  %v4162_v22 = vcombine.high %v68_v16, %v72_v17 }
  0x1e   :  { %v4182_v45 = vcombine.high %v90_v39, %v94_v40  ;;  %v4184_v46 = vcombine.high %v91_v41, %v95_v42  ;;  %v98_v47 = vld [vmem:[%s8187_s1 + $0x180] sm:$0xff]  ;;  %v99_v49 = vld [vmem:[%s8187_s1 + $0x188] sm:$0xff]  ;;  %v4181_v51 = vcombine.low %v90_v39, %v94_v40  ;;  %v4183_v52 = vcombine.low %v91_v41, %v95_v42  ;;  %v73_v21 = vld [vmem:[%s8187_s1 + $0xb8] sm:$0xff] }
  0x1f   :  { %529 = vmatpush1.bf16.msra.mxu0 %v4157_v27  ;;  %642 = vmatpush1.bf16.msra.mxu1 %v4159_v28  ;;  %v102_v48 = vld [vmem:[%s8187_s1 + $0x1a0] sm:$0xff]  ;;  %v103_v50 = vld [vmem:[%s8187_s1 + $0x1a8] sm:$0xff]  ;;  %v76_v25 = vld [vmem:[%s8187_s1 + $0xd0] sm:$0xff]  ;;  %v4164_v27 = vcombine.high %v69_v20, %v73_v21  ;;  %v4163_v32 = vcombine.low %v69_v20, %v73_v21 }
  0x20   :  { %530 = vmatprep.subr.bf16.mxu0 %v4166_v29  ;;  %643 = vmatprep.subr.bf16.mxu1 %v4168_v30  ;;  %v4190_v53 = vcombine.high %v98_v47, %v102_v48  ;;  %v4192_v54 = vcombine.high %v99_v49, %v103_v50  ;;  %v106_v55 = vld [vmem:[%s8187_s1 + $0x1c0] sm:$0xff]  ;;  %v107_v57 = vld [vmem:[%s8187_s1 + $0x1c8] sm:$0xff]  ;;  %v4189_v59 = vcombine.low %v98_v47, %v102_v48  ;;  %v80_v26 = vld [vmem:[%s8187_s1 + $0xf0] sm:$0xff] }
  0x21   :  { %v110_v56 = vld [vmem:[%s8187_s1 + $0x1e0] sm:$0xff]  ;;  %v111_v58 = vld [vmem:[%s8187_s1 + $0x1e8] sm:$0xff]  ;;  %v4191_v60 = vcombine.low %v99_v49, %v103_v50  ;;  %v77_v28 = vld [vmem:[%s8187_s1 + $0xd8] sm:$0xff]  ;;  %v4161_v30 = vcombine.low %v68_v16, %v72_v17  ;;  %v4170_v31 = vcombine.high %v76_v25, %v80_v26 }
  0x22   :  { %v4198_v61 = vcombine.high %v106_v55, %v110_v56  ;;  %v4200_v63 = vcombine.high %v107_v57, %v111_v58  ;;  %v4197_v4 = vcombine.low %v106_v55, %v110_v56  ;;  %v4199_v5 = vcombine.low %v107_v57, %v111_v58  ;;  %v5522_v7 = vld [vmem:[%s8186_s0] sm:$0xff]   ;;  %v5555_v23 = vld [vmem:[%s8186_s0 + $0x8] sm:$0xff]   ;;  %v81_v29 = vld [vmem:[%s8187_s1 + $0xf8] sm:$0xff] }
  0x23   :  { %531 = vmatpush1.bf16.msra.mxu0 %v4165_v35  ;;  %644 = vmatpush1.bf16.msra.mxu1 %v4167_v36  ;;  %v84_v33 = vld [vmem:[%s8187_s1 + $0x110] sm:$0xff]  ;;  %v4172_v35 = vcombine.high %v77_v28, %v81_v29  ;;  %v85_v36 = vld [vmem:[%s8187_s1 + $0x118] sm:$0xff]  ;;  %v4171_v41 = vcombine.low %v77_v28, %v81_v29  ;;  %v5644_v9 = vld [vmem:[%s8186_s0 + $0x20] sm:$0xff]  }
  0x24   :  { %532 = vmatprep.subr.bf16.mxu0 %v4174_v37  ;;  %645 = vmatprep.subr.bf16.mxu1 %v4176_v38  ;;  %v88_v34 = vld [vmem:[%s8187_s1 + $0x130] sm:$0xff]  ;;  %v89_v37 = vld [vmem:[%s8187_s1 + $0x138] sm:$0xff]  ;;  %v4169_v38 = vcombine.low %v76_v25, %v80_v26  ;;  %v5657_v11 = vld [vmem:[%s8186_s0 + $0x28] sm:$0xff]  }
  0x25   :  { %v5588_v39 = vld [vmem:[%s8186_s0 + $0x10] sm:$0xff]   ;;  %v4178_v40 = vcombine.high %v84_v33, %v88_v34  ;;  %v4177_v47 = vcombine.low %v84_v33, %v88_v34  ;;  %v4179_v49 = vcombine.low %v85_v36, %v89_v37  ;;  %v5621_v56 = vld [vmem:[%s8186_s0 + $0x18] sm:$0xff]   ;;  %vm5890_vm1 = vmneg %vm1170_vm0 }
  0x26   :  { %v92_v42 = vld [vmem:[%s8187_s1 + $0x150] sm:$0xff]  ;;  %v109_v62 = vld [vmem:[%s8187_s1 + $0x1d8] sm:$0xff] }
  0x27   :  { %533 = vmatpush1.bf16.msra.mxu0 %v4173_v43  ;;  %646 = vmatpush1.bf16.msra.mxu1 %v4175_v44  ;;  %v96_v43 = vld [vmem:[%s8187_s1 + $0x170] sm:$0xff]  ;;  %v4180_v44 = vcombine.high %v85_v36, %v89_v37  ;;  %v5646_v10 = vld [vmem:[#allocation3 + $0xc] ss:$16 sps:$4 sm:$0xff]   ;;  %v5752_v34 = vld [vmem:[#allocation3 + $0xa8] ss:$16 sps:$4 sm:$0xff]  }
  0x28   :  { %534 = vmatprep.subr.bf16.mxu0 %v4182_v45  ;;  %647 = vmatprep.subr.bf16.mxu1 %v4184_v46  ;;  %v93_v45 = vld [vmem:[%s8187_s1 + $0x158] sm:$0xff]  ;;  %v4186_v48 = vcombine.high %v92_v42, %v96_v43  ;;  %v100_v50 = vld [vmem:[%s8187_s1 + $0x190] sm:$0xff]  ;;  %v4185_v55 = vcombine.low %v92_v42, %v96_v43 }
  0x29   :  { %v97_v46 = vld [vmem:[%s8187_s1 + $0x178] sm:$0xff]  ;;  %v5685_v16 = vld [vmem:[#allocation3 + $0x24] ss:$16 sps:$4 sm:$0xff]   ;;  %v5720_v26 = vld [vmem:[#allocation3 + $0x60] ss:$16 sps:$4 sm:$0xff]  }
  0x2a   :  { %v4187_v58 = vcombine.low %v93_v45, %v97_v46  ;;  %v5675_v13 = vld [vmem:[%s8186_s0 + $0x38] sm:$0xff]   ;;  %v5698_v20 = vld [vmem:[#allocation3 + $0x44] ss:$16 sps:$4 sm:$0xff]   ;;  %v5748_v33 = vld [vmem:[#allocation3 + $0xa0] ss:$16 sps:$4 sm:$0xff]  }
  0x2b   :  { %535 = vmatpush1.bf16.msra.mxu0 %v4181_v51  ;;  %648 = vmatpush1.bf16.msra.mxu1 %v4183_v52  ;;  %v104_v51 = vld [vmem:[%s8187_s1 + $0x1b0] sm:$0xff]  ;;  %v4188_v52 = vcombine.high %v93_v45, %v97_v46  ;;  %v5687_v17 = vld [vmem:[#allocation3 + $0x2c] ss:$16 sps:$4 sm:$0xff]   ;;  %v5780_v42 = vld [vmem:[#allocation3 + $0xe8] ss:$16 sps:$4 sm:$0xff]  }
  0x2c   :  { %536 = vmatprep.subr.bf16.mxu0 %v4190_v53  ;;  %649 = vmatprep.subr.bf16.mxu1 %v4192_v54  ;;  %v101_v53 = vld [vmem:[%s8187_s1 + $0x198] sm:$0xff]  ;;  %v4194_v57 = vcombine.high %v100_v50, %v104_v51  ;;  %v4193_v1 = vcombine.low %v100_v50, %v104_v51  ;;  %v5726_v28 = vld [vmem:[#allocation3 + $0x84] ss:$16 sps:$4 sm:$0xff]   ;;  %v5762_v37 = vld [vmem:[#allocation3 + $0xc0] ss:$16 sps:$4 sm:$0xff]  }
  0x2d   :  { %v105_v54 = vld [vmem:[%s8187_s1 + $0x1b8] sm:$0xff]  ;;  %v5782_v43 = vld [vmem:[#allocation3 + $0x104] ss:$16 sps:$4 sm:$0xff]   ;;  %v5790_v45 = vld [vmem:[#allocation3 + $0x100] ss:$16 sps:$4 sm:$0xff]  }
  0x2e   :  { %v4195_v3 = vcombine.low %v101_v53, %v105_v54  ;;  %v5702_v21 = vld [vmem:[#allocation3 + $0x4c] ss:$16 sps:$4 sm:$0xff]   ;;  %v5794_v46 = vld [vmem:[#allocation3 + $0x108] ss:$16 sps:$4 sm:$0xff]   ;;  %v5810_v51 = vld [vmem:[#allocation3 + $0x144] ss:$16 sps:$4 sm:$0xff]  }
  0x2f   :  { %537 = vmatpush1.bf16.msra.mxu0 %v4189_v59  ;;  %650 = vmatpush1.bf16.msra.mxu1 %v4191_v60  ;;  %v108_v59 = vld [vmem:[%s8187_s1 + $0x1d0] sm:$0xff]  ;;  %v5715_v25 = vld [vmem:[#allocation3 + $0x6c] ss:$16 sps:$4 sm:$0xff]   ;;  %v5808_v50 = vld [vmem:[#allocation3 + $0x128] ss:$16 sps:$4 sm:$0xff]  }
  0x30   :  { %538 = vmatprep.subr.bf16.mxu0 %v4198_v61  ;;  %651 = vmatprep.subr.bf16.mxu1 %v4200_v63  ;;  %v112_v60 = vld [vmem:[%s8187_s1 + $0x1f0] sm:$0xff]  ;;  %v4196_v61 = vcombine.high %v101_v53, %v105_v54  ;;  %v113_v63 = vld [vmem:[%s8187_s1 + $0x1f8] sm:$0xff] }
  0x31   :  { %v4202_v2 = vcombine.high %v108_v59, %v112_v60  ;;  %v5730_v29 = vld [vmem:[#allocation3 + $0x8c] ss:$16 sps:$4 sm:$0xff]   ;;  %v5818_v53 = vld [vmem:[#allocation3 + $0x140] ss:$16 sps:$4 sm:$0xff]   ;;  %v5822_v54 = vld [vmem:[#allocation3 + $0x148] ss:$16 sps:$4 sm:$0xff]  }
  0x32   :  { %v5758_v36 = vld [vmem:[#allocation3 + $0xcc] ss:$16 sps:$4 sm:$0xff]  }
  0x33   :  { %539 = vmatpush1.bf16.msra.mxu0 %v4197_v4  ;;  %652 = vmatpush1.bf16.msra.mxu1 %v4199_v5  ;;  %v4204_v4 = vcombine.high %v109_v62, %v113_v63  ;;  %v4201_v5 = vcombine.low %v108_v59, %v112_v60  ;;  %v5838_v59 = vld [vmem:[#allocation3 + $0x184] ss:$16 sps:$4 sm:$0xff]   ;;  %v5842_v60 = vld [vmem:[#allocation3 + $0x18c] ss:$16 sps:$4 sm:$0xff]  }
  0x34   :  { %750 = vmatprep.subr.bf16.mxu0 %v4146_v6  ;;  %863 = vmatprep.subr.bf16.mxu1 %v4148_v8  ;;  %v4203_v6 = vcombine.low %v109_v62, %v113_v63  ;;  %v5639_v8 = vld [vmem:[#allocation3 + $0x4] ss:$16 sps:$4 sm:$0xff]   ;;  %v5850_v62 = vld [vmem:[#allocation3 + $0x188] ss:$16 sps:$4 sm:$0xff]  }
  0x35   :  { %v5852_v63 = vld [vmem:[#allocation3 + $0x1a4] ss:$16 sps:$4 sm:$0xff]  }
  0x36   :  { %557 = vmatmul.mubr.bf16.vlgmr.msra.gmra.mrb[0].mxu0 %v5522_v7  ;;  %670 = vmatmul.mubr.bf16.vlgmr.msra.gmra.mrb[0].mxu1 %v5522_v7 }
  0x37   :  { %751 = vmatpush1.bf16.msra.mxu0 %v4145_v12  ;;  %566 = vmatprep.mubr.bf16.mxu0 %v5366_v0  ;;  %v5666_v12 = vld [vmem:[%s8186_s0 + $0x30] sm:$0xff]  }
  0x38   :  { %679 = vmatprep.mubr.bf16.mxu1 %v5366_v0  ;;  %752 = vmatprep.subr.bf16.mxu0 %v4154_v14  ;;  %v5681_v14 = vld [vmem:[#allocation3] ss:$16 sps:$4 sm:$0xff]  }
  0x39   :  { %864 = vmatpush1.bf16.msra.mxu1 %v4147_v15  ;;  %v5683_v15 = vld [vmem:[#allocation3 + $0x8] ss:$16 sps:$4 sm:$0xff]  }
  0x3a   :  { %865 = vmatprep.subr.bf16.mxu1 %v4156_v18  ;;  %v5692_v18 = vld [vmem:[#allocation3 + $0x20] ss:$16 sps:$4 sm:$0xff]  }
  0x3b   :  { %753 = vmatpush1.bf16.msra.mxu0 %v4153_v19  ;;  %v5696_v19 = vld [vmem:[#allocation3 + $0x28] ss:$16 sps:$4 sm:$0xff]  }
  0x3c   :  { %754 = vmatprep.subr.bf16.mxu0 %v4162_v22  ;;  %v5710_v22 = vld [vmem:[#allocation3 + $0x48] ss:$16 sps:$4 sm:$0xff]  }
  0x3d   :  { %866 = vmatpush1.bf16.msra.mxu1 %v4155_v24  ;;  %v5712_v24 = vld [vmem:[#allocation3 + $0x64] ss:$16 sps:$4 sm:$0xff]  }
  0x3e   :  { %567 = vmatmul.mubr.bf16.gmra.mrb[4].mxu0 %v5555_v23  ;;  %867 = vmatprep.subr.bf16.mxu1 %v4164_v27  ;;  %v5724_v27 = vld [vmem:[#allocation3 + $0x68] ss:$16 sps:$4 sm:$0xff]  }
  0x3f   :  { %680 = vmatmul.mubr.bf16.gmra.mrb[4].mxu1 %v5555_v23  ;;  %576 = vmatprep.mubr.bf16.mxu0 %v5366_v0 }
  0x40   :  { %689 = vmatprep.mubr.bf16.mxu1 %v5366_v0  ;;  %755 = vmatpush1.bf16.msra.mxu0 %v4161_v30  ;;  %v5738_v30 = vld [vmem:[#allocation3 + $0x88] ss:$16 sps:$4 sm:$0xff]  }
  0x41   :  { %756 = vmatprep.subr.bf16.mxu0 %v4170_v31  ;;  %868 = vmatpush1.bf16.msra.mxu1 %v4163_v32  ;;  %v5740_v31 = vld [vmem:[#allocation3 + $0xa4] ss:$16 sps:$4 sm:$0xff]   ;;  %v5743_v32 = vld [vmem:[#allocation3 + $0xac] ss:$16 sps:$4 sm:$0xff]  }
  0x42   :  { %869 = vmatprep.subr.bf16.mxu1 %v4172_v35  ;;  %v5754_v35 = vld [vmem:[#allocation3 + $0xc4] ss:$16 sps:$4 sm:$0xff]  }
  0x44   :  { %757 = vmatpush1.bf16.msra.mxu0 %v4169_v38  ;;  %v5766_v38 = vld [vmem:[#allocation3 + $0xc8] ss:$16 sps:$4 sm:$0xff]  }
  0x45   :  { %758 = vmatprep.subr.bf16.mxu0 %v4178_v40  ;;  %870 = vmatpush1.bf16.msra.mxu1 %v4171_v41  ;;  %v5771_v40 = vld [vmem:[#allocation3 + $0xec] ss:$16 sps:$4 sm:$0xff]   ;;  %v5776_v41 = vld [vmem:[#allocation3 + $0xe0] ss:$16 sps:$4 sm:$0xff]  }
  0x46   :  { %577 = vmatmul.mubr.bf16.gmra.mrb[8].mxu0 %v5588_v39  ;;  %871 = vmatprep.subr.bf16.mxu1 %v4180_v44  ;;  %v5786_v44 = vld [vmem:[#allocation3 + $0x10c] ss:$16 sps:$4 sm:$0xff]  }
  0x47   :  { %690 = vmatmul.mubr.bf16.gmra.mrb[8].mxu1 %v5588_v39  ;;  %586 = vmatprep.mubr.bf16.mxu0 %v5366_v0 }
  0x48   :  { %699 = vmatprep.mubr.bf16.mxu1 %v5366_v0  ;;  %759 = vmatpush1.bf16.msra.mxu0 %v4177_v47  ;;  %v5796_v47 = vld [vmem:[#allocation3 + $0x124] ss:$16 sps:$4 sm:$0xff]  }
  0x49   :  { %760 = vmatprep.subr.bf16.mxu0 %v4186_v48  ;;  %872 = vmatpush1.bf16.msra.mxu1 %v4179_v49  ;;  %v5799_v48 = vld [vmem:[#allocation3 + $0x12c] ss:$16 sps:$4 sm:$0xff]   ;;  %v5804_v49 = vld [vmem:[#allocation3 + $0x120] ss:$16 sps:$4 sm:$0xff]  }
  0x4a   :  { %873 = vmatprep.subr.bf16.mxu1 %v4188_v52  ;;  %v5814_v52 = vld [vmem:[#allocation3 + $0x14c] ss:$16 sps:$4 sm:$0xff]  }
  0x4c   :  { %761 = vmatpush1.bf16.msra.mxu0 %v4185_v55  ;;  %v5824_v55 = vld [vmem:[#allocation3 + $0x164] ss:$16 sps:$4 sm:$0xff]  }
  0x4d   :  { %762 = vmatprep.subr.bf16.mxu0 %v4194_v57  ;;  %874 = vmatpush1.bf16.msra.mxu1 %v4187_v58  ;;  %v5832_v57 = vld [vmem:[#allocation3 + $0x160] ss:$16 sps:$4 sm:$0xff]   ;;  %v5836_v58 = vld [vmem:[#allocation3 + $0x168] ss:$16 sps:$4 sm:$0xff]  }
  0x4e   :  { %587 = vmatmul.mubr.bf16.gmra.mrb[12].mxu0 %v5621_v56  ;;  %875 = vmatprep.subr.bf16.mxu1 %v4196_v61  ;;  %v5846_v61 = vld [vmem:[#allocation3 + $0x180] ss:$16 sps:$4 sm:$0xff]  }
  0x4f   :  { %700 = vmatmul.mubr.bf16.gmra.mrb[12].mxu1 %v5621_v56  ;;  %596 = vmatprep.mubr.bf16.mxu0 %v5366_v0 }
  0x50   :  { %709 = vmatprep.mubr.bf16.mxu1 %v5366_v0  ;;  %763 = vmatpush1.bf16.msra.mxu0 %v4193_v1  ;;  %v5855_v1 = vld [vmem:[#allocation3 + $0x1ac] ss:$16 sps:$4 sm:$0xff]  }
  0x51   :  { %764 = vmatprep.subr.bf16.mxu0 %v4202_v2  ;;  %876 = vmatpush1.bf16.msra.mxu1 %v4195_v3  ;;  %8383 = vst [vmem:[#allocation6_spill] sm:$0xff] %v5855_v1  ;;  %v5860_v2 = vld [vmem:[#allocation3 + $0x1a0] ss:$16 sps:$4 sm:$0xff]   ;;  %v5864_v3 = vld [vmem:[#allocation3 + $0x1a8] ss:$16 sps:$4 sm:$0xff]  }
  0x52   :  { %877 = vmatprep.subr.bf16.mxu1 %v4204_v4  ;;  %8384 = vst [vmem:[#allocation7_spill] sm:$0xff] %v5860_v2  ;;  %v5866_v4 = vld [vmem:[#allocation3 + $0x1c4] ss:$16 sps:$4 sm:$0xff]  }
  0x53   :  { %8385 = vst [vmem:[#allocation8_spill] sm:$0xff] %v5866_v4 }
  0x54   :  { %765 = vmatpush1.bf16.msra.mxu0 %v4201_v5  ;;  %v5870_v5 = vld [vmem:[#allocation3 + $0x1cc] ss:$16 sps:$4 sm:$0xff]  }
  0x55   :  { %878 = vmatpush1.bf16.msra.mxu1 %v4203_v6  ;;  %1495 = vmatprep.subr.bf16.mxu0 %v5639_v8  ;;  %8386 = vst [vmem:[#allocation9_spill] sm:$0xff] %v5870_v5  ;;  %v5874_v6 = vld [vmem:[#allocation3 + $0x1c0] ss:$16 sps:$4 sm:$0xff]  }
  0x56   :  { %597 = vmatmul.mubr.bf16.gmra.mrb[16].mxu0 %v5644_v9  ;;  %1538 = vmatprep.subr.bf16.mxu1 %v5646_v10 }
  0x57   :  { %710 = vmatmul.mubr.bf16.gmra.mrb[16].mxu1 %v5644_v9  ;;  %606 = vmatprep.mubr.bf16.mxu0 %v5366_v0 }
  0x58   :  { %719 = vmatprep.mubr.bf16.mxu1 %v5366_v0 }
  0x5e   :  { %607 = vmatmul.mubr.bf16.gmra.mrb[20].mxu0 %v5657_v11 }
  0x5f   :  { %720 = vmatmul.mubr.bf16.gmra.mrb[20].mxu1 %v5657_v11  ;;  %616 = vmatprep.mubr.bf16.mxu0 %v5366_v0 }
  0x60   :  { %729 = vmatprep.mubr.bf16.mxu1 %v5366_v0 }
  0x66   :  { %617 = vmatmul.mubr.bf16.gmra.mrb[24].mxu0 %v5666_v12 }
  0x67   :  { %730 = vmatmul.mubr.bf16.gmra.mrb[24].mxu1 %v5666_v12  ;;  %626 = vmatprep.mubr.bf16.mxu0 %v5366_v0 }
  0x68   :  { %739 = vmatprep.mubr.bf16.mxu1 %v5366_v0 }
  0x6e   :  { %627 = vmatmul.mubr.bf16.gmra.mrb[28].mxu0 %v5675_v13 }
  0x6f   :  { %740 = vmatmul.mubr.bf16.gmra.mrb[28].mxu1 %v5675_v13  ;;  %782 = vmatprep.mubr.bf16.mxu0 %v5366_v0 }
  0x70   :  { %895 = vmatprep.mubr.bf16.mxu1 %v5366_v0 }
  0x76   :  { %783 = vmatmul.mubr.bf16.vlgmr.msra.gmra.mrb[32].mxu0 %v5522_v7 }
  0x77   :  { %896 = vmatmul.mubr.bf16.vlgmr.msra.gmra.mrb[32].mxu1 %v5522_v7  ;;  %1496 = vmatpush1.bf16.msra.mxu0 %v5681_v14  ;;  %v5706_v7 = vld [vmem:[#allocation3 + $0x40] ss:$16 sps:$4 sm:$0xff]  }
  0x78   :  { %1539 = vmatpush1.bf16.msra.mxu1 %v5683_v15  ;;  %1497 = vmatprep.subr.bf16.mxu0 %v5685_v16 }
  0x79   :  { %1540 = vmatprep.subr.bf16.mxu1 %v5687_v17  ;;  %792 = vmatprep.mubr.bf16.mxu0 %v5366_v0 }
  0x7a   :  { %905 = vmatprep.mubr.bf16.mxu1 %v5366_v0 }
  0x7b   :  { %1498 = vmatpush1.bf16.msra.mxu0 %v5692_v18 }
  0x7c   :  { %1541 = vmatpush1.bf16.msra.mxu1 %v5696_v19  ;;  %1499 = vmatprep.subr.bf16.mxu0 %v5698_v20 }
  0x7d   :  { %1542 = vmatprep.subr.bf16.mxu1 %v5702_v21 }
  0x7e   :  { %793 = vmatmul.mubr.bf16.gmra.mrb[36].mxu0 %v5555_v23 }
  0x7f   :  { %906 = vmatmul.mubr.bf16.gmra.mrb[36].mxu1 %v5555_v23  ;;  %1500 = vmatpush1.bf16.msra.mxu0 %v5706_v7  ;;  %v5734_v23 = vld [vmem:[#allocation3 + $0x80] ss:$16 sps:$4 sm:$0xff]  }
  0x80   :  { %1543 = vmatpush1.bf16.msra.mxu1 %v5710_v22  ;;  %1501 = vmatprep.subr.bf16.mxu0 %v5712_v24 }
  0x81   :  { %1544 = vmatprep.subr.bf16.mxu1 %v5715_v25  ;;  %802 = vmatprep.mubr.bf16.mxu0 %v5366_v0 }
  0x82   :  { %915 = vmatprep.mubr.bf16.mxu1 %v5366_v0 }
  0x83   :  { %1502 = vmatpush1.bf16.msra.mxu0 %v5720_v26 }
  0x84   :  { %1545 = vmatpush1.bf16.msra.mxu1 %v5724_v27  ;;  %1503 = vmatprep.subr.bf16.mxu0 %v5726_v28 }
  0x85   :  { %1546 = vmatprep.subr.bf16.mxu1 %v5730_v29 }
  0x86   :  { %803 = vmatmul.mubr.bf16.gmra.mrb[40].mxu0 %v5588_v39 }
  0x87   :  { %916 = vmatmul.mubr.bf16.gmra.mrb[40].mxu1 %v5588_v39  ;;  %1504 = vmatpush1.bf16.msra.mxu0 %v5734_v23  ;;  %v5768_v39 = vld [vmem:[#allocation3 + $0xe4] ss:$16 sps:$4 sm:$0xff]  }
  0x88   :  { %1547 = vmatpush1.bf16.msra.mxu1 %v5738_v30  ;;  %1505 = vmatprep.subr.bf16.mxu0 %v5740_v31 }
  0x89   :  { %1548 = vmatprep.subr.bf16.mxu1 %v5743_v32  ;;  %812 = vmatprep.mubr.bf16.mxu0 %v5366_v0 }
  0x8a   :  { %925 = vmatprep.mubr.bf16.mxu1 %v5366_v0 }
  0x8b   :  { %1506 = vmatpush1.bf16.msra.mxu0 %v5748_v33 }
  0x8c   :  { %1549 = vmatpush1.bf16.msra.mxu1 %v5752_v34  ;;  %1507 = vmatprep.subr.bf16.mxu0 %v5754_v35 }
  0x8d   :  { %1550 = vmatprep.subr.bf16.mxu1 %v5758_v36 }
  0x8e   :  { %813 = vmatmul.mubr.bf16.gmra.mrb[44].mxu0 %v5621_v56 }
  0x8f   :  { %926 = vmatmul.mubr.bf16.gmra.mrb[44].mxu1 %v5621_v56  ;;  %1508 = vmatpush1.bf16.msra.mxu0 %v5762_v37  ;;  %v5827_v56 = vld [vmem:[#allocation3 + $0x16c] ss:$16 sps:$4 sm:$0xff]  }
  0x90   :  { %1551 = vmatpush1.bf16.msra.mxu1 %v5766_v38  ;;  %1509 = vmatprep.subr.bf16.mxu0 %v5768_v39 }
  0x91   :  { %1552 = vmatprep.subr.bf16.mxu1 %v5771_v40  ;;  %822 = vmatprep.mubr.bf16.mxu0 %v5366_v0 }
  0x92   :  { %935 = vmatprep.mubr.bf16.mxu1 %v5366_v0 }
  0x93   :  { %1510 = vmatpush1.bf16.msra.mxu0 %v5776_v41 }
  0x94   :  { %1553 = vmatpush1.bf16.msra.mxu1 %v5780_v42  ;;  %1511 = vmatprep.subr.bf16.mxu0 %v5782_v43 }
  0x95   :  { %1554 = vmatprep.subr.bf16.mxu1 %v5786_v44 }
  0x96   :  { %823 = vmatmul.mubr.bf16.gmra.mrb[48].mxu0 %v5644_v9 }
  0x97   :  { %936 = vmatmul.mubr.bf16.gmra.mrb[48].mxu1 %v5644_v9  ;;  %1512 = vmatpush1.bf16.msra.mxu0 %v5790_v45  ;;  %v5878_v9 = vld [vmem:[#allocation3 + $0x1c8] ss:$16 sps:$4 sm:$0xff]  }
  0x98   :  { %1555 = vmatpush1.bf16.msra.mxu1 %v5794_v46  ;;  %1513 = vmatprep.subr.bf16.mxu0 %v5796_v47 }
  0x99   :  { %1556 = vmatprep.subr.bf16.mxu1 %v5799_v48  ;;  %832 = vmatprep.mubr.bf16.mxu0 %v5366_v0 }
  0x9a   :  { %945 = vmatprep.mubr.bf16.mxu1 %v5366_v0 }
  0x9b   :  { %1514 = vmatpush1.bf16.msra.mxu0 %v5804_v49 }
  0x9c   :  { %1557 = vmatpush1.bf16.msra.mxu1 %v5808_v50  ;;  %1515 = vmatprep.subr.bf16.mxu0 %v5810_v51 }
  0x9d   :  { %1558 = vmatprep.subr.bf16.mxu1 %v5814_v52 }
  0x9e   :  { %833 = vmatmul.mubr.bf16.gmra.mrb[52].mxu0 %v5657_v11 }
  0x9f   :  { %946 = vmatmul.mubr.bf16.gmra.mrb[52].mxu1 %v5657_v11  ;;  %1516 = vmatpush1.bf16.msra.mxu0 %v5818_v53  ;;  %v5880_v11 = vld [vmem:[#allocation3 + $0x1e4] ss:$16 sps:$4 sm:$0xff]  }
  0xa0   :  { %1559 = vmatpush1.bf16.msra.mxu1 %v5822_v54  ;;  %1517 = vmatprep.subr.bf16.mxu0 %v5824_v55 }
  0xa1   :  { %1560 = vmatprep.subr.bf16.mxu1 %v5827_v56  ;;  %842 = vmatprep.mubr.bf16.mxu0 %v5366_v0 }
  0xa2   :  { %955 = vmatprep.mubr.bf16.mxu1 %v5366_v0 }
  0xa3   :  { %1518 = vmatpush1.bf16.msra.mxu0 %v5832_v57 }
  0xa4   :  { %1561 = vmatpush1.bf16.msra.mxu1 %v5836_v58  ;;  %1519 = vmatprep.subr.bf16.mxu0 %v5838_v59 }
  0xa5   :  { %1562 = vmatprep.subr.bf16.mxu1 %v5842_v60 }
  0xa6   :  { %843 = vmatmul.mubr.bf16.gmra.mrb[56].mxu0 %v5666_v12 }
  0xa7   :  { %956 = vmatmul.mubr.bf16.gmra.mrb[56].mxu1 %v5666_v12  ;;  %1520 = vmatpush1.bf16.msra.mxu0 %v5846_v61  ;;  %v5883_v12 = vld [vmem:[#allocation3 + $0x1ec] ss:$16 sps:$4 sm:$0xff]  }
  0xa8   :  { %1563 = vmatpush1.bf16.msra.mxu1 %v5850_v62  ;;  %1521 = vmatprep.subr.bf16.mxu0 %v5852_v63 }
  0xa9   :  { %1564 = vmatprep.subr.bf16.mxu1 %v5855_v1  ;;  %852 = vmatprep.mubr.bf16.mxu0 %v5366_v0  ;;  %v5886_v1 = vrot.slane %v5366_v0, 4 }
  0xaa   :  { %965 = vmatprep.mubr.bf16.mxu1 %v5366_v0  ;;  %v8389_v0 = vld [vmem:[#allocation6_spill] sm:$0xff] }
  0xab   :  { %1522 = vmatpush1.bf16.msra.mxu0 %v5860_v2 }
  0xac   :  { %1565 = vmatpush1.bf16.msra.mxu1 %v5864_v3  ;;  %1523 = vmatprep.subr.bf16.mxu0 %v5866_v4  ;;  %v5896_v4 = vld [vmem:[#allocation3 + $0x1e0] ss:$16 sps:$4 sm:$0xff]  }
  0xad   :  { %1566 = vmatprep.subr.bf16.mxu1 %v5870_v5  ;;  %v5900_v5 = vld [vmem:[#allocation3 + $0x1e8] ss:$16 sps:$4 sm:$0xff]  }
  0xae   :  { %853 = vmatmul.mubr.bf16.gmra.mrb[60].mxu0 %v5675_v13 }
  0xaf   :  { %966 = vmatmul.mubr.bf16.gmra.mrb[60].mxu1 %v5675_v13  ;;  %1524 = vmatpush1.bf16.msra.mxu0 %v5874_v6  ;;  %v8390_v13 = vld [vmem:[#allocation7_spill] sm:$0xff] }
  0xb0   :  { %1567 = vmatpush1.bf16.msra.mxu1 %v5878_v9  ;;  %1525 = vmatprep.subr.bf16.mxu0 %v5880_v11 }
  0xb1   :  { %1568 = vmatprep.subr.bf16.mxu1 %v5883_v12  ;;  %4270 = vmatprep.mubr.msk.bf16.mxu0 %vm5890_vm1, %v5886_v1 }
  0xb2   :  { %4274 = vmatprep.mubr.msk.bf16.mxu1 %vm5890_vm1, %v5886_v1 }
  0xb3   :  { %1526 = vmatpush1.bf16.msra.mxu0 %v5896_v4 }
  0xb4   :  { %1569 = vmatpush1.bf16.msra.mxu1 %v5900_v5  ;;  %1659 = vmatprep.subr.bf16.mxu0 %v5639_v8 }
  0xb5   :  { %1702 = vmatprep.subr.bf16.mxu1 %v5646_v10 }
  0xb6   :  { %4272 = vmatmul.mubr.msk.bf16.vlgmr.msra.gmra.mrb[64].mxu0 %vm5890_vm1, %v5886_v1 }
  0xb7   :  { %4276 = vmatmul.mubr.msk.bf16.vlgmr.msra.gmra.mrb[64].mxu1 %vm5890_vm1, %v5886_v1  ;;  %1660 = vmatpush1.bf16.msra.mxu0 %v5681_v14  ;;  %v8391_v14 = vld [vmem:[#allocation8_spill] sm:$0xff] }
  0xb8   :  { %1703 = vmatpush1.bf16.msra.mxu1 %v5683_v15  ;;  %1661 = vmatprep.subr.bf16.mxu0 %v5685_v16  ;;  %v8392_v15 = vld [vmem:[#allocation9_spill] sm:$0xff]  ;;  %v116_v16 = vlaneseq }
  0xb9   :  { %1704 = vmatprep.subr.bf16.mxu1 %v5687_v17 }
  0xba   :  { %v5983_v17 = vshrl.u32 %v116_v16, 7 }
  0xbb   :  { %1662 = vmatpush1.bf16.msra.mxu0 %v5692_v18 }
  0xbc   :  { %1705 = vmatpush1.bf16.msra.mxu1 %v5696_v19  ;;  %1663 = vmatprep.subr.bf16.mxu0 %v5698_v20  ;;  %v126_v18 = vsub.s32 2, %v5983_v17  ;;  %v118_v19 = vsub.s32 0, %v5983_v17  ;;  %v130_v20 = vsub.s32 3, %v5983_v17 }
  0xbd   :  { %1706 = vmatprep.subr.bf16.mxu1 %v5702_v21  ;;  %v5991_v21 = vld [vmem:[%s8189_s3] sm:$0xff] }
  0xbf   :  { %1664 = vmatpush1.bf16.msra.mxu0 %v5706_v7  ;;  %v122_v7 = vsub.s32 1, %v5983_v17 }
  0xc0   :  { %1707 = vmatpush1.bf16.msra.mxu1 %v5710_v22  ;;  %1665 = vmatprep.subr.bf16.mxu0 %v5712_v24 }
  0xc1   :  { %1708 = vmatprep.subr.bf16.mxu1 %v5715_v25 }
  0xc3   :  { %1666 = vmatpush1.bf16.msra.mxu0 %v5720_v26  ;;  %v6007_v26 = vrot.slane %v5991_v21, %v130_v20 }
  0xc4   :  { %1709 = vmatpush1.bf16.msra.mxu1 %v5724_v27  ;;  %1667 = vmatprep.subr.bf16.mxu0 %v5726_v28  ;;  %v6010_v27 = vrot.slane %v5991_v21, %v122_v7 }
  0xc5   :  { %1710 = vmatprep.subr.bf16.mxu1 %v5730_v29 }
  0xc7   :  { %1668 = vmatpush1.bf16.msra.mxu0 %v5734_v23 }
  0xc8   :  { %1711 = vmatpush1.bf16.msra.mxu1 %v5738_v30  ;;  %1669 = vmatprep.subr.bf16.mxu0 %v5740_v31 }
  0xc9   :  { %1712 = vmatprep.subr.bf16.mxu1 %v5743_v32 }
  0xcb   :  { %1670 = vmatpush1.bf16.msra.mxu0 %v5748_v33 }
  0xcc   :  { %1713 = vmatpush1.bf16.msra.mxu1 %v5752_v34  ;;  %1671 = vmatprep.subr.bf16.mxu0 %v5754_v35 }
  0xcd   :  { %1714 = vmatprep.subr.bf16.mxu1 %v5758_v36 }
  0xcf   :  { %1672 = vmatpush1.bf16.msra.mxu0 %v5762_v37 }
  0xd0   :  { %1715 = vmatpush1.bf16.msra.mxu1 %v5766_v38  ;;  %1673 = vmatprep.subr.bf16.mxu0 %v5768_v39 }
  0xd1   :  { %1716 = vmatprep.subr.bf16.mxu1 %v5771_v40 }
  0xd3   :  { %1674 = vmatpush1.bf16.msra.mxu0 %v5776_v41 }
  0xd4   :  { %1717 = vmatpush1.bf16.msra.mxu1 %v5780_v42  ;;  %1675 = vmatprep.subr.bf16.mxu0 %v5782_v43 }
  0xd5   :  { %1718 = vmatprep.subr.bf16.mxu1 %v5786_v44 }
  0xd7   :  { %1676 = vmatpush1.bf16.msra.mxu0 %v5790_v45 }
  0xd8   :  { %1719 = vmatpush1.bf16.msra.mxu1 %v5794_v46  ;;  %1677 = vmatprep.subr.bf16.mxu0 %v5796_v47 }
  0xd9   :  { %1720 = vmatprep.subr.bf16.mxu1 %v5799_v48 }
  0xdb   :  { %1678 = vmatpush1.bf16.msra.mxu0 %v5804_v49 }
  0xdc   :  { %1721 = vmatpush1.bf16.msra.mxu1 %v5808_v50  ;;  %1679 = vmatprep.subr.bf16.mxu0 %v5810_v51 }
  0xdd   :  { %1722 = vmatprep.subr.bf16.mxu1 %v5814_v52 }
  0xdf   :  { %1680 = vmatpush1.bf16.msra.mxu0 %v5818_v53 }
  0xe0   :  { %1723 = vmatpush1.bf16.msra.mxu1 %v5822_v54  ;;  %1681 = vmatprep.subr.bf16.mxu0 %v5824_v55 }
  0xe1   :  { %1724 = vmatprep.subr.bf16.mxu1 %v5827_v56 }
  0xe3   :  { %1682 = vmatpush1.bf16.msra.mxu0 %v5832_v57 }
  0xe4   :  { %1725 = vmatpush1.bf16.msra.mxu1 %v5836_v58  ;;  %1683 = vmatprep.subr.bf16.mxu0 %v5838_v59 }
  0xe5   :  { %1726 = vmatprep.subr.bf16.mxu1 %v5842_v60 }
  0xe7   :  { %1684 = vmatpush1.bf16.msra.mxu0 %v5846_v61 }
  0xe8   :  { %1727 = vmatpush1.bf16.msra.mxu1 %v5850_v62  ;;  %1685 = vmatprep.subr.bf16.mxu0 %v5852_v63 }
  0xe9   :  { %1728 = vmatprep.subr.bf16.mxu1 %v8389_v0 }
  0xeb   :  { %1686 = vmatpush1.bf16.msra.mxu0 %v8390_v13 }
  0xec   :  { %1729 = vmatpush1.bf16.msra.mxu1 %v5864_v3  ;;  %1687 = vmatprep.subr.bf16.mxu0 %v8391_v14 }
  0xed   :  { %1730 = vmatprep.subr.bf16.mxu1 %v8392_v15 }
  0xef   :  { %1688 = vmatpush1.bf16.msra.mxu0 %v5874_v6 }
  0xf0   :  { %1731 = vmatpush1.bf16.msra.mxu1 %v5878_v9  ;;  %1689 = vmatprep.subr.bf16.mxu0 %v5880_v11 }
  0xf1   :  { %1732 = vmatprep.subr.bf16.mxu1 %v5883_v12 }
  0xf3   :  { %1690 = vmatpush1.bf16.msra.mxu0 %v5896_v4 }
  0xf4   :  { %1733 = vmatpush1.bf16.msra.mxu1 %v5900_v5  ;;  %1825 = vmatprep.subr.bf16.mxu0 %v5639_v8  ;;  %v5997_v8 = vrot.slane %v5991_v21, %v126_v18 }
  0xf5   :  { %1868 = vmatprep.subr.bf16.mxu1 %v5646_v10  ;;  %v6000_v10 = vrot.slane %v5991_v21, %v118_v19 }
 0x109   :  { %v5994_v22 = vpop.f32.mrb[0].mxu0  ;;  %v6004_v25 = vpop.f32.mrb[0].mxu1 }
 0x10a   :  { %v6002_v24 = vpop.f32.mrb[1].mxu0  ;;  %v6012_v29 = vpop.f32.mrb[1].mxu1 }
 0x10b   :  { %v562_v28 = vpop.f32.mrb[2].mxu0  ;;  %v675_v31 = vpop.f32.mrb[2].mxu1 }
 0x10c   :  { %v6015_v23 = vadd.f32 %v562_v28, %v6000_v10  ;;  %v564_v30 = vpop.f32.mrb[3].mxu0  ;;  %v6021_v33 = vadd.f32 %v675_v31, %v5997_v8  ;;  %v677_v34 = vpop.f32.mrb[3].mxu1 }
 0x10d   :  { %v6018_v32 = vadd.f32 %v564_v30, %v6010_v27  ;;  %v6024_v35 = vadd.f32 %v677_v34, %v6007_v26 }
 0x111   :  { %v568_v36 = vpop.f32.mrb[4].mxu0 }
 0x112   :  { %v6027_v37 = vadd.f32 %v568_v36, %v6000_v10  ;;  %v570_v38 = vpop.f32.mrb[5].mxu0  ;;  %v681_v39 = vpop.f32.mrb[4].mxu1 }
 0x113   :  { %v6030_v40 = vadd.f32 %v570_v38, %v6010_v27  ;;  %v572_v41 = vpop.f32.mrb[6].mxu0  ;;  %v6033_v42 = vadd.f32 %v681_v39, %v5997_v8  ;;  %v683_v43 = vpop.f32.mrb[5].mxu1 }
 0x114   :  { %8393 = vst [vmem:[#allocation6_spill] sm:$0xff] %v6027_v37  ;;  %v6036_v44 = vadd.f32 %v572_v41, %v6000_v10  ;;  %v574_v45 = vpop.f32.mrb[7].mxu0  ;;  %v6039_v46 = vadd.f32 %v683_v43, %v6007_v26  ;;  %v685_v47 = vpop.f32.mrb[6].mxu1  ;;  %v6531_v37 = vld [vmem:[#allocation3 + $0x128] ss:$16 sps:$4 sm:$0xff]  }
 0x115   :  { %8394 = vst [vmem:[#allocation7_spill] sm:$0xff] %v6030_v40  ;;  %8395 = vst [vmem:[#allocation8_spill] sm:$0xff] %v6033_v42  ;;  %v6042_v48 = vadd.f32 %v574_v45, %v6010_v27  ;;  %v6045_v49 = vadd.f32 %v685_v47, %v5997_v8  ;;  %v687_v50 = vpop.f32.mrb[7].mxu1  ;;  %v6525_v40 = vld [vmem:[#allocation3 + $0x12c] ss:$16 sps:$4 sm:$0xff]  }
 0x116   :  { %8396 = vst [vmem:[#allocation9_spill] sm:$0xff] %v6036_v44  ;;  %8397 = vst [vmem:[#allocation10_spill] sm:$0xff] %v6039_v46  ;;  %v6048_v51 = vadd.f32 %v687_v50, %v6007_v26  ;;  %v6507_v44 = vld [vmem:[#allocation3 + $0xe8] ss:$16 sps:$4 sm:$0xff]   ;;  %v6522_v46 = vld [vmem:[#allocation3 + $0x124] ss:$16 sps:$4 sm:$0xff]  }
 0x117   :  { %8398 = vst [vmem:[#allocation11_spill] sm:$0xff] %v6042_v48  ;;  %8399 = vst [vmem:[#allocation12_spill] sm:$0xff] %v6045_v49  ;;  %v6504_v49 = vld [vmem:[#allocation3 + $0xe0] ss:$16 sps:$4 sm:$0xff]  }
 0x118   :  { %8400 = vst [vmem:[#allocation13_spill] sm:$0xff] %v6048_v51  ;;  %8507 = vst [vmem:[#allocation120_spill] sm:$0xff] %v6522_v46  ;;  %v6528_v42 = vld [vmem:[#allocation3 + $0x120] ss:$16 sps:$4 sm:$0xff]  }
 0x119   :  { %v578_v52 = vpop.f32.mrb[8].mxu0  ;;  %8508 = vst [vmem:[#allocation121_spill] sm:$0xff] %v6525_v40  ;;  %8509 = vst [vmem:[#allocation122_spill] sm:$0xff] %v6528_v42 }
 0x11a   :  { %v6051_v53 = vadd.f32 %v578_v52, %v6000_v10  ;;  %v580_v54 = vpop.f32.mrb[9].mxu0  ;;  %v691_v55 = vpop.f32.mrb[8].mxu1  ;;  %8510 = vst [vmem:[#allocation123_spill] sm:$0xff] %v6531_v37 }
 0x11b   :  { %v6054_v56 = vadd.f32 %v580_v54, %v6010_v27  ;;  %v582_v57 = vpop.f32.mrb[10].mxu0  ;;  %v6057_v58 = vadd.f32 %v691_v55, %v5997_v8  ;;  %v693_v59 = vpop.f32.mrb[9].mxu1 }
 0x11c   :  { %8401 = vst [vmem:[#allocation14_spill] sm:$0xff] %v6051_v53  ;;  %v6060_v60 = vadd.f32 %v582_v57, %v6000_v10  ;;  %v584_v16 = vpop.f32.mrb[11].mxu0  ;;  %v6063_v18 = vadd.f32 %v693_v59, %v6007_v26  ;;  %v695_v19 = vpop.f32.mrb[10].mxu1 }
 0x11d   :  { %8402 = vst [vmem:[#allocation15_spill] sm:$0xff] %v6054_v56  ;;  %8403 = vst [vmem:[#allocation16_spill] sm:$0xff] %v6057_v58  ;;  %v6066_v20 = vadd.f32 %v584_v16, %v6010_v27  ;;  %v6069_v7 = vadd.f32 %v695_v19, %v5997_v8  ;;  %v697_v28 = vpop.f32.mrb[11].mxu1  ;;  %v674_v58 = vadd.f32 %v6012_v29, %v6007_v26 }
 0x11e   :  { %8404 = vst [vmem:[#allocation17_spill] sm:$0xff] %v6060_v60  ;;  %8405 = vst [vmem:[#allocation18_spill] sm:$0xff] %v6063_v18  ;;  %v6072_v30 = vadd.f32 %v697_v28, %v6007_v26  ;;  %v561_v18 = vadd.f32 %v6002_v24, %v6010_v27 }
 0x11f   :  { %8406 = vst [vmem:[#allocation19_spill] sm:$0xff] %v6066_v20  ;;  %8407 = vst [vmem:[#allocation20_spill] sm:$0xff] %v6069_v7 }
 0x120   :  { %8408 = vst [vmem:[#allocation21_spill] sm:$0xff] %v6072_v30 }
 0x121   :  { %v588_v31 = vpop.f32.mrb[12].mxu0 }
 0x122   :  { %v6075_v34 = vadd.f32 %v588_v31, %v6000_v10  ;;  %v590_v36 = vpop.f32.mrb[13].mxu0  ;;  %v701_v38 = vpop.f32.mrb[12].mxu1 }
 0x123   :  { %v6078_v39 = vadd.f32 %v590_v36, %v6010_v27  ;;  %v592_v41 = vpop.f32.mrb[14].mxu0  ;;  %v6081_v43 = vadd.f32 %v701_v38, %v5997_v8  ;;  %v703_v45 = vpop.f32.mrb[13].mxu1 }
 0x124   :  { %8409 = vst [vmem:[#allocation22_spill] sm:$0xff] %v6075_v34  ;;  %v6084_v47 = vadd.f32 %v592_v41, %v6000_v10  ;;  %v594_v50 = vpop.f32.mrb[15].mxu0  ;;  %v6087_v52 = vadd.f32 %v703_v45, %v6007_v26  ;;  %v705_v54 = vpop.f32.mrb[14].mxu1 }
 0x125   :  { %8410 = vst [vmem:[#allocation23_spill] sm:$0xff] %v6078_v39  ;;  %8411 = vst [vmem:[#allocation24_spill] sm:$0xff] %v6081_v43  ;;  %v6090_v55 = vadd.f32 %v594_v50, %v6010_v27  ;;  %v6093_v57 = vadd.f32 %v705_v54, %v5997_v8  ;;  %v707_v59 = vpop.f32.mrb[15].mxu1 }
 0x126   :  { %8412 = vst [vmem:[#allocation25_spill] sm:$0xff] %v6084_v47  ;;  %8413 = vst [vmem:[#allocation26_spill] sm:$0xff] %v6087_v52  ;;  %v6096_v16 = vadd.f32 %v707_v59, %v6007_v26 }
 0x127   :  { %8414 = vst [vmem:[#allocation27_spill] sm:$0xff] %v6090_v55  ;;  %8415 = vst [vmem:[#allocation28_spill] sm:$0xff] %v6093_v57 }
 0x128   :  { %8416 = vst [vmem:[#allocation29_spill] sm:$0xff] %v6096_v16 }
 0x129   :  { %v598_v19 = vpop.f32.mrb[16].mxu0 }
 0x12a   :  { %v6099_v28 = vadd.f32 %v598_v19, %v6000_v10  ;;  %v600_v31 = vpop.f32.mrb[17].mxu0  ;;  %v711_v36 = vpop.f32.mrb[16].mxu1 }
 0x12b   :  { %v6102_v38 = vadd.f32 %v600_v31, %v6010_v27  ;;  %v602_v41 = vpop.f32.mrb[18].mxu0  ;;  %v6105_v45 = vadd.f32 %v711_v36, %v5997_v8  ;;  %v713_v50 = vpop.f32.mrb[17].mxu1 }
 0x12c   :  { %8417 = vst [vmem:[#allocation30_spill] sm:$0xff] %v6099_v28  ;;  %v6108_v54 = vadd.f32 %v602_v41, %v6000_v10  ;;  %v604_v55 = vpop.f32.mrb[19].mxu0  ;;  %v6111_v59 = vadd.f32 %v713_v50, %v6007_v26  ;;  %v715_v16 = vpop.f32.mrb[18].mxu1 }
 0x12d   :  { %8418 = vst [vmem:[#allocation31_spill] sm:$0xff] %v6102_v38  ;;  %8419 = vst [vmem:[#allocation32_spill] sm:$0xff] %v6105_v45  ;;  %v6114_v19 = vadd.f32 %v604_v55, %v6010_v27  ;;  %v6117_v28 = vadd.f32 %v715_v16, %v5997_v8  ;;  %v717_v31 = vpop.f32.mrb[19].mxu1 }
 0x12e   :  { %8420 = vst [vmem:[#allocation33_spill] sm:$0xff] %v6108_v54  ;;  %8421 = vst [vmem:[#allocation34_spill] sm:$0xff] %v6111_v59  ;;  %v6120_v38 = vadd.f32 %v717_v31, %v6007_v26 }
 0x12f   :  { %8422 = vst [vmem:[#allocation35_spill] sm:$0xff] %v6114_v19  ;;  %8423 = vst [vmem:[#allocation36_spill] sm:$0xff] %v6117_v28 }
 0x130   :  { %8424 = vst [vmem:[#allocation37_spill] sm:$0xff] %v6120_v38 }
 0x131   :  { %v608_v36 = vpop.f32.mrb[20].mxu0 }
 0x132   :  { %v6123_v45 = vadd.f32 %v608_v36, %v6000_v10  ;;  %v610_v41 = vpop.f32.mrb[21].mxu0  ;;  %v721_v54 = vpop.f32.mrb[20].mxu1 }
 0x133   :  { %v6126_v50 = vadd.f32 %v610_v41, %v6010_v27  ;;  %v612_v59 = vpop.f32.mrb[22].mxu0  ;;  %v6129_v55 = vadd.f32 %v721_v54, %v5997_v8  ;;  %v723_v19 = vpop.f32.mrb[21].mxu1 }
 0x134   :  { %8425 = vst [vmem:[#allocation38_spill] sm:$0xff] %v6123_v45  ;;  %v6132_v16 = vadd.f32 %v612_v59, %v6000_v10  ;;  %v614_v28 = vpop.f32.mrb[23].mxu0  ;;  %v6135_v31 = vadd.f32 %v723_v19, %v6007_v26  ;;  %v725_v38 = vpop.f32.mrb[22].mxu1 }
 0x135   :  { %8426 = vst [vmem:[#allocation39_spill] sm:$0xff] %v6126_v50  ;;  %8427 = vst [vmem:[#allocation40_spill] sm:$0xff] %v6129_v55  ;;  %v6138_v36 = vadd.f32 %v614_v28, %v6010_v27  ;;  %v6141_v45 = vadd.f32 %v725_v38, %v5997_v8  ;;  %v727_v41 = vpop.f32.mrb[23].mxu1 }
 0x136   :  { %8428 = vst [vmem:[#allocation41_spill] sm:$0xff] %v6132_v16  ;;  %8429 = vst [vmem:[#allocation42_spill] sm:$0xff] %v6135_v31  ;;  %v6144_v50 = vadd.f32 %v727_v41, %v6007_v26 }
 0x137   :  { %8430 = vst [vmem:[#allocation43_spill] sm:$0xff] %v6138_v36  ;;  %8431 = vst [vmem:[#allocation44_spill] sm:$0xff] %v6141_v45 }
 0x138   :  { %8432 = vst [vmem:[#allocation45_spill] sm:$0xff] %v6144_v50 }
 0x139   :  { %v618_v54 = vpop.f32.mrb[24].mxu0 }
 0x13a   :  { %v6147_v55 = vadd.f32 %v618_v54, %v6000_v10  ;;  %v620_v59 = vpop.f32.mrb[25].mxu0  ;;  %v731_v16 = vpop.f32.mrb[24].mxu1 }
 0x13b   :  { %v6150_v19 = vadd.f32 %v620_v59, %v6010_v27  ;;  %v622_v31 = vpop.f32.mrb[26].mxu0  ;;  %v6153_v28 = vadd.f32 %v731_v16, %v5997_v8  ;;  %v733_v36 = vpop.f32.mrb[25].mxu1 }
 0x13c   :  { %8433 = vst [vmem:[#allocation46_spill] sm:$0xff] %v6147_v55  ;;  %v6156_v38 = vadd.f32 %v622_v31, %v6000_v10  ;;  %v624_v45 = vpop.f32.mrb[27].mxu0  ;;  %v6159_v41 = vadd.f32 %v733_v36, %v6007_v26  ;;  %v735_v50 = vpop.f32.mrb[26].mxu1 }
 0x13d   :  { %8434 = vst [vmem:[#allocation47_spill] sm:$0xff] %v6150_v19  ;;  %8435 = vst [vmem:[#allocation48_spill] sm:$0xff] %v6153_v28  ;;  %v6162_v54 = vadd.f32 %v624_v45, %v6010_v27  ;;  %v6165_v55 = vadd.f32 %v735_v50, %v5997_v8  ;;  %v737_v59 = vpop.f32.mrb[27].mxu1 }
 0x13e   :  { %8436 = vst [vmem:[#allocation49_spill] sm:$0xff] %v6156_v38  ;;  %8437 = vst [vmem:[#allocation50_spill] sm:$0xff] %v6159_v41  ;;  %v6168_v19 = vadd.f32 %v737_v59, %v6007_v26  ;;  %v134_v38 = vsub.s32 4, %v5983_v17  ;;  %v142_v59 = vsub.s32 6, %v5983_v17 }
 0x13f   :  { %8438 = vst [vmem:[#allocation51_spill] sm:$0xff] %v6162_v54  ;;  %8439 = vst [vmem:[#allocation52_spill] sm:$0xff] %v6165_v55  ;;  %v138_v54 = vsub.s32 5, %v5983_v17 }
 0x140   :  { %8440 = vst [vmem:[#allocation53_spill] sm:$0xff] %v6168_v19 }
 0x141   :  { %v628_v16 = vpop.f32.mrb[28].mxu0 }
 0x142   :  { %v6171_v28 = vadd.f32 %v628_v16, %v6000_v10  ;;  %v630_v31 = vpop.f32.mrb[29].mxu0  ;;  %v741_v36 = vpop.f32.mrb[28].mxu1 }
 0x143   :  { %v6175_v41 = vadd.f32 %v630_v31, %v6010_v27  ;;  %v632_v45 = vpop.f32.mrb[30].mxu0  ;;  %v6179_v50 = vadd.f32 %v741_v36, %v5997_v8  ;;  %v743_v55 = vpop.f32.mrb[29].mxu1  ;;  %v146_v31 = vsub.s32 7, %v5983_v17 }
 0x144   :  { %8441 = vst [vmem:[#allocation54_spill] sm:$0xff] %v6171_v28  ;;  %v6183_v19 = vadd.f32 %v632_v45, %v6000_v10  ;;  %v634_v16 = vpop.f32.mrb[31].mxu0  ;;  %v6186_v28 = vadd.f32 %v743_v55, %v6007_v26  ;;  %v745_v57 = vpop.f32.mrb[30].mxu1  ;;  %v6205_v55 = vrot.slane %v5991_v21, %v142_v59 }
 0x145   :  { %8442 = vst [vmem:[#allocation55_spill] sm:$0xff] %v6175_v41  ;;  %8443 = vst [vmem:[#allocation56_spill] sm:$0xff] %v6179_v50  ;;  %v6190_v41 = vadd.f32 %v634_v16, %v6010_v27  ;;  %v6193_v47 = vadd.f32 %v745_v57, %v5997_v8  ;;  %v747_v36 = vpop.f32.mrb[31].mxu1  ;;  %v6196_v50 = vrot.slane %v5991_v21, %v134_v38 }
 0x146   :  { %8444 = vst [vmem:[#allocation57_spill] sm:$0xff] %v6183_v19  ;;  %8445 = vst [vmem:[#allocation58_spill] sm:$0xff] %v6186_v28  ;;  %v6199_v45 = vadd.f32 %v747_v36, %v6007_v26  ;;  %v6202_v19 = vrot.slane %v5991_v21, %v138_v54  ;;  %v6208_v17 = vrot.slane %v5991_v21, %v146_v31 }
 0x147   :  { %8446 = vst [vmem:[#allocation59_spill] sm:$0xff] %v6190_v41  ;;  %8447 = vst [vmem:[#allocation60_spill] sm:$0xff] %v6193_v47 }
 0x148   :  { %8448 = vst [vmem:[#allocation61_spill] sm:$0xff] %v6199_v45 }
 0x149   :  { %v784_v16 = vpop.f32.mrb[32].mxu0 }
 0x14a   :  { %v6211_v57 = vadd.f32 %v784_v16, %v6196_v50  ;;  %v786_v41 = vpop.f32.mrb[33].mxu0  ;;  %v897_v47 = vpop.f32.mrb[32].mxu1 }
 0x14b   :  { %v6214_v38 = vadd.f32 %v786_v41, %v6202_v19  ;;  %v788_v36 = vpop.f32.mrb[34].mxu0  ;;  %v6217_v45 = vadd.f32 %v897_v47, %v6205_v55  ;;  %v899_v54 = vpop.f32.mrb[33].mxu1 }
 0x14c   :  { %8449 = vst [vmem:[#allocation62_spill] sm:$0xff] %v6211_v57  ;;  %v6220_v59 = vadd.f32 %v788_v36, %v6196_v50  ;;  %v790_v28 = vpop.f32.mrb[35].mxu0  ;;  %v6223_v21 = vadd.f32 %v899_v54, %v6208_v17  ;;  %v901_v31 = vpop.f32.mrb[34].mxu1 }
 0x14d   :  { %8450 = vst [vmem:[#allocation63_spill] sm:$0xff] %v6214_v38  ;;  %8451 = vst [vmem:[#allocation64_spill] sm:$0xff] %v6217_v45  ;;  %v6226_v16 = vadd.f32 %v790_v28, %v6202_v19  ;;  %v6229_v57 = vadd.f32 %v901_v31, %v6205_v55  ;;  %v903_v41 = vpop.f32.mrb[35].mxu1 }
 0x14e   :  { %8452 = vst [vmem:[#allocation65_spill] sm:$0xff] %v6220_v59  ;;  %8453 = vst [vmem:[#allocation66_spill] sm:$0xff] %v6223_v21  ;;  %v6232_v38 = vadd.f32 %v903_v41, %v6208_v17 }
 0x14f   :  { %8454 = vst [vmem:[#allocation67_spill] sm:$0xff] %v6226_v16  ;;  %8455 = vst [vmem:[#allocation68_spill] sm:$0xff] %v6229_v57 }
 0x150   :  { %8456 = vst [vmem:[#allocation69_spill] sm:$0xff] %v6232_v38 }
 0x151   :  { %v794_v47 = vpop.f32.mrb[36].mxu0 }
 0x152   :  { %v6235_v45 = vadd.f32 %v794_v47, %v6196_v50  ;;  %v796_v36 = vpop.f32.mrb[37].mxu0  ;;  %v907_v59 = vpop.f32.mrb[36].mxu1 }
 0x153   :  { %v6238_v54 = vadd.f32 %v796_v36, %v6202_v19  ;;  %v798_v21 = vpop.f32.mrb[38].mxu0  ;;  %v6241_v28 = vadd.f32 %v907_v59, %v6205_v55  ;;  %v909_v16 = vpop.f32.mrb[37].mxu1 }
 0x154   :  { %8457 = vst [vmem:[#allocation70_spill] sm:$0xff] %v6235_v45  ;;  %v6244_v31 = vadd.f32 %v798_v21, %v6196_v50  ;;  %v800_v57 = vpop.f32.mrb[39].mxu0  ;;  %v6247_v41 = vadd.f32 %v909_v16, %v6208_v17  ;;  %v911_v38 = vpop.f32.mrb[38].mxu1 }
 0x155   :  { %8458 = vst [vmem:[#allocation71_spill] sm:$0xff] %v6238_v54  ;;  %8459 = vst [vmem:[#allocation72_spill] sm:$0xff] %v6241_v28  ;;  %v6250_v47 = vadd.f32 %v800_v57, %v6202_v19  ;;  %v6253_v45 = vadd.f32 %v911_v38, %v6205_v55  ;;  %v913_v36 = vpop.f32.mrb[39].mxu1 }
 0x156   :  { %8460 = vst [vmem:[#allocation73_spill] sm:$0xff] %v6244_v31  ;;  %8461 = vst [vmem:[#allocation74_spill] sm:$0xff] %v6247_v41  ;;  %v6256_v54 = vadd.f32 %v913_v36, %v6208_v17 }
 0x157   :  { %8462 = vst [vmem:[#allocation75_spill] sm:$0xff] %v6250_v47  ;;  %8463 = vst [vmem:[#allocation76_spill] sm:$0xff] %v6253_v45 }
 0x158   :  { %8464 = vst [vmem:[#allocation77_spill] sm:$0xff] %v6256_v54 }
 0x159   :  { %v804_v59 = vpop.f32.mrb[40].mxu0 }
 0x15a   :  { %v6259_v28 = vadd.f32 %v804_v59, %v6196_v50  ;;  %v806_v21 = vpop.f32.mrb[41].mxu0  ;;  %v917_v31 = vpop.f32.mrb[40].mxu1 }
 0x15b   :  { %v6262_v16 = vadd.f32 %v806_v21, %v6202_v19  ;;  %v808_v41 = vpop.f32.mrb[42].mxu0  ;;  %v6265_v57 = vadd.f32 %v917_v31, %v6205_v55  ;;  %v919_v47 = vpop.f32.mrb[41].mxu1 }
 0x15c   :  { %8465 = vst [vmem:[#allocation78_spill] sm:$0xff] %v6259_v28  ;;  %v6268_v38 = vadd.f32 %v808_v41, %v6196_v50  ;;  %v810_v45 = vpop.f32.mrb[43].mxu0  ;;  %v6271_v36 = vadd.f32 %v919_v47, %v6208_v17  ;;  %v921_v54 = vpop.f32.mrb[42].mxu1 }
 0x15d   :  { %8466 = vst [vmem:[#allocation79_spill] sm:$0xff] %v6262_v16  ;;  %8467 = vst [vmem:[#allocation80_spill] sm:$0xff] %v6265_v57  ;;  %v6274_v59 = vadd.f32 %v810_v45, %v6202_v19  ;;  %v6277_v28 = vadd.f32 %v921_v54, %v6205_v55  ;;  %v923_v21 = vpop.f32.mrb[43].mxu1 }
 0x15e   :  { %8468 = vst [vmem:[#allocation81_spill] sm:$0xff] %v6268_v38  ;;  %8469 = vst [vmem:[#allocation82_spill] sm:$0xff] %v6271_v36  ;;  %v6280_v16 = vadd.f32 %v923_v21, %v6208_v17 }
 0x15f   :  { %8470 = vst [vmem:[#allocation83_spill] sm:$0xff] %v6274_v59  ;;  %8471 = vst [vmem:[#allocation84_spill] sm:$0xff] %v6277_v28 }
 0x160   :  { %8472 = vst [vmem:[#allocation85_spill] sm:$0xff] %v6280_v16 }
 0x161   :  { %v814_v31 = vpop.f32.mrb[44].mxu0 }
 0x162   :  { %v6283_v57 = vadd.f32 %v814_v31, %v6196_v50  ;;  %v816_v41 = vpop.f32.mrb[45].mxu0  ;;  %v927_v38 = vpop.f32.mrb[44].mxu1 }
 0x163   :  { %v6286_v47 = vadd.f32 %v816_v41, %v6202_v19  ;;  %v818_v36 = vpop.f32.mrb[46].mxu0  ;;  %v6289_v45 = vadd.f32 %v927_v38, %v6205_v55  ;;  %v929_v59 = vpop.f32.mrb[45].mxu1 }
 0x164   :  { %8473 = vst [vmem:[#allocation86_spill] sm:$0xff] %v6283_v57  ;;  %v6292_v54 = vadd.f32 %v818_v36, %v6196_v50  ;;  %v820_v28 = vpop.f32.mrb[47].mxu0  ;;  %v6295_v21 = vadd.f32 %v929_v59, %v6208_v17  ;;  %v931_v16 = vpop.f32.mrb[46].mxu1 }
 0x165   :  { %8474 = vst [vmem:[#allocation87_spill] sm:$0xff] %v6286_v47  ;;  %8475 = vst [vmem:[#allocation88_spill] sm:$0xff] %v6289_v45  ;;  %v6298_v31 = vadd.f32 %v820_v28, %v6202_v19  ;;  %v6301_v57 = vadd.f32 %v931_v16, %v6205_v55  ;;  %v933_v41 = vpop.f32.mrb[47].mxu1 }
 0x166   :  { %8476 = vst [vmem:[#allocation89_spill] sm:$0xff] %v6292_v54  ;;  %8477 = vst [vmem:[#allocation90_spill] sm:$0xff] %v6295_v21  ;;  %v6304_v47 = vadd.f32 %v933_v41, %v6208_v17 }
 0x167   :  { %8478 = vst [vmem:[#allocation91_spill] sm:$0xff] %v6298_v31  ;;  %8479 = vst [vmem:[#allocation92_spill] sm:$0xff] %v6301_v57 }
 0x168   :  { %8480 = vst [vmem:[#allocation93_spill] sm:$0xff] %v6304_v47 }
 0x169   :  { %v824_v38 = vpop.f32.mrb[48].mxu0 }
 0x16a   :  { %v6307_v45 = vadd.f32 %v824_v38, %v6196_v50  ;;  %v826_v36 = vpop.f32.mrb[49].mxu0  ;;  %v937_v54 = vpop.f32.mrb[48].mxu1 }
 0x16b   :  { %v6310_v59 = vadd.f32 %v826_v36, %v6202_v19  ;;  %v828_v21 = vpop.f32.mrb[50].mxu0  ;;  %v6313_v28 = vadd.f32 %v937_v54, %v6205_v55  ;;  %v939_v31 = vpop.f32.mrb[49].mxu1 }
 0x16c   :  { %8481 = vst [vmem:[#allocation94_spill] sm:$0xff] %v6307_v45  ;;  %v6316_v16 = vadd.f32 %v828_v21, %v6196_v50  ;;  %v830_v57 = vpop.f32.mrb[51].mxu0  ;;  %v6319_v41 = vadd.f32 %v939_v31, %v6208_v17  ;;  %v941_v47 = vpop.f32.mrb[50].mxu1 }
 0x16d   :  { %8482 = vst [vmem:[#allocation95_spill] sm:$0xff] %v6310_v59  ;;  %8483 = vst [vmem:[#allocation96_spill] sm:$0xff] %v6313_v28  ;;  %v6322_v38 = vadd.f32 %v830_v57, %v6202_v19  ;;  %v6325_v45 = vadd.f32 %v941_v47, %v6205_v55  ;;  %v943_v36 = vpop.f32.mrb[51].mxu1 }
 0x16e   :  { %8484 = vst [vmem:[#allocation97_spill] sm:$0xff] %v6316_v16  ;;  %8485 = vst [vmem:[#allocation98_spill] sm:$0xff] %v6319_v41  ;;  %v6328_v59 = vadd.f32 %v943_v36, %v6208_v17 }
 0x16f   :  { %8486 = vst [vmem:[#allocation99_spill] sm:$0xff] %v6322_v38  ;;  %8487 = vst [vmem:[#allocation100_spill] sm:$0xff] %v6325_v45 }
 0x170   :  { %8488 = vst [vmem:[#allocation101_spill] sm:$0xff] %v6328_v59 }
 0x171   :  { %v834_v54 = vpop.f32.mrb[52].mxu0 }
 0x172   :  { %v6331_v28 = vadd.f32 %v834_v54, %v6196_v50  ;;  %v836_v21 = vpop.f32.mrb[53].mxu0  ;;  %v947_v16 = vpop.f32.mrb[52].mxu1 }
 0x173   :  { %v6334_v31 = vadd.f32 %v836_v21, %v6202_v19  ;;  %v838_v41 = vpop.f32.mrb[54].mxu0  ;;  %v6337_v57 = vadd.f32 %v947_v16, %v6205_v55  ;;  %v949_v38 = vpop.f32.mrb[53].mxu1 }
 0x174   :  { %8489 = vst [vmem:[#allocation102_spill] sm:$0xff] %v6331_v28  ;;  %v6340_v47 = vadd.f32 %v838_v41, %v6196_v50  ;;  %v840_v45 = vpop.f32.mrb[55].mxu0  ;;  %v6343_v36 = vadd.f32 %v949_v38, %v6208_v17  ;;  %v951_v59 = vpop.f32.mrb[54].mxu1 }
 0x175   :  { %8490 = vst [vmem:[#allocation103_spill] sm:$0xff] %v6334_v31  ;;  %8491 = vst [vmem:[#allocation104_spill] sm:$0xff] %v6337_v57  ;;  %v6346_v54 = vadd.f32 %v840_v45, %v6202_v19  ;;  %v6349_v52 = vadd.f32 %v951_v59, %v6205_v55  ;;  %v953_v21 = vpop.f32.mrb[55].mxu1 }
 0x176   :  { %8492 = vst [vmem:[#allocation105_spill] sm:$0xff] %v6340_v47  ;;  %8493 = vst [vmem:[#allocation106_spill] sm:$0xff] %v6343_v36  ;;  %v6352_v39 = vadd.f32 %v953_v21, %v6208_v17 }
 0x177   :  { %8494 = vst [vmem:[#allocation107_spill] sm:$0xff] %v6346_v54  ;;  %8495 = vst [vmem:[#allocation108_spill] sm:$0xff] %v6349_v52 }
 0x178   :  { %8496 = vst [vmem:[#allocation109_spill] sm:$0xff] %v6352_v39 }
 0x179   :  { %v844_v16 = vpop.f32.mrb[56].mxu0 }
 0x17a   :  { %v6355_v43 = vadd.f32 %v844_v16, %v6196_v50  ;;  %v846_v41 = vpop.f32.mrb[57].mxu0  ;;  %v957_v34 = vpop.f32.mrb[56].mxu1 }
 0x17b   :  { %v6358_v38 = vadd.f32 %v846_v41, %v6202_v19  ;;  %v848_v36 = vpop.f32.mrb[58].mxu0  ;;  %v6361_v45 = vadd.f32 %v957_v34, %v6205_v55  ;;  %v959_v31 = vpop.f32.mrb[57].mxu1 }
 0x17c   :  { %8497 = vst [vmem:[#allocation110_spill] sm:$0xff] %v6355_v43  ;;  %v6364_v59 = vadd.f32 %v848_v36, %v6196_v50  ;;  %v850_v57 = vpop.f32.mrb[59].mxu0  ;;  %v6367_v21 = vadd.f32 %v959_v31, %v6208_v17  ;;  %v961_v28 = vpop.f32.mrb[58].mxu1 }
 0x17d   :  { %8498 = vst [vmem:[#allocation111_spill] sm:$0xff] %v6358_v38  ;;  %8499 = vst [vmem:[#allocation112_spill] sm:$0xff] %v6361_v45  ;;  %v6370_v16 = vadd.f32 %v850_v57, %v6202_v19  ;;  %v6373_v30 = vadd.f32 %v961_v28, %v6205_v55  ;;  %v963_v41 = vpop.f32.mrb[59].mxu1 }
 0x17e   :  { %8500 = vst [vmem:[#allocation113_spill] sm:$0xff] %v6364_v59  ;;  %8501 = vst [vmem:[#allocation114_spill] sm:$0xff] %v6367_v21  ;;  %v6376_v20 = vadd.f32 %v963_v41, %v6208_v17  ;;  %v6519_v59 = vld [vmem:[#allocation3 + $0x108] ss:$16 sps:$4 sm:$0xff]  }
 0x17f   :  { %8502 = vst [vmem:[#allocation115_spill] sm:$0xff] %v6370_v16  ;;  %8503 = vst [vmem:[#allocation116_spill] sm:$0xff] %v6373_v30  ;;  %v6513_v16 = vld [vmem:[#allocation3 + $0x10c] ss:$16 sps:$4 sm:$0xff]   ;;  %v6516_v30 = vld [vmem:[#allocation3 + $0x100] ss:$16 sps:$4 sm:$0xff]  }
 0x180   :  { %8504 = vst [vmem:[#allocation117_spill] sm:$0xff] %v6376_v20  ;;  %v6510_v20 = vld [vmem:[#allocation3 + $0x104] ss:$16 sps:$4 sm:$0xff]   ;;  %8505 = vst [vmem:[#allocation118_spill] sm:$0xff] %v6516_v30 }
 0x181   :  { %v854_v34 = vpop.f32.mrb[60].mxu0  ;;  %8506 = vst [vmem:[#allocation119_spill] sm:$0xff] %v6519_v59 }
 0x182   :  { %v6379_v7 = vadd.f32 %v854_v34, %v6196_v50  ;;  %v856_v36 = vpop.f32.mrb[61].mxu0  ;;  %v967_v60 = vpop.f32.mrb[60].mxu1  ;;  %v559_v34 = vadd.f32 %v5994_v22, %v6000_v10 }
 0x183   :  { %v6382_v31 = vadd.f32 %v856_v36, %v6202_v19  ;;  %v858_v39 = vpop.f32.mrb[62].mxu0  ;;  %v6385_v57 = vadd.f32 %v967_v60, %v6205_v55  ;;  %v969_v54 = vpop.f32.mrb[61].mxu1  ;;  %v672_v36 = vadd.f32 %v6004_v25, %v5997_v8 }
 0x184   :  { %v860_v28 = vpop.f32.mrb[63].mxu0  ;;  %v6388_v52 = vadd.f32 %v969_v54, %v6208_v17  ;;  %v971_v41 = vpop.f32.mrb[62].mxu1  ;;  %v859_v54 = vadd.f32 %v858_v39, %v6196_v50 }
 0x185   :  { %v973_v47 = vpop.f32.mrb[63].mxu1  ;;  %v972_v56 = vadd.f32 %v971_v41, %v6205_v55  ;;  %v861_v22 = vadd.f32 %v860_v28, %v6202_v19 }
 0x186   :  { %v974_v53 = vadd.f32 %v973_v47, %v6208_v17 }
 0x189   :  { %v1529_v60 = vpop.f32.mrb[64].mxu0 }
 0x18a   :  { %v1590_v21 = vadd.f32 %v1529_v60, %v559_v34  ;;  %v1572_v38 = vpop.f32.mrb[64].mxu1  ;;  %v1531_v45 = vpop.f32.mrb[65].mxu0 }
 0x18b   :  { %v1592_v10 = vadd.f32 %v1572_v38, %v672_v36  ;;  %v1591_v24 = vadd.f32 %v1531_v45, %v561_v18  ;;  %v1574_v27 = vpop.f32.mrb[65].mxu1  ;;  %v1533_v43 = vpop.f32.mrb[66].mxu0 }
 0x18c   :  { %v4277_v8 = vmul.f32 -1.442695, %v1590_v21  ;;  %v1593_v25 = vadd.f32 %v1574_v27, %v674_v58  ;;  %v1594_v55 = vadd.f32 %v1533_v43, %v859_v54  ;;  %v1535_v41 = vpop.f32.mrb[67].mxu0  ;;  %v1576_v51 = vpop.f32.mrb[66].mxu1 }
 0x18d   :  { %v4279_v48 = vmul.f32 -1.442695, %v1591_v24  ;;  %v1595_v26 = vadd.f32 %v1535_v41, %v861_v22  ;;  %v1596_v29 = vadd.f32 %v1576_v51, %v972_v56  ;;  %v1578_v39 = vpop.f32.mrb[67].mxu1 }
 0x18e   :  { %4571 = vpow2.f32 %v4277_v8  ;;  %v4278_v50 = vmul.f32 -1.442695, %v1594_v55  ;;  %v1597_v17 = vadd.f32 %v1578_v39, %v974_v53  ;;  %v4281_v19 = vmul.f32 -1.442695, %v1593_v25 }
 0x18f   :  { %4573 = vpow2.f32 %v4279_v48  ;;  %v4280_v47 = vmul.f32 -1.442695, %v1595_v26 }
 0x190   :  { %4575 = vpow2.f32 %v4278_v50  ;;  %v4282_v18 = vmul.f32 -1.442695, %v1597_v17 }
 0x191   :  { %4577 = vpow2.f32 %v4280_v47 }
 0x192   :  { %4579 = vtanh.f32 %v1592_v10 }
 0x193   :  { %4581 = vpow2.f32 %v4281_v19 }
 0x194   :  { %4583 = vpow2.f32 %v4282_v18 }
 0x198   :  { %v4572_v38 = vpop.eup %4571 }
 0x199   :  { %v4574_v45 = vpop.eup %4573  ;;  %v1604_v58 = vadd.f32 1.0, %v4572_v38 }
 0x19a   :  { %v1616_v43 = vadd.f32 1.0, %v4574_v45  ;;  %v4576_v21 = vpop.eup %4575 }
 0x19b   :  { %4585 = vrcp.f32 %v1604_v58  ;;  %v4578_v51 = vpop.eup %4577  ;;  %v1605_v56 = vadd.f32 1.0, %v4576_v21  ;;  %v6420_v21 = vld [vmem:[#allocation3] ss:$16 sps:$4 sm:$0xff]  }
 0x19c   :  { %4587 = vrcp.f32 %v1616_v43  ;;  %v1617_v28 = vadd.f32 1.0, %v4578_v51  ;;  %v4580_v48 = vpop.eup %4579  ;;  %v6423_v51 = vld [vmem:[#allocation3 + $0x8] ss:$16 sps:$4 sm:$0xff]  }
 0x19d   :  { %4589 = vtanh.f32 %v1596_v29  ;;  %v4582_v53 = vpop.eup %4581 }
 0x19e   :  { %4591 = vrcp.f32 %v1605_v56  ;;  %v4584_v34 = vpop.eup %4583  ;;  %v1630_v22 = vadd.f32 1.0, %v4582_v53  ;;  %v6426_v56 = vld [vmem:[#allocation3 + $0x24] ss:$16 sps:$4 sm:$0xff]   ;;  %v6435_v53 = vld [vmem:[#allocation3 + $0x28] ss:$16 sps:$4 sm:$0xff]  }
 0x19f   :  { %4593 = vrcp.f32 %v1617_v28  ;;  %v1631_v41 = vadd.f32 1.0, %v4584_v34  ;;  %v6429_v28 = vld [vmem:[#allocation3 + $0x2c] ss:$16 sps:$4 sm:$0xff]   ;;  %v6438_v34 = vld [vmem:[#allocation3 + $0x44] ss:$16 sps:$4 sm:$0xff]  }
 0x1a0   :  { %4595 = vrcp.f32 %v1630_v22  ;;  %v6450_v22 = vld [vmem:[#allocation3 + $0x64] ss:$16 sps:$4 sm:$0xff]  }
 0x1a5   :  { %v4586_v36 = vpop.eup %4585 }
 0x1a6   :  { %v4588_v60 = vpop.eup %4587  ;;  %v1638_v54 = vmul.f32 %v4586_v36, %v4580_v48  ;;  %v6432_v48 = vld [vmem:[#allocation3 + $0x20] ss:$16 sps:$4 sm:$0xff]   ;;  %v6441_v36 = vld [vmem:[#allocation3 + $0x4c] ss:$16 sps:$4 sm:$0xff]  }
 0x1a7   :  { %v4590_v10 = vpop.eup %4589  ;;  %v1636_v24 = vmul.f32 0.0, %v4588_v60  ;;  %v6444_v60 = vld [vmem:[#allocation3 + $0x40] ss:$16 sps:$4 sm:$0xff]  }
 0x1a8   :  { %v4592_v27 = vpop.eup %4591 }
 0x1a9   :  { %v4594_v8 = vpop.eup %4593  ;;  %v6402_v25 = vadd.f32 %v1638_v54, %v1636_v24  ;;  %v1639_v55 = vmul.f32 %v4592_v27, %v4590_v10  ;;  %v6447_v54 = vld [vmem:[#allocation3 + $0x48] ss:$16 sps:$4 sm:$0xff]   ;;  %v6453_v10 = vld [vmem:[#allocation3 + $0x6c] ss:$16 sps:$4 sm:$0xff]   ;;  %v6456_v24 = vld [vmem:[#allocation3 + $0x60] ss:$16 sps:$4 sm:$0xff]  }
 0x1aa   :  { %v1637_v26 = vmul.f32 0.0, %v4594_v8  ;;  %v4596_v39 = vpop.eup %4595  ;;  %v6459_v27 = vld [vmem:[#allocation3 + $0x68] ss:$16 sps:$4 sm:$0xff]   ;;  %v6462_v8 = vld [vmem:[#allocation3 + $0x84] ss:$16 sps:$4 sm:$0xff]  }
 0x1ab   :  { %4597 = vtanh.f32 %v6402_v25 }
 0x1ac   :  { %v6405_v29 = vadd.f32 %v1639_v55, %v1637_v26  ;;  %4599 = vrcp.f32 %v1631_v41  ;;  %v6465_v55 = vld [vmem:[#allocation3 + $0x8c] ss:$16 sps:$4 sm:$0xff]   ;;  %v6468_v41 = vld [vmem:[#allocation3 + $0x80] ss:$16 sps:$4 sm:$0xff]   ;;  %v6471_v26 = vld [vmem:[#allocation3 + $0x88] ss:$16 sps:$4 sm:$0xff]  }
 0x1ae   :  { %4601 = vtanh.f32 %v6405_v29 }
 0x1b5   :  { %v4598_v50 = vpop.eup %4597 }
 0x1b6   :  { %v1644_v17 = vmul.f32 %v4598_v50, %v4596_v39  ;;  %v4600_v47 = vpop.eup %4599  ;;  %v6474_v39 = vld [vmem:[#allocation3 + $0xa4] ss:$16 sps:$4 sm:$0xff]   ;;  %v6477_v50 = vld [vmem:[#allocation3 + $0xac] ss:$16 sps:$4 sm:$0xff]  }
 0x1b8   :  { %v4602_v19 = vpop.eup %4601  ;;  %v1646_v18 = vpack.c.bf16 %v1644_v17, %v1644_v17  ;;  %v6480_v17 = vld [vmem:[#allocation3 + $0xa0] ss:$16 sps:$4 sm:$0xff]  }
 0x1b9   :  { %v1645_v38 = vmul.f32 %v4602_v19, %v4600_v47  ;;  %v6483_v47 = vld [vmem:[#allocation3 + $0xa8] ss:$16 sps:$4 sm:$0xff]   ;;  %v6486_v19 = vld [vmem:[#allocation3 + $0xc4] ss:$16 sps:$4 sm:$0xff]  }
 0x1ba   :  { %1647 = vst [vmem:[%s8190_s4] sm:$0xf] %v1646_v18  ;;  %v1654_v43 = vsel %vm1170_vm0, %v1646_v18, %v5886_v1  ;;  %v6489_v18 = vld [vmem:[#allocation3 + $0xcc] ss:$16 sps:$4 sm:$0xff]  }
 0x1bb   :  { %v1648_v45 = vpack.c.bf16 %v1645_v38, %v1645_v38  ;;  %v6492_v38 = vld [vmem:[#allocation3 + $0xc0] ss:$16 sps:$4 sm:$0xff]  }
 0x1bd   :  { %4283 = vst [vmem:[%s8191_s5 + $0x3c] sm:$0xf] %v1648_v45  ;;  %v1652_v58 = vrot.slane %v1648_v45, 4  ;;  %v6495_v45 = vld [vmem:[#allocation3 + $0xc8] ss:$16 sps:$4 sm:$0xff]  }
 0x1bf   :  { %4285 = vmatprep.mubr.msk.bf16.mxu0 %vm5890_vm1, %v1652_v58  ;;  %4287 = vmatprep.mubr.msk.bf16.mxu1 %vm5890_vm1, %v1652_v58  ;;  %v6498_v58 = vld [vmem:[#allocation3 + $0xe4] ss:$16 sps:$4 sm:$0xff]  }
 0x1c0   :  { %1692 = vmatmul.mubr.bf16.vlgmr.msra.gmra.mrb[68].mxu0 %v1654_v43  ;;  %1735 = vmatmul.mubr.bf16.vlgmr.msra.gmra.mrb[68].mxu1 %v1654_v43  ;;  %v6501_v43 = vld [vmem:[#allocation3 + $0xec] ss:$16 sps:$4 sm:$0xff]  }
 0x1c1   :  { %1826 = vmatpush1.bf16.msra.mxu0 %v6420_v21  ;;  %1869 = vmatpush1.bf16.msra.mxu1 %v6423_v51 }
 0x1c2   :  { %1827 = vmatprep.subr.bf16.mxu0 %v6426_v56  ;;  %1870 = vmatprep.subr.bf16.mxu1 %v6429_v28 }
 0x1c5   :  { %1828 = vmatpush1.bf16.msra.mxu0 %v6432_v48  ;;  %1871 = vmatpush1.bf16.msra.mxu1 %v6435_v53 }
 0x1c6   :  { %1829 = vmatprep.subr.bf16.mxu0 %v6438_v34  ;;  %1872 = vmatprep.subr.bf16.mxu1 %v6441_v36 }
 0x1c9   :  { %1830 = vmatpush1.bf16.msra.mxu0 %v6444_v60  ;;  %1873 = vmatpush1.bf16.msra.mxu1 %v6447_v54 }
 0x1ca   :  { %1831 = vmatprep.subr.bf16.mxu0 %v6450_v22  ;;  %1874 = vmatprep.subr.bf16.mxu1 %v6453_v10 }
 0x1cd   :  { %1832 = vmatpush1.bf16.msra.mxu0 %v6456_v24  ;;  %1875 = vmatpush1.bf16.msra.mxu1 %v6459_v27 }
 0x1ce   :  { %1833 = vmatprep.subr.bf16.mxu0 %v6462_v8  ;;  %1876 = vmatprep.subr.bf16.mxu1 %v6465_v55 }
 0x1d1   :  { %1834 = vmatpush1.bf16.msra.mxu0 %v6468_v41  ;;  %1877 = vmatpush1.bf16.msra.mxu1 %v6471_v26 }
 0x1d2   :  { %1835 = vmatprep.subr.bf16.mxu0 %v6474_v39  ;;  %1878 = vmatprep.subr.bf16.mxu1 %v6477_v50 }
 0x1d5   :  { %1836 = vmatpush1.bf16.msra.mxu0 %v6480_v17  ;;  %1879 = vmatpush1.bf16.msra.mxu1 %v6483_v47 }
 0x1d6   :  { %1837 = vmatprep.subr.bf16.mxu0 %v6486_v19  ;;  %1880 = vmatprep.subr.bf16.mxu1 %v6489_v18 }
 0x1d9   :  { %1838 = vmatpush1.bf16.msra.mxu0 %v6492_v38  ;;  %1881 = vmatpush1.bf16.msra.mxu1 %v6495_v45 }
 0x1da   :  { %1839 = vmatprep.subr.bf16.mxu0 %v6498_v58  ;;  %1882 = vmatprep.subr.bf16.mxu1 %v6501_v43 }
 0x1dd   :  { %1840 = vmatpush1.bf16.msra.mxu0 %v6504_v49  ;;  %1883 = vmatpush1.bf16.msra.mxu1 %v6507_v44 }
 0x1de   :  { %1841 = vmatprep.subr.bf16.mxu0 %v6510_v20  ;;  %1884 = vmatprep.subr.bf16.mxu1 %v6513_v16 }
 0x1e1   :  { %1842 = vmatpush1.bf16.msra.mxu0 %v6516_v30  ;;  %1885 = vmatpush1.bf16.msra.mxu1 %v6519_v59  ;;  %v6534_v30 = vld [vmem:[#allocation3 + $0x144] ss:$16 sps:$4 sm:$0xff]   ;;  %v6537_v59 = vld [vmem:[#allocation3 + $0x14c] ss:$16 sps:$4 sm:$0xff]  }
 0x1e2   :  { %1843 = vmatprep.subr.bf16.mxu0 %v6522_v46  ;;  %1886 = vmatprep.subr.bf16.mxu1 %v6525_v40  ;;  %8511 = vst [vmem:[#allocation124_spill] sm:$0xff] %v6534_v30  ;;  %8512 = vst [vmem:[#allocation125_spill] sm:$0xff] %v6537_v59  ;;  %v6540_v46 = vld [vmem:[#allocation3 + $0x140] ss:$16 sps:$4 sm:$0xff]   ;;  %v6543_v40 = vld [vmem:[#allocation3 + $0x148] ss:$16 sps:$4 sm:$0xff]  }
 0x1e3   :  { %8513 = vst [vmem:[#allocation126_spill] sm:$0xff] %v6540_v46  ;;  %8514 = vst [vmem:[#allocation127_spill] sm:$0xff] %v6543_v40 }
 0x1e5   :  { %1844 = vmatpush1.bf16.msra.mxu0 %v6528_v42  ;;  %1887 = vmatpush1.bf16.msra.mxu1 %v6531_v37  ;;  %v6546_v42 = vld [vmem:[#allocation3 + $0x164] ss:$16 sps:$4 sm:$0xff]   ;;  %v6549_v37 = vld [vmem:[#allocation3 + $0x16c] ss:$16 sps:$4 sm:$0xff]  }
 0x1e6   :  { %1845 = vmatprep.subr.bf16.mxu0 %v6534_v30  ;;  %1888 = vmatprep.subr.bf16.mxu1 %v6537_v59  ;;  %8515 = vst [vmem:[#allocation128_spill] sm:$0xff] %v6546_v42  ;;  %8516 = vst [vmem:[#allocation129_spill] sm:$0xff] %v6549_v37  ;;  %v6552_v30 = vld [vmem:[#allocation3 + $0x160] ss:$16 sps:$4 sm:$0xff]   ;;  %v6555_v59 = vld [vmem:[#allocation3 + $0x168] ss:$16 sps:$4 sm:$0xff]  }
 0x1e7   :  { %8517 = vst [vmem:[#allocation130_spill] sm:$0xff] %v6552_v30  ;;  %8518 = vst [vmem:[#allocation131_spill] sm:$0xff] %v6555_v59 }
 0x1e9   :  { %1846 = vmatpush1.bf16.msra.mxu0 %v6540_v46  ;;  %1889 = vmatpush1.bf16.msra.mxu1 %v6543_v40  ;;  %v6558_v46 = vld [vmem:[#allocation3 + $0x184] ss:$16 sps:$4 sm:$0xff]   ;;  %v6561_v40 = vld [vmem:[#allocation3 + $0x18c] ss:$16 sps:$4 sm:$0xff]  }
 0x1ea   :  { %1847 = vmatprep.subr.bf16.mxu0 %v6546_v42  ;;  %1890 = vmatprep.subr.bf16.mxu1 %v6549_v37  ;;  %8519 = vst [vmem:[#allocation132_spill] sm:$0xff] %v6558_v46  ;;  %8520 = vst [vmem:[#allocation133_spill] sm:$0xff] %v6561_v40 }
 0x1ed   :  { %1848 = vmatpush1.bf16.msra.mxu0 %v6552_v30  ;;  %1891 = vmatpush1.bf16.msra.mxu1 %v6555_v59 }
 0x1ee   :  { %1849 = vmatprep.subr.bf16.mxu0 %v6558_v46  ;;  %1892 = vmatprep.subr.bf16.mxu1 %v6561_v40 }
 0x1f1   :  { %1850 = vmatpush1.bf16.msra.mxu0 %v5846_v61  ;;  %1893 = vmatpush1.bf16.msra.mxu1 %v5850_v62  ;;  %v6578_v61 = vld [vmem:[#allocation3 + $0x4] ss:$16 sps:$4 sm:$0xff]   ;;  %v6581_v62 = vld [vmem:[#allocation3 + $0xc] ss:$16 sps:$4 sm:$0xff]  }
 0x1f2   :  { %1851 = vmatprep.subr.bf16.mxu0 %v5852_v63  ;;  %1894 = vmatprep.subr.bf16.mxu1 %v8389_v0  ;;  %8521 = vst [vmem:[#allocation134_spill] sm:$0xff] %v6578_v61  ;;  %8522 = vst [vmem:[#allocation135_spill] sm:$0xff] %v6581_v62 }
 0x1f5   :  { %1852 = vmatpush1.bf16.msra.mxu0 %v8390_v13  ;;  %1895 = vmatpush1.bf16.msra.mxu1 %v5864_v3 }
 0x1f6   :  { %1853 = vmatprep.subr.bf16.mxu0 %v8391_v14  ;;  %1896 = vmatprep.subr.bf16.mxu1 %v8392_v15 }
 0x1f9   :  { %1854 = vmatpush1.bf16.msra.mxu0 %v5874_v6  ;;  %1897 = vmatpush1.bf16.msra.mxu1 %v5878_v9 }
 0x1fa   :  { %1855 = vmatprep.subr.bf16.mxu0 %v5880_v11  ;;  %1898 = vmatprep.subr.bf16.mxu1 %v5883_v12 }
 0x1fd   :  { %1856 = vmatpush1.bf16.msra.mxu0 %v5896_v4  ;;  %1899 = vmatpush1.bf16.msra.mxu1 %v5900_v5 }
 0x1fe   :  { %1991 = vmatprep.subr.bf16.mxu0 %v6578_v61  ;;  %2034 = vmatprep.subr.bf16.mxu1 %v6581_v62 }
 0x293   :  { %v1693_v63 = vpop.f32.mrb[68].mxu0  ;;  %v1736_v3 = vpop.f32.mrb[68].mxu1 }
 0x294   :  { %v1755_v6 = vadd.f32 %v1693_v63, %v6015_v23  ;;  %v1757_v9 = vadd.f32 %v1736_v3, %v6021_v33  ;;  %v1695_v11 = vpop.f32.mrb[69].mxu0  ;;  %v1738_v12 = vpop.f32.mrb[69].mxu1 }
 0x295   :  { %v1756_v4 = vadd.f32 %v1695_v11, %v6018_v32  ;;  %v1758_v5 = vadd.f32 %v1738_v12, %v6024_v35  ;;  %v1697_v0 = vpop.f32.mrb[70].mxu0  ;;  %v1740_v13 = vpop.f32.mrb[70].mxu1 }
 0x296   :  { %v4288_v14 = vmul.f32 -1.442695, %v1755_v6  ;;  %v1759_v15 = vadd.f32 %v1697_v0, %v6379_v7  ;;  %v1761_v61 = vadd.f32 %v1740_v13, %v6385_v57  ;;  %v1699_v62 = vpop.f32.mrb[71].mxu0  ;;  %v1742_v40 = vpop.f32.mrb[71].mxu1 }
 0x297   :  { %v4290_v46 = vmul.f32 -1.442695, %v1756_v4  ;;  %v1760_v23 = vadd.f32 %v1699_v62, %v6382_v31  ;;  %v1762_v33 = vadd.f32 %v1742_v40, %v6388_v52  ;;  %v4292_v35 = vmul.f32 -1.442695, %v1758_v5 }
 0x298   :  { %4603 = vpow2.f32 %v4288_v14  ;;  %v4289_v63 = vmul.f32 -1.442695, %v1759_v15 }
 0x299   :  { %4605 = vpow2.f32 %v4290_v46  ;;  %v4291_v32 = vmul.f32 -1.442695, %v1760_v23  ;;  %v4293_v57 = vmul.f32 -1.442695, %v1762_v33 }
 0x29a   :  { %4607 = vpow2.f32 %v4289_v63 }
 0x29b   :  { %4609 = vpow2.f32 %v4291_v32 }
 0x29c   :  { %4611 = vtanh.f32 %v1757_v9 }
 0x29d   :  { %4613 = vpow2.f32 %v4292_v35 }
 0x29e   :  { %4615 = vtanh.f32 %v1761_v61 }
 0x2a2   :  { %v4604_v3 = vpop.eup %4603 }
 0x2a3   :  { %v4606_v6 = vpop.eup %4605  ;;  %v1769_v7 = vadd.f32 1.0, %v4604_v3 }
 0x2a4   :  { %v1781_v11 = vadd.f32 1.0, %v4606_v6  ;;  %v4608_v12 = vpop.eup %4607 }
 0x2a5   :  { %4617 = vrcp.f32 %v1769_v7  ;;  %v1770_v31 = vadd.f32 1.0, %v4608_v12  ;;  %v4610_v40 = vpop.eup %4609 }
 0x2a6   :  { %4619 = vrcp.f32 %v1781_v11  ;;  %v1782_v46 = vadd.f32 1.0, %v4610_v40  ;;  %v4612_v52 = vpop.eup %4611 }
 0x2a7   :  { %4621 = vpow2.f32 %v4293_v57  ;;  %v4614_v62 = vpop.eup %4613 }
 0x2a8   :  { %4623 = vrcp.f32 %v1770_v31  ;;  %v4616_v4 = vpop.eup %4615  ;;  %v1795_v13 = vadd.f32 1.0, %v4614_v62  ;;  %v8524_v62 = vld [vmem:[#allocation119_spill] sm:$0xff] }
 0x2a9   :  { %4625 = vrcp.f32 %v1782_v46 }
 0x2aa   :  { %4627 = vrcp.f32 %v1795_v13  ;;  %v8529_v13 = vld [vmem:[#allocation124_spill] sm:$0xff] }
 0x2af   :  { %v4618_v5 = vpop.eup %4617 }
 0x2b0   :  { %v4620_v9 = vpop.eup %4619  ;;  %v1803_v0 = vmul.f32 %v4618_v5, %v4612_v52  ;;  %v8523_v52 = vld [vmem:[#allocation118_spill] sm:$0xff]  ;;  %v8526_v5 = vld [vmem:[#allocation121_spill] sm:$0xff] }
 0x2b1   :  { %v4622_v14 = vpop.eup %4621  ;;  %v1801_v15 = vmul.f32 %v4620_v9, %v6402_v25  ;;  %v8527_v9 = vld [vmem:[#allocation122_spill] sm:$0xff] }
 0x2b2   :  { %v4624_v61 = vpop.eup %4623  ;;  %v1796_v32 = vadd.f32 1.0, %v4622_v14  ;;  %v8530_v14 = vld [vmem:[#allocation125_spill] sm:$0xff] }
 0x2b3   :  { %v6593_v23 = vadd.f32 %v1803_v0, %v1801_v15  ;;  %v1804_v33 = vmul.f32 %v4624_v61, %v4616_v4  ;;  %v4626_v63 = vpop.eup %4625  ;;  %v8525_v4 = vld [vmem:[#allocation120_spill] sm:$0xff]  ;;  %v8528_v0 = vld [vmem:[#allocation123_spill] sm:$0xff]  ;;  %v8531_v15 = vld [vmem:[#allocation126_spill] sm:$0xff] }
 0x2b4   :  { %v1802_v35 = vmul.f32 %v4626_v63, %v6405_v29  ;;  %v4628_v6 = vpop.eup %4627  ;;  %v8532_v61 = vld [vmem:[#allocation127_spill] sm:$0xff]  ;;  %v8534_v63 = vld [vmem:[#allocation133_spill] sm:$0xff] }
 0x2b5   :  { %4629 = vtanh.f32 %v6593_v23 }
 0x2b6   :  { %v6597_v3 = vadd.f32 %v1804_v33, %v1802_v35  ;;  %4631 = vrcp.f32 %v1796_v32  ;;  %v8533_v33 = vld [vmem:[#allocation132_spill] sm:$0xff]  ;;  %v6663_v35 = vld [vmem:[#allocation3 + $0x188] ss:$16 sps:$4 sm:$0xff]  }
 0x2b7   :  { %v6660_v32 = vld [vmem:[#allocation3 + $0x180] ss:$16 sps:$4 sm:$0xff]   ;;  %8536 = vst [vmem:[#allocation119_spill] sm:$0xff] %v6663_v35 }
 0x2b8   :  { %4633 = vtanh.f32 %v6597_v3  ;;  %8535 = vst [vmem:[#allocation118_spill] sm:$0xff] %v6660_v32 }
 0x2bf   :  { %v4630_v7 = vpop.eup %4629 }
 0x2c0   :  { %v1809_v57 = vmul.f32 %v4630_v7, %v4628_v6  ;;  %v4632_v25 = vpop.eup %4631  ;;  %v6666_v6 = vld [vmem:[#allocation3 + $0x1a4] ss:$16 sps:$4 sm:$0xff]   ;;  %v6669_v7 = vld [vmem:[#allocation3 + $0x1ac] ss:$16 sps:$4 sm:$0xff]  }
 0x2c1   :  { %8537 = vst [vmem:[#allocation120_spill] sm:$0xff] %v6666_v6  ;;  %8538 = vst [vmem:[#allocation121_spill] sm:$0xff] %v6669_v7 }
 0x2c2   :  { %v1811_v11 = vpack.c.bf16 %v1809_v57, %v1809_v57  ;;  %v4634_v12 = vpop.eup %4633  ;;  %v6672_v57 = vld [vmem:[#allocation3 + $0x1a0] ss:$16 sps:$4 sm:$0xff]  }
 0x2c3   :  { %v1810_v31 = vmul.f32 %v4634_v12, %v4632_v25  ;;  %8539 = vst [vmem:[#allocation122_spill] sm:$0xff] %v6672_v57  ;;  %v6675_v25 = vld [vmem:[#allocation3 + $0x1a8] ss:$16 sps:$4 sm:$0xff]   ;;  %v6681_v12 = vld [vmem:[#allocation3 + $0x1cc] ss:$16 sps:$4 sm:$0xff]  }
 0x2c4   :  { %4294 = vst [vmem:[%s8190_s4 + $0x4] sm:$0xf] %v1811_v11  ;;  %v1820_v46 = vsel %vm1170_vm0, %v1811_v11, %v5886_v1  ;;  %8540 = vst [vmem:[#allocation136_spill] sm:$0xff] %v6675_v25  ;;  %v6678_v11 = vld [vmem:[#allocation3 + $0x1c4] ss:$16 sps:$4 sm:$0xff]  }
 0x2c5   :  { %v1814_v40 = vpack.c.bf16 %v1810_v31, %v1810_v31  ;;  %8541 = vst [vmem:[#allocation137_spill] sm:$0xff] %v6678_v11  ;;  %8542 = vst [vmem:[#allocation138_spill] sm:$0xff] %v6681_v12  ;;  %v6684_v31 = vld [vmem:[#allocation3 + $0x1c0] ss:$16 sps:$4 sm:$0xff]  }
 0x2c6   :  { %8543 = vst [vmem:[#allocation139_spill] sm:$0xff] %v6684_v31 }
 0x2c7   :  { %4295 = vst [vmem:[%s8191_s5 + $0x38] sm:$0xf] %v1814_v40  ;;  %v1818_v29 = vrot.slane %v1814_v40, 4  ;;  %v6687_v40 = vld [vmem:[#allocation3 + $0x1c8] ss:$16 sps:$4 sm:$0xff]  }
 0x2c8   :  { %8544 = vst [vmem:[#allocation140_spill] sm:$0xff] %v6687_v40 }
 0x2c9   :  { %4297 = vmatprep.mubr.msk.bf16.mxu0 %vm5890_vm1, %v1818_v29  ;;  %4299 = vmatprep.mubr.msk.bf16.mxu1 %vm5890_vm1, %v1818_v29  ;;  %v6690_v29 = vld [vmem:[#allocation3 + $0x1e4] ss:$16 sps:$4 sm:$0xff]  }
 0x2ca   :  { %1858 = vmatmul.mubr.bf16.vlgmr.msra.gmra.mrb[72].mxu0 %v1820_v46  ;;  %1901 = vmatmul.mubr.bf16.vlgmr.msra.gmra.mrb[72].mxu1 %v1820_v46  ;;  %8545 = vst [vmem:[#allocation141_spill] sm:$0xff] %v6690_v29  ;;  %v6693_v46 = vld [vmem:[#allocation3 + $0x1ec] ss:$16 sps:$4 sm:$0xff]  }
 0x2cb   :  { %1992 = vmatpush1.bf16.msra.mxu0 %v6420_v21  ;;  %2035 = vmatpush1.bf16.msra.mxu1 %v6423_v51  ;;  %8546 = vst [vmem:[#allocation142_spill] sm:$0xff] %v6693_v46 }
 0x2cc   :  { %1993 = vmatprep.subr.bf16.mxu0 %v6426_v56  ;;  %2036 = vmatprep.subr.bf16.mxu1 %v6429_v28 }
 0x2cf   :  { %1994 = vmatpush1.bf16.msra.mxu0 %v6432_v48  ;;  %2037 = vmatpush1.bf16.msra.mxu1 %v6435_v53 }
 0x2d0   :  { %1995 = vmatprep.subr.bf16.mxu0 %v6438_v34  ;;  %2038 = vmatprep.subr.bf16.mxu1 %v6441_v36 }
 0x2d3   :  { %1996 = vmatpush1.bf16.msra.mxu0 %v6444_v60  ;;  %2039 = vmatpush1.bf16.msra.mxu1 %v6447_v54 }
 0x2d4   :  { %1997 = vmatprep.subr.bf16.mxu0 %v6450_v22  ;;  %2040 = vmatprep.subr.bf16.mxu1 %v6453_v10 }
 0x2d7   :  { %1998 = vmatpush1.bf16.msra.mxu0 %v6456_v24  ;;  %2041 = vmatpush1.bf16.msra.mxu1 %v6459_v27 }
 0x2d8   :  { %1999 = vmatprep.subr.bf16.mxu0 %v6462_v8  ;;  %2042 = vmatprep.subr.bf16.mxu1 %v6465_v55 }
 0x2db   :  { %2000 = vmatpush1.bf16.msra.mxu0 %v6468_v41  ;;  %2043 = vmatpush1.bf16.msra.mxu1 %v6471_v26 }
 0x2dc   :  { %2001 = vmatprep.subr.bf16.mxu0 %v6474_v39  ;;  %2044 = vmatprep.subr.bf16.mxu1 %v6477_v50 }
 0x2df   :  { %2002 = vmatpush1.bf16.msra.mxu0 %v6480_v17  ;;  %2045 = vmatpush1.bf16.msra.mxu1 %v6483_v47 }
 0x2e0   :  { %2003 = vmatprep.subr.bf16.mxu0 %v6486_v19  ;;  %2046 = vmatprep.subr.bf16.mxu1 %v6489_v18 }
 0x2e3   :  { %2004 = vmatpush1.bf16.msra.mxu0 %v6492_v38  ;;  %2047 = vmatpush1.bf16.msra.mxu1 %v6495_v45 }
 0x2e4   :  { %2005 = vmatprep.subr.bf16.mxu0 %v6498_v58  ;;  %2048 = vmatprep.subr.bf16.mxu1 %v6501_v43 }
 0x2e7   :  { %2006 = vmatpush1.bf16.msra.mxu0 %v6504_v49  ;;  %2049 = vmatpush1.bf16.msra.mxu1 %v6507_v44 }
 0x2e8   :  { %2007 = vmatprep.subr.bf16.mxu0 %v6510_v20  ;;  %2050 = vmatprep.subr.bf16.mxu1 %v6513_v16 }
 0x2eb   :  { %2008 = vmatpush1.bf16.msra.mxu0 %v8523_v52  ;;  %2051 = vmatpush1.bf16.msra.mxu1 %v8524_v62 }
 0x2ec   :  { %2009 = vmatprep.subr.bf16.mxu0 %v8525_v4  ;;  %2052 = vmatprep.subr.bf16.mxu1 %v8526_v5 }
 0x2ef   :  { %2010 = vmatpush1.bf16.msra.mxu0 %v8527_v9  ;;  %2053 = vmatpush1.bf16.msra.mxu1 %v8528_v0  ;;  %v8557_v0 = vld [vmem:[#allocation115_spill] sm:$0xff] }
 0x2f0   :  { %2011 = vmatprep.subr.bf16.mxu0 %v8529_v13  ;;  %2054 = vmatprep.subr.bf16.mxu1 %v8530_v14 }
 0x2f3   :  { %2012 = vmatpush1.bf16.msra.mxu0 %v8531_v15  ;;  %2055 = vmatpush1.bf16.msra.mxu1 %v8532_v61 }
 0x2f4   :  { %2013 = vmatprep.subr.bf16.mxu0 %v6546_v42  ;;  %2056 = vmatprep.subr.bf16.mxu1 %v6549_v37 }
 0x2f7   :  { %2014 = vmatpush1.bf16.msra.mxu0 %v6552_v30  ;;  %2057 = vmatpush1.bf16.msra.mxu1 %v6555_v59  ;;  %v8554_v59 = vld [vmem:[#allocation10_spill] sm:$0xff] }
 0x2f8   :  { %2015 = vmatprep.subr.bf16.mxu0 %v8533_v33  ;;  %2058 = vmatprep.subr.bf16.mxu1 %v8534_v63  ;;  %v8553_v63 = vld [vmem:[#allocation7_spill] sm:$0xff] }
 0x2fb   :  { %2016 = vmatpush1.bf16.msra.mxu0 %v6660_v32  ;;  %2059 = vmatpush1.bf16.msra.mxu1 %v6663_v35 }
 0x2fc   :  { %2017 = vmatprep.subr.bf16.mxu0 %v6666_v6  ;;  %2060 = vmatprep.subr.bf16.mxu1 %v6669_v7  ;;  %v8551_v7 = vld [vmem:[#allocation6_spill] sm:$0xff]  ;;  %v8552_v6 = vld [vmem:[#allocation8_spill] sm:$0xff] }
 0x2ff   :  { %2018 = vmatpush1.bf16.msra.mxu0 %v6672_v57  ;;  %2061 = vmatpush1.bf16.msra.mxu1 %v6675_v25  ;;  %v8550_v25 = vld [vmem:[#allocation135_spill] sm:$0xff] }
 0x300   :  { %2019 = vmatprep.subr.bf16.mxu0 %v6678_v11  ;;  %2062 = vmatprep.subr.bf16.mxu1 %v6681_v12  ;;  %v6696_v11 = vld [vmem:[#allocation3 + $0x1e0] ss:$16 sps:$4 sm:$0xff]   ;;  %v6699_v12 = vld [vmem:[#allocation3 + $0x1e8] ss:$16 sps:$4 sm:$0xff]  }
 0x301   :  { %8547 = vst [vmem:[#allocation143_spill] sm:$0xff] %v6696_v11  ;;  %8548 = vst [vmem:[#allocation144_spill] sm:$0xff] %v6699_v12 }
 0x303   :  { %2020 = vmatpush1.bf16.msra.mxu0 %v6684_v31  ;;  %2063 = vmatpush1.bf16.msra.mxu1 %v6687_v40  ;;  %v8549_v31 = vld [vmem:[#allocation134_spill] sm:$0xff] }
 0x304   :  { %2021 = vmatprep.subr.bf16.mxu0 %v6690_v29  ;;  %2064 = vmatprep.subr.bf16.mxu1 %v6693_v46 }
 0x307   :  { %2022 = vmatpush1.bf16.msra.mxu0 %v6696_v11  ;;  %2065 = vmatpush1.bf16.msra.mxu1 %v6699_v12  ;;  %v8555_v12 = vld [vmem:[#allocation113_spill] sm:$0xff] }
 0x308   :  { %2157 = vmatprep.subr.bf16.mxu0 %v8549_v31  ;;  %2200 = vmatprep.subr.bf16.mxu1 %v8550_v25  ;;  %v8556_v31 = vld [vmem:[#allocation116_spill] sm:$0xff] }
 0x39d   :  { %v1859_v40 = vpop.f32.mrb[72].mxu0  ;;  %v1902_v57 = vpop.f32.mrb[72].mxu1 }
 0x39e   :  { %v1921_v29 = vadd.f32 %v1859_v40, %v8551_v7  ;;  %v1923_v35 = vadd.f32 %v1902_v57, %v8552_v6  ;;  %v1861_v32 = vpop.f32.mrb[73].mxu0  ;;  %v1904_v46 = vpop.f32.mrb[73].mxu1  ;;  %v8558_v40 = vld [vmem:[#allocation117_spill] sm:$0xff] }
 0x39f   :  { %v1922_v33 = vadd.f32 %v1861_v32, %v8553_v63  ;;  %v1924_v11 = vadd.f32 %v1904_v46, %v8554_v59  ;;  %v1863_v30 = vpop.f32.mrb[74].mxu0  ;;  %v1906_v37 = vpop.f32.mrb[74].mxu1 }
 0x3a0   :  { %v4300_v42 = vmul.f32 -1.442695, %v1921_v29  ;;  %v1925_v61 = vadd.f32 %v1863_v30, %v8555_v12  ;;  %v1927_v15 = vadd.f32 %v1906_v37, %v8556_v31  ;;  %v1865_v25 = vpop.f32.mrb[75].mxu0  ;;  %v1908_v14 = vpop.f32.mrb[75].mxu1 }
 0x3a1   :  { %v4302_v13 = vmul.f32 -1.442695, %v1922_v33  ;;  %v1926_v7 = vadd.f32 %v1865_v25, %v8557_v0  ;;  %v1928_v6 = vadd.f32 %v1908_v14, %v8558_v40  ;;  %v4304_v59 = vmul.f32 -1.442695, %v1924_v11 }
 0x3a2   :  { %4635 = vpow2.f32 %v4300_v42  ;;  %v4301_v57 = vmul.f32 -1.442695, %v1925_v61 }
 0x3a3   :  { %4637 = vpow2.f32 %v4302_v13  ;;  %v4303_v63 = vmul.f32 -1.442695, %v1926_v7  ;;  %v4305_v37 = vmul.f32 -1.442695, %v1928_v6 }
 0x3a4   :  { %4639 = vpow2.f32 %v4301_v57 }
 0x3a5   :  { %4641 = vpow2.f32 %v4303_v63 }
 0x3a6   :  { %4643 = vtanh.f32 %v1923_v35 }
 0x3a7   :  { %4645 = vpow2.f32 %v4304_v59 }
 0x3a8   :  { %4647 = vtanh.f32 %v1927_v15 }
 0x3ac   :  { %v4636_v32 = vpop.eup %4635 }
 0x3ad   :  { %v4638_v29 = vpop.eup %4637  ;;  %v1935_v30 = vadd.f32 1.0, %v4636_v32 }
 0x3ae   :  { %v1947_v12 = vadd.f32 1.0, %v4638_v29  ;;  %v4640_v33 = vpop.eup %4639 }
 0x3af   :  { %4649 = vrcp.f32 %v1935_v30  ;;  %v1936_v0 = vadd.f32 1.0, %v4640_v33  ;;  %v4642_v14 = vpop.eup %4641 }
 0x3b0   :  { %4651 = vrcp.f32 %v1947_v12  ;;  %v1948_v42 = vadd.f32 1.0, %v4642_v14  ;;  %v4644_v13 = vpop.eup %4643 }
 0x3b1   :  { %4653 = vpow2.f32 %v4305_v37  ;;  %v4646_v61 = vpop.eup %4645 }
 0x3b2   :  { %4655 = vrcp.f32 %v1936_v0  ;;  %v4648_v25 = vpop.eup %4647  ;;  %v1961_v46 = vadd.f32 1.0, %v4646_v61  ;;  %v8559_v61 = vld [vmem:[#allocation123_spill] sm:$0xff] }
 0x3b3   :  { %4657 = vrcp.f32 %v1948_v42 }
 0x3b4   :  { %4659 = vrcp.f32 %v1961_v46  ;;  %v8564_v46 = vld [vmem:[#allocation128_spill] sm:$0xff] }
 0x3b9   :  { %v4650_v11 = vpop.eup %4649 }
 0x3ba   :  { %v4652_v35 = vpop.eup %4651  ;;  %v1969_v31 = vmul.f32 %v4650_v11, %v4644_v13  ;;  %v8561_v11 = vld [vmem:[#allocation125_spill] sm:$0xff] }
 0x3bb   :  { %v4654_v7 = vpop.eup %4653  ;;  %v1967_v40 = vmul.f32 %v4652_v35, %v6593_v23  ;;  %v8562_v35 = vld [vmem:[#allocation126_spill] sm:$0xff] }
 0x3bc   :  { %v4656_v15 = vpop.eup %4655  ;;  %v1962_v59 = vadd.f32 1.0, %v4654_v7  ;;  %v8565_v7 = vld [vmem:[#allocation129_spill] sm:$0xff] }
 0x3bd   :  { %v6713_v6 = vadd.f32 %v1969_v31, %v1967_v40  ;;  %v1970_v57 = vmul.f32 %v4656_v15, %v4648_v25  ;;  %v4658_v63 = vpop.eup %4657  ;;  %v8560_v25 = vld [vmem:[#allocation124_spill] sm:$0xff]  ;;  %v8563_v31 = vld [vmem:[#allocation127_spill] sm:$0xff]  ;;  %v8566_v40 = vld [vmem:[#allocation130_spill] sm:$0xff] }
 0x3be   :  { %v1968_v32 = vmul.f32 %v4658_v63, %v6597_v3  ;;  %v4660_v30 = vpop.eup %4659  ;;  %v8567_v15 = vld [vmem:[#allocation131_spill] sm:$0xff]  ;;  %v8569_v63 = vld [vmem:[#allocation133_spill] sm:$0xff] }
 0x3bf   :  { %4661 = vtanh.f32 %v6713_v6 }
 0x3c0   :  { %v6717_v29 = vadd.f32 %v1970_v57, %v1968_v32  ;;  %4663 = vrcp.f32 %v1962_v59  ;;  %v8568_v57 = vld [vmem:[#allocation132_spill] sm:$0xff]  ;;  %v8570_v59 = vld [vmem:[#allocation118_spill] sm:$0xff]  ;;  %v8571_v32 = vld [vmem:[#allocation119_spill] sm:$0xff] }
 0x3c2   :  { %4665 = vtanh.f32 %v6717_v29 }
 0x3c9   :  { %v4662_v37 = vpop.eup %4661 }
 0x3ca   :  { %v1975_v12 = vmul.f32 %v4662_v37, %v4660_v30  ;;  %v4664_v23 = vpop.eup %4663  ;;  %v8572_v30 = vld [vmem:[#allocation120_spill] sm:$0xff]  ;;  %v8573_v37 = vld [vmem:[#allocation121_spill] sm:$0xff] }
 0x3cc   :  { %v1977_v33 = vpack.c.bf16 %v1975_v12, %v1975_v12  ;;  %v4666_v0 = vpop.eup %4665  ;;  %v8574_v12 = vld [vmem:[#allocation122_spill] sm:$0xff] }
 0x3cd   :  { %v1976_v14 = vmul.f32 %v4666_v0, %v4664_v23  ;;  %v8575_v23 = vld [vmem:[#allocation136_spill] sm:$0xff]  ;;  %v8577_v0 = vld [vmem:[#allocation138_spill] sm:$0xff] }
 0x3ce   :  { %4306 = vst [vmem:[%s8190_s4 + $0x8] sm:$0xf] %v1977_v33  ;;  %v1986_v13 = vsel %vm1170_vm0, %v1977_v33, %v5886_v1  ;;  %v8576_v33 = vld [vmem:[#allocation137_spill] sm:$0xff] }
 0x3cf   :  { %v1980_v42 = vpack.c.bf16 %v1976_v14, %v1976_v14  ;;  %v8578_v14 = vld [vmem:[#allocation139_spill] sm:$0xff] }
 0x3d1   :  { %4307 = vst [vmem:[%s8191_s5 + $0x34] sm:$0xf] %v1980_v42  ;;  %v1984_v3 = vrot.slane %v1980_v42, 4  ;;  %v8579_v42 = vld [vmem:[#allocation140_spill] sm:$0xff] }
 0x3d3   :  { %4309 = vmatprep.mubr.msk.bf16.mxu0 %vm5890_vm1, %v1984_v3  ;;  %4311 = vmatprep.mubr.msk.bf16.mxu1 %vm5890_vm1, %v1984_v3  ;;  %v8580_v3 = vld [vmem:[#allocation141_spill] sm:$0xff] }
 0x3d4   :  { %2024 = vmatmul.mubr.bf16.vlgmr.msra.gmra.mrb[76].mxu0 %v1986_v13  ;;  %2067 = vmatmul.mubr.bf16.vlgmr.msra.gmra.mrb[76].mxu1 %v1986_v13  ;;  %v8581_v13 = vld [vmem:[#allocation142_spill] sm:$0xff] }
 0x3d5   :  { %2158 = vmatpush1.bf16.msra.mxu0 %v6420_v21  ;;  %2201 = vmatpush1.bf16.msra.mxu1 %v6423_v51 }
 0x3d6   :  { %2159 = vmatprep.subr.bf16.mxu0 %v6426_v56  ;;  %2202 = vmatprep.subr.bf16.mxu1 %v6429_v28 }
 0x3d9   :  { %2160 = vmatpush1.bf16.msra.mxu0 %v6432_v48  ;;  %2203 = vmatpush1.bf16.msra.mxu1 %v6435_v53 }
 0x3da   :  { %2161 = vmatprep.subr.bf16.mxu0 %v6438_v34  ;;  %2204 = vmatprep.subr.bf16.mxu1 %v6441_v36 }
 0x3dd   :  { %2162 = vmatpush1.bf16.msra.mxu0 %v6444_v60  ;;  %2205 = vmatpush1.bf16.msra.mxu1 %v6447_v54 }
 0x3de   :  { %2163 = vmatprep.subr.bf16.mxu0 %v6450_v22  ;;  %2206 = vmatprep.subr.bf16.mxu1 %v6453_v10 }
 0x3e1   :  { %2164 = vmatpush1.bf16.msra.mxu0 %v6456_v24  ;;  %2207 = vmatpush1.bf16.msra.mxu1 %v6459_v27 }
 0x3e2   :  { %2165 = vmatprep.subr.bf16.mxu0 %v6462_v8  ;;  %2208 = vmatprep.subr.bf16.mxu1 %v6465_v55 }
 0x3e5   :  { %2166 = vmatpush1.bf16.msra.mxu0 %v6468_v41  ;;  %2209 = vmatpush1.bf16.msra.mxu1 %v6471_v26 }
 0x3e6   :  { %2167 = vmatprep.subr.bf16.mxu0 %v6474_v39  ;;  %2210 = vmatprep.subr.bf16.mxu1 %v6477_v50 }
 0x3e9   :  { %2168 = vmatpush1.bf16.msra.mxu0 %v6480_v17  ;;  %2211 = vmatpush1.bf16.msra.mxu1 %v6483_v47 }
 0x3ea   :  { %2169 = vmatprep.subr.bf16.mxu0 %v6486_v19  ;;  %2212 = vmatprep.subr.bf16.mxu1 %v6489_v18 }
 0x3ed   :  { %2170 = vmatpush1.bf16.msra.mxu0 %v6492_v38  ;;  %2213 = vmatpush1.bf16.msra.mxu1 %v6495_v45 }
 0x3ee   :  { %2171 = vmatprep.subr.bf16.mxu0 %v6498_v58  ;;  %2214 = vmatprep.subr.bf16.mxu1 %v6501_v43 }
 0x3f1   :  { %2172 = vmatpush1.bf16.msra.mxu0 %v6504_v49  ;;  %2215 = vmatpush1.bf16.msra.mxu1 %v6507_v44 }
 0x3f2   :  { %2173 = vmatprep.subr.bf16.mxu0 %v6510_v20  ;;  %2216 = vmatprep.subr.bf16.mxu1 %v6513_v16 }
 0x3f5   :  { %2174 = vmatpush1.bf16.msra.mxu0 %v8523_v52  ;;  %2217 = vmatpush1.bf16.msra.mxu1 %v8524_v62 }
 0x3f6   :  { %2175 = vmatprep.subr.bf16.mxu0 %v8525_v4  ;;  %2218 = vmatprep.subr.bf16.mxu1 %v8526_v5 }
 0x3f9   :  { %2176 = vmatpush1.bf16.msra.mxu0 %v8527_v9  ;;  %2219 = vmatpush1.bf16.msra.mxu1 %v8559_v61  ;;  %v8592_v61 = vld [vmem:[#allocation111_spill] sm:$0xff] }
 0x3fa   :  { %2177 = vmatprep.subr.bf16.mxu0 %v8560_v25  ;;  %2220 = vmatprep.subr.bf16.mxu1 %v8561_v11 }
 0x3fd   :  { %2178 = vmatpush1.bf16.msra.mxu0 %v8562_v35  ;;  %2221 = vmatpush1.bf16.msra.mxu1 %v8563_v31 }
 0x3fe   :  { %2179 = vmatprep.subr.bf16.mxu0 %v8564_v46  ;;  %2222 = vmatprep.subr.bf16.mxu1 %v8565_v7 }
 0x401   :  { %2180 = vmatpush1.bf16.msra.mxu0 %v8566_v40  ;;  %2223 = vmatpush1.bf16.msra.mxu1 %v8567_v15  ;;  %v8588_v15 = vld [vmem:[#allocation11_spill] sm:$0xff]  ;;  %v8589_v40 = vld [vmem:[#allocation13_spill] sm:$0xff] }
 0x402   :  { %2181 = vmatprep.subr.bf16.mxu0 %v8568_v57  ;;  %2224 = vmatprep.subr.bf16.mxu1 %v8569_v63  ;;  %v8587_v63 = vld [vmem:[#allocation12_spill] sm:$0xff] }
 0x405   :  { %2182 = vmatpush1.bf16.msra.mxu0 %v8570_v59  ;;  %2225 = vmatpush1.bf16.msra.mxu1 %v8571_v32  ;;  %v8582_v32 = vld [vmem:[#allocation143_spill] sm:$0xff]  ;;  %v8586_v59 = vld [vmem:[#allocation9_spill] sm:$0xff] }
 0x406   :  { %2183 = vmatprep.subr.bf16.mxu0 %v8572_v30  ;;  %2226 = vmatprep.subr.bf16.mxu1 %v8573_v37  ;;  %v8583_v30 = vld [vmem:[#allocation144_spill] sm:$0xff]  ;;  %v8584_v37 = vld [vmem:[#allocation134_spill] sm:$0xff] }
 0x409   :  { %2184 = vmatpush1.bf16.msra.mxu0 %v8574_v12  ;;  %2227 = vmatpush1.bf16.msra.mxu1 %v8575_v23  ;;  %v8585_v12 = vld [vmem:[#allocation135_spill] sm:$0xff] }
 0x40a   :  { %2185 = vmatprep.subr.bf16.mxu0 %v8576_v33  ;;  %2228 = vmatprep.subr.bf16.mxu1 %v8577_v0 }
 0x40d   :  { %2186 = vmatpush1.bf16.msra.mxu0 %v8578_v14  ;;  %2229 = vmatpush1.bf16.msra.mxu1 %v8579_v42 }
 0x40e   :  { %2187 = vmatprep.subr.bf16.mxu0 %v8580_v3  ;;  %2230 = vmatprep.subr.bf16.mxu1 %v8581_v13 }
 0x411   :  { %2188 = vmatpush1.bf16.msra.mxu0 %v8582_v32  ;;  %2231 = vmatpush1.bf16.msra.mxu1 %v8583_v30  ;;  %v8590_v30 = vld [vmem:[#allocation110_spill] sm:$0xff] }
 0x412   :  { %2323 = vmatprep.subr.bf16.mxu0 %v8584_v37  ;;  %2366 = vmatprep.subr.bf16.mxu1 %v8585_v12  ;;  %v8591_v37 = vld [vmem:[#allocation112_spill] sm:$0xff] }
 0x4a7   :  { %v2025_v23 = vpop.f32.mrb[76].mxu0  ;;  %v2068_v33 = vpop.f32.mrb[76].mxu1 }
 0x4a8   :  { %v2087_v0 = vadd.f32 %v2025_v23, %v8586_v59  ;;  %v2089_v14 = vadd.f32 %v2068_v33, %v8587_v63  ;;  %v2027_v57 = vpop.f32.mrb[77].mxu0  ;;  %v2070_v42 = vpop.f32.mrb[77].mxu1  ;;  %v8593_v23 = vld [vmem:[#allocation114_spill] sm:$0xff] }
 0x4a9   :  { %v2088_v3 = vadd.f32 %v2027_v57, %v8588_v15  ;;  %v2090_v13 = vadd.f32 %v2070_v42, %v8589_v40  ;;  %v2029_v7 = vpop.f32.mrb[78].mxu0  ;;  %v2072_v32 = vpop.f32.mrb[78].mxu1 }
 0x4aa   :  { %v4312_v46 = vmul.f32 -1.442695, %v2087_v0  ;;  %v2091_v31 = vadd.f32 %v2029_v7, %v8590_v30  ;;  %v2093_v35 = vadd.f32 %v2072_v32, %v8591_v37  ;;  %v2031_v12 = vpop.f32.mrb[79].mxu0  ;;  %v2074_v11 = vpop.f32.mrb[79].mxu1 }
 0x4ab   :  { %v4314_v25 = vmul.f32 -1.442695, %v2088_v3  ;;  %v2092_v59 = vadd.f32 %v2031_v12, %v8592_v61  ;;  %v2094_v63 = vadd.f32 %v2074_v11, %v8593_v23  ;;  %v4316_v40 = vmul.f32 -1.442695, %v2090_v13 }
 0x4ac   :  { %4667 = vpow2.f32 %v4312_v46  ;;  %v4313_v33 = vmul.f32 -1.442695, %v2091_v31 }
 0x4ad   :  { %4669 = vpow2.f32 %v4314_v25  ;;  %v4315_v15 = vmul.f32 -1.442695, %v2092_v59  ;;  %v4317_v32 = vmul.f32 -1.442695, %v2094_v63 }
 0x4ae   :  { %4671 = vpow2.f32 %v4313_v33 }
 0x4af   :  { %4673 = vpow2.f32 %v4315_v15 }
 0x4b0   :  { %4675 = vtanh.f32 %v2089_v14 }
 0x4b1   :  { %4677 = vpow2.f32 %v4316_v40 }
 0x4b2   :  { %4679 = vtanh.f32 %v2093_v35 }
 0x4b6   :  { %v4668_v57 = vpop.eup %4667 }
 0x4b7   :  { %v4670_v0 = vpop.eup %4669  ;;  %v2101_v7 = vadd.f32 1.0, %v4668_v57 }
 0x4b8   :  { %v2113_v30 = vadd.f32 1.0, %v4670_v0  ;;  %v4672_v37 = vpop.eup %4671 }
 0x4b9   :  { %4681 = vrcp.f32 %v2101_v7  ;;  %v2102_v61 = vadd.f32 1.0, %v4672_v37  ;;  %v4674_v11 = vpop.eup %4673 }
 0x4ba   :  { %4683 = vrcp.f32 %v2113_v30  ;;  %v2114_v25 = vadd.f32 1.0, %v4674_v11  ;;  %v4676_v31 = vpop.eup %4675 }
 0x4bb   :  { %4685 = vpow2.f32 %v4317_v32  ;;  %v4678_v46 = vpop.eup %4677 }
 0x4bc   :  { %4687 = vrcp.f32 %v2102_v61  ;;  %v4680_v12 = vpop.eup %4679  ;;  %v2127_v13 = vadd.f32 1.0, %v4678_v46  ;;  %v8624_v46 = vld [vmem:[#allocation18_spill] sm:$0xff] }
 0x4bd   :  { %4689 = vrcp.f32 %v2114_v25 }
 0x4be   :  { %4691 = vrcp.f32 %v2127_v13  ;;  %v8625_v13 = vld [vmem:[#allocation105_spill] sm:$0xff] }
 0x4c3   :  { %v4682_v42 = vpop.eup %4681 }
 0x4c4   :  { %v4684_v14 = vpop.eup %4683  ;;  %v2135_v3 = vmul.f32 %v4682_v42, %v4676_v31 }
 0x4c5   :  { %v4686_v59 = vpop.eup %4685  ;;  %v2133_v23 = vmul.f32 %v4684_v14, %v6713_v6 }
 0x4c6   :  { %v4688_v35 = vpop.eup %4687  ;;  %v2128_v40 = vadd.f32 1.0, %v4686_v59 }
 0x4c7   :  { %v6805_v63 = vadd.f32 %v2135_v3, %v2133_v23  ;;  %v2136_v33 = vmul.f32 %v4688_v35, %v4680_v12  ;;  %v4690_v15 = vpop.eup %4689  ;;  %v8626_v23 = vld [vmem:[#allocation108_spill] sm:$0xff] }
 0x4c8   :  { %v2134_v57 = vmul.f32 %v4690_v15, %v6717_v29  ;;  %v4692_v7 = vpop.eup %4691 }
 0x4c9   :  { %4693 = vtanh.f32 %v6805_v63 }
 0x4ca   :  { %v6809_v0 = vadd.f32 %v2136_v33, %v2134_v57  ;;  %4695 = vrcp.f32 %v2128_v40  ;;  %v8627_v57 = vld [vmem:[#allocation107_spill] sm:$0xff] }
 0x4cc   :  { %4697 = vtanh.f32 %v6809_v0 }
 0x4d3   :  { %v4694_v32 = vpop.eup %4693 }
 0x4d4   :  { %v2141_v30 = vmul.f32 %v4694_v32, %v4692_v7  ;;  %v4696_v6 = vpop.eup %4695  ;;  %v8628_v32 = vld [vmem:[#allocation109_spill] sm:$0xff] }
 0x4d6   :  { %v2143_v37 = vpack.c.bf16 %v2141_v30, %v2141_v30  ;;  %v4698_v61 = vpop.eup %4697 }
 0x4d7   :  { %v2142_v11 = vmul.f32 %v4698_v61, %v4696_v6 }
 0x4d8   :  { %4318 = vst [vmem:[%s8190_s4 + $0xc] sm:$0xf] %v2143_v37  ;;  %v2152_v31 = vsel %vm1170_vm0, %v2143_v37, %v5886_v1 }
 0x4d9   :  { %v2146_v25 = vpack.c.bf16 %v2142_v11, %v2142_v11 }
 0x4db   :  { %4319 = vst [vmem:[%s8191_s5 + $0x30] sm:$0xf] %v2146_v25  ;;  %v2150_v29 = vrot.slane %v2146_v25, 4 }
 0x4dd   :  { %4321 = vmatprep.mubr.msk.bf16.mxu0 %vm5890_vm1, %v2150_v29  ;;  %4323 = vmatprep.mubr.msk.bf16.mxu1 %vm5890_vm1, %v2150_v29 }
 0x4de   :  { %2190 = vmatmul.mubr.bf16.vlgmr.msra.gmra.mrb[80].mxu0 %v2152_v31  ;;  %2233 = vmatmul.mubr.bf16.vlgmr.msra.gmra.mrb[80].mxu1 %v2152_v31 }
 0x4df   :  { %2324 = vmatpush1.bf16.msra.mxu0 %v6420_v21  ;;  %2367 = vmatpush1.bf16.msra.mxu1 %v6423_v51  ;;  %v8594_v21 = vld [vmem:[#allocation123_spill] sm:$0xff]  ;;  %v8595_v51 = vld [vmem:[#allocation124_spill] sm:$0xff] }
 0x4e0   :  { %2325 = vmatprep.subr.bf16.mxu0 %v6426_v56  ;;  %2368 = vmatprep.subr.bf16.mxu1 %v6429_v28  ;;  %v8600_v56 = vld [vmem:[#allocation129_spill] sm:$0xff]  ;;  %v8601_v28 = vld [vmem:[#allocation130_spill] sm:$0xff] }
 0x4e3   :  { %2326 = vmatpush1.bf16.msra.mxu0 %v6432_v48  ;;  %2369 = vmatpush1.bf16.msra.mxu1 %v6435_v53  ;;  %v8602_v48 = vld [vmem:[#allocation131_spill] sm:$0xff]  ;;  %v8603_v53 = vld [vmem:[#allocation132_spill] sm:$0xff] }
 0x4e4   :  { %2327 = vmatprep.subr.bf16.mxu0 %v6438_v34  ;;  %2370 = vmatprep.subr.bf16.mxu1 %v6441_v36  ;;  %v8604_v34 = vld [vmem:[#allocation133_spill] sm:$0xff]  ;;  %v8605_v36 = vld [vmem:[#allocation118_spill] sm:$0xff] }
 0x4e7   :  { %2328 = vmatpush1.bf16.msra.mxu0 %v6444_v60  ;;  %2371 = vmatpush1.bf16.msra.mxu1 %v6447_v54  ;;  %v8606_v60 = vld [vmem:[#allocation119_spill] sm:$0xff]  ;;  %v8607_v54 = vld [vmem:[#allocation120_spill] sm:$0xff] }
 0x4e8   :  { %2329 = vmatprep.subr.bf16.mxu0 %v6450_v22  ;;  %2372 = vmatprep.subr.bf16.mxu1 %v6453_v10  ;;  %v8608_v22 = vld [vmem:[#allocation121_spill] sm:$0xff]  ;;  %v8609_v10 = vld [vmem:[#allocation122_spill] sm:$0xff] }
 0x4eb   :  { %2330 = vmatpush1.bf16.msra.mxu0 %v6456_v24  ;;  %2373 = vmatpush1.bf16.msra.mxu1 %v6459_v27  ;;  %v8610_v24 = vld [vmem:[#allocation136_spill] sm:$0xff]  ;;  %v8611_v27 = vld [vmem:[#allocation137_spill] sm:$0xff] }
 0x4ec   :  { %2331 = vmatprep.subr.bf16.mxu0 %v6462_v8  ;;  %2374 = vmatprep.subr.bf16.mxu1 %v6465_v55  ;;  %v8612_v8 = vld [vmem:[#allocation138_spill] sm:$0xff]  ;;  %v8613_v55 = vld [vmem:[#allocation139_spill] sm:$0xff] }
 0x4ef   :  { %2332 = vmatpush1.bf16.msra.mxu0 %v6468_v41  ;;  %2375 = vmatpush1.bf16.msra.mxu1 %v6471_v26  ;;  %v8614_v41 = vld [vmem:[#allocation140_spill] sm:$0xff]  ;;  %v8615_v26 = vld [vmem:[#allocation141_spill] sm:$0xff] }
 0x4f0   :  { %2333 = vmatprep.subr.bf16.mxu0 %v6474_v39  ;;  %2376 = vmatprep.subr.bf16.mxu1 %v6477_v50  ;;  %v8616_v39 = vld [vmem:[#allocation142_spill] sm:$0xff]  ;;  %v8617_v50 = vld [vmem:[#allocation143_spill] sm:$0xff] }
 0x4f3   :  { %2334 = vmatpush1.bf16.msra.mxu0 %v6480_v17  ;;  %2377 = vmatpush1.bf16.msra.mxu1 %v6483_v47  ;;  %v8618_v17 = vld [vmem:[#allocation144_spill] sm:$0xff]  ;;  %v8619_v47 = vld [vmem:[#allocation134_spill] sm:$0xff] }
 0x4f4   :  { %2335 = vmatprep.subr.bf16.mxu0 %v6486_v19  ;;  %2378 = vmatprep.subr.bf16.mxu1 %v6489_v18  ;;  %v8620_v19 = vld [vmem:[#allocation135_spill] sm:$0xff] }
 0x4f7   :  { %2336 = vmatpush1.bf16.msra.mxu0 %v6492_v38  ;;  %2379 = vmatpush1.bf16.msra.mxu1 %v6495_v45  ;;  %v8621_v45 = vld [vmem:[#allocation14_spill] sm:$0xff] }
 0x4f8   :  { %2337 = vmatprep.subr.bf16.mxu0 %v6498_v58  ;;  %2380 = vmatprep.subr.bf16.mxu1 %v6501_v43  ;;  %v8622_v43 = vld [vmem:[#allocation16_spill] sm:$0xff] }
 0x4fb   :  { %2338 = vmatpush1.bf16.msra.mxu0 %v6504_v49  ;;  %2381 = vmatpush1.bf16.msra.mxu1 %v6507_v44  ;;  %v8596_v49 = vld [vmem:[#allocation125_spill] sm:$0xff]  ;;  %v8597_v44 = vld [vmem:[#allocation126_spill] sm:$0xff] }
 0x4fc   :  { %2339 = vmatprep.subr.bf16.mxu0 %v6510_v20  ;;  %2382 = vmatprep.subr.bf16.mxu1 %v6513_v16  ;;  %v8598_v20 = vld [vmem:[#allocation127_spill] sm:$0xff]  ;;  %v8599_v16 = vld [vmem:[#allocation128_spill] sm:$0xff] }
 0x4ff   :  { %2340 = vmatpush1.bf16.msra.mxu0 %v8523_v52  ;;  %2383 = vmatpush1.bf16.msra.mxu1 %v8524_v62 }
 0x500   :  { %2341 = vmatprep.subr.bf16.mxu0 %v8525_v4  ;;  %2384 = vmatprep.subr.bf16.mxu1 %v8526_v5  ;;  %v8623_v5 = vld [vmem:[#allocation15_spill] sm:$0xff] }
 0x503   :  { %2342 = vmatpush1.bf16.msra.mxu0 %v8527_v9  ;;  %2385 = vmatpush1.bf16.msra.mxu1 %v8594_v21 }
 0x504   :  { %2343 = vmatprep.subr.bf16.mxu0 %v8595_v51  ;;  %2386 = vmatprep.subr.bf16.mxu1 %v8596_v49 }
 0x507   :  { %2344 = vmatpush1.bf16.msra.mxu0 %v8597_v44  ;;  %2387 = vmatpush1.bf16.msra.mxu1 %v8598_v20 }
 0x508   :  { %2345 = vmatprep.subr.bf16.mxu0 %v8599_v16  ;;  %2388 = vmatprep.subr.bf16.mxu1 %v8600_v56 }
 0x50b   :  { %2346 = vmatpush1.bf16.msra.mxu0 %v8601_v28  ;;  %2389 = vmatpush1.bf16.msra.mxu1 %v8602_v48 }
 0x50c   :  { %2347 = vmatprep.subr.bf16.mxu0 %v8603_v53  ;;  %2390 = vmatprep.subr.bf16.mxu1 %v8604_v34 }
 0x50f   :  { %2348 = vmatpush1.bf16.msra.mxu0 %v8605_v36  ;;  %2391 = vmatpush1.bf16.msra.mxu1 %v8606_v60 }
 0x510   :  { %2349 = vmatprep.subr.bf16.mxu0 %v8607_v54  ;;  %2392 = vmatprep.subr.bf16.mxu1 %v8608_v22 }
 0x513   :  { %2350 = vmatpush1.bf16.msra.mxu0 %v8609_v10  ;;  %2393 = vmatpush1.bf16.msra.mxu1 %v8610_v24 }
 0x514   :  { %2351 = vmatprep.subr.bf16.mxu0 %v8611_v27  ;;  %2394 = vmatprep.subr.bf16.mxu1 %v8612_v8 }
 0x517   :  { %2352 = vmatpush1.bf16.msra.mxu0 %v8613_v55  ;;  %2395 = vmatpush1.bf16.msra.mxu1 %v8614_v41 }
 0x518   :  { %2353 = vmatprep.subr.bf16.mxu0 %v8615_v26  ;;  %2396 = vmatprep.subr.bf16.mxu1 %v8616_v39 }
 0x51b   :  { %2354 = vmatpush1.bf16.msra.mxu0 %v8617_v50  ;;  %2397 = vmatpush1.bf16.msra.mxu1 %v8618_v17 }
 0x51c   :  { %2489 = vmatprep.subr.bf16.mxu0 %v8619_v47  ;;  %2532 = vmatprep.subr.bf16.mxu1 %v8620_v19 }
 0x5b1   :  { %v2191_v18 = vpop.f32.mrb[80].mxu0  ;;  %v2234_v38 = vpop.f32.mrb[80].mxu1 }
 0x5b2   :  { %v2253_v58 = vadd.f32 %v2191_v18, %v8621_v45  ;;  %v2255_v52 = vadd.f32 %v2234_v38, %v8622_v43  ;;  %v2193_v62 = vpop.f32.mrb[81].mxu0  ;;  %v2236_v4 = vpop.f32.mrb[81].mxu1 }
 0x5b3   :  { %v2254_v9 = vadd.f32 %v2193_v62, %v8623_v5  ;;  %v2256_v12 = vadd.f32 %v2236_v4, %v8624_v46  ;;  %v2195_v42 = vpop.f32.mrb[82].mxu0  ;;  %v2238_v14 = vpop.f32.mrb[82].mxu1 }
 0x5b4   :  { %v4324_v3 = vmul.f32 -1.442695, %v2253_v58  ;;  %v2257_v59 = vadd.f32 %v2195_v42, %v8625_v13  ;;  %v2259_v35 = vadd.f32 %v2238_v14, %v8626_v23  ;;  %v2197_v33 = vpop.f32.mrb[83].mxu0  ;;  %v2240_v15 = vpop.f32.mrb[83].mxu1  ;;  %v6919_v23 = vld [vmem:[#allocation3 + $0x8] ss:$16 sps:$4 sm:$0xff]  }
 0x5b5   :  { %v4326_v40 = vmul.f32 -1.442695, %v2254_v9  ;;  %v2258_v7 = vadd.f32 %v2197_v33, %v8627_v57  ;;  %v2260_v30 = vadd.f32 %v2240_v15, %v8628_v32  ;;  %v4328_v61 = vmul.f32 -1.442695, %v2256_v12  ;;  %v6925_v33 = vld [vmem:[#allocation3 + $0x2c] ss:$16 sps:$4 sm:$0xff]  }
 0x5b6   :  { %4699 = vpow2.f32 %v4324_v3  ;;  %v4325_v6 = vmul.f32 -1.442695, %v2257_v59  ;;  %v6916_v59 = vld [vmem:[#allocation3] ss:$16 sps:$4 sm:$0xff]   ;;  %v6934_v57 = vld [vmem:[#allocation3 + $0x44] ss:$16 sps:$4 sm:$0xff]  }
 0x5b7   :  { %4701 = vpow2.f32 %v4326_v40  ;;  %v4327_v37 = vmul.f32 -1.442695, %v2258_v7  ;;  %v4329_v31 = vmul.f32 -1.442695, %v2260_v30  ;;  %v6928_v15 = vld [vmem:[#allocation3 + $0x20] ss:$16 sps:$4 sm:$0xff]  }
 0x5b8   :  { %4703 = vpow2.f32 %v4325_v6  ;;  %v6931_v40 = vld [vmem:[#allocation3 + $0x28] ss:$16 sps:$4 sm:$0xff]   ;;  %v6937_v7 = vld [vmem:[#allocation3 + $0x4c] ss:$16 sps:$4 sm:$0xff]   ;;  %v6940_v32 = vld [vmem:[#allocation3 + $0x40] ss:$16 sps:$4 sm:$0xff]  }
 0x5b9   :  { %4705 = vpow2.f32 %v4327_v37  ;;  %v6943_v30 = vld [vmem:[#allocation3 + $0x48] ss:$16 sps:$4 sm:$0xff]   ;;  %v6946_v6 = vld [vmem:[#allocation3 + $0x64] ss:$16 sps:$4 sm:$0xff]   ;;  %v6949_v37 = vld [vmem:[#allocation3 + $0x6c] ss:$16 sps:$4 sm:$0xff]  }
 0x5ba   :  { %4707 = vtanh.f32 %v2255_v52 }
 0x5bb   :  { %4709 = vpow2.f32 %v4328_v61  ;;  %v6952_v61 = vld [vmem:[#allocation3 + $0x60] ss:$16 sps:$4 sm:$0xff]  }
 0x5bc   :  { %4711 = vtanh.f32 %v2259_v35  ;;  %v6922_v35 = vld [vmem:[#allocation3 + $0x24] ss:$16 sps:$4 sm:$0xff]  }
 0x5c0   :  { %v4700_v11 = vpop.eup %4699 }
 0x5c1   :  { %v4702_v25 = vpop.eup %4701  ;;  %v2267_v29 = vadd.f32 1.0, %v4700_v11  ;;  %v6955_v11 = vld [vmem:[#allocation3 + $0x68] ss:$16 sps:$4 sm:$0xff]  }
 0x5c2   :  { %v2279_v21 = vadd.f32 1.0, %v4702_v25  ;;  %v4704_v51 = vpop.eup %4703  ;;  %v6958_v25 = vld [vmem:[#allocation3 + $0x84] ss:$16 sps:$4 sm:$0xff]  }
 0x5c3   :  { %4713 = vrcp.f32 %v2267_v29  ;;  %v2268_v49 = vadd.f32 1.0, %v4704_v51  ;;  %v4706_v44 = vpop.eup %4705  ;;  %v6961_v29 = vld [vmem:[#allocation3 + $0x8c] ss:$16 sps:$4 sm:$0xff]   ;;  %v6970_v51 = vld [vmem:[#allocation3 + $0xa4] ss:$16 sps:$4 sm:$0xff]  }
 0x5c4   :  { %4715 = vrcp.f32 %v2279_v21  ;;  %v2280_v20 = vadd.f32 1.0, %v4706_v44  ;;  %v4708_v16 = vpop.eup %4707  ;;  %v6967_v21 = vld [vmem:[#allocation3 + $0x88] ss:$16 sps:$4 sm:$0xff]   ;;  %v6976_v44 = vld [vmem:[#allocation3 + $0xa0] ss:$16 sps:$4 sm:$0xff]  }
 0x5c5   :  { %4717 = vpow2.f32 %v4329_v31  ;;  %v4710_v56 = vpop.eup %4709  ;;  %v6964_v31 = vld [vmem:[#allocation3 + $0x80] ss:$16 sps:$4 sm:$0xff]  }
 0x5c6   :  { %4719 = vrcp.f32 %v2268_v49  ;;  %v4712_v28 = vpop.eup %4711  ;;  %v2293_v47 = vadd.f32 1.0, %v4710_v56  ;;  %v6973_v49 = vld [vmem:[#allocation3 + $0xac] ss:$16 sps:$4 sm:$0xff]  }
 0x5c7   :  { %4721 = vrcp.f32 %v2280_v20  ;;  %v6979_v20 = vld [vmem:[#allocation3 + $0xa8] ss:$16 sps:$4 sm:$0xff]   ;;  %v6985_v56 = vld [vmem:[#allocation3 + $0xcc] ss:$16 sps:$4 sm:$0xff]  }
 0x5c8   :  { %4723 = vrcp.f32 %v2293_v47  ;;  %v7000_v47 = vld [vmem:[#allocation3 + $0xe0] ss:$16 sps:$4 sm:$0xff]  }
 0x5cd   :  { %v4714_v48 = vpop.eup %4713 }
 0x5ce   :  { %v4716_v53 = vpop.eup %4715  ;;  %v2301_v34 = vmul.f32 %v4714_v48, %v4708_v16  ;;  %v6982_v16 = vld [vmem:[#allocation3 + $0xc4] ss:$16 sps:$4 sm:$0xff]   ;;  %v6991_v48 = vld [vmem:[#allocation3 + $0xc8] ss:$16 sps:$4 sm:$0xff]  }
 0x5cf   :  { %v4718_v19 = vpop.eup %4717  ;;  %v2299_v18 = vmul.f32 %v4716_v53, %v6805_v63  ;;  %v6994_v53 = vld [vmem:[#allocation3 + $0xe4] ss:$16 sps:$4 sm:$0xff]  }
 0x5d0   :  { %v4720_v38 = vpop.eup %4719  ;;  %v2294_v52 = vadd.f32 1.0, %v4718_v19  ;;  %v7003_v19 = vld [vmem:[#allocation3 + $0xe8] ss:$16 sps:$4 sm:$0xff]  }
 0x5d1   :  { %v6897_v45 = vadd.f32 %v2301_v34, %v2299_v18  ;;  %v2302_v58 = vmul.f32 %v4720_v38, %v4712_v28  ;;  %v4722_v43 = vpop.eup %4721  ;;  %v6988_v28 = vld [vmem:[#allocation3 + $0xc0] ss:$16 sps:$4 sm:$0xff]   ;;  %v6997_v34 = vld [vmem:[#allocation3 + $0xec] ss:$16 sps:$4 sm:$0xff]   ;;  %v7006_v18 = vld [vmem:[#allocation3 + $0x104] ss:$16 sps:$4 sm:$0xff]  }
 0x5d2   :  { %v2300_v62 = vmul.f32 %v4722_v43, %v6809_v0  ;;  %v4724_v5 = vpop.eup %4723  ;;  %v7009_v38 = vld [vmem:[#allocation3 + $0x10c] ss:$16 sps:$4 sm:$0xff]   ;;  %v7015_v43 = vld [vmem:[#allocation3 + $0x108] ss:$16 sps:$4 sm:$0xff]  }
 0x5d3   :  { %4725 = vtanh.f32 %v6897_v45 }
 0x5d4   :  { %v6901_v4 = vadd.f32 %v2302_v58, %v2300_v62  ;;  %4727 = vrcp.f32 %v2294_v52  ;;  %v7012_v58 = vld [vmem:[#allocation3 + $0x100] ss:$16 sps:$4 sm:$0xff]   ;;  %v7018_v52 = vld [vmem:[#allocation3 + $0x124] ss:$16 sps:$4 sm:$0xff]   ;;  %v7021_v62 = vld [vmem:[#allocation3 + $0x12c] ss:$16 sps:$4 sm:$0xff]  }
 0x5d6   :  { %4729 = vtanh.f32 %v6901_v4 }
 0x5dd   :  { %v4726_v9 = vpop.eup %4725 }
 0x5de   :  { %v2307_v46 = vmul.f32 %v4726_v9, %v4724_v5  ;;  %v4728_v63 = vpop.eup %4727  ;;  %v7024_v5 = vld [vmem:[#allocation3 + $0x120] ss:$16 sps:$4 sm:$0xff]   ;;  %v7027_v9 = vld [vmem:[#allocation3 + $0x128] ss:$16 sps:$4 sm:$0xff]  }
 0x5df   :  { %8629 = vst [vmem:[#allocation6_spill] sm:$0xff] %v7027_v9 }
 0x5e0   :  { %v2309_v12 = vpack.c.bf16 %v2307_v46, %v2307_v46  ;;  %v4730_v42 = vpop.eup %4729  ;;  %v7030_v46 = vld [vmem:[#allocation3 + $0x144] ss:$16 sps:$4 sm:$0xff]  }
 0x5e1   :  { %v2308_v14 = vmul.f32 %v4730_v42, %v4728_v63  ;;  %8630 = vst [vmem:[#allocation8_spill] sm:$0xff] %v7030_v46  ;;  %v7033_v63 = vld [vmem:[#allocation3 + $0x14c] ss:$16 sps:$4 sm:$0xff]   ;;  %v7039_v42 = vld [vmem:[#allocation3 + $0x148] ss:$16 sps:$4 sm:$0xff]  }
 0x5e2   :  { %4330 = vst [vmem:[%s8190_s4 + $0x10] sm:$0xf] %v2309_v12  ;;  %v2318_v13 = vsel %vm1170_vm0, %v2309_v12, %v5886_v1  ;;  %8631 = vst [vmem:[#allocation7_spill] sm:$0xff] %v7033_v63  ;;  %v7036_v12 = vld [vmem:[#allocation3 + $0x140] ss:$16 sps:$4 sm:$0xff]  }
 0x5e3   :  { %v2312_v3 = vpack.c.bf16 %v2308_v14, %v2308_v14  ;;  %8632 = vst [vmem:[#allocation10_spill] sm:$0xff] %v7036_v12  ;;  %8633 = vst [vmem:[#allocation113_spill] sm:$0xff] %v7039_v42  ;;  %v7042_v14 = vld [vmem:[#allocation3 + $0x164] ss:$16 sps:$4 sm:$0xff]  }
 0x5e4   :  { %8634 = vst [vmem:[#allocation116_spill] sm:$0xff] %v7042_v14 }
 0x5e5   :  { %4331 = vst [vmem:[%s8191_s5 + $0x2c] sm:$0xf] %v2312_v3  ;;  %v2316_v0 = vrot.slane %v2312_v3, 4  ;;  %v7045_v3 = vld [vmem:[#allocation3 + $0x16c] ss:$16 sps:$4 sm:$0xff]  }
 0x5e6   :  { %8635 = vst [vmem:[#allocation115_spill] sm:$0xff] %v7045_v3 }
 0x5e7   :  { %4333 = vmatprep.mubr.msk.bf16.mxu0 %vm5890_vm1, %v2316_v0  ;;  %4335 = vmatprep.mubr.msk.bf16.mxu1 %vm5890_vm1, %v2316_v0  ;;  %v7048_v0 = vld [vmem:[#allocation3 + $0x160] ss:$16 sps:$4 sm:$0xff]  }
 0x5e8   :  { %2356 = vmatmul.mubr.bf16.vlgmr.msra.gmra.mrb[84].mxu0 %v2318_v13  ;;  %2399 = vmatmul.mubr.bf16.vlgmr.msra.gmra.mrb[84].mxu1 %v2318_v13  ;;  %8636 = vst [vmem:[#allocation117_spill] sm:$0xff] %v7048_v0  ;;  %v7051_v13 = vld [vmem:[#allocation3 + $0x168] ss:$16 sps:$4 sm:$0xff]  }
 0x5e9   :  { %2490 = vmatpush1.bf16.msra.mxu0 %v6916_v59  ;;  %2533 = vmatpush1.bf16.msra.mxu1 %v6919_v23  ;;  %8637 = vst [vmem:[#allocation9_spill] sm:$0xff] %v7051_v13 }
 0x5ea   :  { %2491 = vmatprep.subr.bf16.mxu0 %v6922_v35  ;;  %2534 = vmatprep.subr.bf16.mxu1 %v6925_v33 }
 0x5ed   :  { %2492 = vmatpush1.bf16.msra.mxu0 %v6928_v15  ;;  %2535 = vmatpush1.bf16.msra.mxu1 %v6931_v40 }
 0x5ee   :  { %2493 = vmatprep.subr.bf16.mxu0 %v6934_v57  ;;  %2536 = vmatprep.subr.bf16.mxu1 %v6937_v7 }
 0x5f1   :  { %2494 = vmatpush1.bf16.msra.mxu0 %v6940_v32  ;;  %2537 = vmatpush1.bf16.msra.mxu1 %v6943_v30 }
 0x5f2   :  { %2495 = vmatprep.subr.bf16.mxu0 %v6946_v6  ;;  %2538 = vmatprep.subr.bf16.mxu1 %v6949_v37 }
 0x5f5   :  { %2496 = vmatpush1.bf16.msra.mxu0 %v6952_v61  ;;  %2539 = vmatpush1.bf16.msra.mxu1 %v6955_v11 }
 0x5f6   :  { %2497 = vmatprep.subr.bf16.mxu0 %v6958_v25  ;;  %2540 = vmatprep.subr.bf16.mxu1 %v6961_v29 }
 0x5f9   :  { %2498 = vmatpush1.bf16.msra.mxu0 %v6964_v31  ;;  %2541 = vmatpush1.bf16.msra.mxu1 %v6967_v21 }
 0x5fa   :  { %2499 = vmatprep.subr.bf16.mxu0 %v6970_v51  ;;  %2542 = vmatprep.subr.bf16.mxu1 %v6973_v49 }
 0x5fd   :  { %2500 = vmatpush1.bf16.msra.mxu0 %v6976_v44  ;;  %2543 = vmatpush1.bf16.msra.mxu1 %v6979_v20 }
 0x5fe   :  { %2501 = vmatprep.subr.bf16.mxu0 %v6982_v16  ;;  %2544 = vmatprep.subr.bf16.mxu1 %v6985_v56 }
 0x601   :  { %2502 = vmatpush1.bf16.msra.mxu0 %v6988_v28  ;;  %2545 = vmatpush1.bf16.msra.mxu1 %v6991_v48 }
 0x602   :  { %2503 = vmatprep.subr.bf16.mxu0 %v6994_v53  ;;  %2546 = vmatprep.subr.bf16.mxu1 %v6997_v34 }
 0x605   :  { %2504 = vmatpush1.bf16.msra.mxu0 %v7000_v47  ;;  %2547 = vmatpush1.bf16.msra.mxu1 %v7003_v19 }
 0x606   :  { %2505 = vmatprep.subr.bf16.mxu0 %v7006_v18  ;;  %2548 = vmatprep.subr.bf16.mxu1 %v7009_v38 }
 0x609   :  { %2506 = vmatpush1.bf16.msra.mxu0 %v7012_v58  ;;  %2549 = vmatpush1.bf16.msra.mxu1 %v7015_v43 }
 0x60a   :  { %2507 = vmatprep.subr.bf16.mxu0 %v7018_v52  ;;  %2550 = vmatprep.subr.bf16.mxu1 %v7021_v62 }
 0x60d   :  { %2508 = vmatpush1.bf16.msra.mxu0 %v7024_v5  ;;  %2551 = vmatpush1.bf16.msra.mxu1 %v7027_v9  ;;  %v8648_v9 = vld [vmem:[#allocation103_spill] sm:$0xff] }
 0x60e   :  { %2509 = vmatprep.subr.bf16.mxu0 %v7030_v46  ;;  %2552 = vmatprep.subr.bf16.mxu1 %v7033_v63 }
 0x611   :  { %2510 = vmatpush1.bf16.msra.mxu0 %v7036_v12  ;;  %2553 = vmatpush1.bf16.msra.mxu1 %v7039_v42  ;;  %v7054_v12 = vld [vmem:[#allocation3 + $0x184] ss:$16 sps:$4 sm:$0xff]   ;;  %v7057_v42 = vld [vmem:[#allocation3 + $0x18c] ss:$16 sps:$4 sm:$0xff]  }
 0x612   :  { %2511 = vmatprep.subr.bf16.mxu0 %v7042_v14  ;;  %2554 = vmatprep.subr.bf16.mxu1 %v7045_v3  ;;  %8638 = vst [vmem:[#allocation12_spill] sm:$0xff] %v7054_v12  ;;  %8639 = vst [vmem:[#allocation11_spill] sm:$0xff] %v7057_v42  ;;  %v8647_v3 = vld [vmem:[#allocation104_spill] sm:$0xff] }
 0x615   :  { %2512 = vmatpush1.bf16.msra.mxu0 %v7048_v0  ;;  %2555 = vmatpush1.bf16.msra.mxu1 %v7051_v13 }
 0x616   :  { %2513 = vmatprep.subr.bf16.mxu0 %v7054_v12  ;;  %2556 = vmatprep.subr.bf16.mxu1 %v7057_v42 }
 0x619   :  { %2514 = vmatpush1.bf16.msra.mxu0 %v8605_v36  ;;  %2557 = vmatpush1.bf16.msra.mxu1 %v8606_v60  ;;  %v7074_v36 = vld [vmem:[#allocation3 + $0x4] ss:$16 sps:$4 sm:$0xff]   ;;  %v7077_v60 = vld [vmem:[#allocation3 + $0xc] ss:$16 sps:$4 sm:$0xff]  }
 0x61a   :  { %2515 = vmatprep.subr.bf16.mxu0 %v8607_v54  ;;  %2558 = vmatprep.subr.bf16.mxu1 %v8608_v22  ;;  %8640 = vst [vmem:[#allocation13_spill] sm:$0xff] %v7074_v36  ;;  %8641 = vst [vmem:[#allocation110_spill] sm:$0xff] %v7077_v60 }
 0x61d   :  { %2516 = vmatpush1.bf16.msra.mxu0 %v8609_v10  ;;  %2559 = vmatpush1.bf16.msra.mxu1 %v8610_v24  ;;  %v8642_v10 = vld [vmem:[#allocation17_spill] sm:$0xff] }
 0x61e   :  { %2517 = vmatprep.subr.bf16.mxu0 %v8611_v27  ;;  %2560 = vmatprep.subr.bf16.mxu1 %v8612_v8  ;;  %v8643_v27 = vld [vmem:[#allocation20_spill] sm:$0xff] }
 0x621   :  { %2518 = vmatpush1.bf16.msra.mxu0 %v8613_v55  ;;  %2561 = vmatpush1.bf16.msra.mxu1 %v8614_v41 }
 0x622   :  { %2519 = vmatprep.subr.bf16.mxu0 %v8615_v26  ;;  %2562 = vmatprep.subr.bf16.mxu1 %v8616_v39  ;;  %v8644_v26 = vld [vmem:[#allocation19_spill] sm:$0xff] }
 0x625   :  { %2520 = vmatpush1.bf16.msra.mxu0 %v8617_v50  ;;  %2563 = vmatpush1.bf16.msra.mxu1 %v8618_v17  ;;  %v8645_v50 = vld [vmem:[#allocation21_spill] sm:$0xff] }
 0x626   :  { %2655 = vmatprep.subr.bf16.mxu0 %v7074_v36  ;;  %2698 = vmatprep.subr.bf16.mxu1 %v7077_v60  ;;  %v8646_v36 = vld [vmem:[#allocation102_spill] sm:$0xff] }
 0x6bb   :  { %v2357_v54 = vpop.f32.mrb[84].mxu0  ;;  %v2400_v22 = vpop.f32.mrb[84].mxu1 }
 0x6bc   :  { %v2419_v24 = vadd.f32 %v2357_v54, %v8642_v10  ;;  %v2421_v8 = vadd.f32 %v2400_v22, %v8643_v27  ;;  %v2359_v55 = vpop.f32.mrb[85].mxu0  ;;  %v2402_v41 = vpop.f32.mrb[85].mxu1  ;;  %v8649_v10 = vld [vmem:[#allocation106_spill] sm:$0xff] }
 0x6bd   :  { %v2420_v39 = vadd.f32 %v2359_v55, %v8644_v26  ;;  %v2422_v17 = vadd.f32 %v2402_v41, %v8645_v50  ;;  %v2361_v42 = vpop.f32.mrb[86].mxu0  ;;  %v2404_v12 = vpop.f32.mrb[86].mxu1 }
 0x6be   :  { %v4336_v13 = vmul.f32 -1.442695, %v2419_v24  ;;  %v2423_v0 = vadd.f32 %v2361_v42, %v8646_v36  ;;  %v2425_v14 = vadd.f32 %v2404_v12, %v8647_v3  ;;  %v2363_v60 = vpop.f32.mrb[87].mxu0  ;;  %v2406_v63 = vpop.f32.mrb[87].mxu1 }
 0x6bf   :  { %v4338_v46 = vmul.f32 -1.442695, %v2420_v39  ;;  %v2424_v54 = vadd.f32 %v2363_v60, %v8648_v9  ;;  %v2426_v22 = vadd.f32 %v2406_v63, %v8649_v10  ;;  %v4340_v41 = vmul.f32 -1.442695, %v2422_v17 }
 0x6c0   :  { %4731 = vpow2.f32 %v4336_v13  ;;  %v4337_v27 = vmul.f32 -1.442695, %v2423_v0 }
 0x6c1   :  { %4733 = vpow2.f32 %v4338_v46  ;;  %v4339_v55 = vmul.f32 -1.442695, %v2424_v54  ;;  %v4341_v12 = vmul.f32 -1.442695, %v2426_v22 }
 0x6c2   :  { %4735 = vpow2.f32 %v4337_v27 }
 0x6c3   :  { %4737 = vpow2.f32 %v4339_v55 }
 0x6c4   :  { %4739 = vtanh.f32 %v2421_v8 }
 0x6c5   :  { %4741 = vpow2.f32 %v4340_v41 }
 0x6c6   :  { %4743 = vtanh.f32 %v2425_v14 }
 0x6ca   :  { %v4732_v26 = vpop.eup %4731 }
 0x6cb   :  { %v4734_v24 = vpop.eup %4733  ;;  %v2433_v42 = vadd.f32 1.0, %v4732_v26 }
 0x6cc   :  { %v2445_v3 = vadd.f32 1.0, %v4734_v24  ;;  %v4736_v36 = vpop.eup %4735 }
 0x6cd   :  { %4745 = vrcp.f32 %v2433_v42  ;;  %v2434_v9 = vadd.f32 1.0, %v4736_v36  ;;  %v4738_v63 = vpop.eup %4737 }
 0x6ce   :  { %4747 = vrcp.f32 %v2445_v3  ;;  %v2446_v46 = vadd.f32 1.0, %v4738_v63  ;;  %v4740_v0 = vpop.eup %4739 }
 0x6cf   :  { %4749 = vpow2.f32 %v4341_v12  ;;  %v4742_v13 = vpop.eup %4741 }
 0x6d0   :  { %4751 = vrcp.f32 %v2434_v9  ;;  %v4744_v60 = vpop.eup %4743  ;;  %v2459_v17 = vadd.f32 1.0, %v4742_v13  ;;  %v8650_v13 = vld [vmem:[#allocation6_spill] sm:$0xff] }
 0x6d1   :  { %4753 = vrcp.f32 %v2446_v46 }
 0x6d2   :  { %4755 = vrcp.f32 %v2459_v17  ;;  %v8655_v17 = vld [vmem:[#allocation116_spill] sm:$0xff] }
 0x6d7   :  { %v4746_v39 = vpop.eup %4745 }
 0x6d8   :  { %v4748_v8 = vpop.eup %4747  ;;  %v2467_v50 = vmul.f32 %v4746_v39, %v4740_v0  ;;  %v8652_v39 = vld [vmem:[#allocation7_spill] sm:$0xff] }
 0x6d9   :  { %v4750_v54 = vpop.eup %4749  ;;  %v2465_v10 = vmul.f32 %v4748_v8, %v6897_v45  ;;  %v8653_v8 = vld [vmem:[#allocation10_spill] sm:$0xff] }
 0x6da   :  { %v4752_v14 = vpop.eup %4751  ;;  %v2460_v41 = vadd.f32 1.0, %v4750_v54  ;;  %v8656_v54 = vld [vmem:[#allocation115_spill] sm:$0xff] }
 0x6db   :  { %v7089_v22 = vadd.f32 %v2467_v50, %v2465_v10  ;;  %v2468_v27 = vmul.f32 %v4752_v14, %v4744_v60  ;;  %v4754_v55 = vpop.eup %4753  ;;  %v8651_v60 = vld [vmem:[#allocation8_spill] sm:$0xff]  ;;  %v8654_v50 = vld [vmem:[#allocation113_spill] sm:$0xff] }
 0x6dc   :  { %v2466_v26 = vmul.f32 %v4754_v55, %v6901_v4  ;;  %v4756_v42 = vpop.eup %4755  ;;  %v8657_v10 = vld [vmem:[#allocation117_spill] sm:$0xff]  ;;  %v8660_v55 = vld [vmem:[#allocation11_spill] sm:$0xff] }
 0x6dd   :  { %4757 = vtanh.f32 %v7089_v22  ;;  %v8658_v14 = vld [vmem:[#allocation9_spill] sm:$0xff] }
 0x6de   :  { %v7093_v24 = vadd.f32 %v2468_v27, %v2466_v26  ;;  %4759 = vrcp.f32 %v2460_v41  ;;  %v8659_v27 = vld [vmem:[#allocation12_spill] sm:$0xff]  ;;  %v7159_v26 = vld [vmem:[#allocation3 + $0x188] ss:$16 sps:$4 sm:$0xff]  }
 0x6df   :  { %v7156_v41 = vld [vmem:[#allocation3 + $0x180] ss:$16 sps:$4 sm:$0xff]   ;;  %8662 = vst [vmem:[#allocation111_spill] sm:$0xff] %v7159_v26 }
 0x6e0   :  { %4761 = vtanh.f32 %v7093_v24  ;;  %8661 = vst [vmem:[#allocation112_spill] sm:$0xff] %v7156_v41 }
 0x6e7   :  { %v4758_v12 = vpop.eup %4757 }
 0x6e8   :  { %v2473_v3 = vmul.f32 %v4758_v12, %v4756_v42  ;;  %v4760_v45 = vpop.eup %4759  ;;  %v7162_v42 = vld [vmem:[#allocation3 + $0x1a4] ss:$16 sps:$4 sm:$0xff]   ;;  %v7165_v12 = vld [vmem:[#allocation3 + $0x1ac] ss:$16 sps:$4 sm:$0xff]  }
 0x6e9   :  { %8663 = vst [vmem:[#allocation114_spill] sm:$0xff] %v7162_v42  ;;  %8664 = vst [vmem:[#allocation123_spill] sm:$0xff] %v7165_v12 }
 0x6ea   :  { %v2475_v36 = vpack.c.bf16 %v2473_v3, %v2473_v3  ;;  %v4762_v9 = vpop.eup %4761  ;;  %v7168_v3 = vld [vmem:[#allocation3 + $0x1a0] ss:$16 sps:$4 sm:$0xff]  }
 0x6eb   :  { %v2474_v63 = vmul.f32 %v4762_v9, %v4760_v45  ;;  %8665 = vst [vmem:[#allocation124_spill] sm:$0xff] %v7168_v3  ;;  %v7171_v45 = vld [vmem:[#allocation3 + $0x1a8] ss:$16 sps:$4 sm:$0xff]   ;;  %v7177_v9 = vld [vmem:[#allocation3 + $0x1cc] ss:$16 sps:$4 sm:$0xff]  }
 0x6ec   :  { %4342 = vst [vmem:[%s8190_s4 + $0x14] sm:$0xf] %v2475_v36  ;;  %v2484_v0 = vsel %vm1170_vm0, %v2475_v36, %v5886_v1  ;;  %8666 = vst [vmem:[#allocation125_spill] sm:$0xff] %v7171_v45  ;;  %v7174_v36 = vld [vmem:[#allocation3 + $0x1c4] ss:$16 sps:$4 sm:$0xff]  }
 0x6ed   :  { %v2478_v46 = vpack.c.bf16 %v2474_v63, %v2474_v63  ;;  %8667 = vst [vmem:[#allocation126_spill] sm:$0xff] %v7174_v36  ;;  %8668 = vst [vmem:[#allocation127_spill] sm:$0xff] %v7177_v9  ;;  %v7180_v63 = vld [vmem:[#allocation3 + $0x1c0] ss:$16 sps:$4 sm:$0xff]  }
 0x6ee   :  { %8669 = vst [vmem:[#allocation128_spill] sm:$0xff] %v7180_v63 }
 0x6ef   :  { %4343 = vst [vmem:[%s8191_s5 + $0x28] sm:$0xf] %v2478_v46  ;;  %v2482_v4 = vrot.slane %v2478_v46, 4  ;;  %v7183_v46 = vld [vmem:[#allocation3 + $0x1c8] ss:$16 sps:$4 sm:$0xff]  }
 0x6f0   :  { %8670 = vst [vmem:[#allocation129_spill] sm:$0xff] %v7183_v46 }
 0x6f1   :  { %4345 = vmatprep.mubr.msk.bf16.mxu0 %vm5890_vm1, %v2482_v4  ;;  %4347 = vmatprep.mubr.msk.bf16.mxu1 %vm5890_vm1, %v2482_v4  ;;  %v7186_v4 = vld [vmem:[#allocation3 + $0x1e4] ss:$16 sps:$4 sm:$0xff]  }
 0x6f2   :  { %2522 = vmatmul.mubr.bf16.vlgmr.msra.gmra.mrb[88].mxu0 %v2484_v0  ;;  %2565 = vmatmul.mubr.bf16.vlgmr.msra.gmra.mrb[88].mxu1 %v2484_v0  ;;  %8671 = vst [vmem:[#allocation130_spill] sm:$0xff] %v7186_v4  ;;  %v7189_v0 = vld [vmem:[#allocation3 + $0x1ec] ss:$16 sps:$4 sm:$0xff]  }
 0x6f3   :  { %2656 = vmatpush1.bf16.msra.mxu0 %v6916_v59  ;;  %2699 = vmatpush1.bf16.msra.mxu1 %v6919_v23  ;;  %8672 = vst [vmem:[#allocation131_spill] sm:$0xff] %v7189_v0 }
 0x6f4   :  { %2657 = vmatprep.subr.bf16.mxu0 %v6922_v35  ;;  %2700 = vmatprep.subr.bf16.mxu1 %v6925_v33 }
 0x6f7   :  { %2658 = vmatpush1.bf16.msra.mxu0 %v6928_v15  ;;  %2701 = vmatpush1.bf16.msra.mxu1 %v6931_v40 }
 0x6f8   :  { %2659 = vmatprep.subr.bf16.mxu0 %v6934_v57  ;;  %2702 = vmatprep.subr.bf16.mxu1 %v6937_v7 }
 0x6fb   :  { %2660 = vmatpush1.bf16.msra.mxu0 %v6940_v32  ;;  %2703 = vmatpush1.bf16.msra.mxu1 %v6943_v30 }
 0x6fc   :  { %2661 = vmatprep.subr.bf16.mxu0 %v6946_v6  ;;  %2704 = vmatprep.subr.bf16.mxu1 %v6949_v37 }
 0x6ff   :  { %2662 = vmatpush1.bf16.msra.mxu0 %v6952_v61  ;;  %2705 = vmatpush1.bf16.msra.mxu1 %v6955_v11 }
 0x700   :  { %2663 = vmatprep.subr.bf16.mxu0 %v6958_v25  ;;  %2706 = vmatprep.subr.bf16.mxu1 %v6961_v29 }
 0x703   :  { %2664 = vmatpush1.bf16.msra.mxu0 %v6964_v31  ;;  %2707 = vmatpush1.bf16.msra.mxu1 %v6967_v21 }
 0x704   :  { %2665 = vmatprep.subr.bf16.mxu0 %v6970_v51  ;;  %2708 = vmatprep.subr.bf16.mxu1 %v6973_v49 }
 0x707   :  { %2666 = vmatpush1.bf16.msra.mxu0 %v6976_v44  ;;  %2709 = vmatpush1.bf16.msra.mxu1 %v6979_v20 }
 0x708   :  { %2667 = vmatprep.subr.bf16.mxu0 %v6982_v16  ;;  %2710 = vmatprep.subr.bf16.mxu1 %v6985_v56 }
 0x70b   :  { %2668 = vmatpush1.bf16.msra.mxu0 %v6988_v28  ;;  %2711 = vmatpush1.bf16.msra.mxu1 %v6991_v48 }
 0x70c   :  { %2669 = vmatprep.subr.bf16.mxu0 %v6994_v53  ;;  %2712 = vmatprep.subr.bf16.mxu1 %v6997_v34 }
 0x70f   :  { %2670 = vmatpush1.bf16.msra.mxu0 %v7000_v47  ;;  %2713 = vmatpush1.bf16.msra.mxu1 %v7003_v19 }
 0x710   :  { %2671 = vmatprep.subr.bf16.mxu0 %v7006_v18  ;;  %2714 = vmatprep.subr.bf16.mxu1 %v7009_v38 }
 0x713   :  { %2672 = vmatpush1.bf16.msra.mxu0 %v7012_v58  ;;  %2715 = vmatpush1.bf16.msra.mxu1 %v7015_v43 }
 0x714   :  { %2673 = vmatprep.subr.bf16.mxu0 %v7018_v52  ;;  %2716 = vmatprep.subr.bf16.mxu1 %v7021_v62 }
 0x717   :  { %2674 = vmatpush1.bf16.msra.mxu0 %v7024_v5  ;;  %2717 = vmatpush1.bf16.msra.mxu1 %v8650_v13  ;;  %v8683_v13 = vld [vmem:[#allocation99_spill] sm:$0xff] }
 0x718   :  { %2675 = vmatprep.subr.bf16.mxu0 %v8651_v60  ;;  %2718 = vmatprep.subr.bf16.mxu1 %v8652_v39 }
 0x71b   :  { %2676 = vmatpush1.bf16.msra.mxu0 %v8653_v8  ;;  %2719 = vmatpush1.bf16.msra.mxu1 %v8654_v50 }
 0x71c   :  { %2677 = vmatprep.subr.bf16.mxu0 %v8655_v17  ;;  %2720 = vmatprep.subr.bf16.mxu1 %v8656_v54 }
 0x71f   :  { %2678 = vmatpush1.bf16.msra.mxu0 %v8657_v10  ;;  %2721 = vmatpush1.bf16.msra.mxu1 %v8658_v14  ;;  %v8680_v14 = vld [vmem:[#allocation26_spill] sm:$0xff] }
 0x720   :  { %2679 = vmatprep.subr.bf16.mxu0 %v8659_v27  ;;  %2722 = vmatprep.subr.bf16.mxu1 %v8660_v55  ;;  %v8679_v55 = vld [vmem:[#allocation23_spill] sm:$0xff] }
 0x723   :  { %2680 = vmatpush1.bf16.msra.mxu0 %v7156_v41  ;;  %2723 = vmatpush1.bf16.msra.mxu1 %v7159_v26 }
 0x724   :  { %2681 = vmatprep.subr.bf16.mxu0 %v7162_v42  ;;  %2724 = vmatprep.subr.bf16.mxu1 %v7165_v12  ;;  %v8677_v12 = vld [vmem:[#allocation22_spill] sm:$0xff]  ;;  %v8678_v42 = vld [vmem:[#allocation24_spill] sm:$0xff] }
 0x727   :  { %2682 = vmatpush1.bf16.msra.mxu0 %v7168_v3  ;;  %2725 = vmatpush1.bf16.msra.mxu1 %v7171_v45  ;;  %v8676_v45 = vld [vmem:[#allocation110_spill] sm:$0xff] }
 0x728   :  { %2683 = vmatprep.subr.bf16.mxu0 %v7174_v36  ;;  %2726 = vmatprep.subr.bf16.mxu1 %v7177_v9  ;;  %v7192_v36 = vld [vmem:[#allocation3 + $0x1e0] ss:$16 sps:$4 sm:$0xff]   ;;  %v7195_v9 = vld [vmem:[#allocation3 + $0x1e8] ss:$16 sps:$4 sm:$0xff]  }
 0x729   :  { %8673 = vst [vmem:[#allocation132_spill] sm:$0xff] %v7192_v36  ;;  %8674 = vst [vmem:[#allocation133_spill] sm:$0xff] %v7195_v9 }
 0x72b   :  { %2684 = vmatpush1.bf16.msra.mxu0 %v7180_v63  ;;  %2727 = vmatpush1.bf16.msra.mxu1 %v7183_v46  ;;  %v8675_v63 = vld [vmem:[#allocation13_spill] sm:$0xff] }
 0x72c   :  { %2685 = vmatprep.subr.bf16.mxu0 %v7186_v4  ;;  %2728 = vmatprep.subr.bf16.mxu1 %v7189_v0 }
 0x72f   :  { %2686 = vmatpush1.bf16.msra.mxu0 %v7192_v36  ;;  %2729 = vmatpush1.bf16.msra.mxu1 %v7195_v9  ;;  %v8681_v9 = vld [vmem:[#allocation97_spill] sm:$0xff] }
 0x730   :  { %2821 = vmatprep.subr.bf16.mxu0 %v8675_v63  ;;  %2864 = vmatprep.subr.bf16.mxu1 %v8676_v45  ;;  %v8682_v63 = vld [vmem:[#allocation100_spill] sm:$0xff] }
 0x7c5   :  { %v2523_v46 = vpop.f32.mrb[88].mxu0  ;;  %v2566_v3 = vpop.f32.mrb[88].mxu1 }
 0x7c6   :  { %v2585_v4 = vadd.f32 %v2523_v46, %v8677_v12  ;;  %v2587_v26 = vadd.f32 %v2566_v3, %v8678_v42  ;;  %v2525_v41 = vpop.f32.mrb[89].mxu0  ;;  %v2568_v0 = vpop.f32.mrb[89].mxu1  ;;  %v8684_v46 = vld [vmem:[#allocation101_spill] sm:$0xff] }
 0x7c7   :  { %v2586_v27 = vadd.f32 %v2525_v41, %v8679_v55  ;;  %v2588_v36 = vadd.f32 %v2568_v0, %v8680_v14  ;;  %v2527_v10 = vpop.f32.mrb[90].mxu0  ;;  %v2570_v54 = vpop.f32.mrb[90].mxu1 }
 0x7c8   :  { %v4348_v17 = vmul.f32 -1.442695, %v2585_v4  ;;  %v2589_v50 = vadd.f32 %v2527_v10, %v8681_v9  ;;  %v2591_v8 = vadd.f32 %v2570_v54, %v8682_v63  ;;  %v2529_v45 = vpop.f32.mrb[91].mxu0  ;;  %v2572_v39 = vpop.f32.mrb[91].mxu1 }
 0x7c9   :  { %v4350_v60 = vmul.f32 -1.442695, %v2586_v27  ;;  %v2590_v12 = vadd.f32 %v2529_v45, %v8683_v13  ;;  %v2592_v42 = vadd.f32 %v2572_v39, %v8684_v46  ;;  %v4352_v14 = vmul.f32 -1.442695, %v2588_v36 }
 0x7ca   :  { %4763 = vpow2.f32 %v4348_v17  ;;  %v4349_v3 = vmul.f32 -1.442695, %v2589_v50 }
 0x7cb   :  { %4765 = vpow2.f32 %v4350_v60  ;;  %v4351_v55 = vmul.f32 -1.442695, %v2590_v12  ;;  %v4353_v54 = vmul.f32 -1.442695, %v2592_v42 }
 0x7cc   :  { %4767 = vpow2.f32 %v4349_v3 }
 0x7cd   :  { %4769 = vpow2.f32 %v4351_v55 }
 0x7ce   :  { %4771 = vtanh.f32 %v2587_v26 }
 0x7cf   :  { %4773 = vpow2.f32 %v4352_v14 }
 0x7d0   :  { %4775 = vtanh.f32 %v2591_v8 }
 0x7d4   :  { %v4764_v41 = vpop.eup %4763 }
 0x7d5   :  { %v4766_v4 = vpop.eup %4765  ;;  %v2599_v10 = vadd.f32 1.0, %v4764_v41 }
 0x7d6   :  { %v2611_v9 = vadd.f32 1.0, %v4766_v4  ;;  %v4768_v27 = vpop.eup %4767 }
 0x7d7   :  { %4777 = vrcp.f32 %v2599_v10  ;;  %v2600_v13 = vadd.f32 1.0, %v4768_v27  ;;  %v4770_v39 = vpop.eup %4769 }
 0x7d8   :  { %4779 = vrcp.f32 %v2611_v9  ;;  %v2612_v60 = vadd.f32 1.0, %v4770_v39  ;;  %v4772_v50 = vpop.eup %4771 }
 0x7d9   :  { %4781 = vpow2.f32 %v4353_v54  ;;  %v4774_v17 = vpop.eup %4773 }
 0x7da   :  { %4783 = vrcp.f32 %v2600_v13  ;;  %v4776_v45 = vpop.eup %4775  ;;  %v2625_v0 = vadd.f32 1.0, %v4774_v17  ;;  %v8685_v17 = vld [vmem:[#allocation6_spill] sm:$0xff] }
 0x7db   :  { %4785 = vrcp.f32 %v2612_v60 }
 0x7dc   :  { %4787 = vrcp.f32 %v2625_v0  ;;  %v8690_v0 = vld [vmem:[#allocation116_spill] sm:$0xff] }
 0x7e1   :  { %v4778_v36 = vpop.eup %4777 }
 0x7e2   :  { %v4780_v26 = vpop.eup %4779  ;;  %v2633_v63 = vmul.f32 %v4778_v36, %v4772_v50  ;;  %v8687_v36 = vld [vmem:[#allocation7_spill] sm:$0xff] }
 0x7e3   :  { %v4782_v12 = vpop.eup %4781  ;;  %v2631_v46 = vmul.f32 %v4780_v26, %v7089_v22  ;;  %v8688_v26 = vld [vmem:[#allocation10_spill] sm:$0xff] }
 0x7e4   :  { %v4784_v8 = vpop.eup %4783  ;;  %v2626_v14 = vadd.f32 1.0, %v4782_v12  ;;  %v8691_v12 = vld [vmem:[#allocation115_spill] sm:$0xff] }
 0x7e5   :  { %v7209_v42 = vadd.f32 %v2633_v63, %v2631_v46  ;;  %v2634_v3 = vmul.f32 %v4784_v8, %v4776_v45  ;;  %v4786_v55 = vpop.eup %4785  ;;  %v8686_v45 = vld [vmem:[#allocation8_spill] sm:$0xff]  ;;  %v8689_v63 = vld [vmem:[#allocation113_spill] sm:$0xff] }
 0x7e6   :  { %v2632_v41 = vmul.f32 %v4786_v55, %v7093_v24  ;;  %v4788_v10 = vpop.eup %4787  ;;  %v8692_v46 = vld [vmem:[#allocation117_spill] sm:$0xff]  ;;  %v8695_v55 = vld [vmem:[#allocation11_spill] sm:$0xff] }
 0x7e7   :  { %4789 = vtanh.f32 %v7209_v42  ;;  %v8693_v8 = vld [vmem:[#allocation9_spill] sm:$0xff] }
 0x7e8   :  { %v7213_v4 = vadd.f32 %v2634_v3, %v2632_v41  ;;  %4791 = vrcp.f32 %v2626_v14  ;;  %v8694_v3 = vld [vmem:[#allocation12_spill] sm:$0xff]  ;;  %v8697_v41 = vld [vmem:[#allocation111_spill] sm:$0xff] }
 0x7e9   :  { %v8696_v14 = vld [vmem:[#allocation112_spill] sm:$0xff] }
 0x7ea   :  { %4793 = vtanh.f32 %v7213_v4 }
 0x7f1   :  { %v4790_v54 = vpop.eup %4789 }
 0x7f2   :  { %v2639_v9 = vmul.f32 %v4790_v54, %v4788_v10  ;;  %v4792_v22 = vpop.eup %4791  ;;  %v8698_v10 = vld [vmem:[#allocation114_spill] sm:$0xff]  ;;  %v8699_v54 = vld [vmem:[#allocation123_spill] sm:$0xff] }
 0x7f4   :  { %v2641_v27 = vpack.c.bf16 %v2639_v9, %v2639_v9  ;;  %v4794_v13 = vpop.eup %4793  ;;  %v8700_v9 = vld [vmem:[#allocation124_spill] sm:$0xff] }
 0x7f5   :  { %v2640_v39 = vmul.f32 %v4794_v13, %v4792_v22  ;;  %v8701_v22 = vld [vmem:[#allocation125_spill] sm:$0xff]  ;;  %v8703_v13 = vld [vmem:[#allocation127_spill] sm:$0xff] }
 0x7f6   :  { %4354 = vst [vmem:[%s8190_s4 + $0x18] sm:$0xf] %v2641_v27  ;;  %v2650_v50 = vsel %vm1170_vm0, %v2641_v27, %v5886_v1  ;;  %v8702_v27 = vld [vmem:[#allocation126_spill] sm:$0xff] }
 0x7f7   :  { %v2644_v60 = vpack.c.bf16 %v2640_v39, %v2640_v39  ;;  %v8704_v39 = vld [vmem:[#allocation128_spill] sm:$0xff] }
 0x7f9   :  { %4355 = vst [vmem:[%s8191_s5 + $0x24] sm:$0xf] %v2644_v60  ;;  %v2648_v24 = vrot.slane %v2644_v60, 4  ;;  %v8705_v60 = vld [vmem:[#allocation129_spill] sm:$0xff] }
 0x7fb   :  { %4357 = vmatprep.mubr.msk.bf16.mxu0 %vm5890_vm1, %v2648_v24  ;;  %4359 = vmatprep.mubr.msk.bf16.mxu1 %vm5890_vm1, %v2648_v24  ;;  %v8706_v24 = vld [vmem:[#allocation130_spill] sm:$0xff] }
 0x7fc   :  { %2688 = vmatmul.mubr.bf16.vlgmr.msra.gmra.mrb[92].mxu0 %v2650_v50  ;;  %2731 = vmatmul.mubr.bf16.vlgmr.msra.gmra.mrb[92].mxu1 %v2650_v50  ;;  %v8707_v50 = vld [vmem:[#allocation131_spill] sm:$0xff] }
 0x7fd   :  { %2822 = vmatpush1.bf16.msra.mxu0 %v6916_v59  ;;  %2865 = vmatpush1.bf16.msra.mxu1 %v6919_v23 }
 0x7fe   :  { %2823 = vmatprep.subr.bf16.mxu0 %v6922_v35  ;;  %2866 = vmatprep.subr.bf16.mxu1 %v6925_v33 }
 0x801   :  { %2824 = vmatpush1.bf16.msra.mxu0 %v6928_v15  ;;  %2867 = vmatpush1.bf16.msra.mxu1 %v6931_v40 }
 0x802   :  { %2825 = vmatprep.subr.bf16.mxu0 %v6934_v57  ;;  %2868 = vmatprep.subr.bf16.mxu1 %v6937_v7 }
 0x805   :  { %2826 = vmatpush1.bf16.msra.mxu0 %v6940_v32  ;;  %2869 = vmatpush1.bf16.msra.mxu1 %v6943_v30 }
 0x806   :  { %2827 = vmatprep.subr.bf16.mxu0 %v6946_v6  ;;  %2870 = vmatprep.subr.bf16.mxu1 %v6949_v37 }
 0x809   :  { %2828 = vmatpush1.bf16.msra.mxu0 %v6952_v61  ;;  %2871 = vmatpush1.bf16.msra.mxu1 %v6955_v11 }
 0x80a   :  { %2829 = vmatprep.subr.bf16.mxu0 %v6958_v25  ;;  %2872 = vmatprep.subr.bf16.mxu1 %v6961_v29 }
 0x80d   :  { %2830 = vmatpush1.bf16.msra.mxu0 %v6964_v31  ;;  %2873 = vmatpush1.bf16.msra.mxu1 %v6967_v21 }
 0x80e   :  { %2831 = vmatprep.subr.bf16.mxu0 %v6970_v51  ;;  %2874 = vmatprep.subr.bf16.mxu1 %v6973_v49 }
 0x811   :  { %2832 = vmatpush1.bf16.msra.mxu0 %v6976_v44  ;;  %2875 = vmatpush1.bf16.msra.mxu1 %v6979_v20 }
 0x812   :  { %2833 = vmatprep.subr.bf16.mxu0 %v6982_v16  ;;  %2876 = vmatprep.subr.bf16.mxu1 %v6985_v56 }
 0x815   :  { %2834 = vmatpush1.bf16.msra.mxu0 %v6988_v28  ;;  %2877 = vmatpush1.bf16.msra.mxu1 %v6991_v48 }
 0x816   :  { %2835 = vmatprep.subr.bf16.mxu0 %v6994_v53  ;;  %2878 = vmatprep.subr.bf16.mxu1 %v6997_v34 }
 0x819   :  { %2836 = vmatpush1.bf16.msra.mxu0 %v7000_v47  ;;  %2879 = vmatpush1.bf16.msra.mxu1 %v7003_v19 }
 0x81a   :  { %2837 = vmatprep.subr.bf16.mxu0 %v7006_v18  ;;  %2880 = vmatprep.subr.bf16.mxu1 %v7009_v38 }
 0x81d   :  { %2838 = vmatpush1.bf16.msra.mxu0 %v7012_v58  ;;  %2881 = vmatpush1.bf16.msra.mxu1 %v7015_v43 }
 0x81e   :  { %2839 = vmatprep.subr.bf16.mxu0 %v7018_v52  ;;  %2882 = vmatprep.subr.bf16.mxu1 %v7021_v62 }
 0x821   :  { %2840 = vmatpush1.bf16.msra.mxu0 %v7024_v5  ;;  %2883 = vmatpush1.bf16.msra.mxu1 %v8685_v17  ;;  %v8718_v17 = vld [vmem:[#allocation95_spill] sm:$0xff] }
 0x822   :  { %2841 = vmatprep.subr.bf16.mxu0 %v8686_v45  ;;  %2884 = vmatprep.subr.bf16.mxu1 %v8687_v36 }
 0x825   :  { %2842 = vmatpush1.bf16.msra.mxu0 %v8688_v26  ;;  %2885 = vmatpush1.bf16.msra.mxu1 %v8689_v63 }
 0x826   :  { %2843 = vmatprep.subr.bf16.mxu0 %v8690_v0  ;;  %2886 = vmatprep.subr.bf16.mxu1 %v8691_v12 }
 0x829   :  { %2844 = vmatpush1.bf16.msra.mxu0 %v8692_v46  ;;  %2887 = vmatpush1.bf16.msra.mxu1 %v8693_v8  ;;  %v8714_v8 = vld [vmem:[#allocation27_spill] sm:$0xff]  ;;  %v8715_v46 = vld [vmem:[#allocation29_spill] sm:$0xff] }
 0x82a   :  { %2845 = vmatprep.subr.bf16.mxu0 %v8694_v3  ;;  %2888 = vmatprep.subr.bf16.mxu1 %v8695_v55  ;;  %v8713_v55 = vld [vmem:[#allocation28_spill] sm:$0xff] }
 0x82d   :  { %2846 = vmatpush1.bf16.msra.mxu0 %v8696_v14  ;;  %2889 = vmatpush1.bf16.msra.mxu1 %v8697_v41  ;;  %v8708_v41 = vld [vmem:[#allocation132_spill] sm:$0xff]  ;;  %v8712_v14 = vld [vmem:[#allocation25_spill] sm:$0xff] }
 0x82e   :  { %2847 = vmatprep.subr.bf16.mxu0 %v8698_v10  ;;  %2890 = vmatprep.subr.bf16.mxu1 %v8699_v54  ;;  %v8709_v10 = vld [vmem:[#allocation133_spill] sm:$0xff] }
 0x82f   :  { %v8710_v54 = vld [vmem:[#allocation13_spill] sm:$0xff] }
 0x831   :  { %2848 = vmatpush1.bf16.msra.mxu0 %v8700_v9  ;;  %2891 = vmatpush1.bf16.msra.mxu1 %v8701_v22  ;;  %v8711_v9 = vld [vmem:[#allocation110_spill] sm:$0xff] }
 0x832   :  { %2849 = vmatprep.subr.bf16.mxu0 %v8702_v27  ;;  %2892 = vmatprep.subr.bf16.mxu1 %v8703_v13 }
 0x835   :  { %2850 = vmatpush1.bf16.msra.mxu0 %v8704_v39  ;;  %2893 = vmatpush1.bf16.msra.mxu1 %v8705_v60 }
 0x836   :  { %2851 = vmatprep.subr.bf16.mxu0 %v8706_v24  ;;  %2894 = vmatprep.subr.bf16.mxu1 %v8707_v50 }
 0x839   :  { %2852 = vmatpush1.bf16.msra.mxu0 %v8708_v41  ;;  %2895 = vmatpush1.bf16.msra.mxu1 %v8709_v10  ;;  %v8716_v10 = vld [vmem:[#allocation94_spill] sm:$0xff] }
 0x83a   :  { %2985 = vmatprep.subr.bf16.mxu0 %v8710_v54  ;;  %3028 = vmatprep.subr.bf16.mxu1 %v8711_v9  ;;  %v8717_v54 = vld [vmem:[#allocation96_spill] sm:$0xff] }
 0x8cf   :  { %v2689_v22 = vpop.f32.mrb[92].mxu0  ;;  %v2732_v27 = vpop.f32.mrb[92].mxu1 }
 0x8d0   :  { %v2751_v13 = vadd.f32 %v2689_v22, %v8712_v14  ;;  %v2753_v39 = vadd.f32 %v2732_v27, %v8713_v55  ;;  %v2691_v3 = vpop.f32.mrb[93].mxu0  ;;  %v2734_v60 = vpop.f32.mrb[93].mxu1  ;;  %v8719_v22 = vld [vmem:[#allocation98_spill] sm:$0xff] }
 0x8d1   :  { %v2752_v24 = vadd.f32 %v2691_v3, %v8714_v8  ;;  %v2754_v50 = vadd.f32 %v2734_v60, %v8715_v46  ;;  %v2693_v12 = vpop.f32.mrb[94].mxu0  ;;  %v2736_v41 = vpop.f32.mrb[94].mxu1 }
 0x8d2   :  { %v4360_v0 = vmul.f32 -1.442695, %v2751_v13  ;;  %v2755_v63 = vadd.f32 %v2693_v12, %v8716_v10  ;;  %v2757_v26 = vadd.f32 %v2736_v41, %v8717_v54  ;;  %v2695_v9 = vpop.f32.mrb[95].mxu0  ;;  %v2738_v36 = vpop.f32.mrb[95].mxu1 }
 0x8d3   :  { %v4362_v45 = vmul.f32 -1.442695, %v2752_v24  ;;  %v2756_v14 = vadd.f32 %v2695_v9, %v8718_v17  ;;  %v2758_v55 = vadd.f32 %v2738_v36, %v8719_v22  ;;  %v4364_v46 = vmul.f32 -1.442695, %v2754_v50 }
 0x8d4   :  { %4795 = vpow2.f32 %v4360_v0  ;;  %v4361_v27 = vmul.f32 -1.442695, %v2755_v63 }
 0x8d5   :  { %4797 = vpow2.f32 %v4362_v45  ;;  %v4363_v8 = vmul.f32 -1.442695, %v2756_v14  ;;  %v4365_v41 = vmul.f32 -1.442695, %v2758_v55 }
 0x8d6   :  { %4799 = vpow2.f32 %v4361_v27 }
 0x8d7   :  { %4801 = vpow2.f32 %v4363_v8 }
 0x8d8   :  { %4803 = vtanh.f32 %v2753_v39 }
 0x8d9   :  { %4805 = vpow2.f32 %v4364_v46 }
 0x8da   :  { %4807 = vtanh.f32 %v2757_v26 }
 0x8de   :  { %v4796_v3 = vpop.eup %4795 }
 0x8df   :  { %v4798_v13 = vpop.eup %4797  ;;  %v2765_v12 = vadd.f32 1.0, %v4796_v3 }
 0x8e0   :  { %v2777_v10 = vadd.f32 1.0, %v4798_v13  ;;  %v4800_v54 = vpop.eup %4799 }
 0x8e1   :  { %4809 = vrcp.f32 %v2765_v12  ;;  %v2766_v17 = vadd.f32 1.0, %v4800_v54  ;;  %v4802_v36 = vpop.eup %4801 }
 0x8e2   :  { %4811 = vrcp.f32 %v2777_v10  ;;  %v2778_v45 = vadd.f32 1.0, %v4802_v36  ;;  %v4804_v63 = vpop.eup %4803 }
 0x8e3   :  { %4813 = vpow2.f32 %v4365_v41  ;;  %v4806_v0 = vpop.eup %4805 }
 0x8e4   :  { %4815 = vrcp.f32 %v2766_v17  ;;  %v4808_v9 = vpop.eup %4807  ;;  %v2791_v50 = vadd.f32 1.0, %v4806_v0  ;;  %v8750_v0 = vld [vmem:[#allocation34_spill] sm:$0xff] }
 0x8e5   :  { %4817 = vrcp.f32 %v2778_v45 }
 0x8e6   :  { %4819 = vrcp.f32 %v2791_v50  ;;  %v8751_v50 = vld [vmem:[#allocation89_spill] sm:$0xff] }
 0x8eb   :  { %v4810_v60 = vpop.eup %4809 }
 0x8ec   :  { %v4812_v39 = vpop.eup %4811  ;;  %v2799_v24 = vmul.f32 %v4810_v60, %v4804_v63 }
 0x8ed   :  { %v4814_v14 = vpop.eup %4813  ;;  %v2797_v22 = vmul.f32 %v4812_v39, %v7209_v42 }
 0x8ee   :  { %v4816_v26 = vpop.eup %4815  ;;  %v2792_v46 = vadd.f32 1.0, %v4814_v14 }
 0x8ef   :  { %v7301_v55 = vadd.f32 %v2799_v24, %v2797_v22  ;;  %v2800_v27 = vmul.f32 %v4816_v26, %v4808_v9  ;;  %v4818_v8 = vpop.eup %4817  ;;  %v8752_v22 = vld [vmem:[#allocation92_spill] sm:$0xff] }
 0x8f0   :  { %v2798_v3 = vmul.f32 %v4818_v8, %v7213_v4  ;;  %v4820_v12 = vpop.eup %4819 }
 0x8f1   :  { %4821 = vtanh.f32 %v7301_v55 }
 0x8f2   :  { %v7305_v13 = vadd.f32 %v2800_v27, %v2798_v3  ;;  %4823 = vrcp.f32 %v2792_v46  ;;  %v8753_v3 = vld [vmem:[#allocation91_spill] sm:$0xff] }
 0x8f4   :  { %4825 = vtanh.f32 %v7305_v13 }
 0x8fb   :  { %v4822_v41 = vpop.eup %4821 }
 0x8fc   :  { %v2805_v10 = vmul.f32 %v4822_v41, %v4820_v12  ;;  %v4824_v42 = vpop.eup %4823  ;;  %v8754_v41 = vld [vmem:[#allocation93_spill] sm:$0xff] }
 0x8fe   :  { %v2807_v54 = vpack.c.bf16 %v2805_v10, %v2805_v10  ;;  %v4826_v17 = vpop.eup %4825 }
 0x8ff   :  { %v2806_v36 = vmul.f32 %v4826_v17, %v4824_v42 }
 0x900   :  { %4366 = vst [vmem:[%s8190_s4 + $0x1c] sm:$0xf] %v2807_v54  ;;  %v2816_v63 = vsel %vm1170_vm0, %v2807_v54, %v5886_v1 }
 0x901   :  { %v2810_v45 = vpack.c.bf16 %v2806_v36, %v2806_v36 }
 0x903   :  { %4367 = vst [vmem:[%s8191_s5 + $0x20] sm:$0xf] %v2810_v45  ;;  %v2814_v4 = vrot.slane %v2810_v45, 4 }
 0x905   :  { %4369 = vmatprep.mubr.msk.bf16.mxu0 %vm5890_vm1, %v2814_v4  ;;  %4371 = vmatprep.mubr.msk.bf16.mxu1 %vm5890_vm1, %v2814_v4 }
 0x906   :  { %2854 = vmatmul.mubr.bf16.vlgmr.msra.gmra.mrb[96].mxu0 %v2816_v63  ;;  %2897 = vmatmul.mubr.bf16.vlgmr.msra.gmra.mrb[96].mxu1 %v2816_v63 }
 0x907   :  { %2986 = vmatpush1.bf16.msra.mxu0 %v6916_v59  ;;  %3029 = vmatpush1.bf16.msra.mxu1 %v6919_v23  ;;  %v8720_v59 = vld [vmem:[#allocation6_spill] sm:$0xff]  ;;  %v8721_v23 = vld [vmem:[#allocation8_spill] sm:$0xff] }
 0x908   :  { %2987 = vmatprep.subr.bf16.mxu0 %v6922_v35  ;;  %3030 = vmatprep.subr.bf16.mxu1 %v6925_v33  ;;  %v8722_v35 = vld [vmem:[#allocation7_spill] sm:$0xff]  ;;  %v8723_v33 = vld [vmem:[#allocation10_spill] sm:$0xff] }
 0x90b   :  { %2988 = vmatpush1.bf16.msra.mxu0 %v6928_v15  ;;  %3031 = vmatpush1.bf16.msra.mxu1 %v6931_v40  ;;  %v8724_v15 = vld [vmem:[#allocation113_spill] sm:$0xff]  ;;  %v8725_v40 = vld [vmem:[#allocation116_spill] sm:$0xff] }
 0x90c   :  { %2989 = vmatprep.subr.bf16.mxu0 %v6934_v57  ;;  %3032 = vmatprep.subr.bf16.mxu1 %v6937_v7  ;;  %v8726_v57 = vld [vmem:[#allocation115_spill] sm:$0xff]  ;;  %v8727_v7 = vld [vmem:[#allocation117_spill] sm:$0xff] }
 0x90f   :  { %2990 = vmatpush1.bf16.msra.mxu0 %v6940_v32  ;;  %3033 = vmatpush1.bf16.msra.mxu1 %v6943_v30  ;;  %v8728_v32 = vld [vmem:[#allocation9_spill] sm:$0xff]  ;;  %v8729_v30 = vld [vmem:[#allocation12_spill] sm:$0xff] }
 0x910   :  { %2991 = vmatprep.subr.bf16.mxu0 %v6946_v6  ;;  %3034 = vmatprep.subr.bf16.mxu1 %v6949_v37  ;;  %v8730_v6 = vld [vmem:[#allocation11_spill] sm:$0xff]  ;;  %v8731_v37 = vld [vmem:[#allocation112_spill] sm:$0xff] }
 0x913   :  { %2992 = vmatpush1.bf16.msra.mxu0 %v6952_v61  ;;  %3035 = vmatpush1.bf16.msra.mxu1 %v6955_v11  ;;  %v8732_v61 = vld [vmem:[#allocation111_spill] sm:$0xff]  ;;  %v8733_v11 = vld [vmem:[#allocation114_spill] sm:$0xff] }
 0x914   :  { %2993 = vmatprep.subr.bf16.mxu0 %v6958_v25  ;;  %3036 = vmatprep.subr.bf16.mxu1 %v6961_v29  ;;  %v8734_v25 = vld [vmem:[#allocation123_spill] sm:$0xff]  ;;  %v8735_v29 = vld [vmem:[#allocation124_spill] sm:$0xff] }
 0x917   :  { %2994 = vmatpush1.bf16.msra.mxu0 %v6964_v31  ;;  %3037 = vmatpush1.bf16.msra.mxu1 %v6967_v21  ;;  %v8736_v31 = vld [vmem:[#allocation125_spill] sm:$0xff]  ;;  %v8737_v21 = vld [vmem:[#allocation126_spill] sm:$0xff] }
 0x918   :  { %2995 = vmatprep.subr.bf16.mxu0 %v6970_v51  ;;  %3038 = vmatprep.subr.bf16.mxu1 %v6973_v49  ;;  %v8738_v51 = vld [vmem:[#allocation127_spill] sm:$0xff]  ;;  %v8739_v49 = vld [vmem:[#allocation128_spill] sm:$0xff] }
 0x91b   :  { %2996 = vmatpush1.bf16.msra.mxu0 %v6976_v44  ;;  %3039 = vmatpush1.bf16.msra.mxu1 %v6979_v20  ;;  %v8740_v44 = vld [vmem:[#allocation129_spill] sm:$0xff]  ;;  %v8741_v20 = vld [vmem:[#allocation130_spill] sm:$0xff] }
 0x91c   :  { %2997 = vmatprep.subr.bf16.mxu0 %v6982_v16  ;;  %3040 = vmatprep.subr.bf16.mxu1 %v6985_v56  ;;  %v8742_v16 = vld [vmem:[#allocation131_spill] sm:$0xff]  ;;  %v8743_v56 = vld [vmem:[#allocation132_spill] sm:$0xff] }
 0x91f   :  { %2998 = vmatpush1.bf16.msra.mxu0 %v6988_v28  ;;  %3041 = vmatpush1.bf16.msra.mxu1 %v6991_v48  ;;  %v8744_v28 = vld [vmem:[#allocation133_spill] sm:$0xff] }
 0x920   :  { %2999 = vmatprep.subr.bf16.mxu0 %v6994_v53  ;;  %3042 = vmatprep.subr.bf16.mxu1 %v6997_v34  ;;  %v8745_v48 = vld [vmem:[#allocation13_spill] sm:$0xff]  ;;  %v8746_v53 = vld [vmem:[#allocation110_spill] sm:$0xff] }
 0x923   :  { %3000 = vmatpush1.bf16.msra.mxu0 %v7000_v47  ;;  %3043 = vmatpush1.bf16.msra.mxu1 %v7003_v19  ;;  %v8747_v19 = vld [vmem:[#allocation30_spill] sm:$0xff] }
 0x924   :  { %3001 = vmatprep.subr.bf16.mxu0 %v7006_v18  ;;  %3044 = vmatprep.subr.bf16.mxu1 %v7009_v38  ;;  %v8748_v38 = vld [vmem:[#allocation32_spill] sm:$0xff] }
 0x927   :  { %3002 = vmatpush1.bf16.msra.mxu0 %v7012_v58  ;;  %3045 = vmatpush1.bf16.msra.mxu1 %v7015_v43 }
 0x928   :  { %3003 = vmatprep.subr.bf16.mxu0 %v7018_v52  ;;  %3046 = vmatprep.subr.bf16.mxu1 %v7021_v62  ;;  %v8749_v62 = vld [vmem:[#allocation31_spill] sm:$0xff] }
 0x92b   :  { %3004 = vmatpush1.bf16.msra.mxu0 %v7024_v5  ;;  %3047 = vmatpush1.bf16.msra.mxu1 %v8720_v59 }
 0x92c   :  { %3005 = vmatprep.subr.bf16.mxu0 %v8721_v23  ;;  %3048 = vmatprep.subr.bf16.mxu1 %v8722_v35 }
 0x92f   :  { %3006 = vmatpush1.bf16.msra.mxu0 %v8723_v33  ;;  %3049 = vmatpush1.bf16.msra.mxu1 %v8724_v15 }
 0x930   :  { %3007 = vmatprep.subr.bf16.mxu0 %v8725_v40  ;;  %3050 = vmatprep.subr.bf16.mxu1 %v8726_v57 }
 0x933   :  { %3008 = vmatpush1.bf16.msra.mxu0 %v8727_v7  ;;  %3051 = vmatpush1.bf16.msra.mxu1 %v8728_v32 }
 0x934   :  { %3009 = vmatprep.subr.bf16.mxu0 %v8729_v30  ;;  %3052 = vmatprep.subr.bf16.mxu1 %v8730_v6 }
 0x937   :  { %3010 = vmatpush1.bf16.msra.mxu0 %v8731_v37  ;;  %3053 = vmatpush1.bf16.msra.mxu1 %v8732_v61 }
 0x938   :  { %3011 = vmatprep.subr.bf16.mxu0 %v8733_v11  ;;  %3054 = vmatprep.subr.bf16.mxu1 %v8734_v25 }
 0x93b   :  { %3012 = vmatpush1.bf16.msra.mxu0 %v8735_v29  ;;  %3055 = vmatpush1.bf16.msra.mxu1 %v8736_v31 }
 0x93c   :  { %3013 = vmatprep.subr.bf16.mxu0 %v8737_v21  ;;  %3056 = vmatprep.subr.bf16.mxu1 %v8738_v51 }
 0x93f   :  { %3014 = vmatpush1.bf16.msra.mxu0 %v8739_v49  ;;  %3057 = vmatpush1.bf16.msra.mxu1 %v8740_v44 }
 0x940   :  { %3015 = vmatprep.subr.bf16.mxu0 %v8741_v20  ;;  %3058 = vmatprep.subr.bf16.mxu1 %v8742_v16 }
 0x943   :  { %3016 = vmatpush1.bf16.msra.mxu0 %v8743_v56  ;;  %3059 = vmatpush1.bf16.msra.mxu1 %v8744_v28 }
 0x944   :  { %3149 = vmatprep.subr.bf16.mxu0 %v8745_v48  ;;  %3192 = vmatprep.subr.bf16.mxu1 %v8746_v53 }
 0x9d9   :  { %v2855_v34 = vpop.f32.mrb[96].mxu0  ;;  %v2898_v47 = vpop.f32.mrb[96].mxu1 }
 0x9da   :  { %v2915_v18 = vadd.f32 %v2855_v34, %v8747_v19  ;;  %v2917_v58 = vadd.f32 %v2898_v47, %v8748_v38  ;;  %v2857_v43 = vpop.f32.mrb[97].mxu0  ;;  %v2900_v52 = vpop.f32.mrb[97].mxu1 }
 0x9db   :  { %v2916_v5 = vadd.f32 %v2857_v43, %v8749_v62  ;;  %v2918_v9 = vadd.f32 %v2900_v52, %v8750_v0  ;;  %v2859_v60 = vpop.f32.mrb[98].mxu0  ;;  %v2902_v39 = vpop.f32.mrb[98].mxu1 }
 0x9dc   :  { %v4372_v24 = vmul.f32 -1.442695, %v2915_v18  ;;  %v2919_v14 = vadd.f32 %v2859_v60, %v8751_v50  ;;  %v2921_v26 = vadd.f32 %v2902_v39, %v8752_v22  ;;  %v2861_v27 = vpop.f32.mrb[99].mxu0  ;;  %v2904_v8 = vpop.f32.mrb[99].mxu1  ;;  %v7415_v22 = vld [vmem:[#allocation3 + $0x8] ss:$16 sps:$4 sm:$0xff]  }
 0x9dd   :  { %v4374_v46 = vmul.f32 -1.442695, %v2916_v5  ;;  %v2920_v12 = vadd.f32 %v2861_v27, %v8753_v3  ;;  %v2922_v10 = vadd.f32 %v2904_v8, %v8754_v41  ;;  %v4376_v17 = vmul.f32 -1.442695, %v2918_v9  ;;  %v7421_v27 = vld [vmem:[#allocation3 + $0x2c] ss:$16 sps:$4 sm:$0xff]  }
 0x9de   :  { %4827 = vpow2.f32 %v4372_v24  ;;  %v4373_v42 = vmul.f32 -1.442695, %v2919_v14  ;;  %v7412_v14 = vld [vmem:[#allocation3] ss:$16 sps:$4 sm:$0xff]   ;;  %v7430_v3 = vld [vmem:[#allocation3 + $0x44] ss:$16 sps:$4 sm:$0xff]  }
 0x9df   :  { %4829 = vpow2.f32 %v4374_v46  ;;  %v4375_v54 = vmul.f32 -1.442695, %v2920_v12  ;;  %v4377_v63 = vmul.f32 -1.442695, %v2922_v10  ;;  %v7424_v8 = vld [vmem:[#allocation3 + $0x20] ss:$16 sps:$4 sm:$0xff]  }
 0x9e0   :  { %4831 = vpow2.f32 %v4373_v42  ;;  %v7427_v46 = vld [vmem:[#allocation3 + $0x28] ss:$16 sps:$4 sm:$0xff]   ;;  %v7433_v12 = vld [vmem:[#allocation3 + $0x4c] ss:$16 sps:$4 sm:$0xff]   ;;  %v7436_v41 = vld [vmem:[#allocation3 + $0x40] ss:$16 sps:$4 sm:$0xff]  }
 0x9e1   :  { %4833 = vpow2.f32 %v4375_v54  ;;  %v7439_v10 = vld [vmem:[#allocation3 + $0x48] ss:$16 sps:$4 sm:$0xff]   ;;  %v7442_v42 = vld [vmem:[#allocation3 + $0x64] ss:$16 sps:$4 sm:$0xff]   ;;  %v7445_v54 = vld [vmem:[#allocation3 + $0x6c] ss:$16 sps:$4 sm:$0xff]  }
 0x9e2   :  { %4835 = vtanh.f32 %v2917_v58 }
 0x9e3   :  { %4837 = vpow2.f32 %v4376_v17  ;;  %v7448_v17 = vld [vmem:[#allocation3 + $0x60] ss:$16 sps:$4 sm:$0xff]  }
 0x9e4   :  { %4839 = vtanh.f32 %v2921_v26  ;;  %v7418_v26 = vld [vmem:[#allocation3 + $0x24] ss:$16 sps:$4 sm:$0xff]  }
 0x9e8   :  { %v4828_v36 = vpop.eup %4827 }
 0x9e9   :  { %v4830_v45 = vpop.eup %4829  ;;  %v2929_v4 = vadd.f32 1.0, %v4828_v36  ;;  %v7451_v36 = vld [vmem:[#allocation3 + $0x68] ss:$16 sps:$4 sm:$0xff]  }
 0x9ea   :  { %v2941_v59 = vadd.f32 1.0, %v4830_v45  ;;  %v4832_v23 = vpop.eup %4831  ;;  %v7454_v45 = vld [vmem:[#allocation3 + $0x84] ss:$16 sps:$4 sm:$0xff]  }
 0x9eb   :  { %4841 = vrcp.f32 %v2929_v4  ;;  %v2930_v35 = vadd.f32 1.0, %v4832_v23  ;;  %v4834_v33 = vpop.eup %4833  ;;  %v7457_v4 = vld [vmem:[#allocation3 + $0x8c] ss:$16 sps:$4 sm:$0xff]   ;;  %v7466_v23 = vld [vmem:[#allocation3 + $0xa4] ss:$16 sps:$4 sm:$0xff]  }
 0x9ec   :  { %4843 = vrcp.f32 %v2941_v59  ;;  %v2942_v15 = vadd.f32 1.0, %v4834_v33  ;;  %v4836_v40 = vpop.eup %4835  ;;  %v7463_v59 = vld [vmem:[#allocation3 + $0x88] ss:$16 sps:$4 sm:$0xff]   ;;  %v7472_v33 = vld [vmem:[#allocation3 + $0xa0] ss:$16 sps:$4 sm:$0xff]  }
 0x9ed   :  { %4845 = vpow2.f32 %v4377_v63  ;;  %v4838_v57 = vpop.eup %4837  ;;  %v7460_v63 = vld [vmem:[#allocation3 + $0x80] ss:$16 sps:$4 sm:$0xff]  }
 0x9ee   :  { %4847 = vrcp.f32 %v2930_v35  ;;  %v4840_v7 = vpop.eup %4839  ;;  %v2955_v48 = vadd.f32 1.0, %v4838_v57  ;;  %v7469_v35 = vld [vmem:[#allocation3 + $0xac] ss:$16 sps:$4 sm:$0xff]  }
 0x9ef   :  { %4849 = vrcp.f32 %v2942_v15  ;;  %v7475_v15 = vld [vmem:[#allocation3 + $0xa8] ss:$16 sps:$4 sm:$0xff]   ;;  %v7481_v57 = vld [vmem:[#allocation3 + $0xcc] ss:$16 sps:$4 sm:$0xff]  }
 0x9f0   :  { %4851 = vrcp.f32 %v2955_v48  ;;  %v7496_v48 = vld [vmem:[#allocation3 + $0xe0] ss:$16 sps:$4 sm:$0xff]  }
 0x9f5   :  { %v4842_v32 = vpop.eup %4841 }
 0x9f6   :  { %v4844_v30 = vpop.eup %4843  ;;  %v2963_v6 = vmul.f32 %v4842_v32, %v4836_v40  ;;  %v7478_v40 = vld [vmem:[#allocation3 + $0xc4] ss:$16 sps:$4 sm:$0xff]   ;;  %v7487_v32 = vld [vmem:[#allocation3 + $0xc8] ss:$16 sps:$4 sm:$0xff]  }
 0x9f7   :  { %v4846_v53 = vpop.eup %4845  ;;  %v2961_v34 = vmul.f32 %v4844_v30, %v7301_v55  ;;  %v7490_v30 = vld [vmem:[#allocation3 + $0xe4] ss:$16 sps:$4 sm:$0xff]  }
 0x9f8   :  { %v4848_v47 = vpop.eup %4847  ;;  %v2956_v58 = vadd.f32 1.0, %v4846_v53  ;;  %v7499_v53 = vld [vmem:[#allocation3 + $0xe8] ss:$16 sps:$4 sm:$0xff]  }
 0x9f9   :  { %v7393_v19 = vadd.f32 %v2963_v6, %v2961_v34  ;;  %v2964_v18 = vmul.f32 %v4848_v47, %v4840_v7  ;;  %v4850_v38 = vpop.eup %4849  ;;  %v7484_v7 = vld [vmem:[#allocation3 + $0xc0] ss:$16 sps:$4 sm:$0xff]   ;;  %v7493_v6 = vld [vmem:[#allocation3 + $0xec] ss:$16 sps:$4 sm:$0xff]   ;;  %v7502_v34 = vld [vmem:[#allocation3 + $0x104] ss:$16 sps:$4 sm:$0xff]  }
 0x9fa   :  { %v2962_v43 = vmul.f32 %v4850_v38, %v7305_v13  ;;  %v4852_v62 = vpop.eup %4851  ;;  %v7505_v47 = vld [vmem:[#allocation3 + $0x10c] ss:$16 sps:$4 sm:$0xff]   ;;  %v7511_v38 = vld [vmem:[#allocation3 + $0x108] ss:$16 sps:$4 sm:$0xff]  }
 0x9fb   :  { %4853 = vtanh.f32 %v7393_v19 }
 0x9fc   :  { %v7397_v52 = vadd.f32 %v2964_v18, %v2962_v43  ;;  %4855 = vrcp.f32 %v2956_v58  ;;  %v7508_v18 = vld [vmem:[#allocation3 + $0x100] ss:$16 sps:$4 sm:$0xff]   ;;  %v7514_v58 = vld [vmem:[#allocation3 + $0x124] ss:$16 sps:$4 sm:$0xff]   ;;  %v7517_v43 = vld [vmem:[#allocation3 + $0x12c] ss:$16 sps:$4 sm:$0xff]  }
 0x9fe   :  { %4857 = vtanh.f32 %v7397_v52 }
 0xa05   :  { %v4854_v5 = vpop.eup %4853 }
 0xa06   :  { %v2969_v0 = vmul.f32 %v4854_v5, %v4852_v62  ;;  %v4856_v55 = vpop.eup %4855  ;;  %v7520_v62 = vld [vmem:[#allocation3 + $0x120] ss:$16 sps:$4 sm:$0xff]   ;;  %v7523_v5 = vld [vmem:[#allocation3 + $0x128] ss:$16 sps:$4 sm:$0xff]  }
 0xa07   :  { %8755 = vst [vmem:[#allocation118_spill] sm:$0xff] %v7523_v5 }
 0xa08   :  { %v2971_v9 = vpack.c.bf16 %v2969_v0, %v2969_v0  ;;  %v4858_v60 = vpop.eup %4857  ;;  %v7526_v0 = vld [vmem:[#allocation3 + $0x144] ss:$16 sps:$4 sm:$0xff]  }
 0xa09   :  { %v2970_v39 = vmul.f32 %v4858_v60, %v4856_v55  ;;  %8756 = vst [vmem:[#allocation119_spill] sm:$0xff] %v7526_v0  ;;  %v7529_v55 = vld [vmem:[#allocation3 + $0x14c] ss:$16 sps:$4 sm:$0xff]   ;;  %v7535_v60 = vld [vmem:[#allocation3 + $0x148] ss:$16 sps:$4 sm:$0xff]  }
 0xa0a   :  { %4378 = vst [vmem:[%s8190_s4 + $0x20] sm:$0xf] %v2971_v9  ;;  %v2980_v50 = vsel %vm1170_vm0, %v2971_v9, %v5886_v1  ;;  %8757 = vst [vmem:[#allocation120_spill] sm:$0xff] %v7529_v55  ;;  %v7532_v9 = vld [vmem:[#allocation3 + $0x140] ss:$16 sps:$4 sm:$0xff]  }
 0xa0b   :  { %v2974_v24 = vpack.c.bf16 %v2970_v39, %v2970_v39  ;;  %8758 = vst [vmem:[#allocation121_spill] sm:$0xff] %v7532_v9  ;;  %8759 = vst [vmem:[#allocation122_spill] sm:$0xff] %v7535_v60  ;;  %v7538_v39 = vld [vmem:[#allocation3 + $0x164] ss:$16 sps:$4 sm:$0xff]  }
 0xa0c   :  { %8760 = vst [vmem:[#allocation136_spill] sm:$0xff] %v7538_v39 }
 0xa0d   :  { %4379 = vst [vmem:[%s8191_s5 + $0x1c] sm:$0xf] %v2974_v24  ;;  %v2978_v13 = vrot.slane %v2974_v24, 4  ;;  %v7541_v24 = vld [vmem:[#allocation3 + $0x16c] ss:$16 sps:$4 sm:$0xff]  }
 0xa0e   :  { %8761 = vst [vmem:[#allocation137_spill] sm:$0xff] %v7541_v24 }
 0xa0f   :  { %4381 = vmatprep.mubr.msk.bf16.mxu0 %vm5890_vm1, %v2978_v13  ;;  %4383 = vmatprep.mubr.msk.bf16.mxu1 %vm5890_vm1, %v2978_v13  ;;  %v7544_v13 = vld [vmem:[#allocation3 + $0x160] ss:$16 sps:$4 sm:$0xff]  }
 0xa10   :  { %3018 = vmatmul.mubr.bf16.vlgmr.msra.gmra.mrb[100].mxu0 %v2980_v50  ;;  %3061 = vmatmul.mubr.bf16.vlgmr.msra.gmra.mrb[100].mxu1 %v2980_v50  ;;  %8762 = vst [vmem:[#allocation138_spill] sm:$0xff] %v7544_v13  ;;  %v7547_v50 = vld [vmem:[#allocation3 + $0x168] ss:$16 sps:$4 sm:$0xff]  }
 0xa11   :  { %3150 = vmatpush1.bf16.msra.mxu0 %v7412_v14  ;;  %3193 = vmatpush1.bf16.msra.mxu1 %v7415_v22  ;;  %8763 = vst [vmem:[#allocation139_spill] sm:$0xff] %v7547_v50 }
 0xa12   :  { %3151 = vmatprep.subr.bf16.mxu0 %v7418_v26  ;;  %3194 = vmatprep.subr.bf16.mxu1 %v7421_v27 }
 0xa15   :  { %3152 = vmatpush1.bf16.msra.mxu0 %v7424_v8  ;;  %3195 = vmatpush1.bf16.msra.mxu1 %v7427_v46 }
 0xa16   :  { %3153 = vmatprep.subr.bf16.mxu0 %v7430_v3  ;;  %3196 = vmatprep.subr.bf16.mxu1 %v7433_v12 }
 0xa19   :  { %3154 = vmatpush1.bf16.msra.mxu0 %v7436_v41  ;;  %3197 = vmatpush1.bf16.msra.mxu1 %v7439_v10 }
 0xa1a   :  { %3155 = vmatprep.subr.bf16.mxu0 %v7442_v42  ;;  %3198 = vmatprep.subr.bf16.mxu1 %v7445_v54 }
 0xa1d   :  { %3156 = vmatpush1.bf16.msra.mxu0 %v7448_v17  ;;  %3199 = vmatpush1.bf16.msra.mxu1 %v7451_v36 }
 0xa1e   :  { %3157 = vmatprep.subr.bf16.mxu0 %v7454_v45  ;;  %3200 = vmatprep.subr.bf16.mxu1 %v7457_v4 }
 0xa21   :  { %3158 = vmatpush1.bf16.msra.mxu0 %v7460_v63  ;;  %3201 = vmatpush1.bf16.msra.mxu1 %v7463_v59 }
 0xa22   :  { %3159 = vmatprep.subr.bf16.mxu0 %v7466_v23  ;;  %3202 = vmatprep.subr.bf16.mxu1 %v7469_v35 }
 0xa25   :  { %3160 = vmatpush1.bf16.msra.mxu0 %v7472_v33  ;;  %3203 = vmatpush1.bf16.msra.mxu1 %v7475_v15 }
 0xa26   :  { %3161 = vmatprep.subr.bf16.mxu0 %v7478_v40  ;;  %3204 = vmatprep.subr.bf16.mxu1 %v7481_v57 }
 0xa29   :  { %3162 = vmatpush1.bf16.msra.mxu0 %v7484_v7  ;;  %3205 = vmatpush1.bf16.msra.mxu1 %v7487_v32 }
 0xa2a   :  { %3163 = vmatprep.subr.bf16.mxu0 %v7490_v30  ;;  %3206 = vmatprep.subr.bf16.mxu1 %v7493_v6 }
 0xa2d   :  { %3164 = vmatpush1.bf16.msra.mxu0 %v7496_v48  ;;  %3207 = vmatpush1.bf16.msra.mxu1 %v7499_v53 }
 0xa2e   :  { %3165 = vmatprep.subr.bf16.mxu0 %v7502_v34  ;;  %3208 = vmatprep.subr.bf16.mxu1 %v7505_v47 }
 0xa31   :  { %3166 = vmatpush1.bf16.msra.mxu0 %v7508_v18  ;;  %3209 = vmatpush1.bf16.msra.mxu1 %v7511_v38 }
 0xa32   :  { %3167 = vmatprep.subr.bf16.mxu0 %v7514_v58  ;;  %3210 = vmatprep.subr.bf16.mxu1 %v7517_v43 }
 0xa35   :  { %3168 = vmatpush1.bf16.msra.mxu0 %v7520_v62  ;;  %3211 = vmatpush1.bf16.msra.mxu1 %v7523_v5  ;;  %v8774_v5 = vld [vmem:[#allocation87_spill] sm:$0xff] }
 0xa36   :  { %3169 = vmatprep.subr.bf16.mxu0 %v7526_v0  ;;  %3212 = vmatprep.subr.bf16.mxu1 %v7529_v55 }
 0xa39   :  { %3170 = vmatpush1.bf16.msra.mxu0 %v7532_v9  ;;  %3213 = vmatpush1.bf16.msra.mxu1 %v7535_v60  ;;  %v7550_v9 = vld [vmem:[#allocation3 + $0x184] ss:$16 sps:$4 sm:$0xff]   ;;  %v7553_v60 = vld [vmem:[#allocation3 + $0x18c] ss:$16 sps:$4 sm:$0xff]  }
 0xa3a   :  { %3171 = vmatprep.subr.bf16.mxu0 %v7538_v39  ;;  %3214 = vmatprep.subr.bf16.mxu1 %v7541_v24  ;;  %8764 = vst [vmem:[#allocation140_spill] sm:$0xff] %v7550_v9  ;;  %8765 = vst [vmem:[#allocation141_spill] sm:$0xff] %v7553_v60  ;;  %v8773_v24 = vld [vmem:[#allocation88_spill] sm:$0xff] }
 0xa3d   :  { %3172 = vmatpush1.bf16.msra.mxu0 %v7544_v13  ;;  %3215 = vmatpush1.bf16.msra.mxu1 %v7547_v50 }
 0xa3e   :  { %3173 = vmatprep.subr.bf16.mxu0 %v7550_v9  ;;  %3216 = vmatprep.subr.bf16.mxu1 %v7553_v60 }
 0xa41   :  { %3174 = vmatpush1.bf16.msra.mxu0 %v8731_v37  ;;  %3217 = vmatpush1.bf16.msra.mxu1 %v8732_v61  ;;  %v7570_v37 = vld [vmem:[#allocation3 + $0x4] ss:$16 sps:$4 sm:$0xff]   ;;  %v7573_v61 = vld [vmem:[#allocation3 + $0xc] ss:$16 sps:$4 sm:$0xff]  }
 0xa42   :  { %3175 = vmatprep.subr.bf16.mxu0 %v8733_v11  ;;  %3218 = vmatprep.subr.bf16.mxu1 %v8734_v25  ;;  %8766 = vst [vmem:[#allocation142_spill] sm:$0xff] %v7570_v37  ;;  %8767 = vst [vmem:[#allocation143_spill] sm:$0xff] %v7573_v61 }
 0xa45   :  { %3176 = vmatpush1.bf16.msra.mxu0 %v8735_v29  ;;  %3219 = vmatpush1.bf16.msra.mxu1 %v8736_v31  ;;  %v8768_v29 = vld [vmem:[#allocation33_spill] sm:$0xff] }
 0xa46   :  { %3177 = vmatprep.subr.bf16.mxu0 %v8737_v21  ;;  %3220 = vmatprep.subr.bf16.mxu1 %v8738_v51  ;;  %v8769_v21 = vld [vmem:[#allocation36_spill] sm:$0xff] }
 0xa49   :  { %3178 = vmatpush1.bf16.msra.mxu0 %v8739_v49  ;;  %3221 = vmatpush1.bf16.msra.mxu1 %v8740_v44 }
 0xa4a   :  { %3179 = vmatprep.subr.bf16.mxu0 %v8741_v20  ;;  %3222 = vmatprep.subr.bf16.mxu1 %v8742_v16  ;;  %v8770_v20 = vld [vmem:[#allocation35_spill] sm:$0xff] }
 0xa4d   :  { %3180 = vmatpush1.bf16.msra.mxu0 %v8743_v56  ;;  %3223 = vmatpush1.bf16.msra.mxu1 %v8744_v28  ;;  %v8771_v56 = vld [vmem:[#allocation37_spill] sm:$0xff] }
 0xa4e   :  { %3313 = vmatprep.subr.bf16.mxu0 %v7570_v37  ;;  %3356 = vmatprep.subr.bf16.mxu1 %v7573_v61  ;;  %v8772_v37 = vld [vmem:[#allocation86_spill] sm:$0xff] }
 0xae3   :  { %v3019_v11 = vpop.f32.mrb[100].mxu0  ;;  %v3062_v25 = vpop.f32.mrb[100].mxu1 }
 0xae4   :  { %v3079_v31 = vadd.f32 %v3019_v11, %v8768_v29  ;;  %v3081_v51 = vadd.f32 %v3062_v25, %v8769_v21  ;;  %v3021_v49 = vpop.f32.mrb[101].mxu0  ;;  %v3064_v44 = vpop.f32.mrb[101].mxu1  ;;  %v8775_v29 = vld [vmem:[#allocation90_spill] sm:$0xff] }
 0xae5   :  { %v3080_v16 = vadd.f32 %v3021_v49, %v8770_v20  ;;  %v3082_v28 = vadd.f32 %v3064_v44, %v8771_v56  ;;  %v3023_v60 = vpop.f32.mrb[102].mxu0  ;;  %v3066_v9 = vpop.f32.mrb[102].mxu1 }
 0xae6   :  { %v4384_v50 = vmul.f32 -1.442695, %v3079_v31  ;;  %v3083_v13 = vadd.f32 %v3023_v60, %v8772_v37  ;;  %v3085_v39 = vadd.f32 %v3066_v9, %v8773_v24  ;;  %v3025_v61 = vpop.f32.mrb[103].mxu0  ;;  %v3068_v55 = vpop.f32.mrb[103].mxu1 }
 0xae7   :  { %v4386_v0 = vmul.f32 -1.442695, %v3080_v16  ;;  %v3084_v11 = vadd.f32 %v3025_v61, %v8774_v5  ;;  %v3086_v25 = vadd.f32 %v3068_v55, %v8775_v29  ;;  %v4388_v44 = vmul.f32 -1.442695, %v3082_v28 }
 0xae8   :  { %4859 = vpow2.f32 %v4384_v50  ;;  %v4385_v21 = vmul.f32 -1.442695, %v3083_v13 }
 0xae9   :  { %4861 = vpow2.f32 %v4386_v0  ;;  %v4387_v49 = vmul.f32 -1.442695, %v3084_v11  ;;  %v4389_v9 = vmul.f32 -1.442695, %v3086_v25 }
 0xaea   :  { %4863 = vpow2.f32 %v4385_v21 }
 0xaeb   :  { %4865 = vpow2.f32 %v4387_v49 }
 0xaec   :  { %4867 = vtanh.f32 %v3081_v51 }
 0xaed   :  { %4869 = vpow2.f32 %v4388_v44 }
 0xaee   :  { %4871 = vtanh.f32 %v3085_v39 }
 0xaf2   :  { %v4860_v20 = vpop.eup %4859 }
 0xaf3   :  { %v4862_v31 = vpop.eup %4861  ;;  %v3093_v60 = vadd.f32 1.0, %v4860_v20 }
 0xaf4   :  { %v3105_v24 = vadd.f32 1.0, %v4862_v31  ;;  %v4864_v37 = vpop.eup %4863 }
 0xaf5   :  { %4873 = vrcp.f32 %v3093_v60  ;;  %v3094_v5 = vadd.f32 1.0, %v4864_v37  ;;  %v4866_v55 = vpop.eup %4865 }
 0xaf6   :  { %4875 = vrcp.f32 %v3105_v24  ;;  %v3106_v0 = vadd.f32 1.0, %v4866_v55  ;;  %v4868_v13 = vpop.eup %4867 }
 0xaf7   :  { %4877 = vpow2.f32 %v4389_v9  ;;  %v4870_v50 = vpop.eup %4869 }
 0xaf8   :  { %4879 = vrcp.f32 %v3094_v5  ;;  %v4872_v61 = vpop.eup %4871  ;;  %v3119_v28 = vadd.f32 1.0, %v4870_v50  ;;  %v8776_v50 = vld [vmem:[#allocation118_spill] sm:$0xff] }
 0xaf9   :  { %4881 = vrcp.f32 %v3106_v0 }
 0xafa   :  { %4883 = vrcp.f32 %v3119_v28  ;;  %v8781_v28 = vld [vmem:[#allocation136_spill] sm:$0xff] }
 0xaff   :  { %v4874_v16 = vpop.eup %4873 }
 0xb00   :  { %v4876_v51 = vpop.eup %4875  ;;  %v3127_v56 = vmul.f32 %v4874_v16, %v4868_v13  ;;  %v8778_v16 = vld [vmem:[#allocation120_spill] sm:$0xff] }
 0xb01   :  { %v4878_v11 = vpop.eup %4877  ;;  %v3125_v29 = vmul.f32 %v4876_v51, %v7393_v19  ;;  %v8779_v51 = vld [vmem:[#allocation121_spill] sm:$0xff] }
 0xb02   :  { %v4880_v39 = vpop.eup %4879  ;;  %v3120_v44 = vadd.f32 1.0, %v4878_v11  ;;  %v8782_v11 = vld [vmem:[#allocation137_spill] sm:$0xff] }
 0xb03   :  { %v7585_v25 = vadd.f32 %v3127_v56, %v3125_v29  ;;  %v3128_v21 = vmul.f32 %v4880_v39, %v4872_v61  ;;  %v4882_v49 = vpop.eup %4881  ;;  %v8777_v61 = vld [vmem:[#allocation119_spill] sm:$0xff]  ;;  %v8780_v56 = vld [vmem:[#allocation122_spill] sm:$0xff] }
 0xb04   :  { %v3126_v20 = vmul.f32 %v4882_v49, %v7397_v52  ;;  %v4884_v60 = vpop.eup %4883  ;;  %v8783_v29 = vld [vmem:[#allocation138_spill] sm:$0xff]  ;;  %v8784_v39 = vld [vmem:[#allocation139_spill] sm:$0xff]  ;;  %v8786_v49 = vld [vmem:[#allocation141_spill] sm:$0xff] }
 0xb05   :  { %4885 = vtanh.f32 %v7585_v25 }
 0xb06   :  { %v7589_v31 = vadd.f32 %v3128_v21, %v3126_v20  ;;  %4887 = vrcp.f32 %v3120_v44  ;;  %v8785_v21 = vld [vmem:[#allocation140_spill] sm:$0xff]  ;;  %v7655_v20 = vld [vmem:[#allocation3 + $0x188] ss:$16 sps:$4 sm:$0xff]  }
 0xb07   :  { %v7652_v44 = vld [vmem:[#allocation3 + $0x180] ss:$16 sps:$4 sm:$0xff]   ;;  %8788 = vst [vmem:[#allocation134_spill] sm:$0xff] %v7655_v20 }
 0xb08   :  { %4889 = vtanh.f32 %v7589_v31  ;;  %8787 = vst [vmem:[#allocation144_spill] sm:$0xff] %v7652_v44 }
 0xb0f   :  { %v4886_v9 = vpop.eup %4885 }
 0xb10   :  { %v3133_v24 = vmul.f32 %v4886_v9, %v4884_v60  ;;  %v4888_v19 = vpop.eup %4887  ;;  %v7658_v60 = vld [vmem:[#allocation3 + $0x1a4] ss:$16 sps:$4 sm:$0xff]   ;;  %v7661_v9 = vld [vmem:[#allocation3 + $0x1ac] ss:$16 sps:$4 sm:$0xff]  }
 0xb11   :  { %8789 = vst [vmem:[#allocation135_spill] sm:$0xff] %v7658_v60  ;;  %8790 = vst [vmem:[#allocation14_spill] sm:$0xff] %v7661_v9 }
 0xb12   :  { %v3135_v37 = vpack.c.bf16 %v3133_v24, %v3133_v24  ;;  %v4890_v5 = vpop.eup %4889  ;;  %v7664_v24 = vld [vmem:[#allocation3 + $0x1a0] ss:$16 sps:$4 sm:$0xff]  }
 0xb13   :  { %v3134_v55 = vmul.f32 %v4890_v5, %v4888_v19  ;;  %8791 = vst [vmem:[#allocation16_spill] sm:$0xff] %v7664_v24  ;;  %v7667_v19 = vld [vmem:[#allocation3 + $0x1a8] ss:$16 sps:$4 sm:$0xff]   ;;  %v7673_v5 = vld [vmem:[#allocation3 + $0x1cc] ss:$16 sps:$4 sm:$0xff]  }
 0xb14   :  { %4390 = vst [vmem:[%s8190_s4 + $0x24] sm:$0xf] %v3135_v37  ;;  %v3144_v13 = vsel %vm1170_vm0, %v3135_v37, %v5886_v1  ;;  %8792 = vst [vmem:[#allocation15_spill] sm:$0xff] %v7667_v19  ;;  %v7670_v37 = vld [vmem:[#allocation3 + $0x1c4] ss:$16 sps:$4 sm:$0xff]  }
 0xb15   :  { %v3138_v0 = vpack.c.bf16 %v3134_v55, %v3134_v55  ;;  %8793 = vst [vmem:[#allocation18_spill] sm:$0xff] %v7670_v37  ;;  %8794 = vst [vmem:[#allocation105_spill] sm:$0xff] %v7673_v5  ;;  %v7676_v55 = vld [vmem:[#allocation3 + $0x1c0] ss:$16 sps:$4 sm:$0xff]  }
 0xb16   :  { %8795 = vst [vmem:[#allocation108_spill] sm:$0xff] %v7676_v55 }
 0xb17   :  { %4391 = vst [vmem:[%s8191_s5 + $0x18] sm:$0xf] %v3138_v0  ;;  %v3142_v52 = vrot.slane %v3138_v0, 4  ;;  %v7679_v0 = vld [vmem:[#allocation3 + $0x1c8] ss:$16 sps:$4 sm:$0xff]  }
 0xb18   :  { %8796 = vst [vmem:[#allocation107_spill] sm:$0xff] %v7679_v0 }
 0xb19   :  { %4393 = vmatprep.mubr.msk.bf16.mxu0 %vm5890_vm1, %v3142_v52  ;;  %4395 = vmatprep.mubr.msk.bf16.mxu1 %vm5890_vm1, %v3142_v52  ;;  %v7682_v52 = vld [vmem:[#allocation3 + $0x1e4] ss:$16 sps:$4 sm:$0xff]  }
 0xb1a   :  { %3182 = vmatmul.mubr.bf16.vlgmr.msra.gmra.mrb[104].mxu0 %v3144_v13  ;;  %3225 = vmatmul.mubr.bf16.vlgmr.msra.gmra.mrb[104].mxu1 %v3144_v13  ;;  %8797 = vst [vmem:[#allocation109_spill] sm:$0xff] %v7682_v52  ;;  %v7685_v13 = vld [vmem:[#allocation3 + $0x1ec] ss:$16 sps:$4 sm:$0xff]  }
 0xb1b   :  { %3314 = vmatpush1.bf16.msra.mxu0 %v7412_v14  ;;  %3357 = vmatpush1.bf16.msra.mxu1 %v7415_v22  ;;  %8798 = vst [vmem:[#allocation17_spill] sm:$0xff] %v7685_v13 }
 0xb1c   :  { %3315 = vmatprep.subr.bf16.mxu0 %v7418_v26  ;;  %3358 = vmatprep.subr.bf16.mxu1 %v7421_v27 }
 0xb1f   :  { %3316 = vmatpush1.bf16.msra.mxu0 %v7424_v8  ;;  %3359 = vmatpush1.bf16.msra.mxu1 %v7427_v46 }
 0xb20   :  { %3317 = vmatprep.subr.bf16.mxu0 %v7430_v3  ;;  %3360 = vmatprep.subr.bf16.mxu1 %v7433_v12 }
 0xb23   :  { %3318 = vmatpush1.bf16.msra.mxu0 %v7436_v41  ;;  %3361 = vmatpush1.bf16.msra.mxu1 %v7439_v10 }
 0xb24   :  { %3319 = vmatprep.subr.bf16.mxu0 %v7442_v42  ;;  %3362 = vmatprep.subr.bf16.mxu1 %v7445_v54 }
 0xb27   :  { %3320 = vmatpush1.bf16.msra.mxu0 %v7448_v17  ;;  %3363 = vmatpush1.bf16.msra.mxu1 %v7451_v36 }
 0xb28   :  { %3321 = vmatprep.subr.bf16.mxu0 %v7454_v45  ;;  %3364 = vmatprep.subr.bf16.mxu1 %v7457_v4 }
 0xb2b   :  { %3322 = vmatpush1.bf16.msra.mxu0 %v7460_v63  ;;  %3365 = vmatpush1.bf16.msra.mxu1 %v7463_v59 }
 0xb2c   :  { %3323 = vmatprep.subr.bf16.mxu0 %v7466_v23  ;;  %3366 = vmatprep.subr.bf16.mxu1 %v7469_v35 }
 0xb2f   :  { %3324 = vmatpush1.bf16.msra.mxu0 %v7472_v33  ;;  %3367 = vmatpush1.bf16.msra.mxu1 %v7475_v15 }
 0xb30   :  { %3325 = vmatprep.subr.bf16.mxu0 %v7478_v40  ;;  %3368 = vmatprep.subr.bf16.mxu1 %v7481_v57 }
 0xb33   :  { %3326 = vmatpush1.bf16.msra.mxu0 %v7484_v7  ;;  %3369 = vmatpush1.bf16.msra.mxu1 %v7487_v32 }
 0xb34   :  { %3327 = vmatprep.subr.bf16.mxu0 %v7490_v30  ;;  %3370 = vmatprep.subr.bf16.mxu1 %v7493_v6 }
 0xb37   :  { %3328 = vmatpush1.bf16.msra.mxu0 %v7496_v48  ;;  %3371 = vmatpush1.bf16.msra.mxu1 %v7499_v53 }
 0xb38   :  { %3329 = vmatprep.subr.bf16.mxu0 %v7502_v34  ;;  %3372 = vmatprep.subr.bf16.mxu1 %v7505_v47 }
 0xb3b   :  { %3330 = vmatpush1.bf16.msra.mxu0 %v7508_v18  ;;  %3373 = vmatpush1.bf16.msra.mxu1 %v7511_v38 }
 0xb3c   :  { %3331 = vmatprep.subr.bf16.mxu0 %v7514_v58  ;;  %3374 = vmatprep.subr.bf16.mxu1 %v7517_v43 }
 0xb3f   :  { %3332 = vmatpush1.bf16.msra.mxu0 %v7520_v62  ;;  %3375 = vmatpush1.bf16.msra.mxu1 %v8776_v50  ;;  %v8809_v50 = vld [vmem:[#allocation83_spill] sm:$0xff] }
 0xb40   :  { %3333 = vmatprep.subr.bf16.mxu0 %v8777_v61  ;;  %3376 = vmatprep.subr.bf16.mxu1 %v8778_v16 }
 0xb43   :  { %3334 = vmatpush1.bf16.msra.mxu0 %v8779_v51  ;;  %3377 = vmatpush1.bf16.msra.mxu1 %v8780_v56 }
 0xb44   :  { %3335 = vmatprep.subr.bf16.mxu0 %v8781_v28  ;;  %3378 = vmatprep.subr.bf16.mxu1 %v8782_v11 }
 0xb47   :  { %3336 = vmatpush1.bf16.msra.mxu0 %v8783_v29  ;;  %3379 = vmatpush1.bf16.msra.mxu1 %v8784_v39  ;;  %v8806_v39 = vld [vmem:[#allocation42_spill] sm:$0xff] }
 0xb48   :  { %3337 = vmatprep.subr.bf16.mxu0 %v8785_v21  ;;  %3380 = vmatprep.subr.bf16.mxu1 %v8786_v49  ;;  %v8805_v49 = vld [vmem:[#allocation39_spill] sm:$0xff] }
 0xb4b   :  { %3338 = vmatpush1.bf16.msra.mxu0 %v7652_v44  ;;  %3381 = vmatpush1.bf16.msra.mxu1 %v7655_v20 }
 0xb4c   :  { %3339 = vmatprep.subr.bf16.mxu0 %v7658_v60  ;;  %3382 = vmatprep.subr.bf16.mxu1 %v7661_v9  ;;  %v8803_v9 = vld [vmem:[#allocation38_spill] sm:$0xff]  ;;  %v8804_v60 = vld [vmem:[#allocation40_spill] sm:$0xff] }
 0xb4f   :  { %3340 = vmatpush1.bf16.msra.mxu0 %v7664_v24  ;;  %3383 = vmatpush1.bf16.msra.mxu1 %v7667_v19  ;;  %v8802_v19 = vld [vmem:[#allocation143_spill] sm:$0xff] }
 0xb50   :  { %3341 = vmatprep.subr.bf16.mxu0 %v7670_v37  ;;  %3384 = vmatprep.subr.bf16.mxu1 %v7673_v5  ;;  %v7688_v37 = vld [vmem:[#allocation3 + $0x1e0] ss:$16 sps:$4 sm:$0xff]   ;;  %v7691_v5 = vld [vmem:[#allocation3 + $0x1e8] ss:$16 sps:$4 sm:$0xff]  }
 0xb51   :  { %8799 = vst [vmem:[#allocation20_spill] sm:$0xff] %v7688_v37  ;;  %8800 = vst [vmem:[#allocation19_spill] sm:$0xff] %v7691_v5 }
 0xb53   :  { %3342 = vmatpush1.bf16.msra.mxu0 %v7676_v55  ;;  %3385 = vmatpush1.bf16.msra.mxu1 %v7679_v0  ;;  %v8801_v55 = vld [vmem:[#allocation142_spill] sm:$0xff] }
 0xb54   :  { %3343 = vmatprep.subr.bf16.mxu0 %v7682_v52  ;;  %3386 = vmatprep.subr.bf16.mxu1 %v7685_v13 }
 0xb57   :  { %3344 = vmatpush1.bf16.msra.mxu0 %v7688_v37  ;;  %3387 = vmatpush1.bf16.msra.mxu1 %v7691_v5  ;;  %v8807_v5 = vld [vmem:[#allocation81_spill] sm:$0xff] }
 0xb58   :  { %3477 = vmatprep.subr.bf16.mxu0 %v8801_v55  ;;  %3520 = vmatprep.subr.bf16.mxu1 %v8802_v19  ;;  %v8808_v55 = vld [vmem:[#allocation84_spill] sm:$0xff] }
 0xbed   :  { %v3183_v0 = vpop.f32.mrb[104].mxu0  ;;  %v3226_v24 = vpop.f32.mrb[104].mxu1 }
 0xbee   :  { %v3243_v52 = vadd.f32 %v3183_v0, %v8803_v9  ;;  %v3245_v20 = vadd.f32 %v3226_v24, %v8804_v60  ;;  %v3185_v44 = vpop.f32.mrb[105].mxu0  ;;  %v3228_v13 = vpop.f32.mrb[105].mxu1  ;;  %v8810_v0 = vld [vmem:[#allocation85_spill] sm:$0xff] }
 0xbef   :  { %v3244_v21 = vadd.f32 %v3185_v44, %v8805_v49  ;;  %v3246_v37 = vadd.f32 %v3228_v13, %v8806_v39  ;;  %v3187_v29 = vpop.f32.mrb[106].mxu0  ;;  %v3230_v11 = vpop.f32.mrb[106].mxu1 }
 0xbf0   :  { %v4396_v28 = vmul.f32 -1.442695, %v3243_v52  ;;  %v3247_v56 = vadd.f32 %v3187_v29, %v8807_v5  ;;  %v3249_v51 = vadd.f32 %v3230_v11, %v8808_v55  ;;  %v3189_v19 = vpop.f32.mrb[107].mxu0  ;;  %v3232_v16 = vpop.f32.mrb[107].mxu1 }
 0xbf1   :  { %v4398_v61 = vmul.f32 -1.442695, %v3244_v21  ;;  %v3248_v9 = vadd.f32 %v3189_v19, %v8809_v50  ;;  %v3250_v60 = vadd.f32 %v3232_v16, %v8810_v0  ;;  %v4400_v39 = vmul.f32 -1.442695, %v3246_v37 }
 0xbf2   :  { %4891 = vpow2.f32 %v4396_v28  ;;  %v4397_v24 = vmul.f32 -1.442695, %v3247_v56 }
 0xbf3   :  { %4893 = vpow2.f32 %v4398_v61  ;;  %v4399_v49 = vmul.f32 -1.442695, %v3248_v9  ;;  %v4401_v11 = vmul.f32 -1.442695, %v3250_v60 }
 0xbf4   :  { %4895 = vpow2.f32 %v4397_v24 }
 0xbf5   :  { %4897 = vpow2.f32 %v4399_v49 }
 0xbf6   :  { %4899 = vtanh.f32 %v3245_v20 }
 0xbf7   :  { %4901 = vpow2.f32 %v4400_v39 }
 0xbf8   :  { %4903 = vtanh.f32 %v3249_v51 }
 0xbfc   :  { %v4892_v44 = vpop.eup %4891 }
 0xbfd   :  { %v4894_v52 = vpop.eup %4893  ;;  %v3257_v29 = vadd.f32 1.0, %v4892_v44 }
 0xbfe   :  { %v3269_v5 = vadd.f32 1.0, %v4894_v52  ;;  %v4896_v21 = vpop.eup %4895 }
 0xbff   :  { %4905 = vrcp.f32 %v3257_v29  ;;  %v3258_v50 = vadd.f32 1.0, %v4896_v21  ;;  %v4898_v16 = vpop.eup %4897 }
 0xc00   :  { %4907 = vrcp.f32 %v3269_v5  ;;  %v3270_v61 = vadd.f32 1.0, %v4898_v16  ;;  %v4900_v56 = vpop.eup %4899 }
 0xc01   :  { %4909 = vpow2.f32 %v4401_v11  ;;  %v4902_v28 = vpop.eup %4901 }
 0xc02   :  { %4911 = vrcp.f32 %v3258_v50  ;;  %v4904_v19 = vpop.eup %4903  ;;  %v3283_v13 = vadd.f32 1.0, %v4902_v28  ;;  %v8811_v28 = vld [vmem:[#allocation118_spill] sm:$0xff] }
 0xc03   :  { %4913 = vrcp.f32 %v3270_v61 }
 0xc04   :  { %4915 = vrcp.f32 %v3283_v13  ;;  %v8816_v13 = vld [vmem:[#allocation136_spill] sm:$0xff] }
 0xc09   :  { %v4906_v37 = vpop.eup %4905 }
 0xc0a   :  { %v4908_v20 = vpop.eup %4907  ;;  %v3291_v55 = vmul.f32 %v4906_v37, %v4900_v56  ;;  %v8813_v37 = vld [vmem:[#allocation120_spill] sm:$0xff] }
 0xc0b   :  { %v4910_v9 = vpop.eup %4909  ;;  %v3289_v0 = vmul.f32 %v4908_v20, %v7585_v25  ;;  %v8814_v20 = vld [vmem:[#allocation121_spill] sm:$0xff] }
 0xc0c   :  { %v4912_v51 = vpop.eup %4911  ;;  %v3284_v39 = vadd.f32 1.0, %v4910_v9  ;;  %v8817_v9 = vld [vmem:[#allocation137_spill] sm:$0xff] }
 0xc0d   :  { %v7705_v60 = vadd.f32 %v3291_v55, %v3289_v0  ;;  %v3292_v24 = vmul.f32 %v4912_v51, %v4904_v19  ;;  %v4914_v49 = vpop.eup %4913  ;;  %v8812_v19 = vld [vmem:[#allocation119_spill] sm:$0xff]  ;;  %v8815_v55 = vld [vmem:[#allocation122_spill] sm:$0xff] }
 0xc0e   :  { %v3290_v44 = vmul.f32 %v4914_v49, %v7589_v31  ;;  %v4916_v29 = vpop.eup %4915  ;;  %v8818_v0 = vld [vmem:[#allocation138_spill] sm:$0xff]  ;;  %v8819_v51 = vld [vmem:[#allocation139_spill] sm:$0xff]  ;;  %v8821_v49 = vld [vmem:[#allocation141_spill] sm:$0xff] }
 0xc0f   :  { %4917 = vtanh.f32 %v7705_v60 }
 0xc10   :  { %v7709_v52 = vadd.f32 %v3292_v24, %v3290_v44  ;;  %4919 = vrcp.f32 %v3284_v39  ;;  %v8820_v24 = vld [vmem:[#allocation140_spill] sm:$0xff]  ;;  %v8823_v44 = vld [vmem:[#allocation134_spill] sm:$0xff] }
 0xc11   :  { %v8822_v39 = vld [vmem:[#allocation144_spill] sm:$0xff] }
 0xc12   :  { %4921 = vtanh.f32 %v7709_v52 }
 0xc19   :  { %v4918_v11 = vpop.eup %4917 }
 0xc1a   :  { %v3297_v5 = vmul.f32 %v4918_v11, %v4916_v29  ;;  %v4920_v25 = vpop.eup %4919  ;;  %v8824_v29 = vld [vmem:[#allocation135_spill] sm:$0xff]  ;;  %v8825_v11 = vld [vmem:[#allocation14_spill] sm:$0xff] }
 0xc1c   :  { %v3299_v21 = vpack.c.bf16 %v3297_v5, %v3297_v5  ;;  %v4922_v50 = vpop.eup %4921  ;;  %v8826_v5 = vld [vmem:[#allocation16_spill] sm:$0xff] }
 0xc1d   :  { %v3298_v16 = vmul.f32 %v4922_v50, %v4920_v25  ;;  %v8827_v25 = vld [vmem:[#allocation15_spill] sm:$0xff]  ;;  %v8829_v50 = vld [vmem:[#allocation105_spill] sm:$0xff] }
 0xc1e   :  { %4402 = vst [vmem:[%s8190_s4 + $0x28] sm:$0xf] %v3299_v21  ;;  %v3308_v56 = vsel %vm1170_vm0, %v3299_v21, %v5886_v1  ;;  %v8828_v21 = vld [vmem:[#allocation18_spill] sm:$0xff] }
 0xc1f   :  { %v3302_v61 = vpack.c.bf16 %v3298_v16, %v3298_v16  ;;  %v8830_v16 = vld [vmem:[#allocation108_spill] sm:$0xff] }
 0xc21   :  { %4403 = vst [vmem:[%s8191_s5 + $0x14] sm:$0xf] %v3302_v61  ;;  %v3306_v31 = vrot.slane %v3302_v61, 4  ;;  %v8831_v61 = vld [vmem:[#allocation107_spill] sm:$0xff] }
 0xc23   :  { %4405 = vmatprep.mubr.msk.bf16.mxu0 %vm5890_vm1, %v3306_v31  ;;  %4407 = vmatprep.mubr.msk.bf16.mxu1 %vm5890_vm1, %v3306_v31  ;;  %v8832_v31 = vld [vmem:[#allocation109_spill] sm:$0xff] }
 0xc24   :  { %3346 = vmatmul.mubr.bf16.vlgmr.msra.gmra.mrb[108].mxu0 %v3308_v56  ;;  %3389 = vmatmul.mubr.bf16.vlgmr.msra.gmra.mrb[108].mxu1 %v3308_v56  ;;  %v8833_v56 = vld [vmem:[#allocation17_spill] sm:$0xff] }
 0xc25   :  { %3478 = vmatpush1.bf16.msra.mxu0 %v7412_v14  ;;  %3521 = vmatpush1.bf16.msra.mxu1 %v7415_v22 }
 0xc26   :  { %3479 = vmatprep.subr.bf16.mxu0 %v7418_v26  ;;  %3522 = vmatprep.subr.bf16.mxu1 %v7421_v27 }
 0xc29   :  { %3480 = vmatpush1.bf16.msra.mxu0 %v7424_v8  ;;  %3523 = vmatpush1.bf16.msra.mxu1 %v7427_v46 }
 0xc2a   :  { %3481 = vmatprep.subr.bf16.mxu0 %v7430_v3  ;;  %3524 = vmatprep.subr.bf16.mxu1 %v7433_v12 }
 0xc2d   :  { %3482 = vmatpush1.bf16.msra.mxu0 %v7436_v41  ;;  %3525 = vmatpush1.bf16.msra.mxu1 %v7439_v10 }
 0xc2e   :  { %3483 = vmatprep.subr.bf16.mxu0 %v7442_v42  ;;  %3526 = vmatprep.subr.bf16.mxu1 %v7445_v54 }
 0xc31   :  { %3484 = vmatpush1.bf16.msra.mxu0 %v7448_v17  ;;  %3527 = vmatpush1.bf16.msra.mxu1 %v7451_v36 }
 0xc32   :  { %3485 = vmatprep.subr.bf16.mxu0 %v7454_v45  ;;  %3528 = vmatprep.subr.bf16.mxu1 %v7457_v4 }
 0xc35   :  { %3486 = vmatpush1.bf16.msra.mxu0 %v7460_v63  ;;  %3529 = vmatpush1.bf16.msra.mxu1 %v7463_v59 }
 0xc36   :  { %3487 = vmatprep.subr.bf16.mxu0 %v7466_v23  ;;  %3530 = vmatprep.subr.bf16.mxu1 %v7469_v35 }
 0xc39   :  { %3488 = vmatpush1.bf16.msra.mxu0 %v7472_v33  ;;  %3531 = vmatpush1.bf16.msra.mxu1 %v7475_v15 }
 0xc3a   :  { %3489 = vmatprep.subr.bf16.mxu0 %v7478_v40  ;;  %3532 = vmatprep.subr.bf16.mxu1 %v7481_v57 }
 0xc3d   :  { %3490 = vmatpush1.bf16.msra.mxu0 %v7484_v7  ;;  %3533 = vmatpush1.bf16.msra.mxu1 %v7487_v32 }
 0xc3e   :  { %3491 = vmatprep.subr.bf16.mxu0 %v7490_v30  ;;  %3534 = vmatprep.subr.bf16.mxu1 %v7493_v6 }
 0xc41   :  { %3492 = vmatpush1.bf16.msra.mxu0 %v7496_v48  ;;  %3535 = vmatpush1.bf16.msra.mxu1 %v7499_v53 }
 0xc42   :  { %3493 = vmatprep.subr.bf16.mxu0 %v7502_v34  ;;  %3536 = vmatprep.subr.bf16.mxu1 %v7505_v47 }
 0xc45   :  { %3494 = vmatpush1.bf16.msra.mxu0 %v7508_v18  ;;  %3537 = vmatpush1.bf16.msra.mxu1 %v7511_v38 }
 0xc46   :  { %3495 = vmatprep.subr.bf16.mxu0 %v7514_v58  ;;  %3538 = vmatprep.subr.bf16.mxu1 %v7517_v43 }
 0xc49   :  { %3496 = vmatpush1.bf16.msra.mxu0 %v7520_v62  ;;  %3539 = vmatpush1.bf16.msra.mxu1 %v8811_v28  ;;  %v8844_v28 = vld [vmem:[#allocation79_spill] sm:$0xff] }
 0xc4a   :  { %3497 = vmatprep.subr.bf16.mxu0 %v8812_v19  ;;  %3540 = vmatprep.subr.bf16.mxu1 %v8813_v37 }
 0xc4d   :  { %3498 = vmatpush1.bf16.msra.mxu0 %v8814_v20  ;;  %3541 = vmatpush1.bf16.msra.mxu1 %v8815_v55 }
 0xc4e   :  { %3499 = vmatprep.subr.bf16.mxu0 %v8816_v13  ;;  %3542 = vmatprep.subr.bf16.mxu1 %v8817_v9 }
 0xc51   :  { %3500 = vmatpush1.bf16.msra.mxu0 %v8818_v0  ;;  %3543 = vmatpush1.bf16.msra.mxu1 %v8819_v51  ;;  %v8840_v51 = vld [vmem:[#allocation43_spill] sm:$0xff]  ;;  %v8841_v0 = vld [vmem:[#allocation45_spill] sm:$0xff] }
 0xc52   :  { %3501 = vmatprep.subr.bf16.mxu0 %v8820_v24  ;;  %3544 = vmatprep.subr.bf16.mxu1 %v8821_v49  ;;  %v8839_v49 = vld [vmem:[#allocation44_spill] sm:$0xff] }
 0xc55   :  { %3502 = vmatpush1.bf16.msra.mxu0 %v8822_v39  ;;  %3545 = vmatpush1.bf16.msra.mxu1 %v8823_v44  ;;  %v8834_v44 = vld [vmem:[#allocation20_spill] sm:$0xff]  ;;  %v8838_v39 = vld [vmem:[#allocation41_spill] sm:$0xff] }
 0xc56   :  { %3503 = vmatprep.subr.bf16.mxu0 %v8824_v29  ;;  %3546 = vmatprep.subr.bf16.mxu1 %v8825_v11  ;;  %v8835_v29 = vld [vmem:[#allocation19_spill] sm:$0xff]  ;;  %v8836_v11 = vld [vmem:[#allocation142_spill] sm:$0xff] }
 0xc59   :  { %3504 = vmatpush1.bf16.msra.mxu0 %v8826_v5  ;;  %3547 = vmatpush1.bf16.msra.mxu1 %v8827_v25  ;;  %v8837_v5 = vld [vmem:[#allocation143_spill] sm:$0xff] }
 0xc5a   :  { %3505 = vmatprep.subr.bf16.mxu0 %v8828_v21  ;;  %3548 = vmatprep.subr.bf16.mxu1 %v8829_v50 }
 0xc5d   :  { %3506 = vmatpush1.bf16.msra.mxu0 %v8830_v16  ;;  %3549 = vmatpush1.bf16.msra.mxu1 %v8831_v61 }
 0xc5e   :  { %3507 = vmatprep.subr.bf16.mxu0 %v8832_v31  ;;  %3550 = vmatprep.subr.bf16.mxu1 %v8833_v56 }
 0xc61   :  { %3508 = vmatpush1.bf16.msra.mxu0 %v8834_v44  ;;  %3551 = vmatpush1.bf16.msra.mxu1 %v8835_v29  ;;  %v8842_v29 = vld [vmem:[#allocation78_spill] sm:$0xff] }
 0xc62   :  { %3641 = vmatprep.subr.bf16.mxu0 %v8836_v11  ;;  %3684 = vmatprep.subr.bf16.mxu1 %v8837_v5  ;;  %v8843_v11 = vld [vmem:[#allocation80_spill] sm:$0xff] }
 0xcf7   :  { %v3347_v25 = vpop.f32.mrb[108].mxu0  ;;  %v3390_v21 = vpop.f32.mrb[108].mxu1 }
 0xcf8   :  { %v3407_v50 = vadd.f32 %v3347_v25, %v8838_v39  ;;  %v3409_v16 = vadd.f32 %v3390_v21, %v8839_v49  ;;  %v3349_v24 = vpop.f32.mrb[109].mxu0  ;;  %v3392_v61 = vpop.f32.mrb[109].mxu1  ;;  %v8845_v25 = vld [vmem:[#allocation82_spill] sm:$0xff] }
 0xcf9   :  { %v3408_v31 = vadd.f32 %v3349_v24, %v8840_v51  ;;  %v3410_v56 = vadd.f32 %v3392_v61, %v8841_v0  ;;  %v3351_v9 = vpop.f32.mrb[110].mxu0  ;;  %v3394_v44 = vpop.f32.mrb[110].mxu1 }
 0xcfa   :  { %v4408_v13 = vmul.f32 -1.442695, %v3407_v50  ;;  %v3411_v55 = vadd.f32 %v3351_v9, %v8842_v29  ;;  %v3413_v20 = vadd.f32 %v3394_v44, %v8843_v11  ;;  %v3353_v5 = vpop.f32.mrb[111].mxu0  ;;  %v3396_v37 = vpop.f32.mrb[111].mxu1 }
 0xcfb   :  { %v4410_v19 = vmul.f32 -1.442695, %v3408_v31  ;;  %v3412_v39 = vadd.f32 %v3353_v5, %v8844_v28  ;;  %v3414_v49 = vadd.f32 %v3396_v37, %v8845_v25  ;;  %v4412_v0 = vmul.f32 -1.442695, %v3410_v56 }
 0xcfc   :  { %4923 = vpow2.f32 %v4408_v13  ;;  %v4409_v21 = vmul.f32 -1.442695, %v3411_v55 }
 0xcfd   :  { %4925 = vpow2.f32 %v4410_v19  ;;  %v4411_v51 = vmul.f32 -1.442695, %v3412_v39  ;;  %v4413_v44 = vmul.f32 -1.442695, %v3414_v49 }
 0xcfe   :  { %4927 = vpow2.f32 %v4409_v21 }
 0xcff   :  { %4929 = vpow2.f32 %v4411_v51 }
 0xd00   :  { %4931 = vtanh.f32 %v3409_v16 }
 0xd01   :  { %4933 = vpow2.f32 %v4412_v0 }
 0xd02   :  { %4935 = vtanh.f32 %v3413_v20 }
 0xd06   :  { %v4924_v24 = vpop.eup %4923 }
 0xd07   :  { %v4926_v50 = vpop.eup %4925  ;;  %v3421_v9 = vadd.f32 1.0, %v4924_v24 }
 0xd08   :  { %v3433_v29 = vadd.f32 1.0, %v4926_v50  ;;  %v4928_v11 = vpop.eup %4927 }
 0xd09   :  { %4937 = vrcp.f32 %v3421_v9  ;;  %v3422_v28 = vadd.f32 1.0, %v4928_v11  ;;  %v4930_v37 = vpop.eup %4929 }
 0xd0a   :  { %4939 = vrcp.f32 %v3433_v29  ;;  %v3434_v19 = vadd.f32 1.0, %v4930_v37  ;;  %v4932_v55 = vpop.eup %4931 }
 0xd0b   :  { %4941 = vpow2.f32 %v4413_v44  ;;  %v4934_v13 = vpop.eup %4933 }
 0xd0c   :  { %4943 = vrcp.f32 %v3422_v28  ;;  %v4936_v5 = vpop.eup %4935  ;;  %v3447_v56 = vadd.f32 1.0, %v4934_v13  ;;  %v8876_v13 = vld [vmem:[#allocation50_spill] sm:$0xff] }
 0xd0d   :  { %4945 = vrcp.f32 %v3434_v19 }
 0xd0e   :  { %4947 = vrcp.f32 %v3447_v56  ;;  %v8877_v56 = vld [vmem:[#allocation73_spill] sm:$0xff] }
 0xd13   :  { %v4938_v61 = vpop.eup %4937 }
 0xd14   :  { %v4940_v16 = vpop.eup %4939  ;;  %v3455_v31 = vmul.f32 %v4938_v61, %v4932_v55 }
 0xd15   :  { %v4942_v39 = vpop.eup %4941  ;;  %v3453_v25 = vmul.f32 %v4940_v16, %v7705_v60 }
 0xd16   :  { %v4944_v20 = vpop.eup %4943  ;;  %v3448_v0 = vadd.f32 1.0, %v4942_v39 }
 0xd17   :  { %v7797_v49 = vadd.f32 %v3455_v31, %v3453_v25  ;;  %v3456_v21 = vmul.f32 %v4944_v20, %v4936_v5  ;;  %v4946_v51 = vpop.eup %4945  ;;  %v8878_v25 = vld [vmem:[#allocation76_spill] sm:$0xff] }
 0xd18   :  { %v3454_v24 = vmul.f32 %v4946_v51, %v7709_v52  ;;  %v4948_v9 = vpop.eup %4947 }
 0xd19   :  { %4949 = vtanh.f32 %v7797_v49 }
 0xd1a   :  { %v7801_v50 = vadd.f32 %v3456_v21, %v3454_v24  ;;  %4951 = vrcp.f32 %v3448_v0  ;;  %v8879_v24 = vld [vmem:[#allocation75_spill] sm:$0xff] }
 0xd1c   :  { %4953 = vtanh.f32 %v7801_v50 }
 0xd23   :  { %v4950_v44 = vpop.eup %4949 }
 0xd24   :  { %v3461_v29 = vmul.f32 %v4950_v44, %v4948_v9  ;;  %v4952_v60 = vpop.eup %4951  ;;  %v8880_v44 = vld [vmem:[#allocation77_spill] sm:$0xff] }
 0xd26   :  { %v3463_v11 = vpack.c.bf16 %v3461_v29, %v3461_v29  ;;  %v4954_v28 = vpop.eup %4953 }
 0xd27   :  { %v3462_v37 = vmul.f32 %v4954_v28, %v4952_v60 }
 0xd28   :  { %4414 = vst [vmem:[%s8190_s4 + $0x2c] sm:$0xf] %v3463_v11  ;;  %v3472_v55 = vsel %vm1170_vm0, %v3463_v11, %v5886_v1 }
 0xd29   :  { %v3466_v19 = vpack.c.bf16 %v3462_v37, %v3462_v37 }
 0xd2b   :  { %4415 = vst [vmem:[%s8191_s5 + $0x10] sm:$0xf] %v3466_v19  ;;  %v3470_v52 = vrot.slane %v3466_v19, 4 }
 0xd2d   :  { %4417 = vmatprep.mubr.msk.bf16.mxu0 %vm5890_vm1, %v3470_v52  ;;  %4419 = vmatprep.mubr.msk.bf16.mxu1 %vm5890_vm1, %v3470_v52 }
 0xd2e   :  { %3510 = vmatmul.mubr.bf16.vlgmr.msra.gmra.mrb[112].mxu0 %v3472_v55  ;;  %3553 = vmatmul.mubr.bf16.vlgmr.msra.gmra.mrb[112].mxu1 %v3472_v55 }
 0xd2f   :  { %3642 = vmatpush1.bf16.msra.mxu0 %v7412_v14  ;;  %3685 = vmatpush1.bf16.msra.mxu1 %v7415_v22  ;;  %v8846_v14 = vld [vmem:[#allocation118_spill] sm:$0xff]  ;;  %v8847_v22 = vld [vmem:[#allocation119_spill] sm:$0xff] }
 0xd30   :  { %3643 = vmatprep.subr.bf16.mxu0 %v7418_v26  ;;  %3686 = vmatprep.subr.bf16.mxu1 %v7421_v27  ;;  %v8848_v26 = vld [vmem:[#allocation120_spill] sm:$0xff]  ;;  %v8849_v27 = vld [vmem:[#allocation121_spill] sm:$0xff] }
 0xd33   :  { %3644 = vmatpush1.bf16.msra.mxu0 %v7424_v8  ;;  %3687 = vmatpush1.bf16.msra.mxu1 %v7427_v46  ;;  %v8850_v8 = vld [vmem:[#allocation122_spill] sm:$0xff]  ;;  %v8851_v46 = vld [vmem:[#allocation136_spill] sm:$0xff] }
 0xd34   :  { %3645 = vmatprep.subr.bf16.mxu0 %v7430_v3  ;;  %3688 = vmatprep.subr.bf16.mxu1 %v7433_v12  ;;  %v8852_v3 = vld [vmem:[#allocation137_spill] sm:$0xff]  ;;  %v8853_v12 = vld [vmem:[#allocation138_spill] sm:$0xff] }
 0xd37   :  { %3646 = vmatpush1.bf16.msra.mxu0 %v7436_v41  ;;  %3689 = vmatpush1.bf16.msra.mxu1 %v7439_v10  ;;  %v8854_v41 = vld [vmem:[#allocation139_spill] sm:$0xff]  ;;  %v8855_v10 = vld [vmem:[#allocation140_spill] sm:$0xff] }
 0xd38   :  { %3647 = vmatprep.subr.bf16.mxu0 %v7442_v42  ;;  %3690 = vmatprep.subr.bf16.mxu1 %v7445_v54  ;;  %v8856_v42 = vld [vmem:[#allocation141_spill] sm:$0xff]  ;;  %v8857_v54 = vld [vmem:[#allocation144_spill] sm:$0xff] }
 0xd3b   :  { %3648 = vmatpush1.bf16.msra.mxu0 %v7448_v17  ;;  %3691 = vmatpush1.bf16.msra.mxu1 %v7451_v36  ;;  %v8858_v17 = vld [vmem:[#allocation134_spill] sm:$0xff]  ;;  %v8859_v36 = vld [vmem:[#allocation135_spill] sm:$0xff] }
 0xd3c   :  { %3649 = vmatprep.subr.bf16.mxu0 %v7454_v45  ;;  %3692 = vmatprep.subr.bf16.mxu1 %v7457_v4  ;;  %v8860_v45 = vld [vmem:[#allocation14_spill] sm:$0xff]  ;;  %v8861_v4 = vld [vmem:[#allocation16_spill] sm:$0xff] }
 0xd3f   :  { %3650 = vmatpush1.bf16.msra.mxu0 %v7460_v63  ;;  %3693 = vmatpush1.bf16.msra.mxu1 %v7463_v59  ;;  %v8862_v63 = vld [vmem:[#allocation15_spill] sm:$0xff]  ;;  %v8863_v59 = vld [vmem:[#allocation18_spill] sm:$0xff] }
 0xd40   :  { %3651 = vmatprep.subr.bf16.mxu0 %v7466_v23  ;;  %3694 = vmatprep.subr.bf16.mxu1 %v7469_v35  ;;  %v8864_v23 = vld [vmem:[#allocation105_spill] sm:$0xff]  ;;  %v8865_v35 = vld [vmem:[#allocation108_spill] sm:$0xff] }
 0xd43   :  { %3652 = vmatpush1.bf16.msra.mxu0 %v7472_v33  ;;  %3695 = vmatpush1.bf16.msra.mxu1 %v7475_v15  ;;  %v8866_v33 = vld [vmem:[#allocation107_spill] sm:$0xff]  ;;  %v8867_v15 = vld [vmem:[#allocation109_spill] sm:$0xff] }
 0xd44   :  { %3653 = vmatprep.subr.bf16.mxu0 %v7478_v40  ;;  %3696 = vmatprep.subr.bf16.mxu1 %v7481_v57  ;;  %v8868_v40 = vld [vmem:[#allocation17_spill] sm:$0xff]  ;;  %v8869_v57 = vld [vmem:[#allocation20_spill] sm:$0xff] }
 0xd47   :  { %3654 = vmatpush1.bf16.msra.mxu0 %v7484_v7  ;;  %3697 = vmatpush1.bf16.msra.mxu1 %v7487_v32  ;;  %v8870_v7 = vld [vmem:[#allocation19_spill] sm:$0xff]  ;;  %v8871_v32 = vld [vmem:[#allocation142_spill] sm:$0xff] }
 0xd48   :  { %3655 = vmatprep.subr.bf16.mxu0 %v7490_v30  ;;  %3698 = vmatprep.subr.bf16.mxu1 %v7493_v6  ;;  %v8872_v30 = vld [vmem:[#allocation143_spill] sm:$0xff] }
 0xd4b   :  { %3656 = vmatpush1.bf16.msra.mxu0 %v7496_v48  ;;  %3699 = vmatpush1.bf16.msra.mxu1 %v7499_v53  ;;  %v8873_v53 = vld [vmem:[#allocation46_spill] sm:$0xff] }
 0xd4c   :  { %3657 = vmatprep.subr.bf16.mxu0 %v7502_v34  ;;  %3700 = vmatprep.subr.bf16.mxu1 %v7505_v47  ;;  %v8874_v47 = vld [vmem:[#allocation48_spill] sm:$0xff] }
 0xd4f   :  { %3658 = vmatpush1.bf16.msra.mxu0 %v7508_v18  ;;  %3701 = vmatpush1.bf16.msra.mxu1 %v7511_v38 }
 0xd50   :  { %3659 = vmatprep.subr.bf16.mxu0 %v7514_v58  ;;  %3702 = vmatprep.subr.bf16.mxu1 %v7517_v43  ;;  %v8875_v43 = vld [vmem:[#allocation47_spill] sm:$0xff] }
 0xd53   :  { %3660 = vmatpush1.bf16.msra.mxu0 %v7520_v62  ;;  %3703 = vmatpush1.bf16.msra.mxu1 %v8846_v14 }
 0xd54   :  { %3661 = vmatprep.subr.bf16.mxu0 %v8847_v22  ;;  %3704 = vmatprep.subr.bf16.mxu1 %v8848_v26 }
 0xd57   :  { %3662 = vmatpush1.bf16.msra.mxu0 %v8849_v27  ;;  %3705 = vmatpush1.bf16.msra.mxu1 %v8850_v8 }
 0xd58   :  { %3663 = vmatprep.subr.bf16.mxu0 %v8851_v46  ;;  %3706 = vmatprep.subr.bf16.mxu1 %v8852_v3 }
 0xd5b   :  { %3664 = vmatpush1.bf16.msra.mxu0 %v8853_v12  ;;  %3707 = vmatpush1.bf16.msra.mxu1 %v8854_v41 }
 0xd5c   :  { %3665 = vmatprep.subr.bf16.mxu0 %v8855_v10  ;;  %3708 = vmatprep.subr.bf16.mxu1 %v8856_v42 }
 0xd5f   :  { %3666 = vmatpush1.bf16.msra.mxu0 %v8857_v54  ;;  %3709 = vmatpush1.bf16.msra.mxu1 %v8858_v17 }
 0xd60   :  { %3667 = vmatprep.subr.bf16.mxu0 %v8859_v36  ;;  %3710 = vmatprep.subr.bf16.mxu1 %v8860_v45 }
 0xd63   :  { %3668 = vmatpush1.bf16.msra.mxu0 %v8861_v4  ;;  %3711 = vmatpush1.bf16.msra.mxu1 %v8862_v63 }
 0xd64   :  { %3669 = vmatprep.subr.bf16.mxu0 %v8863_v59  ;;  %3712 = vmatprep.subr.bf16.mxu1 %v8864_v23 }
 0xd67   :  { %3670 = vmatpush1.bf16.msra.mxu0 %v8865_v35  ;;  %3713 = vmatpush1.bf16.msra.mxu1 %v8866_v33 }
 0xd68   :  { %3671 = vmatprep.subr.bf16.mxu0 %v8867_v15  ;;  %3714 = vmatprep.subr.bf16.mxu1 %v8868_v40 }
 0xd6b   :  { %3672 = vmatpush1.bf16.msra.mxu0 %v8869_v57  ;;  %3715 = vmatpush1.bf16.msra.mxu1 %v8870_v7 }
 0xd6c   :  { %3805 = vmatprep.subr.bf16.mxu0 %v8871_v32  ;;  %3848 = vmatprep.subr.bf16.mxu1 %v8872_v30 }
 0xe01   :  { %v3511_v6 = vpop.f32.mrb[112].mxu0  ;;  %v3554_v48 = vpop.f32.mrb[112].mxu1 }
 0xe02   :  { %v3571_v34 = vadd.f32 %v3511_v6, %v8873_v53  ;;  %v3573_v18 = vadd.f32 %v3554_v48, %v8874_v47  ;;  %v3513_v38 = vpop.f32.mrb[113].mxu0  ;;  %v3556_v58 = vpop.f32.mrb[113].mxu1 }
 0xe03   :  { %v3572_v62 = vadd.f32 %v3513_v38, %v8875_v43  ;;  %v3574_v5 = vadd.f32 %v3556_v58, %v8876_v13  ;;  %v3515_v61 = vpop.f32.mrb[114].mxu0  ;;  %v3558_v16 = vpop.f32.mrb[114].mxu1 }
 0xe04   :  { %v4420_v31 = vmul.f32 -1.442695, %v3571_v34  ;;  %v3575_v39 = vadd.f32 %v3515_v61, %v8877_v56  ;;  %v3577_v20 = vadd.f32 %v3558_v16, %v8878_v25  ;;  %v3517_v21 = vpop.f32.mrb[115].mxu0  ;;  %v3560_v51 = vpop.f32.mrb[115].mxu1  ;;  %v7911_v25 = vld [vmem:[#allocation3 + $0x8] ss:$16 sps:$4 sm:$0xff]  }
 0xe05   :  { %v4422_v0 = vmul.f32 -1.442695, %v3572_v62  ;;  %v3576_v9 = vadd.f32 %v3517_v21, %v8879_v24  ;;  %v3578_v29 = vadd.f32 %v3560_v51, %v8880_v44  ;;  %v4424_v28 = vmul.f32 -1.442695, %v3574_v5  ;;  %v7917_v21 = vld [vmem:[#allocation3 + $0x2c] ss:$16 sps:$4 sm:$0xff]  }
 0xe06   :  { %4955 = vpow2.f32 %v4420_v31  ;;  %v4421_v60 = vmul.f32 -1.442695, %v3575_v39  ;;  %v7908_v39 = vld [vmem:[#allocation3] ss:$16 sps:$4 sm:$0xff]   ;;  %v7926_v24 = vld [vmem:[#allocation3 + $0x44] ss:$16 sps:$4 sm:$0xff]  }
 0xe07   :  { %4957 = vpow2.f32 %v4422_v0  ;;  %v4423_v11 = vmul.f32 -1.442695, %v3576_v9  ;;  %v4425_v55 = vmul.f32 -1.442695, %v3578_v29  ;;  %v7920_v51 = vld [vmem:[#allocation3 + $0x20] ss:$16 sps:$4 sm:$0xff]  }
 0xe08   :  { %4959 = vpow2.f32 %v4421_v60  ;;  %v7923_v0 = vld [vmem:[#allocation3 + $0x28] ss:$16 sps:$4 sm:$0xff]   ;;  %v7929_v9 = vld [vmem:[#allocation3 + $0x4c] ss:$16 sps:$4 sm:$0xff]   ;;  %v7932_v44 = vld [vmem:[#allocation3 + $0x40] ss:$16 sps:$4 sm:$0xff]  }
 0xe09   :  { %4961 = vpow2.f32 %v4423_v11  ;;  %v7935_v29 = vld [vmem:[#allocation3 + $0x48] ss:$16 sps:$4 sm:$0xff]   ;;  %v7938_v60 = vld [vmem:[#allocation3 + $0x64] ss:$16 sps:$4 sm:$0xff]   ;;  %v7941_v11 = vld [vmem:[#allocation3 + $0x6c] ss:$16 sps:$4 sm:$0xff]  }
 0xe0a   :  { %4963 = vtanh.f32 %v3573_v18 }
 0xe0b   :  { %4965 = vpow2.f32 %v4424_v28  ;;  %v7944_v28 = vld [vmem:[#allocation3 + $0x60] ss:$16 sps:$4 sm:$0xff]  }
 0xe0c   :  { %4967 = vtanh.f32 %v3577_v20  ;;  %v7914_v20 = vld [vmem:[#allocation3 + $0x24] ss:$16 sps:$4 sm:$0xff]  }
 0xe10   :  { %v4956_v37 = vpop.eup %4955 }
 0xe11   :  { %v4958_v19 = vpop.eup %4957  ;;  %v3585_v52 = vadd.f32 1.0, %v4956_v37  ;;  %v7947_v37 = vld [vmem:[#allocation3 + $0x68] ss:$16 sps:$4 sm:$0xff]  }
 0xe12   :  { %v3597_v14 = vadd.f32 1.0, %v4958_v19  ;;  %v4960_v22 = vpop.eup %4959  ;;  %v7950_v19 = vld [vmem:[#allocation3 + $0x84] ss:$16 sps:$4 sm:$0xff]  }
 0xe13   :  { %4969 = vrcp.f32 %v3585_v52  ;;  %v3586_v26 = vadd.f32 1.0, %v4960_v22  ;;  %v4962_v27 = vpop.eup %4961  ;;  %v7953_v52 = vld [vmem:[#allocation3 + $0x8c] ss:$16 sps:$4 sm:$0xff]   ;;  %v7962_v22 = vld [vmem:[#allocation3 + $0xa4] ss:$16 sps:$4 sm:$0xff]  }
 0xe14   :  { %4971 = vrcp.f32 %v3597_v14  ;;  %v3598_v8 = vadd.f32 1.0, %v4962_v27  ;;  %v4964_v46 = vpop.eup %4963  ;;  %v7959_v14 = vld [vmem:[#allocation3 + $0x88] ss:$16 sps:$4 sm:$0xff]   ;;  %v7968_v27 = vld [vmem:[#allocation3 + $0xa0] ss:$16 sps:$4 sm:$0xff]  }
 0xe15   :  { %4973 = vpow2.f32 %v4425_v55  ;;  %v4966_v3 = vpop.eup %4965  ;;  %v7956_v55 = vld [vmem:[#allocation3 + $0x80] ss:$16 sps:$4 sm:$0xff]  }
 0xe16   :  { %4975 = vrcp.f32 %v3586_v26  ;;  %v4968_v12 = vpop.eup %4967  ;;  %v3611_v32 = vadd.f32 1.0, %v4966_v3  ;;  %v7965_v26 = vld [vmem:[#allocation3 + $0xac] ss:$16 sps:$4 sm:$0xff]  }
 0xe17   :  { %4977 = vrcp.f32 %v3598_v8  ;;  %v7971_v8 = vld [vmem:[#allocation3 + $0xa8] ss:$16 sps:$4 sm:$0xff]   ;;  %v7977_v3 = vld [vmem:[#allocation3 + $0xcc] ss:$16 sps:$4 sm:$0xff]  }
 0xe18   :  { %4979 = vrcp.f32 %v3611_v32  ;;  %v7992_v32 = vld [vmem:[#allocation3 + $0xe0] ss:$16 sps:$4 sm:$0xff]  }
 0xe1d   :  { %v4970_v41 = vpop.eup %4969 }
 0xe1e   :  { %v4972_v10 = vpop.eup %4971  ;;  %v3619_v42 = vmul.f32 %v4970_v41, %v4964_v46  ;;  %v7974_v46 = vld [vmem:[#allocation3 + $0xc4] ss:$16 sps:$4 sm:$0xff]   ;;  %v7983_v41 = vld [vmem:[#allocation3 + $0xc8] ss:$16 sps:$4 sm:$0xff]  }
 0xe1f   :  { %v4974_v30 = vpop.eup %4973  ;;  %v3617_v6 = vmul.f32 %v4972_v10, %v7797_v49  ;;  %v7986_v10 = vld [vmem:[#allocation3 + $0xe4] ss:$16 sps:$4 sm:$0xff]  }
 0xe20   :  { %v4976_v48 = vpop.eup %4975  ;;  %v3612_v18 = vadd.f32 1.0, %v4974_v30  ;;  %v7995_v30 = vld [vmem:[#allocation3 + $0xe8] ss:$16 sps:$4 sm:$0xff]  }
 0xe21   :  { %v7889_v53 = vadd.f32 %v3619_v42, %v3617_v6  ;;  %v3620_v34 = vmul.f32 %v4976_v48, %v4968_v12  ;;  %v4978_v47 = vpop.eup %4977  ;;  %v7980_v12 = vld [vmem:[#allocation3 + $0xc0] ss:$16 sps:$4 sm:$0xff]   ;;  %v7989_v42 = vld [vmem:[#allocation3 + $0xec] ss:$16 sps:$4 sm:$0xff]   ;;  %v7998_v6 = vld [vmem:[#allocation3 + $0x104] ss:$16 sps:$4 sm:$0xff]  }
 0xe22   :  { %v3618_v38 = vmul.f32 %v4978_v47, %v7801_v50  ;;  %v4980_v43 = vpop.eup %4979  ;;  %v8001_v48 = vld [vmem:[#allocation3 + $0x10c] ss:$16 sps:$4 sm:$0xff]   ;;  %v8007_v47 = vld [vmem:[#allocation3 + $0x108] ss:$16 sps:$4 sm:$0xff]  }
 0xe23   :  { %4981 = vtanh.f32 %v7889_v53 }
 0xe24   :  { %v7893_v58 = vadd.f32 %v3620_v34, %v3618_v38  ;;  %4983 = vrcp.f32 %v3612_v18  ;;  %v8004_v34 = vld [vmem:[#allocation3 + $0x100] ss:$16 sps:$4 sm:$0xff]   ;;  %v8010_v18 = vld [vmem:[#allocation3 + $0x124] ss:$16 sps:$4 sm:$0xff]   ;;  %v8013_v38 = vld [vmem:[#allocation3 + $0x12c] ss:$16 sps:$4 sm:$0xff]  }
 0xe26   :  { %4985 = vtanh.f32 %v7893_v58 }
 0xe2d   :  { %v4982_v62 = vpop.eup %4981 }
 0xe2e   :  { %v3625_v13 = vmul.f32 %v4982_v62, %v4980_v43  ;;  %v4984_v49 = vpop.eup %4983  ;;  %v8016_v43 = vld [vmem:[#allocation3 + $0x120] ss:$16 sps:$4 sm:$0xff]   ;;  %v8019_v62 = vld [vmem:[#allocation3 + $0x128] ss:$16 sps:$4 sm:$0xff]  }
 0xe2f   :  { %8881 = vst [vmem:[#allocation21_spill] sm:$0xff] %v8019_v62 }
 0xe30   :  { %v3627_v5 = vpack.c.bf16 %v3625_v13, %v3625_v13  ;;  %v4986_v61 = vpop.eup %4985  ;;  %v8022_v13 = vld [vmem:[#allocation3 + $0x144] ss:$16 sps:$4 sm:$0xff]  }
 0xe31   :  { %v3626_v16 = vmul.f32 %v4986_v61, %v4984_v49  ;;  %8882 = vst [vmem:[#allocation102_spill] sm:$0xff] %v8022_v13  ;;  %v8025_v49 = vld [vmem:[#allocation3 + $0x14c] ss:$16 sps:$4 sm:$0xff]   ;;  %v8031_v61 = vld [vmem:[#allocation3 + $0x148] ss:$16 sps:$4 sm:$0xff]  }
 0xe32   :  { %4426 = vst [vmem:[%s8190_s4 + $0x30] sm:$0xf] %v3627_v5  ;;  %v3636_v56 = vsel %vm1170_vm0, %v3627_v5, %v5886_v1  ;;  %8883 = vst [vmem:[#allocation104_spill] sm:$0xff] %v8025_v49  ;;  %v8028_v5 = vld [vmem:[#allocation3 + $0x140] ss:$16 sps:$4 sm:$0xff]  }
 0xe33   :  { %v3630_v31 = vpack.c.bf16 %v3626_v16, %v3626_v16  ;;  %8884 = vst [vmem:[#allocation103_spill] sm:$0xff] %v8028_v5  ;;  %8885 = vst [vmem:[#allocation106_spill] sm:$0xff] %v8031_v61  ;;  %v8034_v16 = vld [vmem:[#allocation3 + $0x164] ss:$16 sps:$4 sm:$0xff]  }
 0xe34   :  { %8886 = vst [vmem:[#allocation22_spill] sm:$0xff] %v8034_v16 }
 0xe35   :  { %4427 = vst [vmem:[%s8191_s5 + $0xc] sm:$0xf] %v3630_v31  ;;  %v3634_v50 = vrot.slane %v3630_v31, 4  ;;  %v8037_v31 = vld [vmem:[#allocation3 + $0x16c] ss:$16 sps:$4 sm:$0xff]  }
 0xe36   :  { %8887 = vst [vmem:[#allocation24_spill] sm:$0xff] %v8037_v31 }
 0xe37   :  { %4429 = vmatprep.mubr.msk.bf16.mxu0 %vm5890_vm1, %v3634_v50  ;;  %4431 = vmatprep.mubr.msk.bf16.mxu1 %vm5890_vm1, %v3634_v50  ;;  %v8040_v50 = vld [vmem:[#allocation3 + $0x160] ss:$16 sps:$4 sm:$0xff]  }
 0xe38   :  { %3674 = vmatmul.mubr.bf16.vlgmr.msra.gmra.mrb[116].mxu0 %v3636_v56  ;;  %3717 = vmatmul.mubr.bf16.vlgmr.msra.gmra.mrb[116].mxu1 %v3636_v56  ;;  %8888 = vst [vmem:[#allocation23_spill] sm:$0xff] %v8040_v50  ;;  %v8043_v56 = vld [vmem:[#allocation3 + $0x168] ss:$16 sps:$4 sm:$0xff]  }
 0xe39   :  { %3806 = vmatpush1.bf16.msra.mxu0 %v7908_v39  ;;  %3849 = vmatpush1.bf16.msra.mxu1 %v7911_v25  ;;  %8889 = vst [vmem:[#allocation26_spill] sm:$0xff] %v8043_v56 }
 0xe3a   :  { %3807 = vmatprep.subr.bf16.mxu0 %v7914_v20  ;;  %3850 = vmatprep.subr.bf16.mxu1 %v7917_v21 }
 0xe3d   :  { %3808 = vmatpush1.bf16.msra.mxu0 %v7920_v51  ;;  %3851 = vmatpush1.bf16.msra.mxu1 %v7923_v0 }
 0xe3e   :  { %3809 = vmatprep.subr.bf16.mxu0 %v7926_v24  ;;  %3852 = vmatprep.subr.bf16.mxu1 %v7929_v9 }
 0xe41   :  { %3810 = vmatpush1.bf16.msra.mxu0 %v7932_v44  ;;  %3853 = vmatpush1.bf16.msra.mxu1 %v7935_v29 }
 0xe42   :  { %3811 = vmatprep.subr.bf16.mxu0 %v7938_v60  ;;  %3854 = vmatprep.subr.bf16.mxu1 %v7941_v11 }
 0xe45   :  { %3812 = vmatpush1.bf16.msra.mxu0 %v7944_v28  ;;  %3855 = vmatpush1.bf16.msra.mxu1 %v7947_v37 }
 0xe46   :  { %3813 = vmatprep.subr.bf16.mxu0 %v7950_v19  ;;  %3856 = vmatprep.subr.bf16.mxu1 %v7953_v52 }
 0xe49   :  { %3814 = vmatpush1.bf16.msra.mxu0 %v7956_v55  ;;  %3857 = vmatpush1.bf16.msra.mxu1 %v7959_v14 }
 0xe4a   :  { %3815 = vmatprep.subr.bf16.mxu0 %v7962_v22  ;;  %3858 = vmatprep.subr.bf16.mxu1 %v7965_v26 }
 0xe4d   :  { %3816 = vmatpush1.bf16.msra.mxu0 %v7968_v27  ;;  %3859 = vmatpush1.bf16.msra.mxu1 %v7971_v8 }
 0xe4e   :  { %3817 = vmatprep.subr.bf16.mxu0 %v7974_v46  ;;  %3860 = vmatprep.subr.bf16.mxu1 %v7977_v3 }
 0xe51   :  { %3818 = vmatpush1.bf16.msra.mxu0 %v7980_v12  ;;  %3861 = vmatpush1.bf16.msra.mxu1 %v7983_v41 }
 0xe52   :  { %3819 = vmatprep.subr.bf16.mxu0 %v7986_v10  ;;  %3862 = vmatprep.subr.bf16.mxu1 %v7989_v42 }
 0xe55   :  { %3820 = vmatpush1.bf16.msra.mxu0 %v7992_v32  ;;  %3863 = vmatpush1.bf16.msra.mxu1 %v7995_v30 }
 0xe56   :  { %3821 = vmatprep.subr.bf16.mxu0 %v7998_v6  ;;  %3864 = vmatprep.subr.bf16.mxu1 %v8001_v48 }
 0xe59   :  { %3822 = vmatpush1.bf16.msra.mxu0 %v8004_v34  ;;  %3865 = vmatpush1.bf16.msra.mxu1 %v8007_v47 }
 0xe5a   :  { %3823 = vmatprep.subr.bf16.mxu0 %v8010_v18  ;;  %3866 = vmatprep.subr.bf16.mxu1 %v8013_v38 }
 0xe5d   :  { %3824 = vmatpush1.bf16.msra.mxu0 %v8016_v43  ;;  %3867 = vmatpush1.bf16.msra.mxu1 %v8019_v62  ;;  %v8898_v62 = vld [vmem:[#allocation71_spill] sm:$0xff] }
 0xe5e   :  { %3825 = vmatprep.subr.bf16.mxu0 %v8022_v13  ;;  %3868 = vmatprep.subr.bf16.mxu1 %v8025_v49 }
 0xe61   :  { %3826 = vmatpush1.bf16.msra.mxu0 %v8028_v5  ;;  %3869 = vmatpush1.bf16.msra.mxu1 %v8031_v61  ;;  %v8046_v5 = vld [vmem:[#allocation3 + $0x184] ss:$16 sps:$4 sm:$0xff]   ;;  %v8049_v61 = vld [vmem:[#allocation3 + $0x18c] ss:$16 sps:$4 sm:$0xff]  }
 0xe62   :  { %3827 = vmatprep.subr.bf16.mxu0 %v8034_v16  ;;  %3870 = vmatprep.subr.bf16.mxu1 %v8037_v31  ;;  %8890 = vst [vmem:[#allocation97_spill] sm:$0xff] %v8046_v5  ;;  %8891 = vst [vmem:[#allocation100_spill] sm:$0xff] %v8049_v61 }
 0xe65   :  { %3828 = vmatpush1.bf16.msra.mxu0 %v8040_v50  ;;  %3871 = vmatpush1.bf16.msra.mxu1 %v8043_v56 }
 0xe66   :  { %3829 = vmatprep.subr.bf16.mxu0 %v8046_v5  ;;  %3872 = vmatprep.subr.bf16.mxu1 %v8049_v61  ;;  %v8894_v61 = vld [vmem:[#allocation51_spill] sm:$0xff]  ;;  %v8895_v5 = vld [vmem:[#allocation53_spill] sm:$0xff] }
 0xe69   :  { %3830 = vmatpush1.bf16.msra.mxu0 %v8857_v54  ;;  %3873 = vmatpush1.bf16.msra.mxu1 %v8858_v17  ;;  %v5323_v54 = vld [vmem:[#allocation3 + $0x4] ss:$16 sps:$4 sm:$0xff]   ;;  %v5324_v17 = vld [vmem:[#allocation3 + $0xc] ss:$16 sps:$4 sm:$0xff]  }
 0xe6a   :  { %3831 = vmatprep.subr.bf16.mxu0 %v8859_v36  ;;  %3874 = vmatprep.subr.bf16.mxu1 %v8860_v45 }
 0xe6d   :  { %3832 = vmatpush1.bf16.msra.mxu0 %v8861_v4  ;;  %3875 = vmatpush1.bf16.msra.mxu1 %v8862_v63  ;;  %v8892_v4 = vld [vmem:[#allocation49_spill] sm:$0xff] }
 0xe6e   :  { %3833 = vmatprep.subr.bf16.mxu0 %v8863_v59  ;;  %3876 = vmatprep.subr.bf16.mxu1 %v8864_v23  ;;  %v8893_v59 = vld [vmem:[#allocation52_spill] sm:$0xff] }
 0xe71   :  { %3834 = vmatpush1.bf16.msra.mxu0 %v8865_v35  ;;  %3877 = vmatpush1.bf16.msra.mxu1 %v8866_v33 }
 0xe72   :  { %3835 = vmatprep.subr.bf16.mxu0 %v8867_v15  ;;  %3878 = vmatprep.subr.bf16.mxu1 %v8868_v40 }
 0xe75   :  { %3836 = vmatpush1.bf16.msra.mxu0 %v8869_v57  ;;  %3879 = vmatpush1.bf16.msra.mxu1 %v8870_v7  ;;  %v8896_v7 = vld [vmem:[#allocation70_spill] sm:$0xff] }
 0xe76   :  { %3969 = vmatprep.subr.bf16.mxu0 %v5323_v54  ;;  %4012 = vmatprep.subr.bf16.mxu1 %v5324_v17  ;;  %v8897_v54 = vld [vmem:[#allocation72_spill] sm:$0xff] }
 0xf0b   :  { %v3675_v36 = vpop.f32.mrb[116].mxu0  ;;  %v3718_v45 = vpop.f32.mrb[116].mxu1 }
 0xf0c   :  { %v3735_v63 = vadd.f32 %v3675_v36, %v8892_v4  ;;  %v3737_v23 = vadd.f32 %v3718_v45, %v8893_v59  ;;  %v3677_v35 = vpop.f32.mrb[117].mxu0  ;;  %v3720_v33 = vpop.f32.mrb[117].mxu1  ;;  %v8899_v4 = vld [vmem:[#allocation74_spill] sm:$0xff] }
 0xf0d   :  { %v3736_v15 = vadd.f32 %v3677_v35, %v8894_v61  ;;  %v3738_v40 = vadd.f32 %v3720_v33, %v8895_v5  ;;  %v3679_v56 = vpop.f32.mrb[118].mxu0  ;;  %v3722_v57 = vpop.f32.mrb[118].mxu1 }
 0xf0e   :  { %v4432_v50 = vmul.f32 -1.442695, %v3735_v63  ;;  %v3739_v31 = vadd.f32 %v3679_v56, %v8896_v7  ;;  %v3741_v16 = vadd.f32 %v3722_v57, %v8897_v54  ;;  %v3681_v17 = vpop.f32.mrb[119].mxu0  ;;  %v3724_v49 = vpop.f32.mrb[119].mxu1 }
 0xf0f   :  { %v4434_v13 = vmul.f32 -1.442695, %v3736_v15  ;;  %v3740_v36 = vadd.f32 %v3681_v17, %v8898_v62  ;;  %v3742_v45 = vadd.f32 %v3724_v49, %v8899_v4  ;;  %v4436_v5 = vmul.f32 -1.442695, %v3738_v40 }
 0xf10   :  { %4987 = vpow2.f32 %v4432_v50  ;;  %v4433_v59 = vmul.f32 -1.442695, %v3739_v31 }
 0xf11   :  { %4989 = vpow2.f32 %v4434_v13  ;;  %v4435_v61 = vmul.f32 -1.442695, %v3740_v36  ;;  %v4437_v33 = vmul.f32 -1.442695, %v3742_v45 }
 0xf12   :  { %4991 = vpow2.f32 %v4433_v59 }
 0xf13   :  { %4993 = vpow2.f32 %v4435_v61 }
 0xf14   :  { %4995 = vtanh.f32 %v3737_v23 }
 0xf15   :  { %4997 = vpow2.f32 %v4436_v5 }
 0xf16   :  { %4999 = vtanh.f32 %v3741_v16 }
 0xf1a   :  { %v4988_v35 = vpop.eup %4987 }
 0xf1b   :  { %v4990_v63 = vpop.eup %4989  ;;  %v3749_v56 = vadd.f32 1.0, %v4988_v35 }
 0xf1c   :  { %v3761_v57 = vadd.f32 1.0, %v4990_v63  ;;  %v4992_v15 = vpop.eup %4991 }
 0xf1d   :  { %5001 = vrcp.f32 %v3749_v56  ;;  %v3750_v62 = vadd.f32 1.0, %v4992_v15  ;;  %v4994_v49 = vpop.eup %4993 }
 0xf1e   :  { %5003 = vrcp.f32 %v3761_v57  ;;  %v3762_v13 = vadd.f32 1.0, %v4994_v49  ;;  %v4996_v31 = vpop.eup %4995 }
 0xf1f   :  { %5005 = vpow2.f32 %v4437_v33  ;;  %v4998_v50 = vpop.eup %4997 }
 0xf20   :  { %5007 = vrcp.f32 %v3750_v62  ;;  %v5000_v40 = vpop.eup %4999  ;;  %v3775_v17 = vadd.f32 1.0, %v4998_v50 }
 0xf21   :  { %5009 = vrcp.f32 %v3762_v13 }
 0xf22   :  { %5011 = vrcp.f32 %v3775_v17  ;;  %v8916_v17 = vld [vmem:[#allocation68_spill] sm:$0xff] }
 0xf27   :  { %v5002_v7 = vpop.eup %5001 }
 0xf28   :  { %v5004_v23 = vpop.eup %5003  ;;  %v3783_v54 = vmul.f32 %v5002_v7, %v4996_v31 }
 0xf29   :  { %v5006_v36 = vpop.eup %5005  ;;  %v3781_v4 = vmul.f32 %v5004_v23, %v7889_v53  ;;  %v8915_v23 = vld [vmem:[#allocation65_spill] sm:$0xff] }
 0xf2a   :  { %v5008_v16 = vpop.eup %5007  ;;  %v3776_v5 = vadd.f32 1.0, %v5006_v36 }
 0xf2b   :  { %v8075_v45 = vadd.f32 %v3783_v54, %v3781_v4  ;;  %v3784_v59 = vmul.f32 %v5008_v16, %v5000_v40  ;;  %v5010_v61 = vpop.eup %5009 }
 0xf2c   :  { %v3782_v35 = vmul.f32 %v5010_v61, %v7893_v58  ;;  %v5012_v56 = vpop.eup %5011  ;;  %v8917_v61 = vld [vmem:[#allocation67_spill] sm:$0xff] }
 0xf2d   :  { %5013 = vtanh.f32 %v8075_v45 }
 0xf2e   :  { %v8079_v63 = vadd.f32 %v3784_v59, %v3782_v35  ;;  %5015 = vrcp.f32 %v3776_v5  ;;  %v8918_v35 = vld [vmem:[#allocation69_spill] sm:$0xff] }
 0xf30   :  { %5017 = vtanh.f32 %v8079_v63 }
 0xf37   :  { %v5014_v33 = vpop.eup %5013 }
 0xf38   :  { %v3789_v57 = vmul.f32 %v5014_v33, %v5012_v56  ;;  %v5016_v53 = vpop.eup %5015 }
 0xf3a   :  { %v3791_v15 = vpack.c.bf16 %v3789_v57, %v3789_v57  ;;  %v5018_v62 = vpop.eup %5017 }
 0xf3b   :  { %v3790_v49 = vmul.f32 %v5018_v62, %v5016_v53 }
 0xf3c   :  { %4438 = vst [vmem:[%s8190_s4 + $0x34] sm:$0xf] %v3791_v15  ;;  %v3800_v31 = vsel %vm1170_vm0, %v3791_v15, %v5886_v1 }
 0xf3d   :  { %v3794_v13 = vpack.c.bf16 %v3790_v49, %v3790_v49 }
 0xf3f   :  { %4439 = vst [vmem:[%s8191_s5 + $0x8] sm:$0xf] %v3794_v13  ;;  %v3798_v58 = vrot.slane %v3794_v13, 4 }
 0xf41   :  { %4441 = vmatprep.mubr.msk.bf16.mxu0 %vm5890_vm1, %v3798_v58  ;;  %4443 = vmatprep.mubr.msk.bf16.mxu1 %vm5890_vm1, %v3798_v58 }
 0xf42   :  { %3838 = vmatmul.mubr.bf16.vlgmr.msra.gmra.mrb[120].mxu0 %v3800_v31  ;;  %3881 = vmatmul.mubr.bf16.vlgmr.msra.gmra.mrb[120].mxu1 %v3800_v31 }
 0xf43   :  { %3970 = vmatpush1.bf16.msra.mxu0 %v7908_v39  ;;  %4013 = vmatpush1.bf16.msra.mxu1 %v7911_v25  ;;  %v8900_v39 = vld [vmem:[#allocation21_spill] sm:$0xff]  ;;  %v8901_v25 = vld [vmem:[#allocation102_spill] sm:$0xff] }
 0xf44   :  { %3971 = vmatprep.subr.bf16.mxu0 %v7914_v20  ;;  %4014 = vmatprep.subr.bf16.mxu1 %v7917_v21  ;;  %v8902_v20 = vld [vmem:[#allocation104_spill] sm:$0xff]  ;;  %v8903_v21 = vld [vmem:[#allocation103_spill] sm:$0xff] }
 0xf47   :  { %3972 = vmatpush1.bf16.msra.mxu0 %v7920_v51  ;;  %4015 = vmatpush1.bf16.msra.mxu1 %v7923_v0  ;;  %v8904_v51 = vld [vmem:[#allocation106_spill] sm:$0xff] }
 0xf48   :  { %3973 = vmatprep.subr.bf16.mxu0 %v7926_v24  ;;  %4016 = vmatprep.subr.bf16.mxu1 %v7929_v9  ;;  %v8905_v0 = vld [vmem:[#allocation22_spill] sm:$0xff]  ;;  %v8906_v24 = vld [vmem:[#allocation24_spill] sm:$0xff]  ;;  %v8907_v9 = vld [vmem:[#allocation23_spill] sm:$0xff] }
 0xf4b   :  { %3974 = vmatpush1.bf16.msra.mxu0 %v7932_v44  ;;  %4017 = vmatpush1.bf16.msra.mxu1 %v7935_v29  ;;  %v8908_v44 = vld [vmem:[#allocation26_spill] sm:$0xff]  ;;  %v8909_v29 = vld [vmem:[#allocation97_spill] sm:$0xff] }
 0xf4c   :  { %3975 = vmatprep.subr.bf16.mxu0 %v7938_v60  ;;  %4018 = vmatprep.subr.bf16.mxu1 %v7941_v11  ;;  %v8910_v60 = vld [vmem:[#allocation100_spill] sm:$0xff] }
 0xf4d   :  { %v5325_v11 = vld [vmem:[#allocation3 + $0x180] ss:$16 sps:$4 sm:$0xff]  }
 0xf4f   :  { %3976 = vmatpush1.bf16.msra.mxu0 %v7944_v28  ;;  %4019 = vmatpush1.bf16.msra.mxu1 %v7947_v37  ;;  %v5326_v28 = vld [vmem:[#allocation3 + $0x188] ss:$16 sps:$4 sm:$0xff]   ;;  %v5327_v37 = vld [vmem:[#allocation3 + $0x1a4] ss:$16 sps:$4 sm:$0xff]  }
 0xf50   :  { %3977 = vmatprep.subr.bf16.mxu0 %v7950_v19  ;;  %4020 = vmatprep.subr.bf16.mxu1 %v7953_v52  ;;  %v5328_v19 = vld [vmem:[#allocation3 + $0x1ac] ss:$16 sps:$4 sm:$0xff]   ;;  %v5329_v52 = vld [vmem:[#allocation3 + $0x1a0] ss:$16 sps:$4 sm:$0xff]  }
 0xf53   :  { %3978 = vmatpush1.bf16.msra.mxu0 %v7956_v55  ;;  %4021 = vmatpush1.bf16.msra.mxu1 %v7959_v14  ;;  %v5330_v55 = vld [vmem:[#allocation3 + $0x1a8] ss:$16 sps:$4 sm:$0xff]   ;;  %v5331_v14 = vld [vmem:[#allocation3 + $0x1c4] ss:$16 sps:$4 sm:$0xff]  }
 0xf54   :  { %3979 = vmatprep.subr.bf16.mxu0 %v7962_v22  ;;  %4022 = vmatprep.subr.bf16.mxu1 %v7965_v26  ;;  %v5332_v22 = vld [vmem:[#allocation3 + $0x1cc] ss:$16 sps:$4 sm:$0xff]   ;;  %v5333_v26 = vld [vmem:[#allocation3 + $0x1c0] ss:$16 sps:$4 sm:$0xff]  }
 0xf57   :  { %3980 = vmatpush1.bf16.msra.mxu0 %v7968_v27  ;;  %4023 = vmatpush1.bf16.msra.mxu1 %v7971_v8  ;;  %v5334_v27 = vld [vmem:[#allocation3 + $0x1c8] ss:$16 sps:$4 sm:$0xff]   ;;  %v5335_v8 = vld [vmem:[#allocation3 + $0x1e4] ss:$16 sps:$4 sm:$0xff]  }
 0xf58   :  { %3981 = vmatprep.subr.bf16.mxu0 %v7974_v46  ;;  %4024 = vmatprep.subr.bf16.mxu1 %v7977_v3  ;;  %v5336_v46 = vld [vmem:[#allocation3 + $0x1ec] ss:$16 sps:$4 sm:$0xff]   ;;  %v5337_v3 = vld [vmem:[#allocation3 + $0x1e0] ss:$16 sps:$4 sm:$0xff]  }
 0xf5b   :  { %3982 = vmatpush1.bf16.msra.mxu0 %v7980_v12  ;;  %4025 = vmatpush1.bf16.msra.mxu1 %v7983_v41  ;;  %v5338_v12 = vld [vmem:[#allocation3 + $0x1e8] ss:$16 sps:$4 sm:$0xff]  }
 0xf5c   :  { %3983 = vmatprep.subr.bf16.mxu0 %v7986_v10  ;;  %4026 = vmatprep.subr.bf16.mxu1 %v7989_v42  ;;  %v8911_v42 = vld [vmem:[#allocation54_spill] sm:$0xff] }
 0xf5f   :  { %3984 = vmatpush1.bf16.msra.mxu0 %v7992_v32  ;;  %4027 = vmatpush1.bf16.msra.mxu1 %v7995_v30  ;;  %v8912_v30 = vld [vmem:[#allocation56_spill] sm:$0xff] }
 0xf60   :  { %3985 = vmatprep.subr.bf16.mxu0 %v7998_v6  ;;  %4028 = vmatprep.subr.bf16.mxu1 %v8001_v48 }
 0xf63   :  { %3986 = vmatpush1.bf16.msra.mxu0 %v8004_v34  ;;  %4029 = vmatpush1.bf16.msra.mxu1 %v8007_v47  ;;  %v8913_v47 = vld [vmem:[#allocation55_spill] sm:$0xff] }
 0xf64   :  { %3987 = vmatprep.subr.bf16.mxu0 %v8010_v18  ;;  %4030 = vmatprep.subr.bf16.mxu1 %v8013_v38  ;;  %v8914_v38 = vld [vmem:[#allocation58_spill] sm:$0xff] }
 0xf67   :  { %3988 = vmatpush1.bf16.msra.mxu0 %v8016_v43  ;;  %4031 = vmatpush1.bf16.msra.mxu1 %v8900_v39 }
 0xf68   :  { %3989 = vmatprep.subr.bf16.mxu0 %v8901_v25  ;;  %4032 = vmatprep.subr.bf16.mxu1 %v8902_v20 }
 0xf6b   :  { %3990 = vmatpush1.bf16.msra.mxu0 %v8903_v21  ;;  %4033 = vmatpush1.bf16.msra.mxu1 %v8904_v51 }
 0xf6c   :  { %3991 = vmatprep.subr.bf16.mxu0 %v8905_v0  ;;  %4034 = vmatprep.subr.bf16.mxu1 %v8906_v24 }
 0xf6f   :  { %3992 = vmatpush1.bf16.msra.mxu0 %v8907_v9  ;;  %4035 = vmatpush1.bf16.msra.mxu1 %v8908_v44 }
 0xf70   :  { %3993 = vmatprep.subr.bf16.mxu0 %v8909_v29  ;;  %4036 = vmatprep.subr.bf16.mxu1 %v8910_v60 }
 0xf73   :  { %3994 = vmatpush1.bf16.msra.mxu0 %v5325_v11  ;;  %4037 = vmatpush1.bf16.msra.mxu1 %v5326_v28 }
 0xf74   :  { %3995 = vmatprep.subr.bf16.mxu0 %v5327_v37  ;;  %4038 = vmatprep.subr.bf16.mxu1 %v5328_v19 }
 0xf77   :  { %3996 = vmatpush1.bf16.msra.mxu0 %v5329_v52  ;;  %4039 = vmatpush1.bf16.msra.mxu1 %v5330_v55 }
 0xf78   :  { %3997 = vmatprep.subr.bf16.mxu0 %v5331_v14  ;;  %4040 = vmatprep.subr.bf16.mxu1 %v5332_v22 }
 0xf7b   :  { %3998 = vmatpush1.bf16.msra.mxu0 %v5333_v26  ;;  %4041 = vmatpush1.bf16.msra.mxu1 %v5334_v27 }
 0xf7c   :  { %3999 = vmatprep.subr.bf16.mxu0 %v5335_v8  ;;  %4042 = vmatprep.subr.bf16.mxu1 %v5336_v46 }
 0xf7f   :  { %4000 = vmatpush1.bf16.msra.mxu0 %v5337_v3  ;;  %4043 = vmatpush1.bf16.msra.mxu1 %v5338_v12 }
0x1015   :  { %v3839_v41 = vpop.f32.mrb[120].mxu0  ;;  %v3882_v10 = vpop.f32.mrb[120].mxu1 }
0x1016   :  { %v3899_v32 = vadd.f32 %v3839_v41, %v8911_v42  ;;  %v3901_v6 = vadd.f32 %v3882_v10, %v8912_v30  ;;  %v3841_v48 = vpop.f32.mrb[121].mxu0  ;;  %v3884_v34 = vpop.f32.mrb[121].mxu1  ;;  %v8919_v30 = vld [vmem:[#allocation57_spill] sm:$0xff] }
0x1017   :  { %v3900_v18 = vadd.f32 %v3841_v48, %v8913_v47  ;;  %v3902_v43 = vadd.f32 %v3884_v34, %v8914_v38  ;;  %v3843_v50 = vpop.f32.mrb[122].mxu0  ;;  %v3886_v40 = vpop.f32.mrb[122].mxu1  ;;  %v8920_v48 = vld [vmem:[#allocation60_spill] sm:$0xff]  ;;  %v8921_v38 = vld [vmem:[#allocation59_spill] sm:$0xff] }
0x1018   :  { %v4444_v7 = vmul.f32 -1.442695, %v3899_v32  ;;  %v3903_v54 = vadd.f32 %v3843_v50, %v8915_v23  ;;  %v3905_v36 = vadd.f32 %v3886_v40, %v8916_v17  ;;  %v3845_v4 = vpop.f32.mrb[123].mxu0  ;;  %v3888_v16 = vpop.f32.mrb[123].mxu1  ;;  %v8922_v50 = vld [vmem:[#allocation61_spill] sm:$0xff] }
0x1019   :  { %v4446_v59 = vmul.f32 -1.442695, %v3900_v18  ;;  %v3904_v5 = vadd.f32 %v3845_v4, %v8917_v61  ;;  %v3906_v56 = vadd.f32 %v3888_v16, %v8918_v35  ;;  %v4448_v53 = vmul.f32 -1.442695, %v3902_v43  ;;  %v8925_v61 = vld [vmem:[#allocation63_spill] sm:$0xff]  ;;  %v8926_v35 = vld [vmem:[#allocation66_spill] sm:$0xff] }
0x101a   :  { %5019 = vpow2.f32 %v4444_v7  ;;  %v4445_v33 = vmul.f32 -1.442695, %v3903_v54  ;;  %v8923_v54 = vld [vmem:[#allocation62_spill] sm:$0xff] }
0x101b   :  { %5021 = vpow2.f32 %v4446_v59  ;;  %v4447_v57 = vmul.f32 -1.442695, %v3904_v5  ;;  %v4449_v13 = vmul.f32 -1.442695, %v3906_v56 }
0x101c   :  { %5023 = vpow2.f32 %v4445_v33 }
0x101d   :  { %5025 = vpow2.f32 %v4447_v57 }
0x101e   :  { %5027 = vtanh.f32 %v3901_v6 }
0x101f   :  { %5029 = vpow2.f32 %v4448_v53 }
0x1020   :  { %5031 = vtanh.f32 %v3905_v36 }
0x1024   :  { %v5020_v15 = vpop.eup %5019 }
0x1025   :  { %v5022_v62 = vpop.eup %5021  ;;  %v3913_v49 = vadd.f32 1.0, %v5020_v15 }
0x1026   :  { %v3925_v58 = vadd.f32 1.0, %v5022_v62  ;;  %v5024_v31 = vpop.eup %5023 }
0x1027   :  { %5033 = vrcp.f32 %v3913_v49  ;;  %v3914_v39 = vadd.f32 1.0, %v5024_v31  ;;  %v5026_v25 = vpop.eup %5025 }
0x1028   :  { %5035 = vrcp.f32 %v3925_v58  ;;  %v3926_v20 = vadd.f32 1.0, %v5026_v25  ;;  %v5028_v21 = vpop.eup %5027 }
0x1029   :  { %5037 = vpow2.f32 %v4449_v13  ;;  %v5030_v51 = vpop.eup %5029 }
0x102a   :  { %5039 = vrcp.f32 %v3914_v39  ;;  %v5032_v0 = vpop.eup %5031  ;;  %v3939_v29 = vadd.f32 1.0, %v5030_v51 }
0x102b   :  { %5041 = vrcp.f32 %v3926_v20 }
0x102c   :  { %5043 = vrcp.f32 %v3939_v29 }
0x1031   :  { %v5034_v24 = vpop.eup %5033 }
0x1032   :  { %v5036_v9 = vpop.eup %5035  ;;  %v3947_v44 = vmul.f32 %v5034_v24, %v5028_v21 }
0x1033   :  { %v5038_v60 = vpop.eup %5037  ;;  %v3945_v11 = vmul.f32 %v5036_v9, %v8075_v45 }
0x1034   :  { %v5040_v28 = vpop.eup %5039  ;;  %v3940_v55 = vadd.f32 1.0, %v5038_v60 }
0x1035   :  { %v8151_v37 = vadd.f32 %v3947_v44, %v3945_v11  ;;  %v3948_v19 = vmul.f32 %v5040_v28, %v5032_v0  ;;  %v5042_v52 = vpop.eup %5041 }
0x1036   :  { %v3946_v14 = vmul.f32 %v5042_v52, %v8079_v63  ;;  %v5044_v26 = vpop.eup %5043 }
0x1037   :  { %5045 = vtanh.f32 %v8151_v37 }
0x1038   :  { %v8155_v22 = vadd.f32 %v3948_v19, %v3946_v14  ;;  %5047 = vrcp.f32 %v3940_v55 }
0x103a   :  { %5049 = vtanh.f32 %v8155_v22 }
0x1041   :  { %v5046_v27 = vpop.eup %5045 }
0x1042   :  { %v3953_v8 = vmul.f32 %v5046_v27, %v5044_v26  ;;  %v5048_v45 = vpop.eup %5047 }
0x1044   :  { %v3955_v46 = vpack.c.bf16 %v3953_v8, %v3953_v8  ;;  %v5050_v3 = vpop.eup %5049 }
0x1045   :  { %v3954_v12 = vmul.f32 %v5050_v3, %v5048_v45 }
0x1046   :  { %4450 = vst [vmem:[%s8190_s4 + $0x38] sm:$0xf] %v3955_v46  ;;  %v3964_v10 = vsel %vm1170_vm0, %v3955_v46, %v5886_v1  ;;  %v8924_v1 = vld [vmem:[#allocation64_spill] sm:$0xff] }
0x1047   :  { %v3958_v41 = vpack.c.bf16 %v3954_v12, %v3954_v12 }
0x1049   :  { %4451 = vst [vmem:[%s8191_s5 + $0x4] sm:$0xf] %v3958_v41  ;;  %v3962_v63 = vrot.slane %v3958_v41, 4 }
0x104b   :  { %4453 = vmatprep.mubr.msk.bf16.mxu0 %vm5890_vm1, %v3962_v63  ;;  %4455 = vmatprep.mubr.msk.bf16.mxu1 %vm5890_vm1, %v3962_v63 }
0x104c   :  { %4002 = vmatmul.mubr.bf16.vlgmr.msra.gmra.mrb[124].mxu0 %v3964_v10  ;;  %4045 = vmatmul.mubr.bf16.vlgmr.msra.gmra.mrb[124].mxu1 %v3964_v10 }
0x111f   :  { %v4003_v42 = vpop.f32.mrb[124].mxu0  ;;  %v4046_v32 = vpop.f32.mrb[124].mxu1 }
0x1120   :  { %v4063_v6 = vadd.f32 %v4003_v42, %v8919_v30  ;;  %v4065_v34 = vadd.f32 %v4046_v32, %v8920_v48  ;;  %v4005_v47 = vpop.f32.mrb[125].mxu0  ;;  %v4048_v18 = vpop.f32.mrb[125].mxu1 }
0x1121   :  { %v4064_v43 = vadd.f32 %v4005_v47, %v8921_v38  ;;  %v4066_v40 = vadd.f32 %v4048_v18, %v8922_v50  ;;  %v4007_v7 = vpop.f32.mrb[126].mxu0  ;;  %v4050_v2 = vpop.f32.mrb[126].mxu1 }
0x1122   :  { %v4456_v23 = vmul.f32 -1.442695, %v4063_v6  ;;  %v4067_v17 = vadd.f32 %v4007_v7, %v8923_v54  ;;  %v4069_v36 = vadd.f32 %v4050_v2, %v8924_v1  ;;  %v4009_v4 = vpop.f32.mrb[127].mxu0  ;;  %v4052_v16 = vpop.f32.mrb[127].mxu1 }
0x1123   :  { %v4458_v59 = vmul.f32 -1.442695, %v4064_v43  ;;  %v4068_v5 = vadd.f32 %v4009_v4, %v8925_v61  ;;  %v4070_v56 = vadd.f32 %v4052_v16, %v8926_v35  ;;  %v4460_v53 = vmul.f32 -1.442695, %v4066_v40 }
0x1124   :  { %5051 = vpow2.f32 %v4456_v23  ;;  %v4457_v33 = vmul.f32 -1.442695, %v4067_v17 }
0x1125   :  { %5053 = vpow2.f32 %v4458_v59  ;;  %v4459_v57 = vmul.f32 -1.442695, %v4068_v5  ;;  %v4461_v13 = vmul.f32 -1.442695, %v4070_v56 }
0x1126   :  { %5055 = vpow2.f32 %v4457_v33 }
0x1127   :  { %5057 = vpow2.f32 %v4459_v57 }
0x1128   :  { %5059 = vtanh.f32 %v4065_v34 }
0x1129   :  { %5061 = vpow2.f32 %v4460_v53 }
0x112a   :  { %5063 = vtanh.f32 %v4069_v36 }
0x112e   :  { %v5052_v15 = vpop.eup %5051 }
0x112f   :  { %v5054_v62 = vpop.eup %5053  ;;  %v4077_v49 = vadd.f32 1.0, %v5052_v15 }
0x1130   :  { %v4089_v58 = vadd.f32 1.0, %v5054_v62  ;;  %v5056_v31 = vpop.eup %5055 }
0x1131   :  { %5065 = vrcp.f32 %v4077_v49  ;;  %v4078_v39 = vadd.f32 1.0, %v5056_v31  ;;  %v5058_v25 = vpop.eup %5057 }
0x1132   :  { %5067 = vrcp.f32 %v4089_v58  ;;  %v4090_v20 = vadd.f32 1.0, %v5058_v25  ;;  %v5060_v21 = vpop.eup %5059 }
0x1133   :  { %5069 = vpow2.f32 %v4461_v13  ;;  %v5062_v51 = vpop.eup %5061 }
0x1134   :  { %5071 = vrcp.f32 %v4078_v39  ;;  %v5064_v0 = vpop.eup %5063  ;;  %v4103_v29 = vadd.f32 1.0, %v5062_v51 }
0x1135   :  { %5073 = vrcp.f32 %v4090_v20 }
0x1136   :  { %5075 = vrcp.f32 %v4103_v29 }
0x113b   :  { %v5066_v24 = vpop.eup %5065 }
0x113c   :  { %v5068_v9 = vpop.eup %5067  ;;  %v4111_v44 = vmul.f32 %v5066_v24, %v5060_v21 }
0x113d   :  { %v5070_v60 = vpop.eup %5069  ;;  %v4109_v11 = vmul.f32 %v5068_v9, %v8151_v37 }
0x113e   :  { %v5072_v28 = vpop.eup %5071  ;;  %v4104_v14 = vadd.f32 1.0, %v5070_v60 }
0x113f   :  { %v4113_v19 = vadd.f32 %v4111_v44, %v4109_v11  ;;  %v4112_v52 = vmul.f32 %v5072_v28, %v5064_v0  ;;  %v5074_v55 = vpop.eup %5073 }
0x1140   :  { %v4110_v26 = vmul.f32 %v5074_v55, %v8155_v22  ;;  %v5076_v8 = vpop.eup %5075 }
0x1141   :  { %5077 = vtanh.f32 %v4113_v19 }
0x1142   :  { %v4114_v27 = vadd.f32 %v4112_v52, %v4110_v26  ;;  %5079 = vrcp.f32 %v4104_v14 }
0x1144   :  { %5081 = vtanh.f32 %v4114_v27 }
0x114b   :  { %v5078_v45 = vpop.eup %5077 }
0x114c   :  { %v4117_v46 = vmul.f32 %v5078_v45, %v5076_v8  ;;  %v5080_v3 = vpop.eup %5079 }
0x114e   :  { %v4119_v12 = vpack.c.bf16 %v4117_v46, %v4117_v46  ;;  %v5082_v41 = vpop.eup %5081 }
0x114f   :  { %v4118_v37 = vmul.f32 %v5082_v41, %v5080_v3 }
0x1150   :  { %4462 = vst [vmem:[%s8190_s4 + $0x3c] sm:$0xf] %v4119_v12 }
0x1151   :  { %v4122_v63 = vpack.c.bf16 %v4118_v37, %v4118_v37 }
0x1153   :  { %4123 = vst [vmem:[%s8191_s5] sm:$0xf] %v4122_v63 }
0x1154   :  { %4132 = vsyncpa [#allocation4], 1 }

</bundles_post_ra>
